<compile_context>
chip_gen: v7x
topology: tpu7x:2x2x1
jax: 0.10.0
libtpu: 0.0.40
codegen_flags: <defaults>
</compile_context>

<pallas_src>
import functools

import jax
import jax.numpy as jnp
from jax.experimental import pallas as pl
from jax.experimental.pallas import tpu as pltpu

F32 = jnp.float32
BN_EPS = 1e-5

_PARALLEL_1D = pltpu.CompilerParams(dimension_semantics=("parallel",))


# ------------------------------ small helpers -------------------------------


def _act(x, kind):
    if kind == "none":
        return x
    if kind == "relu":
        return jnp.maximum(x, 0.0)
    if kind == "leaky":
        return jnp.where(x >= 0.0, x, 0.1 * x)
    if kind == "sigmoid":
        return jax.nn.sigmoid(x)
    raise ValueError(f"unknown act {kind}")


def _round_up(n, m):
    return ((n + m - 1) // m) * m


def _pick_bm(m):
    # Largest row tile that divides M and still leaves >=2 grid steps for
    # pipelining / megacore sharding; otherwise pad to a multiple of 256.
    for cand in (4096, 2048, 1024, 512, 256):
        if m % cand == 0 and m // cand >= 2:
            return cand
    for cand in (4096, 2048, 1024, 512, 256):
        if m % cand == 0:
            return cand
    return 256


def _pad_rows(x2, bm):
    m = x2.shape[0]
    mp = _round_up(m, bm)
    if mp == m:
        return x2
    return jnp.pad(x2, ((0, mp - m), (0, 0)))


def _row_call(kernel, row_arrays, small_arrays, out_cols):
    """Run `kernel` tiled over rows with a parallel 1-D grid.

    row_arrays  : list of (M, Ci) arrays, tiled (bm, Ci) per grid step.
    small_arrays: list of small 2-D arrays (weights / per-channel affines /
                  biases) passed as whole resident blocks.
    out_cols    : list of output channel counts; outputs are (M, c) f32.
    Kernel ref order: row refs..., small refs..., out refs...
    """
    m0 = row_arrays[0].shape[0]
    bm = _pick_bm(m0)
    rows = [_pad_rows(a.astype(F32), bm) for a in row_arrays]
    mp = rows[0].shape[0]
    in_specs = [pl.BlockSpec((bm, a.shape[1]), lambda i: (i, 0)) for a in rows]
    smalls = [a.astype(F32) for a in small_arrays]
    in_specs += [pl.BlockSpec(a.shape, lambda i: (0, 0)) for a in smalls]
    outs = pl.pallas_call(
        kernel,
        out_shape=[jax.ShapeDtypeStruct((mp, c), F32) for c in out_cols],
        grid=(mp // bm,),
        in_specs=in_specs,
        out_specs=[pl.BlockSpec((bm, c), lambda i: (i, 0)) for c in out_cols],
        compiler_params=_PARALLEL_1D,
    )(*rows, *smalls)
    return tuple(o[:m0] for o in outs)


# ------------------------------ Pallas kernels -------------------------------


def _mm_kernel(x_ref, w_ref, o_ref, *, in_act, out_act):
    x = _act(x_ref[...], in_act)
    y = jnp.dot(x, w_ref[...], preferred_element_type=jnp.float32)
    o_ref[...] = _act(y, out_act)


def _mm_bias_kernel(x_ref, w_ref, b_ref, o_ref, *, in_act, out_act):
    x = _act(x_ref[...], in_act)
    y = jnp.dot(x, w_ref[...], preferred_element_type=jnp.float32) + b_ref[...]
    o_ref[...] = _act(y, out_act)


def _expand_gate(ga, cb, nb):
    # (bm, nb) per-branch gate -> (bm, nb*cb) broadcast over each branch's channels
    rows = ga.shape[0]
    return jnp.concatenate(
        [jnp.broadcast_to(ga[:, i:i + 1], (rows, cb)) for i in range(nb)], axis=-1)


def _sa_stats_kernel(un_ref, sc_ref, sh_ref, o_ref, *, cb, nb):
    # Deferred BN+leaky of the conv_n output, then per-branch channel mean & max.
    x = _act(un_ref[...] * sc_ref[...] + sh_ref[...], "leaky")
    cols = []
    for i in range(nb):
        xi = x[:, i * cb:(i + 1) * cb]
        cols.append(jnp.mean(xi, axis=-1, keepdims=True))   # torch order: [mean, max]
        cols.append(jnp.max(xi, axis=-1, keepdims=True))
    o_ref[...] = jnp.concatenate(cols, axis=-1)


def _gru_a_kernel(un_ref, ga_ref, sc_ref, sh_ref, w_ref, xc_ref, u1_ref, *, cb, nb):
    # x_c = ga * x_t ;  u1 = conv_a1(x_c)   (all four GRUs, block-diag weight)
    x_t = _act(un_ref[...] * sc_ref[...] + sh_ref[...], "leaky")
    gate = _expand_gate(ga_ref[...], cb, nb)
    x_c = gate * x_t
    xc_ref[...] = x_c
    u1_ref[...] = jnp.dot(x_c, w_ref[...], preferred_element_type=jnp.float32)


def _gru_b_kernel(u1_ref, xc_ref, ga_ref, sc_ref, sh_ref, w_ref, u2_ref, *, cb, nb):
    # x_b = leaky(BN(u1)) * (1 - ga) ;  u2 = conv_a2(x_b + x_c)
    x_b = _act(u1_ref[...] * sc_ref[...] + sh_ref[...], "leaky")
    gate = _expand_gate(ga_ref[...], cb, nb)
    z = x_b * (1.0 - gate) + xc_ref[...]
    u2_ref[...] = jnp.dot(z, w_ref[...], preferred_element_type=jnp.float32)


def _gru_c_kernel(u2_ref, un_ref, xres_ref, sc2_ref, sh2_ref, scn_ref, shn_ref,
                  w_ref, b_ref, o_ref):
    # x_t' = leaky(BN(u2)) + x_t ;  out = x + sum_i conv_a3_i(x_t'_i)
    x_t = (_act(u2_ref[...] * sc2_ref[...] + sh2_ref[...], "leaky")
           + _act(un_ref[...] * scn_ref[...] + shn_ref[...], "leaky"))
    y = jnp.dot(x_t, w_ref[...], preferred_element_type=jnp.float32) + b_ref[...]
    o_ref[...] = xres_ref[...] + y


# ------------------------------ conv wrappers --------------------------------


def matmul_fused(x2, w_kc, *, bias=None, in_act="none", out_act="none"):
    """(M, K) @ (K, Cout) with optional bias, fused input/output activations."""
    cout = w_kc.shape[1]
    if bias is None:
        kern = functools.partial(_mm_kernel, in_act=in_act, out_act=out_act)
        smalls = [w_kc]
    else:
        kern = functools.partial(_mm_bias_kernel, in_act=in_act, out_act=out_act)
        smalls = [w_kc, bias.reshape(1, cout)]
    (out,) = _row_call(kern, [x2], smalls, [cout])
    return out


def _im2col(x_nhwc, dilation):
    n, h, w, c = x_nhwc.shape
    d = int(dilation)
    xp = jnp.pad(x_nhwc, ((0, 0), (d, d), (d, d), (0, 0)))
    cols = [xp[:, ki * d:ki * d + h, kj * d:kj * d + w, :]
            for ki in range(3) for kj in range(3)]
    return jnp.concatenate(cols, axis=-1).reshape(n * h * w, 9 * c)


def conv3x3(x_nhwc, w_taps, bias, dilation, out_act="none"):
    """3x3 conv, stride 1, padding == dilation, as one K=9*Cin matmul."""
    n, h, w, _ = x_nhwc.shape
    cout = w_taps.shape[1]
    y = matmul_fused(_im2col(x_nhwc, dilation), w_taps, bias=bias, out_act=out_act)
    return y.reshape(n, h, w, cout)


# ------------------------------ module pieces --------------------------------


def bn_scale_shift(y2, eps=BN_EPS):
    # nn.BatchNorm2d training mode (batch stats, weight=1, bias=0) as an affine.
    mean = jnp.mean(y2, axis=0)
    var = jnp.var(y2, axis=0)
    scale = 1.0 / jnp.sqrt(var + eps)
    return scale, -mean * scale


def gru_batched(u_n, scale_n, shift_n, x_res, P, n, h, w, cb, nb=4):
    """All four ConvGRUs at once.  u_n: raw batched conv_n output (M, 4*cb);
    (scale_n, shift_n): its deferred BN; x_res: normalized conv_u output (M, cb).
    Returns (M, cb) = x + y1 + y2 + y3 + y4 (pre out_norm)."""
    m, ctot = u_n.shape
    sc_n = scale_n.reshape(1, ctot)
    sh_n = shift_n.reshape(1, ctot)

    # SpatialAttention x4: channel mean/max -> blocked 3x3 conv (2*nb->nb) -> sigmoid
    (stats,) = _row_call(functools.partial(_sa_stats_kernel, cb=cb, nb=nb),
                         [u_n], [sc_n, sh_n], [2 * nb])
    ga = conv3x3(stats.reshape(n, h, w, 2 * nb), P["sa_w_taps"], None, 1,
                 out_act="sigmoid").reshape(m, nb)

    xc, u1 = _row_call(functools.partial(_gru_a_kernel, cb=cb, nb=nb),
                       [u_n, ga], [sc_n, sh_n, P["a1_w_bd"]], [ctot, ctot])
    sc1, sh1 = bn_scale_shift(u1)
    (u2,) = _row_call(functools.partial(_gru_b_kernel, cb=cb, nb=nb),
                      [u1, xc, ga],
                      [sc1.reshape(1, ctot), sh1.reshape(1, ctot), P["a2_w_bd"]],
                      [ctot])
    sc2, sh2 = bn_scale_shift(u2)
    (out_pre,) = _row_call(_gru_c_kernel,
                           [u2, u_n, x_res],
                           [sc2.reshape(1, ctot), sh2.reshape(1, ctot), sc_n, sh_n,
                            P["a3_w_stack"], P["a3_b_sum"].reshape(1, cb)],
                           [cb])
    return out_pre


def mrg_forward(x_nhwc, P):
    n, h, w, cin = x_nhwc.shape
    cb = P["conv_u_w"].shape[1]                     # mid_channel
    m = n * h * w

    # conv_u: 1x1 (bias=False) -> BN -> leaky.  The normalized x is materialized
    # because the dilated convs need the zero-padded NHWC image.
    u_u = matmul_fused(x_nhwc.reshape(m, cin), P["conv_u_w"])
    sc_u, sh_u = bn_scale_shift(u_u)
    x2 = _act(u_u * sc_u + sh_u, "leaky")
    x_img = x2.reshape(n, h, w, cb)

    # Dilated 3x3 chain: d0 computed once (branches 1 and 3/4); d1 applied to
    # [x, d0] in one batched matmul; d3 applied to d1(d0(x)).
    d0 = conv3x3(x_img, P["d0_w_taps"], P["d0_b"], 1)
    d1_both = conv3x3(jnp.concatenate([x_img, d0], axis=-1),
                      P["d1_w_taps2"], P["d1_b2"], 3)
    d1x, d1d0 = d1_both[..., :cb], d1_both[..., cb:]
    d3 = conv3x3(d1d0, P["d3_w_taps"], P["d3_b"], 5)

    # Shared conv_1x1 + relu for branches 2/3/4 (block-diagonal batched).
    dcat = jnp.concatenate([d1x, d1d0, d3], axis=-1).reshape(m, 3 * cb)
    t234 = matmul_fused(dcat, P["c1x1_w_bd"], bias=P["c1x1_b3"], out_act="relu")

    # conv_n1..n4 batched; branch-1's relu(conv_d0(x)) is folded into the input
    # activation (t2..t4 are already >= 0, so relu is a no-op on them).
    t_all = jnp.concatenate([d0.reshape(m, cb), t234], axis=-1)
    u_n = matmul_fused(t_all, P["n_w_bd"], in_act="relu")
    sc_n, sh_n = bn_scale_shift(u_n)

    out_pre = gru_batched(u_n, sc_n, sh_n, x2, P, n, h, w, cb)

    # out_norm (BatchNorm2d, training mode).
    sc_o, sh_o = bn_scale_shift(out_pre)
    return (out_pre * sc_o + sh_o).reshape(n, h, w, cb)


# ------------------------------- parameters ----------------------------------


def _w1x1(w_oihw):
    # torch (Cout, Cin, 1, 1) -> (Cin, Cout)
    return jnp.transpose(w_oihw[:, :, 0, 0], (1, 0)).astype(F32)


def _wtaps(w_oihw):
    # torch (Cout, Cin, 3, 3) -> (9*Cin, Cout), tap-major / channel-minor
    # (matches _im2col's column layout).
    cout, cin = w_oihw.shape[0], w_oihw.shape[1]
    return jnp.transpose(w_oihw, (2, 3, 1, 0)).reshape(9 * cin, cout).astype(F32)


def _block_diag(mats):
    rows = sum(mm.shape[0] for mm in mats)
    cols = sum(mm.shape[1] for mm in mats)
    out = jnp.zeros((rows, cols), F32)
    r = c = 0
    for mm in mats:
        out = out.at[r:r + mm.shape[0], c:c + mm.shape[1]].set(mm.astype(F32))
        r += mm.shape[0]
        c += mm.shape[1]
    return out


def prepare_params(raw, mid_ch, nb=4):
    cb = mid_ch
    P = {}
    P["conv_u_w"] = _w1x1(raw["conv_u_w"])
    P["d0_w_taps"] = _wtaps(raw["d0_w"])
    P["d0_b"] = raw["d0_b"].astype(F32)
    P["d3_w_taps"] = _wtaps(raw["d3_w"])
    P["d3_b"] = raw["d3_b"].astype(F32)
    # conv_d1 batched over the two inputs [x, d0]:
    t = jnp.transpose(raw["d1_w"], (2, 3, 1, 0)).astype(F32)        # (3,3,cb,cb)
    z = jnp.zeros_like(t)
    comb = jnp.concatenate([jnp.concatenate([t, z], axis=-1),
                            jnp.concatenate([z, t], axis=-1)], axis=2)
    P["d1_w_taps2"] = comb.reshape(9 * 2 * cb, 2 * cb)
    P["d1_b2"] = jnp.tile(raw["d1_b"].astype(F32), 2)
    # shared conv_1x1 for branches 2/3/4:
    w1 = _w1x1(raw["c1x1_w"])
    P["c1x1_w_bd"] = _block_diag([w1, w1, w1])
    P["c1x1_b3"] = jnp.tile(raw["c1x1_b"].astype(F32), 3)
    # conv_n1..n4 / conv_a1 / conv_a2 block-diagonal, conv_a3 stacked (sums branches):
    P["n_w_bd"] = _block_diag([_w1x1(wt) for wt in raw["n_w"]])
    P["a1_w_bd"] = _block_diag([_w1x1(wt) for wt in raw["a1_w"]])
    P["a2_w_bd"] = _block_diag([_w1x1(wt) for wt in raw["a2_w"]])
    P["a3_w_stack"] = jnp.concatenate([_w1x1(wt) for wt in raw["a3_w"]], axis=0)
    P["a3_b_sum"] = jnp.sum(jnp.stack([b.astype(F32) for b in raw["a3_b"]]), axis=0)
    # four SpatialAttention convs as one blocked (2*nb -> nb) 3x3 conv;
    # torch concat order is [mean, max] -> branch i uses input channels (2i, 2i+1).
    wsa = jnp.zeros((3, 3, 2 * nb, nb), F32)
    for i in range(nb):
        wi = jnp.transpose(raw["sa_w"][i], (2, 3, 1, 0)).astype(F32)  # (3,3,2,1)
        wsa = wsa.at[:, :, 2 * i:2 * i + 2, i:i + 1].set(wi)
    P["sa_w_taps"] = wsa.reshape(9 * 2 * nb, nb)
    return P


def init_params(key, in_ch, mid_ch):
    keys = iter(jax.random.split(key, 64))

    def w(shape, scale=0.1):
        return (scale * jax.random.normal(next(keys), shape)).astype(F32)

    def zeros(c):
        return jnp.zeros((c,), F32)

    raw = dict(
        conv_u_w=w((mid_ch, in_ch, 1, 1)),
        d0_w=w((mid_ch, mid_ch, 3, 3)), d0_b=zeros(mid_ch),
        d1_w=w((mid_ch, mid_ch, 3, 3)), d1_b=zeros(mid_ch),
        d3_w=w((mid_ch, mid_ch, 3, 3)), d3_b=zeros(mid_ch),
        c1x1_w=w((mid_ch, mid_ch, 1, 1)), c1x1_b=zeros(mid_ch),
        n_w=[w((mid_ch, mid_ch, 1, 1)) for _ in range(4)],
        sa_w=[w((1, 2, 3, 3)) for _ in range(4)],
        a1_w=[w((mid_ch, mid_ch, 1, 1)) for _ in range(4)],
        a2_w=[w((mid_ch, mid_ch, 1, 1)) for _ in range(4)],
        a3_w=[w((mid_ch, mid_ch, 1, 1)) for _ in range(4)],
        a3_b=[zeros(mid_ch) for _ in range(4)],
    )
    return prepare_params(raw, mid_ch)


# ----------------------------------- main -------------------------------------


if __name__ == "__main__":
    key = jax.random.PRNGKey(0)
    kx, kp = jax.random.split(key)

    N, IN_CH, H, W = 2, 4, 16, 16
    MID_CH = 8

    x_nchw = jax.random.normal(kx, (N, IN_CH, H, W), dtype=F32)     # PyTorch NCHW
    params = init_params(kp, IN_CH, MID_CH)

    x_nhwc = jnp.transpose(x_nchw, (0, 2, 3, 1))                    # kernel layout
    out_nhwc = jax.jit(mrg_forward)(x_nhwc, params)
    out_nchw = jnp.transpose(out_nhwc, (0, 3, 1, 2))                # back to NCHW
    jax.block_until_ready(out_nchw)

    assert out_nchw.shape == (N, MID_CH, H, W), out_nchw.shape
    assert bool(jnp.all(jnp.isfinite(out_nchw)))
    print("KERNEL_OK")
</pallas_src>

<mosaic_0001>
module attributes {stable_mosaic.version = 11 : i64} {
  func.func @_mm_kernel(%arg0: i32, %arg1: memref<256x4xf32, #tpu.memory_space<vmem>>, %arg2: memref<4x8xf32, #tpu.memory_space<vmem>>, %arg3: memref<256x8xf32, #tpu.memory_space<vmem>>) attributes {dimension_semantics = [#tpu.dimension_semantics<parallel>], iteration_bounds = array<i64: 2>, scalar_prefetch = 0 : i64, scratch_operands = 0 : i64, tpu.core_type = #tpu.core_type<tc>, window_params = [{transform_indices = @transform_0, window_bounds = array<i64: 256, 4>}, {pipeline_mode = #tpu.pipeline_mode<synchronous>, transform_indices = @transform_1, window_bounds = array<i64: 4, 8>}, {transform_indices = @transform_2, window_bounds = array<i64: 256, 8>}]} {
    %c0 = arith.constant 0 : index
    %c0_0 = arith.constant 0 : index
    %0 = vector.load %arg1[%c0, %c0_0] : memref<256x4xf32, #tpu.memory_space<vmem>>, vector<256x4xf32>
    %c0_1 = arith.constant 0 : index
    %c0_2 = arith.constant 0 : index
    %1 = vector.load %arg2[%c0_1, %c0_2] : memref<4x8xf32, #tpu.memory_space<vmem>>, vector<4x8xf32>
    %cst = arith.constant dense<0.000000e+00> : vector<256x8xf32>
    %2 = tpu.matmul %0, %1, %cst {dimension_numbers = #tpu.dot_dimension_numbers<[1], [0], [0], [1], [0, 0, 1, 1], [], []>} : vector<256x4xf32>, vector<4x8xf32>, vector<256x8xf32> -> vector<256x8xf32>
    %c0_3 = arith.constant 0 : index
    %c0_4 = arith.constant 0 : index
    %3 = vector.load %arg3[%c0_3, %c0_4] : memref<256x8xf32, #tpu.memory_space<vmem>>, vector<256x8xf32>
    tpu.vector_store %arg3[%c0_3, %c0_4], %2 {strides = array<i32>} : memref<256x8xf32, #tpu.memory_space<vmem>>, vector<256x8xf32>,
    return
  }
  func.func @transform_0(%arg0: i32) -> (i32, i32) {
    %c0_i32 = arith.constant 0 : i32
    %c0_i32_0 = arith.constant 0 : i32
    return %arg0, %c0_i32 : i32, i32
  }
  func.func @transform_1(%arg0: i32) -> (i32, i32) {
    %c0_i32 = arith.constant 0 : i32
    %c0_i32_0 = arith.constant 0 : i32
    %c0_i32_1 = arith.constant 0 : i32
    return %c0_i32, %c0_i32_0 : i32, i32
  }
  func.func @transform_2(%arg0: i32) -> (i32, i32) {
    %c0_i32 = arith.constant 0 : i32
    %c0_i32_0 = arith.constant 0 : i32
    return %arg0, %c0_i32 : i32, i32
  }
}

module attributes {stable_mosaic.version = 11 : i64} {
  func.func @_mm_bias_kernel(%arg0: i32, %arg1: memref<256x72xf32, #tpu.memory_space<vmem>>, %arg2: memref<72x8xf32, #tpu.memory_space<vmem>>, %arg3: memref<1x8xf32, #tpu.memory_space<vmem>>, %arg4: memref<256x8xf32, #tpu.memory_space<vmem>>) attributes {dimension_semantics = [#tpu.dimension_semantics<parallel>], iteration_bounds = array<i64: 2>, scalar_prefetch = 0 : i64, scratch_operands = 0 : i64, tpu.core_type = #tpu.core_type<tc>, window_params = [{transform_indices = @transform_0, window_bounds = array<i64: 256, 72>}, {pipeline_mode = #tpu.pipeline_mode<synchronous>, transform_indices = @transform_1, window_bounds = array<i64: 72, 8>}, {pipeline_mode = #tpu.pipeline_mode<synchronous>, transform_indices = @transform_2, window_bounds = array<i64: 1, 8>}, {transform_indices = @transform_3, window_bounds = array<i64: 256, 8>}]} {
    %c0 = arith.constant 0 : index
    %c0_0 = arith.constant 0 : index
    %0 = vector.load %arg1[%c0, %c0_0] : memref<256x72xf32, #tpu.memory_space<vmem>>, vector<256x72xf32>
    %c0_1 = arith.constant 0 : index
    %c0_2 = arith.constant 0 : index
    %1 = vector.load %arg2[%c0_1, %c0_2] : memref<72x8xf32, #tpu.memory_space<vmem>>, vector<72x8xf32>
    %cst = arith.constant dense<0.000000e+00> : vector<256x8xf32>
    %2 = tpu.matmul %0, %1, %cst {dimension_numbers = #tpu.dot_dimension_numbers<[1], [0], [0], [1], [0, 0, 1, 1], [], []>} : vector<256x72xf32>, vector<72x8xf32>, vector<256x8xf32> -> vector<256x8xf32>
    %c0_3 = arith.constant 0 : index
    %c0_4 = arith.constant 0 : index
    %3 = vector.load %arg3[%c0_3, %c0_4] : memref<1x8xf32, #tpu.memory_space<vmem>>, vector<1x8xf32>
    %4 = vector.broadcast %3 : vector<1x8xf32> to vector<256x8xf32>
    %5 = arith.addf %2, %4 : vector<256x8xf32>
    %c0_5 = arith.constant 0 : index
    %c0_6 = arith.constant 0 : index
    %6 = vector.load %arg4[%c0_5, %c0_6] : memref<256x8xf32, #tpu.memory_space<vmem>>, vector<256x8xf32>
    tpu.vector_store %arg4[%c0_5, %c0_6], %5 {strides = array<i32>} : memref<256x8xf32, #tpu.memory_space<vmem>>, vector<256x8xf32>,
    return
  }
  func.func @transform_0(%arg0: i32) -> (i32, i32) {
    %c0_i32 = arith.constant 0 : i32
    %c0_i32_0 = arith.constant 0 : i32
    return %arg0, %c0_i32 : i32, i32
  }
  func.func @transform_1(%arg0: i32) -> (i32, i32) {
    %c0_i32 = arith.constant 0 : i32
    %c0_i32_0 = arith.constant 0 : i32
    %c0_i32_1 = arith.constant 0 : i32
    return %c0_i32, %c0_i32_0 : i32, i32
  }
  func.func @transform_2(%arg0: i32) -> (i32, i32) {
    %c0_i32 = arith.constant 0 : i32
    %c0_i32_0 = arith.constant 0 : i32
    %c0_i32_1 = arith.constant 0 : i32
    return %c0_i32, %c0_i32_0 : i32, i32
  }
  func.func @transform_3(%arg0: i32) -> (i32, i32) {
    %c0_i32 = arith.constant 0 : i32
    %c0_i32_0 = arith.constant 0 : i32
    return %arg0, %c0_i32 : i32, i32
  }
}

module attributes {stable_mosaic.version = 11 : i64} {
  func.func @_mm_bias_kernel(%arg0: i32, %arg1: memref<256x144xf32, #tpu.memory_space<vmem>>, %arg2: memref<144x16xf32, #tpu.memory_space<vmem>>, %arg3: memref<1x16xf32, #tpu.memory_space<vmem>>, %arg4: memref<256x16xf32, #tpu.memory_space<vmem>>) attributes {dimension_semantics = [#tpu.dimension_semantics<parallel>], iteration_bounds = array<i64: 2>, scalar_prefetch = 0 : i64, scratch_operands = 0 : i64, tpu.core_type = #tpu.core_type<tc>, window_params = [{transform_indices = @transform_0, window_bounds = array<i64: 256, 144>}, {pipeline_mode = #tpu.pipeline_mode<synchronous>, transform_indices = @transform_1, window_bounds = array<i64: 144, 16>}, {pipeline_mode = #tpu.pipeline_mode<synchronous>, transform_indices = @transform_2, window_bounds = array<i64: 1, 16>}, {transform_indices = @transform_3, window_bounds = array<i64: 256, 16>}]} {
    %c0 = arith.constant 0 : index
    %c0_0 = arith.constant 0 : index
    %0 = vector.load %arg1[%c0, %c0_0] : memref<256x144xf32, #tpu.memory_space<vmem>>, vector<256x144xf32>
    %c0_1 = arith.constant 0 : index
    %c0_2 = arith.constant 0 : index
    %1 = vector.load %arg2[%c0_1, %c0_2] : memref<144x16xf32, #tpu.memory_space<vmem>>, vector<144x16xf32>
    %cst = arith.constant dense<0.000000e+00> : vector<256x16xf32>
    %2 = tpu.matmul %0, %1, %cst {dimension_numbers = #tpu.dot_dimension_numbers<[1], [0], [0], [1], [0, 0, 1, 1], [], []>} : vector<256x144xf32>, vector<144x16xf32>, vector<256x16xf32> -> vector<256x16xf32>
    %c0_3 = arith.constant 0 : index
    %c0_4 = arith.constant 0 : index
    %3 = vector.load %arg3[%c0_3, %c0_4] : memref<1x16xf32, #tpu.memory_space<vmem>>, vector<1x16xf32>
    %4 = vector.broadcast %3 : vector<1x16xf32> to vector<256x16xf32>
    %5 = arith.addf %2, %4 : vector<256x16xf32>
    %c0_5 = arith.constant 0 : index
    %c0_6 = arith.constant 0 : index
    %6 = vector.load %arg4[%c0_5, %c0_6] : memref<256x16xf32, #tpu.memory_space<vmem>>, vector<256x16xf32>
    tpu.vector_store %arg4[%c0_5, %c0_6], %5 {strides = array<i32>} : memref<256x16xf32, #tpu.memory_space<vmem>>, vector<256x16xf32>,
    return
  }
  func.func @transform_0(%arg0: i32) -> (i32, i32) {
    %c0_i32 = arith.constant 0 : i32
    %c0_i32_0 = arith.constant 0 : i32
    return %arg0, %c0_i32 : i32, i32
  }
  func.func @transform_1(%arg0: i32) -> (i32, i32) {
    %c0_i32 = arith.constant 0 : i32
    %c0_i32_0 = arith.constant 0 : i32
    %c0_i32_1 = arith.constant 0 : i32
    return %c0_i32, %c0_i32_0 : i32, i32
  }
  func.func @transform_2(%arg0: i32) -> (i32, i32) {
    %c0_i32 = arith.constant 0 : i32
    %c0_i32_0 = arith.constant 0 : i32
    %c0_i32_1 = arith.constant 0 : i32
    return %c0_i32, %c0_i32_0 : i32, i32
  }
  func.func @transform_3(%arg0: i32) -> (i32, i32) {
    %c0_i32 = arith.constant 0 : i32
    %c0_i32_0 = arith.constant 0 : i32
    return %arg0, %c0_i32 : i32, i32
  }
}

module attributes {stable_mosaic.version = 11 : i64} {
  func.func @_mm_bias_kernel(%arg0: i32, %arg1: memref<256x24xf32, #tpu.memory_space<vmem>>, %arg2: memref<24x24xf32, #tpu.memory_space<vmem>>, %arg3: memref<1x24xf32, #tpu.memory_space<vmem>>, %arg4: memref<256x24xf32, #tpu.memory_space<vmem>>) attributes {dimension_semantics = [#tpu.dimension_semantics<parallel>], iteration_bounds = array<i64: 2>, scalar_prefetch = 0 : i64, scratch_operands = 0 : i64, tpu.core_type = #tpu.core_type<tc>, window_params = [{transform_indices = @transform_0, window_bounds = array<i64: 256, 24>}, {pipeline_mode = #tpu.pipeline_mode<synchronous>, transform_indices = @transform_1, window_bounds = array<i64: 24, 24>}, {pipeline_mode = #tpu.pipeline_mode<synchronous>, transform_indices = @transform_2, window_bounds = array<i64: 1, 24>}, {transform_indices = @transform_3, window_bounds = array<i64: 256, 24>}]} {
    %c0 = arith.constant 0 : index
    %c0_0 = arith.constant 0 : index
    %0 = vector.load %arg1[%c0, %c0_0] : memref<256x24xf32, #tpu.memory_space<vmem>>, vector<256x24xf32>
    %c0_1 = arith.constant 0 : index
    %c0_2 = arith.constant 0 : index
    %1 = vector.load %arg2[%c0_1, %c0_2] : memref<24x24xf32, #tpu.memory_space<vmem>>, vector<24x24xf32>
    %cst = arith.constant dense<0.000000e+00> : vector<256x24xf32>
    %2 = tpu.matmul %0, %1, %cst {dimension_numbers = #tpu.dot_dimension_numbers<[1], [0], [0], [1], [0, 0, 1, 1], [], []>} : vector<256x24xf32>, vector<24x24xf32>, vector<256x24xf32> -> vector<256x24xf32>
    %c0_3 = arith.constant 0 : index
    %c0_4 = arith.constant 0 : index
    %3 = vector.load %arg3[%c0_3, %c0_4] : memref<1x24xf32, #tpu.memory_space<vmem>>, vector<1x24xf32>
    %4 = vector.broadcast %3 : vector<1x24xf32> to vector<256x24xf32>
    %5 = arith.addf %2, %4 : vector<256x24xf32>
    %cst_5 = arith.constant 0.000000e+00 : f32
    %6 = vector.broadcast %cst_5 : f32 to vector<256x24xf32>
    %7 = arith.maximumf %5, %6 : vector<256x24xf32>
    %c0_6 = arith.constant 0 : index
    %c0_7 = arith.constant 0 : index
    %8 = vector.load %arg4[%c0_6, %c0_7] : memref<256x24xf32, #tpu.memory_space<vmem>>, vector<256x24xf32>
    tpu.vector_store %arg4[%c0_6, %c0_7], %7 {strides = array<i32>} : memref<256x24xf32, #tpu.memory_space<vmem>>, vector<256x24xf32>,
    return
  }
  func.func @transform_0(%arg0: i32) -> (i32, i32) {
    %c0_i32 = arith.constant 0 : i32
    %c0_i32_0 = arith.constant 0 : i32
    return %arg0, %c0_i32 : i32, i32
  }
  func.func @transform_1(%arg0: i32) -> (i32, i32) {
    %c0_i32 = arith.constant 0 : i32
    %c0_i32_0 = arith.constant 0 : i32
    %c0_i32_1 = arith.constant 0 : i32
    return %c0_i32, %c0_i32_0 : i32, i32
  }
  func.func @transform_2(%arg0: i32) -> (i32, i32) {
    %c0_i32 = arith.constant 0 : i32
    %c0_i32_0 = arith.constant 0 : i32
    %c0_i32_1 = arith.constant 0 : i32
    return %c0_i32, %c0_i32_0 : i32, i32
  }
  func.func @transform_3(%arg0: i32) -> (i32, i32) {
    %c0_i32 = arith.constant 0 : i32
    %c0_i32_0 = arith.constant 0 : i32
    return %arg0, %c0_i32 : i32, i32
  }
}

module attributes {stable_mosaic.version = 11 : i64} {
  func.func @_mm_kernel(%arg0: i32, %arg1: memref<256x32xf32, #tpu.memory_space<vmem>>, %arg2: memref<32x32xf32, #tpu.memory_space<vmem>>, %arg3: memref<256x32xf32, #tpu.memory_space<vmem>>) attributes {dimension_semantics = [#tpu.dimension_semantics<parallel>], iteration_bounds = array<i64: 2>, scalar_prefetch = 0 : i64, scratch_operands = 0 : i64, tpu.core_type = #tpu.core_type<tc>, window_params = [{transform_indices = @transform_0, window_bounds = array<i64: 256, 32>}, {pipeline_mode = #tpu.pipeline_mode<synchronous>, transform_indices = @transform_1, window_bounds = array<i64: 32, 32>}, {transform_indices = @transform_2, window_bounds = array<i64: 256, 32>}]} {
    %c0 = arith.constant 0 : index
    %c0_0 = arith.constant 0 : index
    %0 = vector.load %arg1[%c0, %c0_0] : memref<256x32xf32, #tpu.memory_space<vmem>>, vector<256x32xf32>
    %cst = arith.constant 0.000000e+00 : f32
    %1 = vector.broadcast %cst : f32 to vector<256x32xf32>
    %2 = arith.maximumf %0, %1 : vector<256x32xf32>
    %c0_1 = arith.constant 0 : index
    %c0_2 = arith.constant 0 : index
    %3 = vector.load %arg2[%c0_1, %c0_2] : memref<32x32xf32, #tpu.memory_space<vmem>>, vector<32x32xf32>
    %cst_3 = arith.constant dense<0.000000e+00> : vector<256x32xf32>
    %4 = tpu.matmul %2, %3, %cst_3 {dimension_numbers = #tpu.dot_dimension_numbers<[1], [0], [0], [1], [0, 0, 1, 1], [], []>} : vector<256x32xf32>, vector<32x32xf32>, vector<256x32xf32> -> vector<256x32xf32>
    %c0_4 = arith.constant 0 : index
    %c0_5 = arith.constant 0 : index
    %5 = vector.load %arg3[%c0_4, %c0_5] : memref<256x32xf32, #tpu.memory_space<vmem>>, vector<256x32xf32>
    tpu.vector_store %arg3[%c0_4, %c0_5], %4 {strides = array<i32>} : memref<256x32xf32, #tpu.memory_space<vmem>>, vector<256x32xf32>,
    return
  }
  func.func @transform_0(%arg0: i32) -> (i32, i32) {
    %c0_i32 = arith.constant 0 : i32
    %c0_i32_0 = arith.constant 0 : i32
    return %arg0, %c0_i32 : i32, i32
  }
  func.func @transform_1(%arg0: i32) -> (i32, i32) {
    %c0_i32 = arith.constant 0 : i32
    %c0_i32_0 = arith.constant 0 : i32
    %c0_i32_1 = arith.constant 0 : i32
    return %c0_i32, %c0_i32_0 : i32, i32
  }
  func.func @transform_2(%arg0: i32) -> (i32, i32) {
    %c0_i32 = arith.constant 0 : i32
    %c0_i32_0 = arith.constant 0 : i32
    return %arg0, %c0_i32 : i32, i32
  }
}

module attributes {stable_mosaic.version = 11 : i64} {
  func.func @_sa_stats_kernel(%arg0: i32, %arg1: memref<256x32xf32, #tpu.memory_space<vmem>>, %arg2: memref<1x32xf32, #tpu.memory_space<vmem>>, %arg3: memref<1x32xf32, #tpu.memory_space<vmem>>, %arg4: memref<256x8xf32, #tpu.memory_space<vmem>>) attributes {dimension_semantics = [#tpu.dimension_semantics<parallel>], iteration_bounds = array<i64: 2>, scalar_prefetch = 0 : i64, scratch_operands = 0 : i64, tpu.core_type = #tpu.core_type<tc>, window_params = [{transform_indices = @transform_0, window_bounds = array<i64: 256, 32>}, {pipeline_mode = #tpu.pipeline_mode<synchronous>, transform_indices = @transform_1, window_bounds = array<i64: 1, 32>}, {pipeline_mode = #tpu.pipeline_mode<synchronous>, transform_indices = @transform_2, window_bounds = array<i64: 1, 32>}, {transform_indices = @transform_3, window_bounds = array<i64: 256, 8>}]} {
    %c0 = arith.constant 0 : index
    %c0_0 = arith.constant 0 : index
    %0 = vector.load %arg1[%c0, %c0_0] : memref<256x32xf32, #tpu.memory_space<vmem>>, vector<256x32xf32>
    %c0_1 = arith.constant 0 : index
    %c0_2 = arith.constant 0 : index
    %1 = vector.load %arg2[%c0_1, %c0_2] : memref<1x32xf32, #tpu.memory_space<vmem>>, vector<1x32xf32>
    %2 = vector.broadcast %1 : vector<1x32xf32> to vector<256x32xf32>
    %3 = arith.mulf %0, %2 : vector<256x32xf32>
    %c0_3 = arith.constant 0 : index
    %c0_4 = arith.constant 0 : index
    %4 = vector.load %arg3[%c0_3, %c0_4] : memref<1x32xf32, #tpu.memory_space<vmem>>, vector<1x32xf32>
    %5 = vector.broadcast %4 : vector<1x32xf32> to vector<256x32xf32>
    %6 = arith.addf %3, %5 : vector<256x32xf32>
    %cst = arith.constant 0.000000e+00 : f32
    %7 = vector.broadcast %cst : f32 to vector<256x32xf32>
    %8 = arith.cmpf oge, %6, %7 : vector<256x32xf32>
    %cst_5 = arith.constant 1.000000e-01 : f32
    %9 = vector.broadcast %cst_5 : f32 to vector<256x32xf32>
    %10 = arith.mulf %9, %6 : vector<256x32xf32>
    %11 = arith.select %8, %6, %10 : vector<256x32xi1>, vector<256x32xf32>
    %12 = vector.extract_strided_slice %11 {offsets = [0, 0], sizes = [256, 8], strides = [1, 1]} : vector<256x32xf32> to vector<256x8xf32>
    %cst_6 = arith.constant dense<0.000000e+00> : vector<256xf32>
    %13 = vector.multi_reduction <add>, %12, %cst_6 [1] : vector<256x8xf32> to vector<256xf32>
    %14 = vector.shape_cast %13 : vector<256xf32> to vector<256x1xf32>
    %cst_7 = arith.constant 8.000000e+00 : f32
    %15 = vector.broadcast %cst_7 : f32 to vector<256x1xf32>
    %16 = arith.divf %14, %15 : vector<256x1xf32>
    %cst_8 = arith.constant dense<0xFF800000> : vector<256xf32>
    %17 = vector.multi_reduction <maximumf>, %12, %cst_8 [1] : vector<256x8xf32> to vector<256xf32>
    %18 = vector.shape_cast %17 : vector<256xf32> to vector<256x1xf32>
    %19 = vector.extract_strided_slice %11 {offsets = [0, 8], sizes = [256, 8], strides = [1, 1]} : vector<256x32xf32> to vector<256x8xf32>
    %cst_9 = arith.constant dense<0.000000e+00> : vector<256xf32>
    %20 = vector.multi_reduction <add>, %19, %cst_9 [1] : vector<256x8xf32> to vector<256xf32>
    %21 = vector.shape_cast %20 : vector<256xf32> to vector<256x1xf32>
    %cst_10 = arith.constant 8.000000e+00 : f32
    %22 = vector.broadcast %cst_10 : f32 to vector<256x1xf32>
    %23 = arith.divf %21, %22 : vector<256x1xf32>
    %cst_11 = arith.constant dense<0xFF800000> : vector<256xf32>
    %24 = vector.multi_reduction <maximumf>, %19, %cst_11 [1] : vector<256x8xf32> to vector<256xf32>
    %25 = vector.shape_cast %24 : vector<256xf32> to vector<256x1xf32>
    %26 = vector.extract_strided_slice %11 {offsets = [0, 16], sizes = [256, 8], strides = [1, 1]} : vector<256x32xf32> to vector<256x8xf32>
    %cst_12 = arith.constant dense<0.000000e+00> : vector<256xf32>
    %27 = vector.multi_reduction <add>, %26, %cst_12 [1] : vector<256x8xf32> to vector<256xf32>
    %28 = vector.shape_cast %27 : vector<256xf32> to vector<256x1xf32>
    %cst_13 = arith.constant 8.000000e+00 : f32
    %29 = vector.broadcast %cst_13 : f32 to vector<256x1xf32>
    %30 = arith.divf %28, %29 : vector<256x1xf32>
    %cst_14 = arith.constant dense<0xFF800000> : vector<256xf32>
    %31 = vector.multi_reduction <maximumf>, %26, %cst_14 [1] : vector<256x8xf32> to vector<256xf32>
    %32 = vector.shape_cast %31 : vector<256xf32> to vector<256x1xf32>
    %33 = vector.extract_strided_slice %11 {offsets = [0, 24], sizes = [256, 8], strides = [1, 1]} : vector<256x32xf32> to vector<256x8xf32>
    %cst_15 = arith.constant dense<0.000000e+00> : vector<256xf32>
    %34 = vector.multi_reduction <add>, %33, %cst_15 [1] : vector<256x8xf32> to vector<256xf32>
    %35 = vector.shape_cast %34 : vector<256xf32> to vector<256x1xf32>
    %cst_16 = arith.constant 8.000000e+00 : f32
    %36 = vector.broadcast %cst_16 : f32 to vector<256x1xf32>
    %37 = arith.divf %35, %36 : vector<256x1xf32>
    %cst_17 = arith.constant dense<0xFF800000> : vector<256xf32>
    %38 = vector.multi_reduction <maximumf>, %33, %cst_17 [1] : vector<256x8xf32> to vector<256xf32>
    %39 = vector.shape_cast %38 : vector<256xf32> to vector<256x1xf32>
    %40 = tpu.concatenate %16, %18, %23, %25, %30, %32, %37, %39 in 1 : vector<256x1xf32>, vector<256x1xf32>, vector<256x1xf32>, vector<256x1xf32>, vector<256x1xf32>, vector<256x1xf32>, vector<256x1xf32>, vector<256x1xf32> -> vector<256x8xf32>
    %c0_18 = arith.constant 0 : index
    %c0_19 = arith.constant 0 : index
    %41 = vector.load %arg4[%c0_18, %c0_19] : memref<256x8xf32, #tpu.memory_space<vmem>>, vector<256x8xf32>
    tpu.vector_store %arg4[%c0_18, %c0_19], %40 {strides = array<i32>} : memref<256x8xf32, #tpu.memory_space<vmem>>, vector<256x8xf32>,
    return
  }
  func.func @transform_0(%arg0: i32) -> (i32, i32) {
    %c0_i32 = arith.constant 0 : i32
    %c0_i32_0 = arith.constant 0 : i32
    return %arg0, %c0_i32 : i32, i32
  }
  func.func @transform_1(%arg0: i32) -> (i32, i32) {
    %c0_i32 = arith.constant 0 : i32
    %c0_i32_0 = arith.constant 0 : i32
    %c0_i32_1 = arith.constant 0 : i32
    return %c0_i32, %c0_i32_0 : i32, i32
  }
  func.func @transform_2(%arg0: i32) -> (i32, i32) {
    %c0_i32 = arith.constant 0 : i32
    %c0_i32_0 = arith.constant 0 : i32
    %c0_i32_1 = arith.constant 0 : i32
    return %c0_i32, %c0_i32_0 : i32, i32
  }
  func.func @transform_3(%arg0: i32) -> (i32, i32) {
    %c0_i32 = arith.constant 0 : i32
    %c0_i32_0 = arith.constant 0 : i32
    return %arg0, %c0_i32 : i32, i32
  }
}

module attributes {stable_mosaic.version = 11 : i64} {
  func.func @_mm_kernel(%arg0: i32, %arg1: memref<256x72xf32, #tpu.memory_space<vmem>>, %arg2: memref<72x4xf32, #tpu.memory_space<vmem>>, %arg3: memref<256x4xf32, #tpu.memory_space<vmem>>) attributes {dimension_semantics = [#tpu.dimension_semantics<parallel>], iteration_bounds = array<i64: 2>, scalar_prefetch = 0 : i64, scratch_operands = 0 : i64, tpu.core_type = #tpu.core_type<tc>, window_params = [{transform_indices = @transform_0, window_bounds = array<i64: 256, 72>}, {pipeline_mode = #tpu.pipeline_mode<synchronous>, transform_indices = @transform_1, window_bounds = array<i64: 72, 4>}, {transform_indices = @transform_2, window_bounds = array<i64: 256, 4>}]} {
    %c0 = arith.constant 0 : index
    %c0_0 = arith.constant 0 : index
    %0 = vector.load %arg1[%c0, %c0_0] : memref<256x72xf32, #tpu.memory_space<vmem>>, vector<256x72xf32>
    %c0_1 = arith.constant 0 : index
    %c0_2 = arith.constant 0 : index
    %1 = vector.load %arg2[%c0_1, %c0_2] : memref<72x4xf32, #tpu.memory_space<vmem>>, vector<72x4xf32>
    %cst = arith.constant dense<0.000000e+00> : vector<256x4xf32>
    %2 = tpu.matmul %0, %1, %cst {dimension_numbers = #tpu.dot_dimension_numbers<[1], [0], [0], [1], [0, 0, 1, 1], [], []>} : vector<256x72xf32>, vector<72x4xf32>, vector<256x4xf32> -> vector<256x4xf32>
    %3 = arith.negf %2 : vector<256x4xf32>
    %4 = math.exp %3 : vector<256x4xf32>
    %cst_3 = arith.constant 1.000000e+00 : f32
    %5 = vector.broadcast %cst_3 : f32 to vector<256x4xf32>
    %6 = arith.addf %5, %4 : vector<256x4xf32>
    %7 = arith.divf %5, %6 : vector<256x4xf32>
    %c0_4 = arith.constant 0 : index
    %c0_5 = arith.constant 0 : index
    %8 = vector.load %arg3[%c0_4, %c0_5] : memref<256x4xf32, #tpu.memory_space<vmem>>, vector<256x4xf32>
    tpu.vector_store %arg3[%c0_4, %c0_5], %7 {strides = array<i32>} : memref<256x4xf32, #tpu.memory_space<vmem>>, vector<256x4xf32>,
    return
  }
  func.func @transform_0(%arg0: i32) -> (i32, i32) {
    %c0_i32 = arith.constant 0 : i32
    %c0_i32_0 = arith.constant 0 : i32
    return %arg0, %c0_i32 : i32, i32
  }
  func.func @transform_1(%arg0: i32) -> (i32, i32) {
    %c0_i32 = arith.constant 0 : i32
    %c0_i32_0 = arith.constant 0 : i32
    %c0_i32_1 = arith.constant 0 : i32
    return %c0_i32, %c0_i32_0 : i32, i32
  }
  func.func @transform_2(%arg0: i32) -> (i32, i32) {
    %c0_i32 = arith.constant 0 : i32
    %c0_i32_0 = arith.constant 0 : i32
    return %arg0, %c0_i32 : i32, i32
  }
}

module attributes {stable_mosaic.version = 11 : i64} {
  func.func @_gru_a_kernel(%arg0: i32, %arg1: memref<256x32xf32, #tpu.memory_space<vmem>>, %arg2: memref<256x4xf32, #tpu.memory_space<vmem>>, %arg3: memref<1x32xf32, #tpu.memory_space<vmem>>, %arg4: memref<1x32xf32, #tpu.memory_space<vmem>>, %arg5: memref<32x32xf32, #tpu.memory_space<vmem>>, %arg6: memref<256x32xf32, #tpu.memory_space<vmem>>, %arg7: memref<256x32xf32, #tpu.memory_space<vmem>>) attributes {dimension_semantics = [#tpu.dimension_semantics<parallel>], iteration_bounds = array<i64: 2>, scalar_prefetch = 0 : i64, scratch_operands = 0 : i64, tpu.core_type = #tpu.core_type<tc>, window_params = [{transform_indices = @transform_0, window_bounds = array<i64: 256, 32>}, {transform_indices = @transform_1, window_bounds = array<i64: 256, 4>}, {pipeline_mode = #tpu.pipeline_mode<synchronous>, transform_indices = @transform_2, window_bounds = array<i64: 1, 32>}, {pipeline_mode = #tpu.pipeline_mode<synchronous>, transform_indices = @transform_3, window_bounds = array<i64: 1, 32>}, {pipeline_mode = #tpu.pipeline_mode<synchronous>, transform_indices = @transform_4, window_bounds = array<i64: 32, 32>}, {transform_indices = @transform_5, window_bounds = array<i64: 256, 32>}, {transform_indices = @transform_6, window_bounds = array<i64: 256, 32>}]} {
    %c0 = arith.constant 0 : index
    %c0_0 = arith.constant 0 : index
    %0 = vector.load %arg1[%c0, %c0_0] : memref<256x32xf32, #tpu.memory_space<vmem>>, vector<256x32xf32>
    %c0_1 = arith.constant 0 : index
    %c0_2 = arith.constant 0 : index
    %1 = vector.load %arg3[%c0_1, %c0_2] : memref<1x32xf32, #tpu.memory_space<vmem>>, vector<1x32xf32>
    %2 = vector.broadcast %1 : vector<1x32xf32> to vector<256x32xf32>
    %3 = arith.mulf %0, %2 : vector<256x32xf32>
    %c0_3 = arith.constant 0 : index
    %c0_4 = arith.constant 0 : index
    %4 = vector.load %arg4[%c0_3, %c0_4] : memref<1x32xf32, #tpu.memory_space<vmem>>, vector<1x32xf32>
    %5 = vector.broadcast %4 : vector<1x32xf32> to vector<256x32xf32>
    %6 = arith.addf %3, %5 : vector<256x32xf32>
    %cst = arith.constant 0.000000e+00 : f32
    %7 = vector.broadcast %cst : f32 to vector<256x32xf32>
    %8 = arith.cmpf oge, %6, %7 : vector<256x32xf32>
    %cst_5 = arith.constant 1.000000e-01 : f32
    %9 = vector.broadcast %cst_5 : f32 to vector<256x32xf32>
    %10 = arith.mulf %9, %6 : vector<256x32xf32>
    %11 = arith.select %8, %6, %10 : vector<256x32xi1>, vector<256x32xf32>
    %c0_6 = arith.constant 0 : index
    %c0_7 = arith.constant 0 : index
    %12 = vector.load %arg2[%c0_6, %c0_7] : memref<256x4xf32, #tpu.memory_space<vmem>>, vector<256x4xf32>
    %13 = vector.extract_strided_slice %12 {offsets = [0, 0], sizes = [256, 1], strides = [1, 1]} : vector<256x4xf32> to vector<256x1xf32>
    %14 = vector.shape_cast %13 : vector<256x1xf32> to vector<256x1xf32>
    %15 = vector.broadcast %14 : vector<256x1xf32> to vector<256x8xf32>
    %16 = vector.extract_strided_slice %12 {offsets = [0, 1], sizes = [256, 1], strides = [1, 1]} : vector<256x4xf32> to vector<256x1xf32>
    %17 = vector.shape_cast %16 : vector<256x1xf32> to vector<256x1xf32>
    %18 = vector.broadcast %17 : vector<256x1xf32> to vector<256x8xf32>
    %19 = vector.extract_strided_slice %12 {offsets = [0, 2], sizes = [256, 1], strides = [1, 1]} : vector<256x4xf32> to vector<256x1xf32>
    %20 = vector.shape_cast %19 : vector<256x1xf32> to vector<256x1xf32>
    %21 = vector.broadcast %20 : vector<256x1xf32> to vector<256x8xf32>
    %22 = vector.extract_strided_slice %12 {offsets = [0, 3], sizes = [256, 1], strides = [1, 1]} : vector<256x4xf32> to vector<256x1xf32>
    %23 = vector.shape_cast %22 : vector<256x1xf32> to vector<256x1xf32>
    %24 = vector.broadcast %23 : vector<256x1xf32> to vector<256x8xf32>
    %25 = tpu.concatenate %15, %18, %21, %24 in 1 : vector<256x8xf32>, vector<256x8xf32>, vector<256x8xf32>, vector<256x8xf32> -> vector<256x32xf32>
    %26 = arith.mulf %25, %11 : vector<256x32xf32>
    %c0_8 = arith.constant 0 : index
    %c0_9 = arith.constant 0 : index
    %27 = vector.load %arg6[%c0_8, %c0_9] : memref<256x32xf32, #tpu.memory_space<vmem>>, vector<256x32xf32>
    tpu.vector_store %arg6[%c0_8, %c0_9], %26 {strides = array<i32>} : memref<256x32xf32, #tpu.memory_space<vmem>>, vector<256x32xf32>,
    %c0_10 = arith.constant 0 : index
    %c0_11 = arith.constant 0 : index
    %28 = vector.load %arg5[%c0_10, %c0_11] : memref<32x32xf32, #tpu.memory_space<vmem>>, vector<32x32xf32>
    %cst_12 = arith.constant dense<0.000000e+00> : vector<256x32xf32>
    %29 = tpu.matmul %26, %28, %cst_12 {dimension_numbers = #tpu.dot_dimension_numbers<[1], [0], [0], [1], [0, 0, 1, 1], [], []>} : vector<256x32xf32>, vector<32x32xf32>, vector<256x32xf32> -> vector<256x32xf32>
    %c0_13 = arith.constant 0 : index
    %c0_14 = arith.constant 0 : index
    %30 = vector.load %arg7[%c0_13, %c0_14] : memref<256x32xf32, #tpu.memory_space<vmem>>, vector<256x32xf32>
    tpu.vector_store %arg7[%c0_13, %c0_14], %29 {strides = array<i32>} : memref<256x32xf32, #tpu.memory_space<vmem>>, vector<256x32xf32>,
    return
  }
  func.func @transform_0(%arg0: i32) -> (i32, i32) {
    %c0_i32 = arith.constant 0 : i32
    %c0_i32_0 = arith.constant 0 : i32
    return %arg0, %c0_i32 : i32, i32
  }
  func.func @transform_1(%arg0: i32) -> (i32, i32) {
    %c0_i32 = arith.constant 0 : i32
    %c0_i32_0 = arith.constant 0 : i32
    return %arg0, %c0_i32 : i32, i32
  }
  func.func @transform_2(%arg0: i32) -> (i32, i32) {
    %c0_i32 = arith.constant 0 : i32
    %c0_i32_0 = arith.constant 0 : i32
    %c0_i32_1 = arith.constant 0 : i32
    return %c0_i32, %c0_i32_0 : i32, i32
  }
  func.func @transform_3(%arg0: i32) -> (i32, i32) {
    %c0_i32 = arith.constant 0 : i32
    %c0_i32_0 = arith.constant 0 : i32
    %c0_i32_1 = arith.constant 0 : i32
    return %c0_i32, %c0_i32_0 : i32, i32
  }
  func.func @transform_4(%arg0: i32) -> (i32, i32) {
    %c0_i32 = arith.constant 0 : i32
    %c0_i32_0 = arith.constant 0 : i32
    %c0_i32_1 = arith.constant 0 : i32
    return %c0_i32, %c0_i32_0 : i32, i32
  }
  func.func @transform_5(%arg0: i32) -> (i32, i32) {
    %c0_i32 = arith.constant 0 : i32
    %c0_i32_0 = arith.constant 0 : i32
    return %arg0, %c0_i32 : i32, i32
  }
  func.func @transform_6(%arg0: i32) -> (i32, i32) {
    %c0_i32 = arith.constant 0 : i32
    %c0_i32_0 = arith.constant 0 : i32
    return %arg0, %c0_i32 : i32, i32
  }
}

module attributes {stable_mosaic.version = 11 : i64} {
  func.func @_gru_b_kernel(%arg0: i32, %arg1: memref<256x32xf32, #tpu.memory_space<vmem>>, %arg2: memref<256x32xf32, #tpu.memory_space<vmem>>, %arg3: memref<256x4xf32, #tpu.memory_space<vmem>>, %arg4: memref<1x32xf32, #tpu.memory_space<vmem>>, %arg5: memref<1x32xf32, #tpu.memory_space<vmem>>, %arg6: memref<32x32xf32, #tpu.memory_space<vmem>>, %arg7: memref<256x32xf32, #tpu.memory_space<vmem>>) attributes {dimension_semantics = [#tpu.dimension_semantics<parallel>], iteration_bounds = array<i64: 2>, scalar_prefetch = 0 : i64, scratch_operands = 0 : i64, tpu.core_type = #tpu.core_type<tc>, window_params = [{transform_indices = @transform_0, window_bounds = array<i64: 256, 32>}, {transform_indices = @transform_1, window_bounds = array<i64: 256, 32>}, {transform_indices = @transform_2, window_bounds = array<i64: 256, 4>}, {pipeline_mode = #tpu.pipeline_mode<synchronous>, transform_indices = @transform_3, window_bounds = array<i64: 1, 32>}, {pipeline_mode = #tpu.pipeline_mode<synchronous>, transform_indices = @transform_4, window_bounds = array<i64: 1, 32>}, {pipeline_mode = #tpu.pipeline_mode<synchronous>, transform_indices = @transform_5, window_bounds = array<i64: 32, 32>}, {transform_indices = @transform_6, window_bounds = array<i64: 256, 32>}]} {
    %c0 = arith.constant 0 : index
    %c0_0 = arith.constant 0 : index
    %0 = vector.load %arg1[%c0, %c0_0] : memref<256x32xf32, #tpu.memory_space<vmem>>, vector<256x32xf32>
    %c0_1 = arith.constant 0 : index
    %c0_2 = arith.constant 0 : index
    %1 = vector.load %arg4[%c0_1, %c0_2] : memref<1x32xf32, #tpu.memory_space<vmem>>, vector<1x32xf32>
    %2 = vector.broadcast %1 : vector<1x32xf32> to vector<256x32xf32>
    %3 = arith.mulf %0, %2 : vector<256x32xf32>
    %c0_3 = arith.constant 0 : index
    %c0_4 = arith.constant 0 : index
    %4 = vector.load %arg5[%c0_3, %c0_4] : memref<1x32xf32, #tpu.memory_space<vmem>>, vector<1x32xf32>
    %5 = vector.broadcast %4 : vector<1x32xf32> to vector<256x32xf32>
    %6 = arith.addf %3, %5 : vector<256x32xf32>
    %cst = arith.constant 0.000000e+00 : f32
    %7 = vector.broadcast %cst : f32 to vector<256x32xf32>
    %8 = arith.cmpf oge, %6, %7 : vector<256x32xf32>
    %cst_5 = arith.constant 1.000000e-01 : f32
    %9 = vector.broadcast %cst_5 : f32 to vector<256x32xf32>
    %10 = arith.mulf %9, %6 : vector<256x32xf32>
    %11 = arith.select %8, %6, %10 : vector<256x32xi1>, vector<256x32xf32>
    %c0_6 = arith.constant 0 : index
    %c0_7 = arith.constant 0 : index
    %12 = vector.load %arg3[%c0_6, %c0_7] : memref<256x4xf32, #tpu.memory_space<vmem>>, vector<256x4xf32>
    %13 = vector.extract_strided_slice %12 {offsets = [0, 0], sizes = [256, 1], strides = [1, 1]} : vector<256x4xf32> to vector<256x1xf32>
    %14 = vector.shape_cast %13 : vector<256x1xf32> to vector<256x1xf32>
    %15 = vector.broadcast %14 : vector<256x1xf32> to vector<256x8xf32>
    %16 = vector.extract_strided_slice %12 {offsets = [0, 1], sizes = [256, 1], strides = [1, 1]} : vector<256x4xf32> to vector<256x1xf32>
    %17 = vector.shape_cast %16 : vector<256x1xf32> to vector<256x1xf32>
    %18 = vector.broadcast %17 : vector<256x1xf32> to vector<256x8xf32>
    %19 = vector.extract_strided_slice %12 {offsets = [0, 2], sizes = [256, 1], strides = [1, 1]} : vector<256x4xf32> to vector<256x1xf32>
    %20 = vector.shape_cast %19 : vector<256x1xf32> to vector<256x1xf32>
    %21 = vector.broadcast %20 : vector<256x1xf32> to vector<256x8xf32>
    %22 = vector.extract_strided_slice %12 {offsets = [0, 3], sizes = [256, 1], strides = [1, 1]} : vector<256x4xf32> to vector<256x1xf32>
    %23 = vector.shape_cast %22 : vector<256x1xf32> to vector<256x1xf32>
    %24 = vector.broadcast %23 : vector<256x1xf32> to vector<256x8xf32>
    %25 = tpu.concatenate %15, %18, %21, %24 in 1 : vector<256x8xf32>, vector<256x8xf32>, vector<256x8xf32>, vector<256x8xf32> -> vector<256x32xf32>
    %cst_8 = arith.constant 1.000000e+00 : f32
    %26 = vector.broadcast %cst_8 : f32 to vector<256x32xf32>
    %27 = arith.subf %26, %25 : vector<256x32xf32>
    %28 = arith.mulf %11, %27 : vector<256x32xf32>
    %c0_9 = arith.constant 0 : index
    %c0_10 = arith.constant 0 : index
    %29 = vector.load %arg2[%c0_9, %c0_10] : memref<256x32xf32, #tpu.memory_space<vmem>>, vector<256x32xf32>
    %30 = arith.addf %28, %29 : vector<256x32xf32>
    %c0_11 = arith.constant 0 : index
    %c0_12 = arith.constant 0 : index
    %31 = vector.load %arg6[%c0_11, %c0_12] : memref<32x32xf32, #tpu.memory_space<vmem>>, vector<32x32xf32>
    %cst_13 = arith.constant dense<0.000000e+00> : vector<256x32xf32>
    %32 = tpu.matmul %30, %31, %cst_13 {dimension_numbers = #tpu.dot_dimension_numbers<[1], [0], [0], [1], [0, 0, 1, 1], [], []>} : vector<256x32xf32>, vector<32x32xf32>, vector<256x32xf32> -> vector<256x32xf32>
    %c0_14 = arith.constant 0 : index
    %c0_15 = arith.constant 0 : index
    %33 = vector.load %arg7[%c0_14, %c0_15] : memref<256x32xf32, #tpu.memory_space<vmem>>, vector<256x32xf32>
    tpu.vector_store %arg7[%c0_14, %c0_15], %32 {strides = array<i32>} : memref<256x32xf32, #tpu.memory_space<vmem>>, vector<256x32xf32>,
    return
  }
  func.func @transform_0(%arg0: i32) -> (i32, i32) {
    %c0_i32 = arith.constant 0 : i32
    %c0_i32_0 = arith.constant 0 : i32
    return %arg0, %c0_i32 : i32, i32
  }
  func.func @transform_1(%arg0: i32) -> (i32, i32) {
    %c0_i32 = arith.constant 0 : i32
    %c0_i32_0 = arith.constant 0 : i32
    return %arg0, %c0_i32 : i32, i32
  }
  func.func @transform_2(%arg0: i32) -> (i32, i32) {
    %c0_i32 = arith.constant 0 : i32
    %c0_i32_0 = arith.constant 0 : i32
    return %arg0, %c0_i32 : i32, i32
  }
  func.func @transform_3(%arg0: i32) -> (i32, i32) {
    %c0_i32 = arith.constant 0 : i32
    %c0_i32_0 = arith.constant 0 : i32
    %c0_i32_1 = arith.constant 0 : i32
    return %c0_i32, %c0_i32_0 : i32, i32
  }
  func.func @transform_4(%arg0: i32) -> (i32, i32) {
    %c0_i32 = arith.constant 0 : i32
    %c0_i32_0 = arith.constant 0 : i32
    %c0_i32_1 = arith.constant 0 : i32
    return %c0_i32, %c0_i32_0 : i32, i32
  }
  func.func @transform_5(%arg0: i32) -> (i32, i32) {
    %c0_i32 = arith.constant 0 : i32
    %c0_i32_0 = arith.constant 0 : i32
    %c0_i32_1 = arith.constant 0 : i32
    return %c0_i32, %c0_i32_0 : i32, i32
  }
  func.func @transform_6(%arg0: i32) -> (i32, i32) {
    %c0_i32 = arith.constant 0 : i32
    %c0_i32_0 = arith.constant 0 : i32
    return %arg0, %c0_i32 : i32, i32
  }
}

module attributes {stable_mosaic.version = 11 : i64} {
  func.func @_gru_c_kernel(%arg0: i32, %arg1: memref<256x32xf32, #tpu.memory_space<vmem>>, %arg2: memref<256x32xf32, #tpu.memory_space<vmem>>, %arg3: memref<256x8xf32, #tpu.memory_space<vmem>>, %arg4: memref<1x32xf32, #tpu.memory_space<vmem>>, %arg5: memref<1x32xf32, #tpu.memory_space<vmem>>, %arg6: memref<1x32xf32, #tpu.memory_space<vmem>>, %arg7: memref<1x32xf32, #tpu.memory_space<vmem>>, %arg8: memref<32x8xf32, #tpu.memory_space<vmem>>, %arg9: memref<1x8xf32, #tpu.memory_space<vmem>>, %arg10: memref<256x8xf32, #tpu.memory_space<vmem>>) attributes {dimension_semantics = [#tpu.dimension_semantics<parallel>], iteration_bounds = array<i64: 2>, scalar_prefetch = 0 : i64, scratch_operands = 0 : i64, tpu.core_type = #tpu.core_type<tc>, window_params = [{transform_indices = @transform_0, window_bounds = array<i64: 256, 32>}, {transform_indices = @transform_1, window_bounds = array<i64: 256, 32>}, {transform_indices = @transform_2, window_bounds = array<i64: 256, 8>}, {pipeline_mode = #tpu.pipeline_mode<synchronous>, transform_indices = @transform_3, window_bounds = array<i64: 1, 32>}, {pipeline_mode = #tpu.pipeline_mode<synchronous>, transform_indices = @transform_4, window_bounds = array<i64: 1, 32>}, {pipeline_mode = #tpu.pipeline_mode<synchronous>, transform_indices = @transform_5, window_bounds = array<i64: 1, 32>}, {pipeline_mode = #tpu.pipeline_mode<synchronous>, transform_indices = @transform_6, window_bounds = array<i64: 1, 32>}, {pipeline_mode = #tpu.pipeline_mode<synchronous>, transform_indices = @transform_7, window_bounds = array<i64: 32, 8>}, {pipeline_mode = #tpu.pipeline_mode<synchronous>, transform_indices = @transform_8, window_bounds = array<i64: 1, 8>}, {transform_indices = @transform_9, window_bounds = array<i64: 256, 8>}]} {
    %c0 = arith.constant 0 : index
    %c0_0 = arith.constant 0 : index
    %0 = vector.load %arg1[%c0, %c0_0] : memref<256x32xf32, #tpu.memory_space<vmem>>, vector<256x32xf32>
    %c0_1 = arith.constant 0 : index
    %c0_2 = arith.constant 0 : index
    %1 = vector.load %arg4[%c0_1, %c0_2] : memref<1x32xf32, #tpu.memory_space<vmem>>, vector<1x32xf32>
    %2 = vector.broadcast %1 : vector<1x32xf32> to vector<256x32xf32>
    %3 = arith.mulf %0, %2 : vector<256x32xf32>
    %c0_3 = arith.constant 0 : index
    %c0_4 = arith.constant 0 : index
    %4 = vector.load %arg5[%c0_3, %c0_4] : memref<1x32xf32, #tpu.memory_space<vmem>>, vector<1x32xf32>
    %5 = vector.broadcast %4 : vector<1x32xf32> to vector<256x32xf32>
    %6 = arith.addf %3, %5 : vector<256x32xf32>
    %cst = arith.constant 0.000000e+00 : f32
    %7 = vector.broadcast %cst : f32 to vector<256x32xf32>
    %8 = arith.cmpf oge, %6, %7 : vector<256x32xf32>
    %cst_5 = arith.constant 1.000000e-01 : f32
    %9 = vector.broadcast %cst_5 : f32 to vector<256x32xf32>
    %10 = arith.mulf %9, %6 : vector<256x32xf32>
    %11 = arith.select %8, %6, %10 : vector<256x32xi1>, vector<256x32xf32>
    %c0_6 = arith.constant 0 : index
    %c0_7 = arith.constant 0 : index
    %12 = vector.load %arg2[%c0_6, %c0_7] : memref<256x32xf32, #tpu.memory_space<vmem>>, vector<256x32xf32>
    %c0_8 = arith.constant 0 : index
    %c0_9 = arith.constant 0 : index
    %13 = vector.load %arg6[%c0_8, %c0_9] : memref<1x32xf32, #tpu.memory_space<vmem>>, vector<1x32xf32>
    %14 = vector.broadcast %13 : vector<1x32xf32> to vector<256x32xf32>
    %15 = arith.mulf %12, %14 : vector<256x32xf32>
    %c0_10 = arith.constant 0 : index
    %c0_11 = arith.constant 0 : index
    %16 = vector.load %arg7[%c0_10, %c0_11] : memref<1x32xf32, #tpu.memory_space<vmem>>, vector<1x32xf32>
    %17 = vector.broadcast %16 : vector<1x32xf32> to vector<256x32xf32>
    %18 = arith.addf %15, %17 : vector<256x32xf32>
    %cst_12 = arith.constant 0.000000e+00 : f32
    %19 = vector.broadcast %cst_12 : f32 to vector<256x32xf32>
    %20 = arith.cmpf oge, %18, %19 : vector<256x32xf32>
    %cst_13 = arith.constant 1.000000e-01 : f32
    %21 = vector.broadcast %cst_13 : f32 to vector<256x32xf32>
    %22 = arith.mulf %21, %18 : vector<256x32xf32>
    %23 = arith.select %20, %18, %22 : vector<256x32xi1>, vector<256x32xf32>
    %24 = arith.addf %11, %23 : vector<256x32xf32>
    %c0_14 = arith.constant 0 : index
    %c0_15 = arith.constant 0 : index
    %25 = vector.load %arg8[%c0_14, %c0_15] : memref<32x8xf32, #tpu.memory_space<vmem>>, vector<32x8xf32>
    %cst_16 = arith.constant dense<0.000000e+00> : vector<256x8xf32>
    %26 = tpu.matmul %24, %25, %cst_16 {dimension_numbers = #tpu.dot_dimension_numbers<[1], [0], [0], [1], [0, 0, 1, 1], [], []>} : vector<256x32xf32>, vector<32x8xf32>, vector<256x8xf32> -> vector<256x8xf32>
    %c0_17 = arith.constant 0 : index
    %c0_18 = arith.constant 0 : index
    %27 = vector.load %arg9[%c0_17, %c0_18] : memref<1x8xf32, #tpu.memory_space<vmem>>, vector<1x8xf32>
    %28 = vector.broadcast %27 : vector<1x8xf32> to vector<256x8xf32>
    %29 = arith.addf %26, %28 : vector<256x8xf32>
    %c0_19 = arith.constant 0 : index
    %c0_20 = arith.constant 0 : index
    %30 = vector.load %arg3[%c0_19, %c0_20] : memref<256x8xf32, #tpu.memory_space<vmem>>, vector<256x8xf32>
    %31 = arith.addf %30, %29 : vector<256x8xf32>
    %c0_21 = arith.constant 0 : index
    %c0_22 = arith.constant 0 : index
    %32 = vector.load %arg10[%c0_21, %c0_22] : memref<256x8xf32, #tpu.memory_space<vmem>>, vector<256x8xf32>
    tpu.vector_store %arg10[%c0_21, %c0_22], %31 {strides = array<i32>} : memref<256x8xf32, #tpu.memory_space<vmem>>, vector<256x8xf32>,
    return
  }
  func.func @transform_0(%arg0: i32) -> (i32, i32) {
    %c0_i32 = arith.constant 0 : i32
    %c0_i32_0 = arith.constant 0 : i32
    return %arg0, %c0_i32 : i32, i32
  }
  func.func @transform_1(%arg0: i32) -> (i32, i32) {
    %c0_i32 = arith.constant 0 : i32
    %c0_i32_0 = arith.constant 0 : i32
    return %arg0, %c0_i32 : i32, i32
  }
  func.func @transform_2(%arg0: i32) -> (i32, i32) {
    %c0_i32 = arith.constant 0 : i32
    %c0_i32_0 = arith.constant 0 : i32
    return %arg0, %c0_i32 : i32, i32
  }
  func.func @transform_3(%arg0: i32) -> (i32, i32) {
    %c0_i32 = arith.constant 0 : i32
    %c0_i32_0 = arith.constant 0 : i32
    %c0_i32_1 = arith.constant 0 : i32
    return %c0_i32, %c0_i32_0 : i32, i32
  }
  func.func @transform_4(%arg0: i32) -> (i32, i32) {
    %c0_i32 = arith.constant 0 : i32
    %c0_i32_0 = arith.constant 0 : i32
    %c0_i32_1 = arith.constant 0 : i32
    return %c0_i32, %c0_i32_0 : i32, i32
  }
  func.func @transform_5(%arg0: i32) -> (i32, i32) {
    %c0_i32 = arith.constant 0 : i32
    %c0_i32_0 = arith.constant 0 : i32
    %c0_i32_1 = arith.constant 0 : i32
    return %c0_i32, %c0_i32_0 : i32, i32
  }
  func.func @transform_6(%arg0: i32) -> (i32, i32) {
    %c0_i32 = arith.constant 0 : i32
    %c0_i32_0 = arith.constant 0 : i32
    %c0_i32_1 = arith.constant 0 : i32
    return %c0_i32, %c0_i32_0 : i32, i32
  }
  func.func @transform_7(%arg0: i32) -> (i32, i32) {
    %c0_i32 = arith.constant 0 : i32
    %c0_i32_0 = arith.constant 0 : i32
    %c0_i32_1 = arith.constant 0 : i32
    return %c0_i32, %c0_i32_0 : i32, i32
  }
  func.func @transform_8(%arg0: i32) -> (i32, i32) {
    %c0_i32 = arith.constant 0 : i32
    %c0_i32_0 = arith.constant 0 : i32
    %c0_i32_1 = arith.constant 0 : i32
    return %c0_i32, %c0_i32_0 : i32, i32
  }
  func.func @transform_9(%arg0: i32) -> (i32, i32) {
    %c0_i32 = arith.constant 0 : i32
    %c0_i32_0 = arith.constant 0 : i32
    return %arg0, %c0_i32 : i32, i32
  }
}

</mosaic_0001>

<bundles_post_ra>
// kernel: mrg_forward.11
= control target key start
LH: loop header
LB: loop body
LE: loop exit
PB: predicated region body
PF: predicated region fallthrough
CT: control target
= control target key end

     0   :  { %s755_s9 = smov 0   ;;  %s914_s0 = inlined_call_operand.vmem [shape: f32[512,4], index: 0, kind: input, shape index: {}]   ;;  %s915_s1 = inlined_call_operand.vmem [shape: f32[4,8], index: 1, kind: input, shape index: {}]   ;;  %s916_s2 = inlined_call_operand.vmem [shape: f32[512,8], index: 2, kind: output, shape index: {}]  }
   0x1 LB: > { %s595_s10 = sadd.s32 4294967295, %s738_s9   ;;  %p599_p0 = scmp.ge.s32.totalorder %s738_s9, 1  ;;  %s738_s9 = sphi %s755_s9, %s12_s9  }
   0x2   : > { %p113_p1 = scmp.lt.s32.totalorder %s738_s9, 3 }
   0x4   : > { %p114_p2 = pnand %p599_p0, %p113_p1 }
   0x5   : > { %v179_v0 = vld [vmem:[%s915_s1] sm:$0xf] (!%p114_p2)  ;;  %vm277_vm0 = vcmask (!%p114_p2), 1043456   ;;  %s600_s13 = sshll.u32 (!%p114_p2), %s595_s10, 5  ;;  %vm180_vm1 = vcmask (!%p114_p2), 31744   ;;  %vm506_vm2 = vcmask (!%p114_p2), 64512  }
   0x6   : > { %117 = sbr.rel (%p114_p2) target bundleno = 261 (0x105), region = 28  ;;  %672 = vmatprep.subr.msk.mxu0 (!%p114_p2), %vm277_vm0, %v179_v0  ;;  %722 = vmatprep.subr.msk.mxu1 (!%p114_p2), %vm277_vm0, %v179_v0  ;;  %p136_p3 = scmp.lt.s32.totalorder (!%p114_p2), %s600_s13, 63 }
   0x7   : > { %673 = vmatpush3.msk.msra.mxu0 (!%p114_p2), %vm277_vm0, %v179_v0  ;;  %723 = vmatpush3.msk.msra.mxu1 (!%p114_p2), %vm277_vm0, %v179_v0 }
   0xd   : > { %s918_s13 = smov (!%p136_p3, %s600_s13), 63 }
   0xe   : > { %s601_s14 = sshll.u32 %s918_s13, 3 }
   0xf   : > { %s774_s17 = scalar_lea.vmem %s914_s0, %s601_s14  ;;  %s845_s20 = scalar_lea.vmem %s916_s2, %s601_s14 }
  0x10   : > { %v147_v1 = vld [vmem:[%s774_s17] sm:$0xff]  ;;  %v148_v3 = vld [vmem:[%s774_s17 + $0x8] sm:$0xff]  ;;  %v149_v5 = vld [vmem:[%s774_s17 + $0x10] sm:$0xff] }
  0x11   : > { %v163_v2 = vld [vmem:[%s774_s17 + $0x80] sm:$0xff]  ;;  %674 = vmatprep.mubr.msk.f32.mxu0 %vm180_vm1, %v147_v1  ;;  %v164_v4 = vld [vmem:[%s774_s17 + $0x88] sm:$0xff]  ;;  %v165_v6 = vld [vmem:[%s774_s17 + $0x90] sm:$0xff] }
  0x12   : > { %698 = vmatprep.mubr.msk.f32.mxu1 %vm180_vm1, %v163_v2  ;;  %675 = vmatmul.mubr.msk.f32.vlgmr.msra.gmra.mrb[0].mxu0 %vm180_vm1, %v148_v3  ;;  %v150_v7 = vld [vmem:[%s774_s17 + $0x18] sm:$0xff]  ;;  %v151_v9 = vld [vmem:[%s774_s17 + $0x20] sm:$0xff]  ;;  %v152_v11 = vld [vmem:[%s774_s17 + $0x28] sm:$0xff] }
  0x13   : > { %699 = vmatmul.mubr.msk.f32.vlgmr.msra.gmra.mrb[0].mxu1 %vm180_vm1, %v164_v4  ;;  %677 = vmatprep.mubr.msk.f32.mxu0 %vm180_vm1, %v149_v5  ;;  %v166_v8 = vld [vmem:[%s774_s17 + $0x98] sm:$0xff]  ;;  %v167_v10 = vld [vmem:[%s774_s17 + $0xa0] sm:$0xff]  ;;  %v168_v12 = vld [vmem:[%s774_s17 + $0xa8] sm:$0xff] }
  0x14   : > { %701 = vmatprep.mubr.msk.f32.mxu1 %vm180_vm1, %v165_v6  ;;  %v153_v13 = vld [vmem:[%s774_s17 + $0x30] sm:$0xff]  ;;  %v154_v15 = vld [vmem:[%s774_s17 + $0x38] sm:$0xff]  ;;  %v155_v17 = vld [vmem:[%s774_s17 + $0x40] sm:$0xff] }
  0x15   : > { %v169_v14 = vld [vmem:[%s774_s17 + $0xb0] sm:$0xff]  ;;  %v170_v16 = vld [vmem:[%s774_s17 + $0xb8] sm:$0xff]  ;;  %v171_v18 = vld [vmem:[%s774_s17 + $0xc0] sm:$0xff] }
  0x16   : > { %678 = vmatmul.mubr.msk.f32.gmra.mrb[2].mxu0 %vm180_vm1, %v150_v7  ;;  %v156_v19 = vld [vmem:[%s774_s17 + $0x48] sm:$0xff]  ;;  %v157_v21 = vld [vmem:[%s774_s17 + $0x50] sm:$0xff]  ;;  %v158_v23 = vld [vmem:[%s774_s17 + $0x58] sm:$0xff] }
  0x17   : > { %702 = vmatmul.mubr.msk.f32.gmra.mrb[2].mxu1 %vm180_vm1, %v166_v8  ;;  %680 = vmatprep.mubr.msk.f32.mxu0 %vm180_vm1, %v151_v9  ;;  %v172_v20 = vld [vmem:[%s774_s17 + $0xc8] sm:$0xff]  ;;  %v173_v22 = vld [vmem:[%s774_s17 + $0xd0] sm:$0xff]  ;;  %v174_v24 = vld [vmem:[%s774_s17 + $0xd8] sm:$0xff] }
  0x18   : > { %704 = vmatprep.mubr.msk.f32.mxu1 %vm180_vm1, %v167_v10  ;;  %v159_v25 = vld [vmem:[%s774_s17 + $0x60] sm:$0xff]  ;;  %v160_v27 = vld [vmem:[%s774_s17 + $0x68] sm:$0xff]  ;;  %v161_v29 = vld [vmem:[%s774_s17 + $0x70] sm:$0xff] }
  0x19   : > { %v175_v26 = vld [vmem:[%s774_s17 + $0xe0] sm:$0xff]  ;;  %v176_v28 = vld [vmem:[%s774_s17 + $0xe8] sm:$0xff]  ;;  %v177_v30 = vld [vmem:[%s774_s17 + $0xf0] sm:$0xff] }
  0x1a   : > { %681 = vmatmul.mubr.msk.f32.gmra.mrb[4].mxu0 %vm180_vm1, %v152_v11  ;;  %v162_v31 = vld [vmem:[%s774_s17 + $0x78] sm:$0xff] }
  0x1b   : > { %705 = vmatmul.mubr.msk.f32.gmra.mrb[4].mxu1 %vm180_vm1, %v168_v12  ;;  %683 = vmatprep.mubr.msk.f32.mxu0 %vm180_vm1, %v153_v13  ;;  %v178_v32 = vld [vmem:[%s774_s17 + $0xf8] sm:$0xff] }
  0x1c   : > { %707 = vmatprep.mubr.msk.f32.mxu1 %vm180_vm1, %v169_v14 }
  0x1e   : > { %684 = vmatmul.mubr.msk.f32.gmra.mrb[6].mxu0 %vm180_vm1, %v154_v15 }
  0x1f   : > { %708 = vmatmul.mubr.msk.f32.gmra.mrb[6].mxu1 %vm180_vm1, %v170_v16  ;;  %686 = vmatprep.mubr.msk.f32.mxu0 %vm180_vm1, %v155_v17 }
  0x20   : > { %710 = vmatprep.mubr.msk.f32.mxu1 %vm180_vm1, %v171_v18 }
  0x22   : > { %687 = vmatmul.mubr.msk.f32.gmra.mrb[8].mxu0 %vm180_vm1, %v156_v19 }
  0x23   : > { %711 = vmatmul.mubr.msk.f32.gmra.mrb[8].mxu1 %vm180_vm1, %v172_v20  ;;  %689 = vmatprep.mubr.msk.f32.mxu0 %vm180_vm1, %v157_v21 }
  0x24   : > { %713 = vmatprep.mubr.msk.f32.mxu1 %vm180_vm1, %v173_v22 }
  0x26   : > { %690 = vmatmul.mubr.msk.f32.gmra.mrb[10].mxu0 %vm180_vm1, %v158_v23 }
  0x27   : > { %714 = vmatmul.mubr.msk.f32.gmra.mrb[10].mxu1 %vm180_vm1, %v174_v24  ;;  %692 = vmatprep.mubr.msk.f32.mxu0 %vm180_vm1, %v159_v25 }
  0x28   : > { %716 = vmatprep.mubr.msk.f32.mxu1 %vm180_vm1, %v175_v26 }
  0x2a   : > { %693 = vmatmul.mubr.msk.f32.gmra.mrb[12].mxu0 %vm180_vm1, %v160_v27 }
  0x2b   : > { %717 = vmatmul.mubr.msk.f32.gmra.mrb[12].mxu1 %vm180_vm1, %v176_v28  ;;  %695 = vmatprep.mubr.msk.f32.mxu0 %vm180_vm1, %v161_v29 }
  0x2c   : > { %719 = vmatprep.mubr.msk.f32.mxu1 %vm180_vm1, %v177_v30 }
  0x2e   : > { %696 = vmatmul.mubr.msk.f32.gmra.mrb[14].mxu0 %vm180_vm1, %v162_v31 }
  0x2f   : > { %720 = vmatmul.mubr.msk.f32.gmra.mrb[14].mxu1 %vm180_vm1, %v178_v32 }
  0xe5   : > { %v676_v33 = vpop.f32.mrb[0].mxu0 }
  0xe6   : > { %v700_v34 = vpop.f32.mrb[0].mxu1  ;;  %508 = vst.msk [vmem:[%s845_s20 + $0x8] sm:$0xff] %vm506_vm2, %v676_v33  ;;  %v347_v35 = vpop.f32.mrb[1].mxu0 }
  0xe7   : > { %524 = vst.msk [vmem:[%s845_s20 + $0x88] sm:$0xff] %vm506_vm2, %v700_v34  ;;  %v427_v36 = vpop.f32.mrb[1].mxu1  ;;  %507 = vst.msk [vmem:[%s845_s20] sm:$0xff] %vm506_vm2, %v347_v35 }
  0xe8   : > { %523 = vst.msk [vmem:[%s845_s20 + $0x80] sm:$0xff] %vm506_vm2, %v427_v36 }
  0xe9   : > { %v679_v37 = vpop.f32.mrb[2].mxu0 }
  0xea   : > { %v703_v38 = vpop.f32.mrb[2].mxu1  ;;  %510 = vst.msk [vmem:[%s845_s20 + $0x18] sm:$0xff] %vm506_vm2, %v679_v37  ;;  %v357_v39 = vpop.f32.mrb[3].mxu0 }
  0xeb   : > { %526 = vst.msk [vmem:[%s845_s20 + $0x98] sm:$0xff] %vm506_vm2, %v703_v38  ;;  %v437_v40 = vpop.f32.mrb[3].mxu1  ;;  %509 = vst.msk [vmem:[%s845_s20 + $0x10] sm:$0xff] %vm506_vm2, %v357_v39 }
  0xec   : > { %525 = vst.msk [vmem:[%s845_s20 + $0x90] sm:$0xff] %vm506_vm2, %v437_v40 }
  0xed   : > { %v682_v41 = vpop.f32.mrb[4].mxu0 }
  0xee   : > { %v706_v42 = vpop.f32.mrb[4].mxu1  ;;  %512 = vst.msk [vmem:[%s845_s20 + $0x28] sm:$0xff] %vm506_vm2, %v682_v41  ;;  %v367_v43 = vpop.f32.mrb[5].mxu0 }
  0xef   : > { %528 = vst.msk [vmem:[%s845_s20 + $0xa8] sm:$0xff] %vm506_vm2, %v706_v42  ;;  %v447_v44 = vpop.f32.mrb[5].mxu1  ;;  %511 = vst.msk [vmem:[%s845_s20 + $0x20] sm:$0xff] %vm506_vm2, %v367_v43 }
  0xf0   : > { %527 = vst.msk [vmem:[%s845_s20 + $0xa0] sm:$0xff] %vm506_vm2, %v447_v44 }
  0xf1   : > { %v685_v45 = vpop.f32.mrb[6].mxu0 }
  0xf2   : > { %v709_v46 = vpop.f32.mrb[6].mxu1  ;;  %514 = vst.msk [vmem:[%s845_s20 + $0x38] sm:$0xff] %vm506_vm2, %v685_v45  ;;  %v377_v47 = vpop.f32.mrb[7].mxu0 }
  0xf3   : > { %530 = vst.msk [vmem:[%s845_s20 + $0xb8] sm:$0xff] %vm506_vm2, %v709_v46  ;;  %v457_v48 = vpop.f32.mrb[7].mxu1  ;;  %513 = vst.msk [vmem:[%s845_s20 + $0x30] sm:$0xff] %vm506_vm2, %v377_v47 }
  0xf4   : > { %529 = vst.msk [vmem:[%s845_s20 + $0xb0] sm:$0xff] %vm506_vm2, %v457_v48 }
  0xf5   : > { %v688_v49 = vpop.f32.mrb[8].mxu0 }
  0xf6   : > { %v712_v50 = vpop.f32.mrb[8].mxu1  ;;  %516 = vst.msk [vmem:[%s845_s20 + $0x48] sm:$0xff] %vm506_vm2, %v688_v49  ;;  %v387_v51 = vpop.f32.mrb[9].mxu0 }
  0xf7   : > { %532 = vst.msk [vmem:[%s845_s20 + $0xc8] sm:$0xff] %vm506_vm2, %v712_v50  ;;  %v467_v52 = vpop.f32.mrb[9].mxu1  ;;  %515 = vst.msk [vmem:[%s845_s20 + $0x40] sm:$0xff] %vm506_vm2, %v387_v51 }
  0xf8   : > { %531 = vst.msk [vmem:[%s845_s20 + $0xc0] sm:$0xff] %vm506_vm2, %v467_v52 }
  0xf9   : > { %v691_v53 = vpop.f32.mrb[10].mxu0 }
  0xfa   : > { %v715_v54 = vpop.f32.mrb[10].mxu1  ;;  %518 = vst.msk [vmem:[%s845_s20 + $0x58] sm:$0xff] %vm506_vm2, %v691_v53  ;;  %v397_v55 = vpop.f32.mrb[11].mxu0 }
  0xfb   : > { %534 = vst.msk [vmem:[%s845_s20 + $0xd8] sm:$0xff] %vm506_vm2, %v715_v54  ;;  %v477_v56 = vpop.f32.mrb[11].mxu1  ;;  %517 = vst.msk [vmem:[%s845_s20 + $0x50] sm:$0xff] %vm506_vm2, %v397_v55 }
  0xfc   : > { %533 = vst.msk [vmem:[%s845_s20 + $0xd0] sm:$0xff] %vm506_vm2, %v477_v56 }
  0xfd   : > { %v694_v57 = vpop.f32.mrb[12].mxu0 }
  0xfe   : > { %v718_v58 = vpop.f32.mrb[12].mxu1  ;;  %520 = vst.msk [vmem:[%s845_s20 + $0x68] sm:$0xff] %vm506_vm2, %v694_v57  ;;  %v407_v59 = vpop.f32.mrb[13].mxu0 }
  0xff   : > { %536 = vst.msk [vmem:[%s845_s20 + $0xe8] sm:$0xff] %vm506_vm2, %v718_v58  ;;  %v487_v60 = vpop.f32.mrb[13].mxu1  ;;  %519 = vst.msk [vmem:[%s845_s20 + $0x60] sm:$0xff] %vm506_vm2, %v407_v59 }
 0x100   : > { %535 = vst.msk [vmem:[%s845_s20 + $0xe0] sm:$0xff] %vm506_vm2, %v487_v60 }
 0x101   : > { %v697_v61 = vpop.f32.mrb[14].mxu0 }
 0x102   : > { %v721_v62 = vpop.f32.mrb[14].mxu1  ;;  %522 = vst.msk [vmem:[%s845_s20 + $0x78] sm:$0xff] %vm506_vm2, %v697_v61  ;;  %v417_v63 = vpop.f32.mrb[15].mxu0 }
 0x103   : > { %538 = vst.msk [vmem:[%s845_s20 + $0xf8] sm:$0xff] %vm506_vm2, %v721_v62  ;;  %v497_v0 = vpop.f32.mrb[15].mxu1  ;;  %521 = vst.msk [vmem:[%s845_s20 + $0x70] sm:$0xff] %vm506_vm2, %v417_v63 }
 0x104   : > { %537 = vst.msk [vmem:[%s845_s20 + $0xf0] sm:$0xff] %vm506_vm2, %v497_v0 }
 0x105 PF: > { %s12_s9 = sadd.s32 1, %s738_s9  }
 0x106   : > { %p9_p4 = scmp.ge.s32.totalorder %s12_s9, 4  }
 0x108   :  { %11 = sbr.rel (!%p9_p4) target bundleno = 1 (0x1), region = 58 }

// kernel: mrg_forward.12
= control target key start
LH: loop header
LB: loop body
LE: loop exit
PB: predicated region body
PF: predicated region fallthrough
CT: control target
= control target key end

     0   :  { %s846_s12 = smov 0   ;;  %s1066_s0 = inlined_call_operand.vmem [shape: f32[512,72], index: 0, kind: input, shape index: {}]   ;;  %s1067_s1 = inlined_call_operand.vmem [shape: f32[72,8], index: 1, kind: input, shape index: {}]   ;;  %s1068_s2 = inlined_call_operand.vmem [shape: f32[1,8], index: 2, kind: input, shape index: {}]   ;;  %s1069_s3 = inlined_call_operand.vmem [shape: f32[512,8], index: 3, kind: output, shape index: {}]  }
   0x1 LB: > { %s633_s13 = sadd.s32 4294967295, %s824_s12   ;;  %p637_p0 = scmp.ge.s32.totalorder %s824_s12, 1  ;;  %s824_s12 = sphi %s846_s12, %s13_s12  }
   0x2   : > { %p138_p1 = scmp.lt.s32.totalorder %s824_s12, 3 }
   0x4   : > { %p139_p2 = pnand %p637_p0, %p138_p1 }
   0x5   : > { %v206_v0 = vld [vmem:[%s1067_s1] sm:$0xff] (!%p139_p2)  ;;  %v207_v1 = vld [vmem:[%s1067_s1 + $0x8] sm:$0xff] (!%p139_p2)  ;;  %v208_v2 = vld [vmem:[%s1067_s1 + $0x10] sm:$0xff] (!%p139_p2)  ;;  %s638_s20 = sshll.u32 (!%p139_p2), %s633_s13, 5  ;;  %vm222_vm0 = vcmask (!%p139_p2), 588800   ;;  %vm544_vm1 = vcmask (!%p139_p2), 64512  }
   0x6   : > { %142 = sbr.rel (%p139_p2) target bundleno = 271 (0x10f), region = 32  ;;  %v784_v3 = vpack.c.bf16 (!%p139_p2), %v207_v1, %v206_v0  ;;  %v209_v4 = vld [vmem:[%s1067_s1 + $0x18] sm:$0xff] (!%p139_p2)  ;;  %p163_p3 = scmp.lt.s32.totalorder (!%p139_p2), %s638_s20, 63  ;;  %v210_v6 = vld [vmem:[%s1067_s1 + $0x20] sm:$0xff] (!%p139_p2)  ;;  %v211_v7 = vld [vmem:[%s1067_s1 + $0x28] sm:$0xff] (!%p139_p2) }
   0x7   : > { %v788_v5 = vpack.c.bf16 (!%p139_p2), %v209_v4, %v208_v2  ;;  %v792_v8 = vpack.c.bf16 (!%p139_p2), %v211_v7, %v210_v6  ;;  %v212_v9 = vld [vmem:[%s1067_s1 + $0x30] sm:$0xff] (!%p139_p2)  ;;  %v213_v10 = vld [vmem:[%s1067_s1 + $0x38] sm:$0xff] (!%p139_p2)  ;;  %v214_v14 = vld [vmem:[%s1067_s1 + $0x40] sm:$0xff] (!%p139_p2) }
   0x8   : > { %785 = vmatprep.subr.bf16.mxu0 (!%p139_p2), %v784_v3  ;;  %800 = vmatprep.subr.bf16.mxu1 (!%p139_p2), %v784_v3  ;;  %v796_v13 = vpack.c.bf16 (!%p139_p2), %v213_v10, %v212_v9  ;;  %v958_v45 = vld [vmem:[%s1068_s2] ss:$0 sm:$0xff] (!%p139_p2) }
   0x9   : > { %787 = vmatpush3.bf16.msra.mxu0 (!%p139_p2), %v784_v3  ;;  %805 = vmatpush3.bf16.msra.mxu1 (!%p139_p2), %v784_v3 }
   0xa   : > { %789 = vmatprep.subr.bf16.mxu0 (!%p139_p2), %v788_v5  ;;  %801 = vmatprep.subr.bf16.mxu1 (!%p139_p2), %v788_v5 }
   0xd   : > { %s1071_s20 = smov (!%p163_p3, %s638_s20), 63  ;;  %791 = vmatpush3.bf16.msra.mxu0 %v788_v5  ;;  %806 = vmatpush3.bf16.msra.mxu1 %v788_v5 }
   0xe   : > { %s639_s27 = sshll.u32 %s1071_s20, 3  ;;  %793 = vmatprep.subr.bf16.mxu0 %v792_v8  ;;  %802 = vmatprep.subr.bf16.mxu1 %v792_v8 }
   0xf   : > { %s886_s7 = scalar_lea.vmem %s1066_s0, %s639_s27  ;;  %s965_s15 = scalar_lea.vmem %s1069_s3, %s639_s27 }
  0x10   : > { %v174_v11 = vld [vmem:[%s886_s7] sm:$0xff]  ;;  %v175_v15 = vld [vmem:[%s886_s7 + $0x8] sm:$0xff]  ;;  %v176_v17 = vld [vmem:[%s886_s7 + $0x10] sm:$0xff] }
  0x11   : > { %v190_v12 = vld [vmem:[%s886_s7 + $0x80] sm:$0xff]  ;;  %736 = vmatprep.mubr.msk.f32.mxu0 %vm222_vm0, %v174_v11  ;;  %795 = vmatpush3.bf16.msra.mxu0 %v792_v8  ;;  %v191_v16 = vld [vmem:[%s886_s7 + $0x88] sm:$0xff]  ;;  %v192_v18 = vld [vmem:[%s886_s7 + $0x90] sm:$0xff] }
  0x12   : > { %760 = vmatprep.mubr.msk.f32.mxu1 %vm222_vm0, %v190_v12  ;;  %807 = vmatpush3.bf16.msra.mxu1 %v792_v8  ;;  %v177_v19 = vld [vmem:[%s886_s7 + $0x18] sm:$0xff]  ;;  %v178_v21 = vld [vmem:[%s886_s7 + $0x20] sm:$0xff]  ;;  %v179_v23 = vld [vmem:[%s886_s7 + $0x28] sm:$0xff] }
  0x13   : > { %797 = vmatprep.subr.bf16.mxu0 %v796_v13  ;;  %803 = vmatprep.subr.bf16.mxu1 %v796_v13  ;;  %v193_v20 = vld [vmem:[%s886_s7 + $0x98] sm:$0xff]  ;;  %v194_v22 = vld [vmem:[%s886_s7 + $0xa0] sm:$0xff]  ;;  %v195_v24 = vld [vmem:[%s886_s7 + $0xa8] sm:$0xff] }
  0x14   : > { %v180_v25 = vld [vmem:[%s886_s7 + $0x30] sm:$0xff]  ;;  %v181_v27 = vld [vmem:[%s886_s7 + $0x38] sm:$0xff]  ;;  %v182_v29 = vld [vmem:[%s886_s7 + $0x40] sm:$0xff] }
  0x15   : > { %799 = vmatpush3.bf16.msra.mxu0 %v796_v13  ;;  %v196_v26 = vld [vmem:[%s886_s7 + $0xb0] sm:$0xff]  ;;  %v197_v28 = vld [vmem:[%s886_s7 + $0xb8] sm:$0xff]  ;;  %v198_v30 = vld [vmem:[%s886_s7 + $0xc0] sm:$0xff] }
  0x16   : > { %808 = vmatpush3.bf16.msra.mxu1 %v796_v13  ;;  %734 = vmatprep.subr.mxu0 %v214_v14  ;;  %v183_v31 = vld [vmem:[%s886_s7 + $0x48] sm:$0xff]  ;;  %v184_v33 = vld [vmem:[%s886_s7 + $0x50] sm:$0xff]  ;;  %v185_v35 = vld [vmem:[%s886_s7 + $0x58] sm:$0xff] }
  0x17   : > { %804 = vmatprep.subr.mxu1 %v214_v14  ;;  %v199_v32 = vld [vmem:[%s886_s7 + $0xc8] sm:$0xff]  ;;  %v200_v34 = vld [vmem:[%s886_s7 + $0xd0] sm:$0xff]  ;;  %v201_v36 = vld [vmem:[%s886_s7 + $0xd8] sm:$0xff] }
  0x18   : > { %v186_v37 = vld [vmem:[%s886_s7 + $0x60] sm:$0xff]  ;;  %v187_v39 = vld [vmem:[%s886_s7 + $0x68] sm:$0xff]  ;;  %v188_v41 = vld [vmem:[%s886_s7 + $0x70] sm:$0xff] }
  0x19   : > { %735 = vmatpush3.msra.mxu0 %v214_v14  ;;  %v202_v38 = vld [vmem:[%s886_s7 + $0xe0] sm:$0xff]  ;;  %v203_v40 = vld [vmem:[%s886_s7 + $0xe8] sm:$0xff]  ;;  %v204_v42 = vld [vmem:[%s886_s7 + $0xf0] sm:$0xff] }
  0x1a   : > { %809 = vmatpush3.msra.mxu1 %v214_v14  ;;  %737 = vmatmul.mubr.msk.f32.vlgmr.msra.gmra.mrb[0].mxu0 %vm222_vm0, %v175_v15  ;;  %v189_v43 = vld [vmem:[%s886_s7 + $0x78] sm:$0xff] }
  0x1b   : > { %761 = vmatmul.mubr.msk.f32.vlgmr.msra.gmra.mrb[0].mxu1 %vm222_vm0, %v191_v16  ;;  %739 = vmatprep.mubr.msk.f32.mxu0 %vm222_vm0, %v176_v17  ;;  %v205_v44 = vld [vmem:[%s886_s7 + $0xf8] sm:$0xff] }
  0x1c   : > { %763 = vmatprep.mubr.msk.f32.mxu1 %vm222_vm0, %v192_v18 }
  0x1e   : > { %740 = vmatmul.mubr.msk.f32.gmra.mrb[2].mxu0 %vm222_vm0, %v177_v19 }
  0x1f   : > { %764 = vmatmul.mubr.msk.f32.gmra.mrb[2].mxu1 %vm222_vm0, %v193_v20  ;;  %742 = vmatprep.mubr.msk.f32.mxu0 %vm222_vm0, %v178_v21 }
  0x20   : > { %766 = vmatprep.mubr.msk.f32.mxu1 %vm222_vm0, %v194_v22 }
  0x22   : > { %743 = vmatmul.mubr.msk.f32.gmra.mrb[4].mxu0 %vm222_vm0, %v179_v23 }
  0x23   : > { %767 = vmatmul.mubr.msk.f32.gmra.mrb[4].mxu1 %vm222_vm0, %v195_v24  ;;  %745 = vmatprep.mubr.msk.f32.mxu0 %vm222_vm0, %v180_v25 }
  0x24   : > { %769 = vmatprep.mubr.msk.f32.mxu1 %vm222_vm0, %v196_v26 }
  0x26   : > { %746 = vmatmul.mubr.msk.f32.gmra.mrb[6].mxu0 %vm222_vm0, %v181_v27 }
  0x27   : > { %770 = vmatmul.mubr.msk.f32.gmra.mrb[6].mxu1 %vm222_vm0, %v197_v28  ;;  %748 = vmatprep.mubr.msk.f32.mxu0 %vm222_vm0, %v182_v29 }
  0x28   : > { %772 = vmatprep.mubr.msk.f32.mxu1 %vm222_vm0, %v198_v30 }
  0x2a   : > { %749 = vmatmul.mubr.msk.f32.gmra.mrb[8].mxu0 %vm222_vm0, %v183_v31 }
  0x2b   : > { %773 = vmatmul.mubr.msk.f32.gmra.mrb[8].mxu1 %vm222_vm0, %v199_v32  ;;  %751 = vmatprep.mubr.msk.f32.mxu0 %vm222_vm0, %v184_v33 }
  0x2c   : > { %775 = vmatprep.mubr.msk.f32.mxu1 %vm222_vm0, %v200_v34 }
  0x2e   : > { %752 = vmatmul.mubr.msk.f32.gmra.mrb[10].mxu0 %vm222_vm0, %v185_v35 }
  0x2f   : > { %776 = vmatmul.mubr.msk.f32.gmra.mrb[10].mxu1 %vm222_vm0, %v201_v36  ;;  %754 = vmatprep.mubr.msk.f32.mxu0 %vm222_vm0, %v186_v37 }
  0x30   : > { %778 = vmatprep.mubr.msk.f32.mxu1 %vm222_vm0, %v202_v38 }
  0x32   : > { %755 = vmatmul.mubr.msk.f32.gmra.mrb[12].mxu0 %vm222_vm0, %v187_v39 }
  0x33   : > { %779 = vmatmul.mubr.msk.f32.gmra.mrb[12].mxu1 %vm222_vm0, %v203_v40  ;;  %757 = vmatprep.mubr.msk.f32.mxu0 %vm222_vm0, %v188_v41 }
  0x34   : > { %781 = vmatprep.mubr.msk.f32.mxu1 %vm222_vm0, %v204_v42 }
  0x36   : > { %758 = vmatmul.mubr.msk.f32.gmra.mrb[14].mxu0 %vm222_vm0, %v189_v43 }
  0x37   : > { %782 = vmatmul.mubr.msk.f32.gmra.mrb[14].mxu1 %vm222_vm0, %v205_v44 }
  0xed   : > { %v738_v46 = vpop.f32.mrb[0].mxu0 }
  0xee   : > { %v762_v47 = vpop.f32.mrb[0].mxu1  ;;  %v391_v48 = vadd.f32 %v738_v46, %v958_v45  ;;  %v385_v50 = vpop.f32.mrb[1].mxu0 }
  0xef   : > { %v471_v49 = vadd.f32 %v762_v47, %v958_v45  ;;  %v465_v51 = vpop.f32.mrb[1].mxu1  ;;  %v386_v52 = vadd.f32 %v958_v45, %v385_v50 }
  0xf0   : > { %v466_v53 = vadd.f32 %v958_v45, %v465_v51  ;;  %546 = vst.msk [vmem:[%s965_s15 + $0x8] sm:$0xff] %vm544_vm1, %v391_v48 }
  0xf1   : > { %562 = vst.msk [vmem:[%s965_s15 + $0x88] sm:$0xff] %vm544_vm1, %v471_v49  ;;  %545 = vst.msk [vmem:[%s965_s15] sm:$0xff] %vm544_vm1, %v386_v52  ;;  %v741_v54 = vpop.f32.mrb[2].mxu0 }
  0xf2   : > { %561 = vst.msk [vmem:[%s965_s15 + $0x80] sm:$0xff] %vm544_vm1, %v466_v53  ;;  %v765_v55 = vpop.f32.mrb[2].mxu1  ;;  %v401_v56 = vadd.f32 %v741_v54, %v958_v45  ;;  %v395_v58 = vpop.f32.mrb[3].mxu0 }
  0xf3   : > { %v481_v57 = vadd.f32 %v765_v55, %v958_v45  ;;  %v475_v59 = vpop.f32.mrb[3].mxu1  ;;  %v396_v60 = vadd.f32 %v958_v45, %v395_v58 }
  0xf4   : > { %v476_v61 = vadd.f32 %v958_v45, %v475_v59  ;;  %548 = vst.msk [vmem:[%s965_s15 + $0x18] sm:$0xff] %vm544_vm1, %v401_v56 }
  0xf5   : > { %564 = vst.msk [vmem:[%s965_s15 + $0x98] sm:$0xff] %vm544_vm1, %v481_v57  ;;  %547 = vst.msk [vmem:[%s965_s15 + $0x10] sm:$0xff] %vm544_vm1, %v396_v60  ;;  %v744_v62 = vpop.f32.mrb[4].mxu0 }
  0xf6   : > { %563 = vst.msk [vmem:[%s965_s15 + $0x90] sm:$0xff] %vm544_vm1, %v476_v61  ;;  %v768_v63 = vpop.f32.mrb[4].mxu1  ;;  %v411_v0 = vadd.f32 %v744_v62, %v958_v45  ;;  %v405_v2 = vpop.f32.mrb[5].mxu0 }
  0xf7   : > { %v491_v1 = vadd.f32 %v768_v63, %v958_v45  ;;  %v485_v3 = vpop.f32.mrb[5].mxu1  ;;  %v406_v4 = vadd.f32 %v958_v45, %v405_v2 }
  0xf8   : > { %v486_v5 = vadd.f32 %v958_v45, %v485_v3  ;;  %550 = vst.msk [vmem:[%s965_s15 + $0x28] sm:$0xff] %vm544_vm1, %v411_v0 }
  0xf9   : > { %566 = vst.msk [vmem:[%s965_s15 + $0xa8] sm:$0xff] %vm544_vm1, %v491_v1  ;;  %549 = vst.msk [vmem:[%s965_s15 + $0x20] sm:$0xff] %vm544_vm1, %v406_v4  ;;  %v747_v6 = vpop.f32.mrb[6].mxu0 }
  0xfa   : > { %565 = vst.msk [vmem:[%s965_s15 + $0xa0] sm:$0xff] %vm544_vm1, %v486_v5  ;;  %v771_v7 = vpop.f32.mrb[6].mxu1  ;;  %v421_v8 = vadd.f32 %v747_v6, %v958_v45  ;;  %v415_v10 = vpop.f32.mrb[7].mxu0 }
  0xfb   : > { %v501_v9 = vadd.f32 %v771_v7, %v958_v45  ;;  %v495_v11 = vpop.f32.mrb[7].mxu1  ;;  %v416_v12 = vadd.f32 %v958_v45, %v415_v10 }
  0xfc   : > { %v496_v13 = vadd.f32 %v958_v45, %v495_v11  ;;  %552 = vst.msk [vmem:[%s965_s15 + $0x38] sm:$0xff] %vm544_vm1, %v421_v8 }
  0xfd   : > { %568 = vst.msk [vmem:[%s965_s15 + $0xb8] sm:$0xff] %vm544_vm1, %v501_v9  ;;  %551 = vst.msk [vmem:[%s965_s15 + $0x30] sm:$0xff] %vm544_vm1, %v416_v12  ;;  %v750_v14 = vpop.f32.mrb[8].mxu0 }
  0xfe   : > { %567 = vst.msk [vmem:[%s965_s15 + $0xb0] sm:$0xff] %vm544_vm1, %v496_v13  ;;  %v774_v15 = vpop.f32.mrb[8].mxu1  ;;  %v431_v16 = vadd.f32 %v750_v14, %v958_v45  ;;  %v425_v18 = vpop.f32.mrb[9].mxu0 }
  0xff   : > { %v511_v17 = vadd.f32 %v774_v15, %v958_v45  ;;  %v505_v19 = vpop.f32.mrb[9].mxu1  ;;  %v426_v20 = vadd.f32 %v958_v45, %v425_v18 }
 0x100   : > { %v506_v21 = vadd.f32 %v958_v45, %v505_v19  ;;  %554 = vst.msk [vmem:[%s965_s15 + $0x48] sm:$0xff] %vm544_vm1, %v431_v16 }
 0x101   : > { %570 = vst.msk [vmem:[%s965_s15 + $0xc8] sm:$0xff] %vm544_vm1, %v511_v17  ;;  %553 = vst.msk [vmem:[%s965_s15 + $0x40] sm:$0xff] %vm544_vm1, %v426_v20  ;;  %v753_v22 = vpop.f32.mrb[10].mxu0 }
 0x102   : > { %569 = vst.msk [vmem:[%s965_s15 + $0xc0] sm:$0xff] %vm544_vm1, %v506_v21  ;;  %v777_v23 = vpop.f32.mrb[10].mxu1  ;;  %v441_v24 = vadd.f32 %v753_v22, %v958_v45  ;;  %v435_v26 = vpop.f32.mrb[11].mxu0 }
 0x103   : > { %v521_v25 = vadd.f32 %v777_v23, %v958_v45  ;;  %v515_v27 = vpop.f32.mrb[11].mxu1  ;;  %v436_v28 = vadd.f32 %v958_v45, %v435_v26 }
 0x104   : > { %v516_v29 = vadd.f32 %v958_v45, %v515_v27  ;;  %556 = vst.msk [vmem:[%s965_s15 + $0x58] sm:$0xff] %vm544_vm1, %v441_v24 }
 0x105   : > { %572 = vst.msk [vmem:[%s965_s15 + $0xd8] sm:$0xff] %vm544_vm1, %v521_v25  ;;  %555 = vst.msk [vmem:[%s965_s15 + $0x50] sm:$0xff] %vm544_vm1, %v436_v28  ;;  %v756_v30 = vpop.f32.mrb[12].mxu0 }
 0x106   : > { %571 = vst.msk [vmem:[%s965_s15 + $0xd0] sm:$0xff] %vm544_vm1, %v516_v29  ;;  %v780_v31 = vpop.f32.mrb[12].mxu1  ;;  %v451_v32 = vadd.f32 %v756_v30, %v958_v45  ;;  %v445_v34 = vpop.f32.mrb[13].mxu0 }
 0x107   : > { %v531_v33 = vadd.f32 %v780_v31, %v958_v45  ;;  %v525_v35 = vpop.f32.mrb[13].mxu1  ;;  %v446_v36 = vadd.f32 %v958_v45, %v445_v34 }
 0x108   : > { %v526_v37 = vadd.f32 %v958_v45, %v525_v35  ;;  %558 = vst.msk [vmem:[%s965_s15 + $0x68] sm:$0xff] %vm544_vm1, %v451_v32 }
 0x109   : > { %574 = vst.msk [vmem:[%s965_s15 + $0xe8] sm:$0xff] %vm544_vm1, %v531_v33  ;;  %557 = vst.msk [vmem:[%s965_s15 + $0x60] sm:$0xff] %vm544_vm1, %v446_v36  ;;  %v759_v38 = vpop.f32.mrb[14].mxu0 }
 0x10a   : > { %573 = vst.msk [vmem:[%s965_s15 + $0xe0] sm:$0xff] %vm544_vm1, %v526_v37  ;;  %v783_v39 = vpop.f32.mrb[14].mxu1  ;;  %v461_v40 = vadd.f32 %v759_v38, %v958_v45  ;;  %v455_v42 = vpop.f32.mrb[15].mxu0 }
 0x10b   : > { %v541_v41 = vadd.f32 %v783_v39, %v958_v45  ;;  %v535_v43 = vpop.f32.mrb[15].mxu1  ;;  %v456_v44 = vadd.f32 %v958_v45, %v455_v42 }
 0x10c   : > { %v536_v46 = vadd.f32 %v958_v45, %v535_v43  ;;  %560 = vst.msk [vmem:[%s965_s15 + $0x78] sm:$0xff] %vm544_vm1, %v461_v40 }
 0x10d   : > { %576 = vst.msk [vmem:[%s965_s15 + $0xf8] sm:$0xff] %vm544_vm1, %v541_v41  ;;  %559 = vst.msk [vmem:[%s965_s15 + $0x70] sm:$0xff] %vm544_vm1, %v456_v44 }
 0x10e   : > { %575 = vst.msk [vmem:[%s965_s15 + $0xf0] sm:$0xff] %vm544_vm1, %v536_v46 }
 0x10f PF: > { %s13_s12 = sadd.s32 1, %s824_s12  }
 0x110   : > { %p10_p4 = scmp.ge.s32.totalorder %s13_s12, 4  }
 0x112   :  { %12 = sbr.rel (!%p10_p4) target bundleno = 1 (0x1), region = 62 }

// kernel: mrg_forward.13
= control target key start
LH: loop header
LB: loop body
LE: loop exit
PB: predicated region body
PF: predicated region fallthrough
CT: control target
= control target key end

     0   :  { %s805_s12 = smov 0   ;;  %s1099_s0 = inlined_call_operand.vmem [shape: f32[512,144], index: 0, kind: input, shape index: {}]   ;;  %s1100_s1 = inlined_call_operand.vmem [shape: f32[144,16], index: 1, kind: input, shape index: {}]   ;;  %s1101_s2 = inlined_call_operand.vmem [shape: f32[1,16], index: 2, kind: input, shape index: {}]   ;;  %s1102_s3 = inlined_call_operand.vmem [shape: f32[512,16], index: 3, kind: output, shape index: {}]  }
   0x1 LB: > { %s676_s13 = sadd.s32 4294967295, %s782_s12   ;;  %p680_p0 = scmp.ge.s32.totalorder %s782_s12, 1  ;;  %s782_s12 = sphi %s805_s12, %s13_s12  }
   0x2   : > { %p139_p1 = scmp.lt.s32.totalorder %s782_s12, 3 }
   0x4   : > { %p140_p2 = pnand %p680_p0, %p139_p1 }
   0x5   : > { %v241_v0 = vld [vmem:[%s1100_s1] sm:$0xff] (!%p140_p2)  ;;  %v242_v1 = vld [vmem:[%s1100_s1 + $0x8] sm:$0xff] (!%p140_p2)  ;;  %v243_v2 = vld [vmem:[%s1100_s1 + $0x10] sm:$0xff] (!%p140_p2)  ;;  %s681_s20 = sshll.u32 (!%p140_p2), %s676_s13, 5  ;;  %v784_v3 = vmov (!%p140_p2), 0.0|0.0   ;;  %vm266_vm0 = vcmask (!%p140_p2), 130048  }
   0x6   : > { %143 = sbr.rel (%p140_p2) target bundleno = 318 (0x13e), region = 32  ;;  %722 = vmatprep.subr.bf16.mxu0 (!%p140_p2), %v784_v3  ;;  %749 = vmatprep.subr.bf16.mxu1 (!%p140_p2), %v784_v3  ;;  %v723_v4 = vpack.c.bf16 (!%p140_p2), %v242_v1, %v241_v0  ;;  %v244_v5 = vld [vmem:[%s1100_s1 + $0x18] sm:$0xff] (!%p140_p2)  ;;  %p165_p3 = scmp.lt.s32.totalorder (!%p140_p2), %s681_s20, 63  ;;  %v245_v7 = vld [vmem:[%s1100_s1 + $0x20] sm:$0xff] (!%p140_p2)  ;;  %v246_v8 = vld [vmem:[%s1100_s1 + $0x28] sm:$0xff] (!%p140_p2) }
   0x7   : > { %v726_v6 = vpack.c.bf16 (!%p140_p2), %v244_v5, %v243_v2  ;;  %v729_v9 = vpack.c.bf16 (!%p140_p2), %v246_v8, %v245_v7  ;;  %v247_v12 = vld [vmem:[%s1100_s1 + $0x30] sm:$0xff] (!%p140_p2)  ;;  %v248_v13 = vld [vmem:[%s1100_s1 + $0x38] sm:$0xff] (!%p140_p2)  ;;  %v249_v15 = vld [vmem:[%s1100_s1 + $0x40] sm:$0xff] (!%p140_p2) }
   0x8   : > { %724 = vmatpush1.bf16.msra.mxu0 (!%p140_p2), %v723_v4  ;;  %758 = vmatpush1.bf16.msra.mxu1 (!%p140_p2), %v723_v4  ;;  %v732_v14 = vpack.c.bf16 (!%p140_p2), %v248_v13, %v247_v12  ;;  %v250_v16 = vld [vmem:[%s1100_s1 + $0x48] sm:$0xff] (!%p140_p2)  ;;  %v251_v18 = vld [vmem:[%s1100_s1 + $0x50] sm:$0xff] (!%p140_p2)  ;;  %v252_v19 = vld [vmem:[%s1100_s1 + $0x58] sm:$0xff] (!%p140_p2) }
   0x9   : > { %725 = vmatprep.subr.bf16.mxu0 (!%p140_p2), %v784_v3  ;;  %750 = vmatprep.subr.bf16.mxu1 (!%p140_p2), %v784_v3  ;;  %v735_v17 = vpack.c.bf16 (!%p140_p2), %v250_v16, %v249_v15  ;;  %v738_v20 = vpack.c.bf16 (!%p140_p2), %v252_v19, %v251_v18  ;;  %v253_v21 = vld [vmem:[%s1100_s1 + $0x60] sm:$0xff] (!%p140_p2)  ;;  %v254_v22 = vld [vmem:[%s1100_s1 + $0x68] sm:$0xff] (!%p140_p2)  ;;  %v255_v24 = vld [vmem:[%s1100_s1 + $0x70] sm:$0xff] (!%p140_p2) }
   0xa   : > { %v741_v23 = vpack.c.bf16 (!%p140_p2), %v254_v22, %v253_v21  ;;  %v256_v25 = vld [vmem:[%s1100_s1 + $0x78] sm:$0xff] (!%p140_p2)  ;;  %v257_v27 = vld [vmem:[%s1100_s1 + $0x80] sm:$0xff] (!%p140_p2)  ;;  %v258_v28 = vld [vmem:[%s1100_s1 + $0x88] sm:$0xff] (!%p140_p2) }
   0xb   : > { %v744_v26 = vpack.c.bf16 (!%p140_p2), %v256_v25, %v255_v24  ;;  %v747_v29 = vpack.c.bf16 (!%p140_p2), %v258_v28, %v257_v27  ;;  %v993_v28 = vld [vmem:[%s1101_s2] ss:$0 sm:$0xff] (!%p140_p2) }
   0xc   : > { %727 = vmatpush1.bf16.msra.mxu0 (!%p140_p2), %v726_v6  ;;  %759 = vmatpush1.bf16.msra.mxu1 (!%p140_p2), %v726_v6 }
   0xd   : > { %s1104_s20 = smov (!%p165_p3, %s681_s20), 63  ;;  %728 = vmatprep.subr.bf16.mxu0 %v784_v3  ;;  %751 = vmatprep.subr.bf16.mxu1 %v784_v3 }
   0xe   : > { %s721_s27 = sshll.u32 %s1104_s20, 4  ;;  %s685_s4 = sshll.u32 %s1104_s20, 3 }
   0xf   : > { %s841_s30 = scalar_lea.vmem %s1099_s0, %s721_s27  ;;  %s998_s9 = scalar_lea.vmem %s1102_s3, %s685_s4 }
  0x10   : > { %v178_v10 = vld [vmem:[%s841_s30 + $0x8] sm:$0xff]  ;;  %730 = vmatpush1.bf16.msra.mxu0 %v729_v9  ;;  %760 = vmatpush1.bf16.msra.mxu1 %v729_v9  ;;  %v177_v30 = vld [vmem:[%s841_s30] sm:$0xff]  ;;  %v180_v32 = vld [vmem:[%s841_s30 + $0x18] sm:$0xff] }
  0x11   : > { %v210_v11 = vld [vmem:[%s841_s30 + $0x108] sm:$0xff]  ;;  %687 = vmatprep.mubr.msk.f32.mxu0 %vm266_vm0, %v178_v10  ;;  %731 = vmatprep.subr.bf16.mxu0 %v784_v3  ;;  %v209_v31 = vld [vmem:[%s841_s30 + $0x100] sm:$0xff]  ;;  %v212_v33 = vld [vmem:[%s841_s30 + $0x118] sm:$0xff] }
  0x12   : > { %703 = vmatprep.mubr.msk.f32.mxu1 %vm266_vm0, %v210_v11  ;;  %752 = vmatprep.subr.bf16.mxu1 %v784_v3  ;;  %v179_v34 = vld [vmem:[%s841_s30 + $0x10] sm:$0xff]  ;;  %v182_v36 = vld [vmem:[%s841_s30 + $0x28] sm:$0xff]  ;;  %v181_v38 = vld [vmem:[%s841_s30 + $0x20] sm:$0xff] }
  0x13   : > { %v211_v35 = vld [vmem:[%s841_s30 + $0x110] sm:$0xff]  ;;  %v214_v37 = vld [vmem:[%s841_s30 + $0x128] sm:$0xff]  ;;  %v213_v39 = vld [vmem:[%s841_s30 + $0x120] sm:$0xff] }
  0x14   : > { %733 = vmatpush1.bf16.msra.mxu0 %v732_v14  ;;  %761 = vmatpush1.bf16.msra.mxu1 %v732_v14  ;;  %v184_v40 = vld [vmem:[%s841_s30 + $0x38] sm:$0xff]  ;;  %v183_v42 = vld [vmem:[%s841_s30 + $0x30] sm:$0xff]  ;;  %v186_v44 = vld [vmem:[%s841_s30 + $0x48] sm:$0xff] }
  0x15   : > { %734 = vmatprep.subr.bf16.mxu0 %v784_v3  ;;  %753 = vmatprep.subr.bf16.mxu1 %v784_v3  ;;  %v216_v41 = vld [vmem:[%s841_s30 + $0x138] sm:$0xff]  ;;  %v215_v43 = vld [vmem:[%s841_s30 + $0x130] sm:$0xff]  ;;  %v218_v45 = vld [vmem:[%s841_s30 + $0x148] sm:$0xff] }
  0x16   : > { %v185_v46 = vld [vmem:[%s841_s30 + $0x40] sm:$0xff]  ;;  %v188_v48 = vld [vmem:[%s841_s30 + $0x58] sm:$0xff]  ;;  %v187_v50 = vld [vmem:[%s841_s30 + $0x50] sm:$0xff] }
  0x17   : > { %v217_v47 = vld [vmem:[%s841_s30 + $0x140] sm:$0xff]  ;;  %v220_v49 = vld [vmem:[%s841_s30 + $0x158] sm:$0xff]  ;;  %v219_v51 = vld [vmem:[%s841_s30 + $0x150] sm:$0xff] }
  0x18   : > { %736 = vmatpush1.bf16.msra.mxu0 %v735_v17  ;;  %762 = vmatpush1.bf16.msra.mxu1 %v735_v17  ;;  %v190_v52 = vld [vmem:[%s841_s30 + $0x68] sm:$0xff]  ;;  %v189_v54 = vld [vmem:[%s841_s30 + $0x60] sm:$0xff]  ;;  %v192_v56 = vld [vmem:[%s841_s30 + $0x78] sm:$0xff] }
  0x19   : > { %737 = vmatprep.subr.bf16.mxu0 %v784_v3  ;;  %754 = vmatprep.subr.bf16.mxu1 %v784_v3  ;;  %v222_v53 = vld [vmem:[%s841_s30 + $0x168] sm:$0xff]  ;;  %v221_v55 = vld [vmem:[%s841_s30 + $0x160] sm:$0xff]  ;;  %v224_v57 = vld [vmem:[%s841_s30 + $0x178] sm:$0xff] }
  0x1a   : > { %v191_v58 = vld [vmem:[%s841_s30 + $0x70] sm:$0xff]  ;;  %v194_v60 = vld [vmem:[%s841_s30 + $0x88] sm:$0xff]  ;;  %v193_v62 = vld [vmem:[%s841_s30 + $0x80] sm:$0xff] }
  0x1b   : > { %v223_v59 = vld [vmem:[%s841_s30 + $0x170] sm:$0xff]  ;;  %v226_v61 = vld [vmem:[%s841_s30 + $0x188] sm:$0xff]  ;;  %v225_v63 = vld [vmem:[%s841_s30 + $0x180] sm:$0xff] }
  0x1c   : > { %739 = vmatpush1.bf16.msra.mxu0 %v738_v20  ;;  %763 = vmatpush1.bf16.msra.mxu1 %v738_v20  ;;  %v196_v0 = vld [vmem:[%s841_s30 + $0x98] sm:$0xff]  ;;  %v195_v2 = vld [vmem:[%s841_s30 + $0x90] sm:$0xff]  ;;  %v198_v4 = vld [vmem:[%s841_s30 + $0xa8] sm:$0xff] }
  0x1d   : > { %740 = vmatprep.subr.bf16.mxu0 %v784_v3  ;;  %755 = vmatprep.subr.bf16.mxu1 %v784_v3  ;;  %v228_v1 = vld [vmem:[%s841_s30 + $0x198] sm:$0xff]  ;;  %v230_v5 = vld [vmem:[%s841_s30 + $0x1a8] sm:$0xff]  ;;  %v197_v6 = vld [vmem:[%s841_s30 + $0xa0] sm:$0xff] }
  0x1e   : > { %v229_v7 = vld [vmem:[%s841_s30 + $0x1a0] sm:$0xff]  ;;  %v200_v8 = vld [vmem:[%s841_s30 + $0xb8] sm:$0xff]  ;;  %v199_v10 = vld [vmem:[%s841_s30 + $0xb0] sm:$0xff] }
  0x1f   : > { %v232_v9 = vld [vmem:[%s841_s30 + $0x1b8] sm:$0xff]  ;;  %v231_v11 = vld [vmem:[%s841_s30 + $0x1b0] sm:$0xff]  ;;  %v202_v12 = vld [vmem:[%s841_s30 + $0xc8] sm:$0xff] }
  0x20   : > { %742 = vmatpush1.bf16.msra.mxu0 %v741_v23  ;;  %764 = vmatpush1.bf16.msra.mxu1 %v741_v23  ;;  %v234_v13 = vld [vmem:[%s841_s30 + $0x1c8] sm:$0xff]  ;;  %v201_v14 = vld [vmem:[%s841_s30 + $0xc0] sm:$0xff]  ;;  %v204_v16 = vld [vmem:[%s841_s30 + $0xd8] sm:$0xff] }
  0x21   : > { %743 = vmatprep.subr.bf16.mxu0 %v784_v3  ;;  %756 = vmatprep.subr.bf16.mxu1 %v784_v3  ;;  %v233_v15 = vld [vmem:[%s841_s30 + $0x1c0] sm:$0xff]  ;;  %v236_v17 = vld [vmem:[%s841_s30 + $0x1d8] sm:$0xff]  ;;  %v203_v18 = vld [vmem:[%s841_s30 + $0xd0] sm:$0xff] }
  0x22   : > { %v235_v19 = vld [vmem:[%s841_s30 + $0x1d0] sm:$0xff]  ;;  %v206_v20 = vld [vmem:[%s841_s30 + $0xe8] sm:$0xff]  ;;  %v205_v22 = vld [vmem:[%s841_s30 + $0xe0] sm:$0xff] }
  0x23   : > { %v238_v21 = vld [vmem:[%s841_s30 + $0x1e8] sm:$0xff]  ;;  %v237_v23 = vld [vmem:[%s841_s30 + $0x1e0] sm:$0xff]  ;;  %v208_v24 = vld [vmem:[%s841_s30 + $0xf8] sm:$0xff] }
  0x24   : > { %745 = vmatpush1.bf16.msra.mxu0 %v744_v26  ;;  %765 = vmatpush1.bf16.msra.mxu1 %v744_v26  ;;  %v240_v25 = vld [vmem:[%s841_s30 + $0x1f8] sm:$0xff]  ;;  %v207_v26 = vld [vmem:[%s841_s30 + $0xf0] sm:$0xff] }
  0x25   : > { %746 = vmatprep.subr.bf16.mxu0 %v784_v3  ;;  %757 = vmatprep.subr.bf16.mxu1 %v784_v3  ;;  %v227_v3 = vld [vmem:[%s841_s30 + $0x190] sm:$0xff] }
  0x26   : > { %v239_v27 = vld [vmem:[%s841_s30 + $0x1f0] sm:$0xff] }
  0x28   : > { %748 = vmatpush1.bf16.msra.mxu0 %v747_v29  ;;  %766 = vmatpush1.bf16.msra.mxu1 %v747_v29 }
  0x2b   : > { %428 = vmatmul.mubr.f32.vlgmr.msra.gmra.mrb[0].mxu0 %v177_v30  ;;  %508 = vmatmul.mubr.f32.vlgmr.msra.gmra.mrb[0].mxu1 %v209_v31 }
  0x2c   : > { %688 = vmatprep.mubr.msk.f32.mxu0 %vm266_vm0, %v180_v32  ;;  %704 = vmatprep.mubr.msk.f32.mxu1 %vm266_vm0, %v212_v33 }
  0x2f   : > { %433 = vmatmul.mubr.f32.gmra.mrb[2].mxu0 %v179_v34  ;;  %513 = vmatmul.mubr.f32.gmra.mrb[2].mxu1 %v211_v35 }
  0x30   : > { %689 = vmatprep.mubr.msk.f32.mxu0 %vm266_vm0, %v182_v36  ;;  %705 = vmatprep.mubr.msk.f32.mxu1 %vm266_vm0, %v214_v37 }
  0x33   : > { %438 = vmatmul.mubr.f32.gmra.mrb[4].mxu0 %v181_v38  ;;  %518 = vmatmul.mubr.f32.gmra.mrb[4].mxu1 %v213_v39 }
  0x34   : > { %690 = vmatprep.mubr.msk.f32.mxu0 %vm266_vm0, %v184_v40  ;;  %706 = vmatprep.mubr.msk.f32.mxu1 %vm266_vm0, %v216_v41 }
  0x37   : > { %443 = vmatmul.mubr.f32.gmra.mrb[6].mxu0 %v183_v42  ;;  %523 = vmatmul.mubr.f32.gmra.mrb[6].mxu1 %v215_v43 }
  0x38   : > { %691 = vmatprep.mubr.msk.f32.mxu0 %vm266_vm0, %v186_v44  ;;  %707 = vmatprep.mubr.msk.f32.mxu1 %vm266_vm0, %v218_v45 }
  0x3b   : > { %448 = vmatmul.mubr.f32.gmra.mrb[8].mxu0 %v185_v46  ;;  %528 = vmatmul.mubr.f32.gmra.mrb[8].mxu1 %v217_v47 }
  0x3c   : > { %692 = vmatprep.mubr.msk.f32.mxu0 %vm266_vm0, %v188_v48  ;;  %708 = vmatprep.mubr.msk.f32.mxu1 %vm266_vm0, %v220_v49 }
  0x3f   : > { %453 = vmatmul.mubr.f32.gmra.mrb[10].mxu0 %v187_v50  ;;  %533 = vmatmul.mubr.f32.gmra.mrb[10].mxu1 %v219_v51 }
  0x40   : > { %693 = vmatprep.mubr.msk.f32.mxu0 %vm266_vm0, %v190_v52  ;;  %709 = vmatprep.mubr.msk.f32.mxu1 %vm266_vm0, %v222_v53 }
  0x43   : > { %458 = vmatmul.mubr.f32.gmra.mrb[12].mxu0 %v189_v54  ;;  %538 = vmatmul.mubr.f32.gmra.mrb[12].mxu1 %v221_v55 }
  0x44   : > { %694 = vmatprep.mubr.msk.f32.mxu0 %vm266_vm0, %v192_v56  ;;  %710 = vmatprep.mubr.msk.f32.mxu1 %vm266_vm0, %v224_v57 }
  0x47   : > { %463 = vmatmul.mubr.f32.gmra.mrb[14].mxu0 %v191_v58  ;;  %543 = vmatmul.mubr.f32.gmra.mrb[14].mxu1 %v223_v59 }
  0x48   : > { %695 = vmatprep.mubr.msk.f32.mxu0 %vm266_vm0, %v194_v60  ;;  %711 = vmatprep.mubr.msk.f32.mxu1 %vm266_vm0, %v226_v61 }
  0x4b   : > { %468 = vmatmul.mubr.f32.gmra.mrb[16].mxu0 %v193_v62  ;;  %548 = vmatmul.mubr.f32.gmra.mrb[16].mxu1 %v225_v63 }
  0x4c   : > { %696 = vmatprep.mubr.msk.f32.mxu0 %vm266_vm0, %v196_v0  ;;  %712 = vmatprep.mubr.msk.f32.mxu1 %vm266_vm0, %v228_v1 }
  0x4f   : > { %473 = vmatmul.mubr.f32.gmra.mrb[18].mxu0 %v195_v2  ;;  %553 = vmatmul.mubr.f32.gmra.mrb[18].mxu1 %v227_v3 }
  0x50   : > { %697 = vmatprep.mubr.msk.f32.mxu0 %vm266_vm0, %v198_v4  ;;  %713 = vmatprep.mubr.msk.f32.mxu1 %vm266_vm0, %v230_v5 }
  0x53   : > { %478 = vmatmul.mubr.f32.gmra.mrb[20].mxu0 %v197_v6  ;;  %558 = vmatmul.mubr.f32.gmra.mrb[20].mxu1 %v229_v7 }
  0x54   : > { %698 = vmatprep.mubr.msk.f32.mxu0 %vm266_vm0, %v200_v8  ;;  %714 = vmatprep.mubr.msk.f32.mxu1 %vm266_vm0, %v232_v9 }
  0x57   : > { %483 = vmatmul.mubr.f32.gmra.mrb[22].mxu0 %v199_v10  ;;  %563 = vmatmul.mubr.f32.gmra.mrb[22].mxu1 %v231_v11 }
  0x58   : > { %699 = vmatprep.mubr.msk.f32.mxu0 %vm266_vm0, %v202_v12  ;;  %715 = vmatprep.mubr.msk.f32.mxu1 %vm266_vm0, %v234_v13 }
  0x5b   : > { %488 = vmatmul.mubr.f32.gmra.mrb[24].mxu0 %v201_v14  ;;  %568 = vmatmul.mubr.f32.gmra.mrb[24].mxu1 %v233_v15 }
  0x5c   : > { %700 = vmatprep.mubr.msk.f32.mxu0 %vm266_vm0, %v204_v16  ;;  %716 = vmatprep.mubr.msk.f32.mxu1 %vm266_vm0, %v236_v17 }
  0x5f   : > { %493 = vmatmul.mubr.f32.gmra.mrb[26].mxu0 %v203_v18  ;;  %573 = vmatmul.mubr.f32.gmra.mrb[26].mxu1 %v235_v19 }
  0x60   : > { %701 = vmatprep.mubr.msk.f32.mxu0 %vm266_vm0, %v206_v20  ;;  %717 = vmatprep.mubr.msk.f32.mxu1 %vm266_vm0, %v238_v21 }
  0x63   : > { %498 = vmatmul.mubr.f32.gmra.mrb[28].mxu0 %v205_v22  ;;  %578 = vmatmul.mubr.f32.gmra.mrb[28].mxu1 %v237_v23 }
  0x64   : > { %702 = vmatprep.mubr.msk.f32.mxu0 %vm266_vm0, %v208_v24  ;;  %718 = vmatprep.mubr.msk.f32.mxu1 %vm266_vm0, %v240_v25 }
  0x67   : > { %503 = vmatmul.mubr.f32.gmra.mrb[30].mxu0 %v207_v26  ;;  %583 = vmatmul.mubr.f32.gmra.mrb[30].mxu1 %v239_v27 }
  0xfe   : > { %v429_v29 = vpop.f32.mrb[0].mxu0  ;;  %v509_v30 = vpop.f32.mrb[0].mxu1 }
  0xff   : > { %v430_v31 = vadd.f32 %v993_v28, %v429_v29  ;;  %v510_v32 = vadd.f32 %v993_v28, %v509_v30  ;;  %v431_v33 = vpop.f32.mrb[1].mxu0  ;;  %v511_v34 = vpop.f32.mrb[1].mxu1 }
 0x101   : > { %588 = vst.msk [vmem:[%s998_s9] sm:$0xff] %vm266_vm0, %v430_v31  ;;  %604 = vst.msk [vmem:[%s998_s9 + $0x80] sm:$0xff] %vm266_vm0, %v510_v32 }
 0x102   : > { %v434_v35 = vpop.f32.mrb[2].mxu0  ;;  %v514_v36 = vpop.f32.mrb[2].mxu1 }
 0x103   : > { %v435_v37 = vadd.f32 %v993_v28, %v434_v35  ;;  %v515_v38 = vadd.f32 %v993_v28, %v514_v36  ;;  %v436_v39 = vpop.f32.mrb[3].mxu0  ;;  %v516_v40 = vpop.f32.mrb[3].mxu1 }
 0x105   : > { %589 = vst.msk [vmem:[%s998_s9 + $0x8] sm:$0xff] %vm266_vm0, %v435_v37  ;;  %605 = vst.msk [vmem:[%s998_s9 + $0x88] sm:$0xff] %vm266_vm0, %v515_v38 }
 0x106   : > { %v439_v41 = vpop.f32.mrb[4].mxu0  ;;  %v519_v42 = vpop.f32.mrb[4].mxu1 }
 0x107   : > { %v440_v43 = vadd.f32 %v993_v28, %v439_v41  ;;  %v520_v44 = vadd.f32 %v993_v28, %v519_v42  ;;  %v441_v45 = vpop.f32.mrb[5].mxu0  ;;  %v521_v46 = vpop.f32.mrb[5].mxu1 }
 0x109   : > { %590 = vst.msk [vmem:[%s998_s9 + $0x10] sm:$0xff] %vm266_vm0, %v440_v43  ;;  %606 = vst.msk [vmem:[%s998_s9 + $0x90] sm:$0xff] %vm266_vm0, %v520_v44 }
 0x10a   : > { %v444_v47 = vpop.f32.mrb[6].mxu0  ;;  %v524_v48 = vpop.f32.mrb[6].mxu1 }
 0x10b   : > { %v445_v49 = vadd.f32 %v993_v28, %v444_v47  ;;  %v525_v50 = vadd.f32 %v993_v28, %v524_v48  ;;  %v446_v51 = vpop.f32.mrb[7].mxu0  ;;  %v526_v52 = vpop.f32.mrb[7].mxu1 }
 0x10d   : > { %591 = vst.msk [vmem:[%s998_s9 + $0x18] sm:$0xff] %vm266_vm0, %v445_v49  ;;  %607 = vst.msk [vmem:[%s998_s9 + $0x98] sm:$0xff] %vm266_vm0, %v525_v50 }
 0x10e   : > { %v449_v53 = vpop.f32.mrb[8].mxu0  ;;  %v529_v54 = vpop.f32.mrb[8].mxu1 }
 0x10f   : > { %v450_v55 = vadd.f32 %v993_v28, %v449_v53  ;;  %v530_v56 = vadd.f32 %v993_v28, %v529_v54  ;;  %v451_v57 = vpop.f32.mrb[9].mxu0  ;;  %v531_v58 = vpop.f32.mrb[9].mxu1 }
 0x111   : > { %592 = vst.msk [vmem:[%s998_s9 + $0x20] sm:$0xff] %vm266_vm0, %v450_v55  ;;  %608 = vst.msk [vmem:[%s998_s9 + $0xa0] sm:$0xff] %vm266_vm0, %v530_v56 }
 0x112   : > { %v454_v59 = vpop.f32.mrb[10].mxu0  ;;  %v534_v60 = vpop.f32.mrb[10].mxu1 }
 0x113   : > { %v455_v61 = vadd.f32 %v993_v28, %v454_v59  ;;  %v535_v62 = vadd.f32 %v993_v28, %v534_v60  ;;  %v456_v63 = vpop.f32.mrb[11].mxu0  ;;  %v536_v0 = vpop.f32.mrb[11].mxu1 }
 0x115   : > { %593 = vst.msk [vmem:[%s998_s9 + $0x28] sm:$0xff] %vm266_vm0, %v455_v61  ;;  %609 = vst.msk [vmem:[%s998_s9 + $0xa8] sm:$0xff] %vm266_vm0, %v535_v62 }
 0x116   : > { %v459_v1 = vpop.f32.mrb[12].mxu0  ;;  %v539_v2 = vpop.f32.mrb[12].mxu1 }
 0x117   : > { %v460_v3 = vadd.f32 %v993_v28, %v459_v1  ;;  %v540_v4 = vadd.f32 %v993_v28, %v539_v2  ;;  %v461_v5 = vpop.f32.mrb[13].mxu0  ;;  %v541_v6 = vpop.f32.mrb[13].mxu1 }
 0x119   : > { %594 = vst.msk [vmem:[%s998_s9 + $0x30] sm:$0xff] %vm266_vm0, %v460_v3  ;;  %610 = vst.msk [vmem:[%s998_s9 + $0xb0] sm:$0xff] %vm266_vm0, %v540_v4 }
 0x11a   : > { %v464_v7 = vpop.f32.mrb[14].mxu0  ;;  %v544_v8 = vpop.f32.mrb[14].mxu1 }
 0x11b   : > { %v465_v9 = vadd.f32 %v993_v28, %v464_v7  ;;  %v545_v10 = vadd.f32 %v993_v28, %v544_v8  ;;  %v466_v11 = vpop.f32.mrb[15].mxu0  ;;  %v546_v12 = vpop.f32.mrb[15].mxu1 }
 0x11d   : > { %595 = vst.msk [vmem:[%s998_s9 + $0x38] sm:$0xff] %vm266_vm0, %v465_v9  ;;  %611 = vst.msk [vmem:[%s998_s9 + $0xb8] sm:$0xff] %vm266_vm0, %v545_v10 }
 0x11e   : > { %v469_v13 = vpop.f32.mrb[16].mxu0  ;;  %v549_v14 = vpop.f32.mrb[16].mxu1 }
 0x11f   : > { %v470_v15 = vadd.f32 %v993_v28, %v469_v13  ;;  %v550_v16 = vadd.f32 %v993_v28, %v549_v14  ;;  %v471_v17 = vpop.f32.mrb[17].mxu0  ;;  %v551_v18 = vpop.f32.mrb[17].mxu1 }
 0x121   : > { %596 = vst.msk [vmem:[%s998_s9 + $0x40] sm:$0xff] %vm266_vm0, %v470_v15  ;;  %612 = vst.msk [vmem:[%s998_s9 + $0xc0] sm:$0xff] %vm266_vm0, %v550_v16 }
 0x122   : > { %v474_v19 = vpop.f32.mrb[18].mxu0  ;;  %v554_v20 = vpop.f32.mrb[18].mxu1 }
 0x123   : > { %v475_v21 = vadd.f32 %v993_v28, %v474_v19  ;;  %v555_v22 = vadd.f32 %v993_v28, %v554_v20  ;;  %v476_v23 = vpop.f32.mrb[19].mxu0  ;;  %v556_v24 = vpop.f32.mrb[19].mxu1 }
 0x125   : > { %597 = vst.msk [vmem:[%s998_s9 + $0x48] sm:$0xff] %vm266_vm0, %v475_v21  ;;  %613 = vst.msk [vmem:[%s998_s9 + $0xc8] sm:$0xff] %vm266_vm0, %v555_v22 }
 0x126   : > { %v479_v25 = vpop.f32.mrb[20].mxu0  ;;  %v559_v26 = vpop.f32.mrb[20].mxu1 }
 0x127   : > { %v480_v27 = vadd.f32 %v993_v28, %v479_v25  ;;  %v560_v29 = vadd.f32 %v993_v28, %v559_v26  ;;  %v481_v30 = vpop.f32.mrb[21].mxu0  ;;  %v561_v31 = vpop.f32.mrb[21].mxu1 }
 0x129   : > { %598 = vst.msk [vmem:[%s998_s9 + $0x50] sm:$0xff] %vm266_vm0, %v480_v27  ;;  %614 = vst.msk [vmem:[%s998_s9 + $0xd0] sm:$0xff] %vm266_vm0, %v560_v29 }
 0x12a   : > { %v484_v32 = vpop.f32.mrb[22].mxu0  ;;  %v564_v33 = vpop.f32.mrb[22].mxu1 }
 0x12b   : > { %v485_v34 = vadd.f32 %v993_v28, %v484_v32  ;;  %v565_v35 = vadd.f32 %v993_v28, %v564_v33  ;;  %v486_v36 = vpop.f32.mrb[23].mxu0  ;;  %v566_v37 = vpop.f32.mrb[23].mxu1 }
 0x12d   : > { %599 = vst.msk [vmem:[%s998_s9 + $0x58] sm:$0xff] %vm266_vm0, %v485_v34  ;;  %615 = vst.msk [vmem:[%s998_s9 + $0xd8] sm:$0xff] %vm266_vm0, %v565_v35 }
 0x12e   : > { %v489_v38 = vpop.f32.mrb[24].mxu0  ;;  %v569_v39 = vpop.f32.mrb[24].mxu1 }
 0x12f   : > { %v490_v40 = vadd.f32 %v993_v28, %v489_v38  ;;  %v570_v41 = vadd.f32 %v993_v28, %v569_v39  ;;  %v491_v42 = vpop.f32.mrb[25].mxu0  ;;  %v571_v43 = vpop.f32.mrb[25].mxu1 }
 0x131   : > { %600 = vst.msk [vmem:[%s998_s9 + $0x60] sm:$0xff] %vm266_vm0, %v490_v40  ;;  %616 = vst.msk [vmem:[%s998_s9 + $0xe0] sm:$0xff] %vm266_vm0, %v570_v41 }
 0x132   : > { %v494_v44 = vpop.f32.mrb[26].mxu0  ;;  %v574_v45 = vpop.f32.mrb[26].mxu1 }
 0x133   : > { %v495_v46 = vadd.f32 %v993_v28, %v494_v44  ;;  %v575_v47 = vadd.f32 %v993_v28, %v574_v45  ;;  %v496_v48 = vpop.f32.mrb[27].mxu0  ;;  %v576_v49 = vpop.f32.mrb[27].mxu1 }
 0x135   : > { %601 = vst.msk [vmem:[%s998_s9 + $0x68] sm:$0xff] %vm266_vm0, %v495_v46  ;;  %617 = vst.msk [vmem:[%s998_s9 + $0xe8] sm:$0xff] %vm266_vm0, %v575_v47 }
 0x136   : > { %v499_v50 = vpop.f32.mrb[28].mxu0  ;;  %v579_v51 = vpop.f32.mrb[28].mxu1 }
 0x137   : > { %v500_v52 = vadd.f32 %v993_v28, %v499_v50  ;;  %v580_v53 = vadd.f32 %v993_v28, %v579_v51  ;;  %v501_v54 = vpop.f32.mrb[29].mxu0  ;;  %v581_v55 = vpop.f32.mrb[29].mxu1 }
 0x139   : > { %602 = vst.msk [vmem:[%s998_s9 + $0x70] sm:$0xff] %vm266_vm0, %v500_v52  ;;  %618 = vst.msk [vmem:[%s998_s9 + $0xf0] sm:$0xff] %vm266_vm0, %v580_v53 }
 0x13a   : > { %v504_v56 = vpop.f32.mrb[30].mxu0  ;;  %v584_v57 = vpop.f32.mrb[30].mxu1 }
 0x13b   : > { %v505_v58 = vadd.f32 %v993_v28, %v504_v56  ;;  %v585_v59 = vadd.f32 %v993_v28, %v584_v57  ;;  %v506_v60 = vpop.f32.mrb[31].mxu0  ;;  %v586_v61 = vpop.f32.mrb[31].mxu1 }
 0x13d   : > { %603 = vst.msk [vmem:[%s998_s9 + $0x78] sm:$0xff] %vm266_vm0, %v505_v58  ;;  %619 = vst.msk [vmem:[%s998_s9 + $0xf8] sm:$0xff] %vm266_vm0, %v585_v59 }
 0x13e PF: > { %s13_s12 = sadd.s32 1, %s782_s12  }
 0x13f   : > { %p10_p4 = scmp.ge.s32.totalorder %s13_s12, 4  }
 0x141   :  { %12 = sbr.rel (!%p10_p4) target bundleno = 1 (0x1), region = 62 }

// kernel: mrg_forward.15
= control target key start
LH: loop header
LB: loop body
LE: loop exit
PB: predicated region body
PF: predicated region fallthrough
CT: control target
= control target key end

     0   :  { %s835_s12 = smov 0   ;;  %s1037_s0 = inlined_call_operand.vmem [shape: f32[512,24], index: 0, kind: input, shape index: {}]   ;;  %s1038_s1 = inlined_call_operand.vmem [shape: f32[24,24], index: 1, kind: input, shape index: {}]   ;;  %s1039_s2 = inlined_call_operand.vmem [shape: f32[1,24], index: 2, kind: input, shape index: {}]   ;;  %s1040_s3 = inlined_call_operand.vmem [shape: f32[512,24], index: 3, kind: output, shape index: {}]  }
   0x1 LB: > { %s658_s13 = sadd.s32 4294967295, %s813_s12   ;;  %p662_p0 = scmp.ge.s32.totalorder %s813_s12, 1  ;;  %s813_s12 = sphi %s835_s12, %s13_s12  }
   0x2   : > { %p138_p1 = scmp.lt.s32.totalorder %s813_s12, 3 }
   0x4   : > { %p139_p2 = pnand %p662_p0, %p138_p1 }
   0x5   : > { %v206_v0 = vld [vmem:[%s1038_s1] sm:$0xff] (!%p139_p2)  ;;  %v207_v1 = vld [vmem:[%s1038_s1 + $0x8] sm:$0xff] (!%p139_p2)  ;;  %s663_s18 = sshll.u32 (!%p139_p2), %s658_s13, 5  ;;  %v208_v3 = vld [vmem:[%s1038_s1 + $0x10] sm:$0xff] (!%p139_p2)  ;;  %vm216_vm0 = vcmask (!%p139_p2), 195584  }
   0x6   : > { %142 = sbr.rel (%p139_p2) target bundleno = 265 (0x109), region = 32  ;;  %v791_v2 = vpack.c.bf16 (!%p139_p2), %v207_v1, %v206_v0  ;;  %p163_p3 = scmp.lt.s32.totalorder (!%p139_p2), %s663_s18, 63  ;;  %v929_v36 = vld [vmem:[%s1039_s2] ss:$0 sm:$0xff] (!%p139_p2) }
   0x8   : > { %792 = vmatprep.subr.bf16.mxu0 (!%p139_p2), %v791_v2  ;;  %795 = vmatprep.subr.bf16.mxu1 (!%p139_p2), %v791_v2 }
   0x9   : > { %794 = vmatpush3.bf16.msra.mxu0 (!%p139_p2), %v791_v2  ;;  %797 = vmatpush3.bf16.msra.mxu1 (!%p139_p2), %v791_v2 }
   0xa   : > { %741 = vmatprep.subr.mxu0 (!%p139_p2), %v208_v3  ;;  %796 = vmatprep.subr.mxu1 (!%p139_p2), %v208_v3 }
   0xd   : > { %s1042_s18 = smov (!%p163_p3, %s663_s18), 63  ;;  %742 = vmatpush3.msra.mxu0 %v208_v3  ;;  %798 = vmatpush3.msra.mxu1 %v208_v3 }
   0xe   : > { %s664_s21 = sshll.u32 %s1042_s18, 3 }
   0xf   : > { %s860_s24 = scalar_lea.vmem %s1037_s0, %s664_s21  ;;  %s938_s29 = scalar_lea.vmem %s1040_s3, %s664_s21 }
  0x10   : > { %v174_v4 = vld [vmem:[%s860_s24] sm:$0xff]  ;;  %v175_v6 = vld [vmem:[%s860_s24 + $0x8] sm:$0xff]  ;;  %v176_v8 = vld [vmem:[%s860_s24 + $0x10] sm:$0xff] }
  0x11   : > { %v190_v5 = vld [vmem:[%s860_s24 + $0x80] sm:$0xff]  ;;  %v191_v7 = vld [vmem:[%s860_s24 + $0x88] sm:$0xff]  ;;  %v192_v9 = vld [vmem:[%s860_s24 + $0x90] sm:$0xff]  ;;  %743 = vmatprep.mubr.msk.f32.mxu0 %vm216_vm0, %v174_v4 }
  0x12   : > { %767 = vmatprep.mubr.msk.f32.mxu1 %vm216_vm0, %v190_v5  ;;  %744 = vmatmul.mubr.msk.f32.vlgmr.msra.gmra.mrb[0].mxu0 %vm216_vm0, %v175_v6  ;;  %v177_v10 = vld [vmem:[%s860_s24 + $0x18] sm:$0xff]  ;;  %v178_v12 = vld [vmem:[%s860_s24 + $0x20] sm:$0xff]  ;;  %v179_v14 = vld [vmem:[%s860_s24 + $0x28] sm:$0xff] }
  0x13   : > { %768 = vmatmul.mubr.msk.f32.vlgmr.msra.gmra.mrb[0].mxu1 %vm216_vm0, %v191_v7  ;;  %746 = vmatprep.mubr.msk.f32.mxu0 %vm216_vm0, %v176_v8  ;;  %v193_v11 = vld [vmem:[%s860_s24 + $0x98] sm:$0xff]  ;;  %v194_v13 = vld [vmem:[%s860_s24 + $0xa0] sm:$0xff]  ;;  %v195_v15 = vld [vmem:[%s860_s24 + $0xa8] sm:$0xff] }
  0x14   : > { %770 = vmatprep.mubr.msk.f32.mxu1 %vm216_vm0, %v192_v9  ;;  %v180_v16 = vld [vmem:[%s860_s24 + $0x30] sm:$0xff]  ;;  %v181_v18 = vld [vmem:[%s860_s24 + $0x38] sm:$0xff]  ;;  %v182_v20 = vld [vmem:[%s860_s24 + $0x40] sm:$0xff] }
  0x15   : > { %v196_v17 = vld [vmem:[%s860_s24 + $0xb0] sm:$0xff]  ;;  %v197_v19 = vld [vmem:[%s860_s24 + $0xb8] sm:$0xff]  ;;  %v198_v21 = vld [vmem:[%s860_s24 + $0xc0] sm:$0xff] }
  0x16   : > { %747 = vmatmul.mubr.msk.f32.gmra.mrb[2].mxu0 %vm216_vm0, %v177_v10  ;;  %v183_v22 = vld [vmem:[%s860_s24 + $0x48] sm:$0xff]  ;;  %v184_v24 = vld [vmem:[%s860_s24 + $0x50] sm:$0xff]  ;;  %v185_v26 = vld [vmem:[%s860_s24 + $0x58] sm:$0xff] }
  0x17   : > { %771 = vmatmul.mubr.msk.f32.gmra.mrb[2].mxu1 %vm216_vm0, %v193_v11  ;;  %749 = vmatprep.mubr.msk.f32.mxu0 %vm216_vm0, %v178_v12  ;;  %v199_v23 = vld [vmem:[%s860_s24 + $0xc8] sm:$0xff]  ;;  %v200_v25 = vld [vmem:[%s860_s24 + $0xd0] sm:$0xff]  ;;  %v201_v27 = vld [vmem:[%s860_s24 + $0xd8] sm:$0xff] }
  0x18   : > { %773 = vmatprep.mubr.msk.f32.mxu1 %vm216_vm0, %v194_v13  ;;  %v186_v28 = vld [vmem:[%s860_s24 + $0x60] sm:$0xff]  ;;  %v187_v30 = vld [vmem:[%s860_s24 + $0x68] sm:$0xff]  ;;  %v188_v32 = vld [vmem:[%s860_s24 + $0x70] sm:$0xff] }
  0x19   : > { %v202_v29 = vld [vmem:[%s860_s24 + $0xe0] sm:$0xff]  ;;  %v203_v31 = vld [vmem:[%s860_s24 + $0xe8] sm:$0xff]  ;;  %v204_v33 = vld [vmem:[%s860_s24 + $0xf0] sm:$0xff] }
  0x1a   : > { %750 = vmatmul.mubr.msk.f32.gmra.mrb[4].mxu0 %vm216_vm0, %v179_v14  ;;  %v189_v34 = vld [vmem:[%s860_s24 + $0x78] sm:$0xff] }
  0x1b   : > { %774 = vmatmul.mubr.msk.f32.gmra.mrb[4].mxu1 %vm216_vm0, %v195_v15  ;;  %752 = vmatprep.mubr.msk.f32.mxu0 %vm216_vm0, %v180_v16  ;;  %v205_v35 = vld [vmem:[%s860_s24 + $0xf8] sm:$0xff] }
  0x1c   : > { %776 = vmatprep.mubr.msk.f32.mxu1 %vm216_vm0, %v196_v17 }
  0x1e   : > { %753 = vmatmul.mubr.msk.f32.gmra.mrb[6].mxu0 %vm216_vm0, %v181_v18 }
  0x1f   : > { %777 = vmatmul.mubr.msk.f32.gmra.mrb[6].mxu1 %vm216_vm0, %v197_v19  ;;  %755 = vmatprep.mubr.msk.f32.mxu0 %vm216_vm0, %v182_v20 }
  0x20   : > { %779 = vmatprep.mubr.msk.f32.mxu1 %vm216_vm0, %v198_v21 }
  0x22   : > { %756 = vmatmul.mubr.msk.f32.gmra.mrb[8].mxu0 %vm216_vm0, %v183_v22 }
  0x23   : > { %780 = vmatmul.mubr.msk.f32.gmra.mrb[8].mxu1 %vm216_vm0, %v199_v23  ;;  %758 = vmatprep.mubr.msk.f32.mxu0 %vm216_vm0, %v184_v24 }
  0x24   : > { %782 = vmatprep.mubr.msk.f32.mxu1 %vm216_vm0, %v200_v25 }
  0x26   : > { %759 = vmatmul.mubr.msk.f32.gmra.mrb[10].mxu0 %vm216_vm0, %v185_v26 }
  0x27   : > { %783 = vmatmul.mubr.msk.f32.gmra.mrb[10].mxu1 %vm216_vm0, %v201_v27  ;;  %761 = vmatprep.mubr.msk.f32.mxu0 %vm216_vm0, %v186_v28 }
  0x28   : > { %785 = vmatprep.mubr.msk.f32.mxu1 %vm216_vm0, %v202_v29 }
  0x2a   : > { %762 = vmatmul.mubr.msk.f32.gmra.mrb[12].mxu0 %vm216_vm0, %v187_v30 }
  0x2b   : > { %786 = vmatmul.mubr.msk.f32.gmra.mrb[12].mxu1 %vm216_vm0, %v203_v31  ;;  %764 = vmatprep.mubr.msk.f32.mxu0 %vm216_vm0, %v188_v32 }
  0x2c   : > { %788 = vmatprep.mubr.msk.f32.mxu1 %vm216_vm0, %v204_v33 }
  0x2e   : > { %765 = vmatmul.mubr.msk.f32.gmra.mrb[14].mxu0 %vm216_vm0, %v189_v34 }
  0x2f   : > { %789 = vmatmul.mubr.msk.f32.gmra.mrb[14].mxu1 %vm216_vm0, %v205_v35 }
  0xe5   : > { %v745_v37 = vpop.f32.mrb[0].mxu0 }
  0xe6   : > { %v769_v38 = vpop.f32.mrb[0].mxu1  ;;  %v385_v39 = vadd.f32 %v745_v37, %v929_v36  ;;  %v379_v41 = vpop.f32.mrb[1].mxu0 }
  0xe7   : > { %v465_v40 = vadd.f32 %v769_v38, %v929_v36  ;;  %v459_v42 = vpop.f32.mrb[1].mxu1  ;;  %v380_v43 = vadd.f32 %v929_v36, %v379_v41 }
  0xe8   : > { %v460_v44 = vadd.f32 %v929_v36, %v459_v42  ;;  %v539_v45 = vmax.f32 %v385_v39, 0.0 }
  0xe9   : > { %v555_v46 = vmax.f32 %v465_v40, 0.0  ;;  %v538_v47 = vmax.f32 %v380_v43, 0.0  ;;  %v748_v49 = vpop.f32.mrb[2].mxu0 }
  0xea   : > { %v554_v48 = vmax.f32 %v460_v44, 0.0  ;;  %v772_v50 = vpop.f32.mrb[2].mxu1  ;;  %571 = vst.msk [vmem:[%s938_s29 + $0x8] sm:$0xff] %vm216_vm0, %v539_v45  ;;  %v395_v51 = vadd.f32 %v748_v49, %v929_v36  ;;  %v389_v53 = vpop.f32.mrb[3].mxu0 }
  0xeb   : > { %587 = vst.msk [vmem:[%s938_s29 + $0x88] sm:$0xff] %vm216_vm0, %v555_v46  ;;  %v475_v52 = vadd.f32 %v772_v50, %v929_v36  ;;  %v469_v54 = vpop.f32.mrb[3].mxu1  ;;  %570 = vst.msk [vmem:[%s938_s29] sm:$0xff] %vm216_vm0, %v538_v47  ;;  %v390_v55 = vadd.f32 %v929_v36, %v389_v53 }
  0xec   : > { %586 = vst.msk [vmem:[%s938_s29 + $0x80] sm:$0xff] %vm216_vm0, %v554_v48  ;;  %v470_v56 = vadd.f32 %v929_v36, %v469_v54  ;;  %v541_v57 = vmax.f32 %v395_v51, 0.0 }
  0xed   : > { %v557_v58 = vmax.f32 %v475_v52, 0.0  ;;  %v540_v59 = vmax.f32 %v390_v55, 0.0  ;;  %v751_v61 = vpop.f32.mrb[4].mxu0 }
  0xee   : > { %v556_v60 = vmax.f32 %v470_v56, 0.0  ;;  %v775_v62 = vpop.f32.mrb[4].mxu1  ;;  %573 = vst.msk [vmem:[%s938_s29 + $0x18] sm:$0xff] %vm216_vm0, %v541_v57  ;;  %v405_v63 = vadd.f32 %v751_v61, %v929_v36  ;;  %v399_v1 = vpop.f32.mrb[5].mxu0 }
  0xef   : > { %589 = vst.msk [vmem:[%s938_s29 + $0x98] sm:$0xff] %vm216_vm0, %v557_v58  ;;  %v485_v0 = vadd.f32 %v775_v62, %v929_v36  ;;  %v479_v2 = vpop.f32.mrb[5].mxu1  ;;  %572 = vst.msk [vmem:[%s938_s29 + $0x10] sm:$0xff] %vm216_vm0, %v540_v59  ;;  %v400_v3 = vadd.f32 %v929_v36, %v399_v1 }
  0xf0   : > { %588 = vst.msk [vmem:[%s938_s29 + $0x90] sm:$0xff] %vm216_vm0, %v556_v60  ;;  %v480_v4 = vadd.f32 %v929_v36, %v479_v2  ;;  %v543_v5 = vmax.f32 %v405_v63, 0.0 }
  0xf1   : > { %v559_v6 = vmax.f32 %v485_v0, 0.0  ;;  %v542_v7 = vmax.f32 %v400_v3, 0.0  ;;  %v754_v9 = vpop.f32.mrb[6].mxu0 }
  0xf2   : > { %v558_v8 = vmax.f32 %v480_v4, 0.0  ;;  %v778_v10 = vpop.f32.mrb[6].mxu1  ;;  %575 = vst.msk [vmem:[%s938_s29 + $0x28] sm:$0xff] %vm216_vm0, %v543_v5  ;;  %v415_v11 = vadd.f32 %v754_v9, %v929_v36  ;;  %v409_v13 = vpop.f32.mrb[7].mxu0 }
  0xf3   : > { %591 = vst.msk [vmem:[%s938_s29 + $0xa8] sm:$0xff] %vm216_vm0, %v559_v6  ;;  %v495_v12 = vadd.f32 %v778_v10, %v929_v36  ;;  %v489_v14 = vpop.f32.mrb[7].mxu1  ;;  %574 = vst.msk [vmem:[%s938_s29 + $0x20] sm:$0xff] %vm216_vm0, %v542_v7  ;;  %v410_v15 = vadd.f32 %v929_v36, %v409_v13 }
  0xf4   : > { %590 = vst.msk [vmem:[%s938_s29 + $0xa0] sm:$0xff] %vm216_vm0, %v558_v8  ;;  %v490_v16 = vadd.f32 %v929_v36, %v489_v14  ;;  %v545_v17 = vmax.f32 %v415_v11, 0.0 }
  0xf5   : > { %v561_v18 = vmax.f32 %v495_v12, 0.0  ;;  %v544_v19 = vmax.f32 %v410_v15, 0.0  ;;  %v757_v21 = vpop.f32.mrb[8].mxu0 }
  0xf6   : > { %v560_v20 = vmax.f32 %v490_v16, 0.0  ;;  %v781_v22 = vpop.f32.mrb[8].mxu1  ;;  %577 = vst.msk [vmem:[%s938_s29 + $0x38] sm:$0xff] %vm216_vm0, %v545_v17  ;;  %v425_v23 = vadd.f32 %v757_v21, %v929_v36  ;;  %v419_v25 = vpop.f32.mrb[9].mxu0 }
  0xf7   : > { %593 = vst.msk [vmem:[%s938_s29 + $0xb8] sm:$0xff] %vm216_vm0, %v561_v18  ;;  %v505_v24 = vadd.f32 %v781_v22, %v929_v36  ;;  %v499_v26 = vpop.f32.mrb[9].mxu1  ;;  %576 = vst.msk [vmem:[%s938_s29 + $0x30] sm:$0xff] %vm216_vm0, %v544_v19  ;;  %v420_v27 = vadd.f32 %v929_v36, %v419_v25 }
  0xf8   : > { %592 = vst.msk [vmem:[%s938_s29 + $0xb0] sm:$0xff] %vm216_vm0, %v560_v20  ;;  %v500_v28 = vadd.f32 %v929_v36, %v499_v26  ;;  %v547_v29 = vmax.f32 %v425_v23, 0.0 }
  0xf9   : > { %v563_v30 = vmax.f32 %v505_v24, 0.0  ;;  %v546_v31 = vmax.f32 %v420_v27, 0.0  ;;  %v760_v33 = vpop.f32.mrb[10].mxu0 }
  0xfa   : > { %v562_v32 = vmax.f32 %v500_v28, 0.0  ;;  %v784_v34 = vpop.f32.mrb[10].mxu1  ;;  %579 = vst.msk [vmem:[%s938_s29 + $0x48] sm:$0xff] %vm216_vm0, %v547_v29  ;;  %v435_v35 = vadd.f32 %v760_v33, %v929_v36  ;;  %v429_v38 = vpop.f32.mrb[11].mxu0 }
  0xfb   : > { %595 = vst.msk [vmem:[%s938_s29 + $0xc8] sm:$0xff] %vm216_vm0, %v563_v30  ;;  %v515_v37 = vadd.f32 %v784_v34, %v929_v36  ;;  %v509_v39 = vpop.f32.mrb[11].mxu1  ;;  %578 = vst.msk [vmem:[%s938_s29 + $0x40] sm:$0xff] %vm216_vm0, %v546_v31  ;;  %v430_v40 = vadd.f32 %v929_v36, %v429_v38 }
  0xfc   : > { %594 = vst.msk [vmem:[%s938_s29 + $0xc0] sm:$0xff] %vm216_vm0, %v562_v32  ;;  %v510_v41 = vadd.f32 %v929_v36, %v509_v39  ;;  %v549_v42 = vmax.f32 %v435_v35, 0.0 }
  0xfd   : > { %v565_v43 = vmax.f32 %v515_v37, 0.0  ;;  %v548_v44 = vmax.f32 %v430_v40, 0.0  ;;  %v763_v46 = vpop.f32.mrb[12].mxu0 }
  0xfe   : > { %v564_v45 = vmax.f32 %v510_v41, 0.0  ;;  %v787_v47 = vpop.f32.mrb[12].mxu1  ;;  %581 = vst.msk [vmem:[%s938_s29 + $0x58] sm:$0xff] %vm216_vm0, %v549_v42  ;;  %v445_v48 = vadd.f32 %v763_v46, %v929_v36  ;;  %v439_v50 = vpop.f32.mrb[13].mxu0 }
  0xff   : > { %597 = vst.msk [vmem:[%s938_s29 + $0xd8] sm:$0xff] %vm216_vm0, %v565_v43  ;;  %v525_v49 = vadd.f32 %v787_v47, %v929_v36  ;;  %v519_v51 = vpop.f32.mrb[13].mxu1  ;;  %580 = vst.msk [vmem:[%s938_s29 + $0x50] sm:$0xff] %vm216_vm0, %v548_v44  ;;  %v440_v52 = vadd.f32 %v929_v36, %v439_v50 }
 0x100   : > { %596 = vst.msk [vmem:[%s938_s29 + $0xd0] sm:$0xff] %vm216_vm0, %v564_v45  ;;  %v520_v53 = vadd.f32 %v929_v36, %v519_v51  ;;  %v551_v54 = vmax.f32 %v445_v48, 0.0 }
 0x101   : > { %v567_v55 = vmax.f32 %v525_v49, 0.0  ;;  %v550_v56 = vmax.f32 %v440_v52, 0.0  ;;  %v766_v58 = vpop.f32.mrb[14].mxu0 }
 0x102   : > { %v566_v57 = vmax.f32 %v520_v53, 0.0  ;;  %v790_v59 = vpop.f32.mrb[14].mxu1  ;;  %583 = vst.msk [vmem:[%s938_s29 + $0x68] sm:$0xff] %vm216_vm0, %v551_v54  ;;  %v455_v60 = vadd.f32 %v766_v58, %v929_v36  ;;  %v449_v62 = vpop.f32.mrb[15].mxu0 }
 0x103   : > { %599 = vst.msk [vmem:[%s938_s29 + $0xe8] sm:$0xff] %vm216_vm0, %v567_v55  ;;  %v535_v61 = vadd.f32 %v790_v59, %v929_v36  ;;  %v529_v63 = vpop.f32.mrb[15].mxu1  ;;  %582 = vst.msk [vmem:[%s938_s29 + $0x60] sm:$0xff] %vm216_vm0, %v550_v56  ;;  %v450_v0 = vadd.f32 %v929_v36, %v449_v62 }
 0x104   : > { %598 = vst.msk [vmem:[%s938_s29 + $0xe0] sm:$0xff] %vm216_vm0, %v566_v57  ;;  %v530_v1 = vadd.f32 %v929_v36, %v529_v63  ;;  %v553_v2 = vmax.f32 %v455_v60, 0.0 }
 0x105   : > { %v569_v3 = vmax.f32 %v535_v61, 0.0  ;;  %v552_v4 = vmax.f32 %v450_v0, 0.0 }
 0x106   : > { %v568_v5 = vmax.f32 %v530_v1, 0.0  ;;  %585 = vst.msk [vmem:[%s938_s29 + $0x78] sm:$0xff] %vm216_vm0, %v553_v2 }
 0x107   : > { %601 = vst.msk [vmem:[%s938_s29 + $0xf8] sm:$0xff] %vm216_vm0, %v569_v3  ;;  %584 = vst.msk [vmem:[%s938_s29 + $0x70] sm:$0xff] %vm216_vm0, %v552_v4 }
 0x108   : > { %600 = vst.msk [vmem:[%s938_s29 + $0xf0] sm:$0xff] %vm216_vm0, %v568_v5 }
 0x109 PF: > { %s13_s12 = sadd.s32 1, %s813_s12  }
 0x10a   : > { %p10_p4 = scmp.ge.s32.totalorder %s13_s12, 4  }
 0x10c   :  { %12 = sbr.rel (!%p10_p4) target bundleno = 1 (0x1), region = 62 }

// kernel: mrg_forward.16
= control target key start
LH: loop header
LB: loop body
LE: loop exit
PB: predicated region body
PF: predicated region fallthrough
CT: control target
= control target key end

     0   :  { %s803_s9 = smov 0   ;;  %s971_s0 = inlined_call_operand.vmem [shape: f32[512,32], index: 0, kind: input, shape index: {}]   ;;  %s972_s1 = inlined_call_operand.vmem [shape: f32[32,32], index: 1, kind: input, shape index: {}]   ;;  %s973_s2 = inlined_call_operand.vmem [shape: f32[512,32], index: 2, kind: output, shape index: {}]  }
   0x1 LB: > { %s625_s10 = sadd.s32 4294967295, %s786_s9   ;;  %p629_p0 = scmp.ge.s32.totalorder %s786_s9, 1  ;;  %s786_s9 = sphi %s803_s9, %s12_s9  }
   0x2   : > { %p113_p1 = scmp.lt.s32.totalorder %s786_s9, 3 }
   0x4   : > { %p114_p2 = pnand %p629_p0, %p113_p1 }
   0x5   : > { %v211_v0 = vld [vmem:[%s972_s1] sm:$0xff] (!%p114_p2)  ;;  %v212_v1 = vld [vmem:[%s972_s1 + $0x8] sm:$0xff] (!%p114_p2)  ;;  %v213_v2 = vld [vmem:[%s972_s1 + $0x10] sm:$0xff] (!%p114_p2)  ;;  %s630_s17 = sshll.u32 (!%p114_p2), %s625_s10, 5  ;;  %vm215_vm0 = vcmask (!%p114_p2), 261120  }
   0x6   : > { %117 = sbr.rel (%p114_p2) target bundleno = 263 (0x107), region = 28  ;;  %v760_v3 = vpack.c.bf16 (!%p114_p2), %v212_v1, %v211_v0  ;;  %v214_v4 = vld [vmem:[%s972_s1 + $0x18] sm:$0xff] (!%p114_p2)  ;;  %p136_p3 = scmp.lt.s32.totalorder (!%p114_p2), %s630_s17, 63 }
   0x7   : > { %v764_v5 = vpack.c.bf16 (!%p114_p2), %v214_v4, %v213_v2 }
   0x8   : > { %761 = vmatprep.subr.bf16.mxu0 (!%p114_p2), %v760_v3  ;;  %768 = vmatprep.subr.bf16.mxu1 (!%p114_p2), %v760_v3 }
   0x9   : > { %763 = vmatpush3.bf16.msra.mxu0 (!%p114_p2), %v760_v3  ;;  %770 = vmatpush3.bf16.msra.mxu1 (!%p114_p2), %v760_v3 }
   0xa   : > { %765 = vmatprep.subr.bf16.mxu0 (!%p114_p2), %v764_v5  ;;  %769 = vmatprep.subr.bf16.mxu1 (!%p114_p2), %v764_v5 }
   0xd   : > { %s975_s17 = smov (!%p136_p3, %s630_s17), 63  ;;  %767 = vmatpush3.bf16.msra.mxu0 %v764_v5  ;;  %771 = vmatpush3.bf16.msra.mxu1 %v764_v5 }
   0xe   : > { %s631_s20 = sshll.u32 %s975_s17, 3 }
   0xf   : > { %s831_s23 = scalar_lea.vmem %s971_s0, %s631_s20  ;;  %s902_s26 = scalar_lea.vmem %s973_s2, %s631_s20 }
  0x10   : > { %v147_v6 = vld [vmem:[%s831_s23] sm:$0xff]  ;;  %v148_v8 = vld [vmem:[%s831_s23 + $0x8] sm:$0xff]  ;;  %v149_v13 = vld [vmem:[%s831_s23 + $0x10] sm:$0xff] }
  0x11   : > { %v163_v7 = vld [vmem:[%s831_s23 + $0x80] sm:$0xff]  ;;  %v179_v9 = vmax.f32 %v147_v6, 0.0  ;;  %v180_v11 = vmax.f32 %v148_v8, 0.0  ;;  %v164_v12 = vld [vmem:[%s831_s23 + $0x88] sm:$0xff]  ;;  %v165_v14 = vld [vmem:[%s831_s23 + $0x90] sm:$0xff]  ;;  %v181_v16 = vmax.f32 %v149_v13, 0.0 }
  0x12   : > { %v195_v10 = vmax.f32 %v163_v7, 0.0  ;;  %v196_v15 = vmax.f32 %v164_v12, 0.0  ;;  %v197_v17 = vmax.f32 %v165_v14, 0.0  ;;  %v150_v18 = vld [vmem:[%s831_s23 + $0x18] sm:$0xff]  ;;  %v151_v20 = vld [vmem:[%s831_s23 + $0x20] sm:$0xff]  ;;  %v152_v26 = vld [vmem:[%s831_s23 + $0x28] sm:$0xff] }
  0x13   : > { %v166_v19 = vld [vmem:[%s831_s23 + $0x98] sm:$0xff]  ;;  %712 = vmatprep.mubr.msk.f32.mxu0 %vm215_vm0, %v179_v9  ;;  %v167_v21 = vld [vmem:[%s831_s23 + $0xa0] sm:$0xff]  ;;  %v182_v22 = vmax.f32 %v150_v18, 0.0  ;;  %v183_v24 = vmax.f32 %v151_v20, 0.0  ;;  %v168_v27 = vld [vmem:[%s831_s23 + $0xa8] sm:$0xff]  ;;  %v184_v30 = vmax.f32 %v152_v26, 0.0 }
  0x14   : > { %736 = vmatprep.mubr.msk.f32.mxu1 %vm215_vm0, %v195_v10  ;;  %713 = vmatmul.mubr.msk.f32.vlgmr.msra.gmra.mrb[0].mxu0 %vm215_vm0, %v180_v11  ;;  %v198_v23 = vmax.f32 %v166_v19, 0.0  ;;  %v199_v25 = vmax.f32 %v167_v21, 0.0  ;;  %v153_v28 = vld [vmem:[%s831_s23 + $0x30] sm:$0xff]  ;;  %v200_v31 = vmax.f32 %v168_v27, 0.0  ;;  %v154_v34 = vld [vmem:[%s831_s23 + $0x38] sm:$0xff]  ;;  %v155_v36 = vld [vmem:[%s831_s23 + $0x40] sm:$0xff] }
  0x15   : > { %737 = vmatmul.mubr.msk.f32.vlgmr.msra.gmra.mrb[0].mxu1 %vm215_vm0, %v196_v15  ;;  %715 = vmatprep.mubr.msk.f32.mxu0 %vm215_vm0, %v181_v16  ;;  %v169_v29 = vld [vmem:[%s831_s23 + $0xb0] sm:$0xff]  ;;  %v185_v32 = vmax.f32 %v153_v28, 0.0  ;;  %v170_v35 = vld [vmem:[%s831_s23 + $0xb8] sm:$0xff]  ;;  %v171_v37 = vld [vmem:[%s831_s23 + $0xc0] sm:$0xff]  ;;  %v186_v38 = vmax.f32 %v154_v34, 0.0  ;;  %v187_v40 = vmax.f32 %v155_v36, 0.0 }
  0x16   : > { %739 = vmatprep.mubr.msk.f32.mxu1 %vm215_vm0, %v197_v17  ;;  %v201_v33 = vmax.f32 %v169_v29, 0.0  ;;  %v202_v39 = vmax.f32 %v170_v35, 0.0  ;;  %v203_v41 = vmax.f32 %v171_v37, 0.0  ;;  %v156_v42 = vld [vmem:[%s831_s23 + $0x48] sm:$0xff]  ;;  %v157_v44 = vld [vmem:[%s831_s23 + $0x50] sm:$0xff]  ;;  %v158_v50 = vld [vmem:[%s831_s23 + $0x58] sm:$0xff] }
  0x17   : > { %v172_v43 = vld [vmem:[%s831_s23 + $0xc8] sm:$0xff]  ;;  %v173_v45 = vld [vmem:[%s831_s23 + $0xd0] sm:$0xff]  ;;  %v188_v46 = vmax.f32 %v156_v42, 0.0  ;;  %v189_v48 = vmax.f32 %v157_v44, 0.0  ;;  %v174_v51 = vld [vmem:[%s831_s23 + $0xd8] sm:$0xff]  ;;  %v190_v54 = vmax.f32 %v158_v50, 0.0 }
  0x18   : > { %716 = vmatmul.mubr.msk.f32.gmra.mrb[2].mxu0 %vm215_vm0, %v182_v22  ;;  %v204_v47 = vmax.f32 %v172_v43, 0.0  ;;  %v205_v49 = vmax.f32 %v173_v45, 0.0  ;;  %v159_v52 = vld [vmem:[%s831_s23 + $0x60] sm:$0xff]  ;;  %v206_v55 = vmax.f32 %v174_v51, 0.0  ;;  %v160_v58 = vld [vmem:[%s831_s23 + $0x68] sm:$0xff]  ;;  %v161_v60 = vld [vmem:[%s831_s23 + $0x70] sm:$0xff] }
  0x19   : > { %740 = vmatmul.mubr.msk.f32.gmra.mrb[2].mxu1 %vm215_vm0, %v198_v23  ;;  %718 = vmatprep.mubr.msk.f32.mxu0 %vm215_vm0, %v183_v24  ;;  %v175_v53 = vld [vmem:[%s831_s23 + $0xe0] sm:$0xff]  ;;  %v191_v56 = vmax.f32 %v159_v52, 0.0  ;;  %v176_v59 = vld [vmem:[%s831_s23 + $0xe8] sm:$0xff]  ;;  %v177_v61 = vld [vmem:[%s831_s23 + $0xf0] sm:$0xff]  ;;  %v192_v62 = vmax.f32 %v160_v58, 0.0  ;;  %v193_v0 = vmax.f32 %v161_v60, 0.0 }
  0x1a   : > { %742 = vmatprep.mubr.msk.f32.mxu1 %vm215_vm0, %v199_v25  ;;  %v207_v57 = vmax.f32 %v175_v53, 0.0  ;;  %v208_v63 = vmax.f32 %v176_v59, 0.0  ;;  %v209_v1 = vmax.f32 %v177_v61, 0.0  ;;  %v162_v2 = vld [vmem:[%s831_s23 + $0x78] sm:$0xff] }
  0x1b   : > { %v178_v3 = vld [vmem:[%s831_s23 + $0xf8] sm:$0xff]  ;;  %v194_v4 = vmax.f32 %v162_v2, 0.0 }
  0x1c   : > { %719 = vmatmul.mubr.msk.f32.gmra.mrb[4].mxu0 %vm215_vm0, %v184_v30  ;;  %v210_v5 = vmax.f32 %v178_v3, 0.0 }
  0x1d   : > { %743 = vmatmul.mubr.msk.f32.gmra.mrb[4].mxu1 %vm215_vm0, %v200_v31  ;;  %721 = vmatprep.mubr.msk.f32.mxu0 %vm215_vm0, %v185_v32 }
  0x1e   : > { %745 = vmatprep.mubr.msk.f32.mxu1 %vm215_vm0, %v201_v33 }
  0x20   : > { %722 = vmatmul.mubr.msk.f32.gmra.mrb[6].mxu0 %vm215_vm0, %v186_v38 }
  0x21   : > { %746 = vmatmul.mubr.msk.f32.gmra.mrb[6].mxu1 %vm215_vm0, %v202_v39  ;;  %724 = vmatprep.mubr.msk.f32.mxu0 %vm215_vm0, %v187_v40 }
  0x22   : > { %748 = vmatprep.mubr.msk.f32.mxu1 %vm215_vm0, %v203_v41 }
  0x24   : > { %725 = vmatmul.mubr.msk.f32.gmra.mrb[8].mxu0 %vm215_vm0, %v188_v46 }
  0x25   : > { %749 = vmatmul.mubr.msk.f32.gmra.mrb[8].mxu1 %vm215_vm0, %v204_v47  ;;  %727 = vmatprep.mubr.msk.f32.mxu0 %vm215_vm0, %v189_v48 }
  0x26   : > { %751 = vmatprep.mubr.msk.f32.mxu1 %vm215_vm0, %v205_v49 }
  0x28   : > { %728 = vmatmul.mubr.msk.f32.gmra.mrb[10].mxu0 %vm215_vm0, %v190_v54 }
  0x29   : > { %752 = vmatmul.mubr.msk.f32.gmra.mrb[10].mxu1 %vm215_vm0, %v206_v55  ;;  %730 = vmatprep.mubr.msk.f32.mxu0 %vm215_vm0, %v191_v56 }
  0x2a   : > { %754 = vmatprep.mubr.msk.f32.mxu1 %vm215_vm0, %v207_v57 }
  0x2c   : > { %731 = vmatmul.mubr.msk.f32.gmra.mrb[12].mxu0 %vm215_vm0, %v192_v62 }
  0x2d   : > { %755 = vmatmul.mubr.msk.f32.gmra.mrb[12].mxu1 %vm215_vm0, %v208_v63  ;;  %733 = vmatprep.mubr.msk.f32.mxu0 %vm215_vm0, %v193_v0 }
  0x2e   : > { %757 = vmatprep.mubr.msk.f32.mxu1 %vm215_vm0, %v209_v1 }
  0x30   : > { %734 = vmatmul.mubr.msk.f32.gmra.mrb[14].mxu0 %vm215_vm0, %v194_v4 }
  0x31   : > { %758 = vmatmul.mubr.msk.f32.gmra.mrb[14].mxu1 %vm215_vm0, %v210_v5 }
  0xe7   : > { %v714_v6 = vpop.f32.mrb[0].mxu0 }
  0xe8   : > { %v738_v7 = vpop.f32.mrb[0].mxu1  ;;  %538 = vst.msk [vmem:[%s902_s26 + $0x8] sm:$0xff] %vm215_vm0, %v714_v6  ;;  %v378_v8 = vpop.f32.mrb[1].mxu0 }
  0xe9   : > { %554 = vst.msk [vmem:[%s902_s26 + $0x88] sm:$0xff] %vm215_vm0, %v738_v7  ;;  %v458_v9 = vpop.f32.mrb[1].mxu1  ;;  %537 = vst.msk [vmem:[%s902_s26] sm:$0xff] %vm215_vm0, %v378_v8 }
  0xea   : > { %553 = vst.msk [vmem:[%s902_s26 + $0x80] sm:$0xff] %vm215_vm0, %v458_v9 }
  0xeb   : > { %v717_v10 = vpop.f32.mrb[2].mxu0 }
  0xec   : > { %v741_v11 = vpop.f32.mrb[2].mxu1  ;;  %540 = vst.msk [vmem:[%s902_s26 + $0x18] sm:$0xff] %vm215_vm0, %v717_v10  ;;  %v388_v12 = vpop.f32.mrb[3].mxu0 }
  0xed   : > { %556 = vst.msk [vmem:[%s902_s26 + $0x98] sm:$0xff] %vm215_vm0, %v741_v11  ;;  %v468_v13 = vpop.f32.mrb[3].mxu1  ;;  %539 = vst.msk [vmem:[%s902_s26 + $0x10] sm:$0xff] %vm215_vm0, %v388_v12 }
  0xee   : > { %555 = vst.msk [vmem:[%s902_s26 + $0x90] sm:$0xff] %vm215_vm0, %v468_v13 }
  0xef   : > { %v720_v14 = vpop.f32.mrb[4].mxu0 }
  0xf0   : > { %v744_v15 = vpop.f32.mrb[4].mxu1  ;;  %542 = vst.msk [vmem:[%s902_s26 + $0x28] sm:$0xff] %vm215_vm0, %v720_v14  ;;  %v398_v16 = vpop.f32.mrb[5].mxu0 }
  0xf1   : > { %558 = vst.msk [vmem:[%s902_s26 + $0xa8] sm:$0xff] %vm215_vm0, %v744_v15  ;;  %v478_v17 = vpop.f32.mrb[5].mxu1  ;;  %541 = vst.msk [vmem:[%s902_s26 + $0x20] sm:$0xff] %vm215_vm0, %v398_v16 }
  0xf2   : > { %557 = vst.msk [vmem:[%s902_s26 + $0xa0] sm:$0xff] %vm215_vm0, %v478_v17 }
  0xf3   : > { %v723_v18 = vpop.f32.mrb[6].mxu0 }
  0xf4   : > { %v747_v19 = vpop.f32.mrb[6].mxu1  ;;  %544 = vst.msk [vmem:[%s902_s26 + $0x38] sm:$0xff] %vm215_vm0, %v723_v18  ;;  %v408_v20 = vpop.f32.mrb[7].mxu0 }
  0xf5   : > { %560 = vst.msk [vmem:[%s902_s26 + $0xb8] sm:$0xff] %vm215_vm0, %v747_v19  ;;  %v488_v21 = vpop.f32.mrb[7].mxu1  ;;  %543 = vst.msk [vmem:[%s902_s26 + $0x30] sm:$0xff] %vm215_vm0, %v408_v20 }
  0xf6   : > { %559 = vst.msk [vmem:[%s902_s26 + $0xb0] sm:$0xff] %vm215_vm0, %v488_v21 }
  0xf7   : > { %v726_v22 = vpop.f32.mrb[8].mxu0 }
  0xf8   : > { %v750_v23 = vpop.f32.mrb[8].mxu1  ;;  %546 = vst.msk [vmem:[%s902_s26 + $0x48] sm:$0xff] %vm215_vm0, %v726_v22  ;;  %v418_v24 = vpop.f32.mrb[9].mxu0 }
  0xf9   : > { %562 = vst.msk [vmem:[%s902_s26 + $0xc8] sm:$0xff] %vm215_vm0, %v750_v23  ;;  %v498_v25 = vpop.f32.mrb[9].mxu1  ;;  %545 = vst.msk [vmem:[%s902_s26 + $0x40] sm:$0xff] %vm215_vm0, %v418_v24 }
  0xfa   : > { %561 = vst.msk [vmem:[%s902_s26 + $0xc0] sm:$0xff] %vm215_vm0, %v498_v25 }
  0xfb   : > { %v729_v26 = vpop.f32.mrb[10].mxu0 }
  0xfc   : > { %v753_v27 = vpop.f32.mrb[10].mxu1  ;;  %548 = vst.msk [vmem:[%s902_s26 + $0x58] sm:$0xff] %vm215_vm0, %v729_v26  ;;  %v428_v28 = vpop.f32.mrb[11].mxu0 }
  0xfd   : > { %564 = vst.msk [vmem:[%s902_s26 + $0xd8] sm:$0xff] %vm215_vm0, %v753_v27  ;;  %v508_v29 = vpop.f32.mrb[11].mxu1  ;;  %547 = vst.msk [vmem:[%s902_s26 + $0x50] sm:$0xff] %vm215_vm0, %v428_v28 }
  0xfe   : > { %563 = vst.msk [vmem:[%s902_s26 + $0xd0] sm:$0xff] %vm215_vm0, %v508_v29 }
  0xff   : > { %v732_v30 = vpop.f32.mrb[12].mxu0 }
 0x100   : > { %v756_v31 = vpop.f32.mrb[12].mxu1  ;;  %550 = vst.msk [vmem:[%s902_s26 + $0x68] sm:$0xff] %vm215_vm0, %v732_v30  ;;  %v438_v32 = vpop.f32.mrb[13].mxu0 }
 0x101   : > { %566 = vst.msk [vmem:[%s902_s26 + $0xe8] sm:$0xff] %vm215_vm0, %v756_v31  ;;  %v518_v33 = vpop.f32.mrb[13].mxu1  ;;  %549 = vst.msk [vmem:[%s902_s26 + $0x60] sm:$0xff] %vm215_vm0, %v438_v32 }
 0x102   : > { %565 = vst.msk [vmem:[%s902_s26 + $0xe0] sm:$0xff] %vm215_vm0, %v518_v33 }
 0x103   : > { %v735_v34 = vpop.f32.mrb[14].mxu0 }
 0x104   : > { %v759_v35 = vpop.f32.mrb[14].mxu1  ;;  %552 = vst.msk [vmem:[%s902_s26 + $0x78] sm:$0xff] %vm215_vm0, %v735_v34  ;;  %v448_v36 = vpop.f32.mrb[15].mxu0 }
 0x105   : > { %568 = vst.msk [vmem:[%s902_s26 + $0xf8] sm:$0xff] %vm215_vm0, %v759_v35  ;;  %v528_v37 = vpop.f32.mrb[15].mxu1  ;;  %551 = vst.msk [vmem:[%s902_s26 + $0x70] sm:$0xff] %vm215_vm0, %v448_v36 }
 0x106   : > { %567 = vst.msk [vmem:[%s902_s26 + $0xf0] sm:$0xff] %vm215_vm0, %v528_v37 }
 0x107 PF: > { %s12_s9 = sadd.s32 1, %s786_s9  }
 0x108   : > { %p9_p4 = scmp.ge.s32.totalorder %s12_s9, 4  }
 0x10a   :  { %11 = sbr.rel (!%p9_p4) target bundleno = 1 (0x1), region = 58 }

// kernel: mrg_forward.18
= control target key start
LH: loop header
LB: loop body
LE: loop exit
PB: predicated region body
PF: predicated region fallthrough
CT: control target
= control target key end

     0   :  { %s1158_s9 = smov 0   ;;  %s1359_s0 = inlined_call_operand.vmem [shape: f32[512,72], index: 0, kind: input, shape index: {}]   ;;  %s1360_s1 = inlined_call_operand.vmem [shape: f32[72,4], index: 1, kind: input, shape index: {}]   ;;  %s1361_s2 = inlined_call_operand.vmem [shape: f32[512,4], index: 2, kind: output, shape index: {}]  }
   0x1 LB: > { %s791_s10 = sadd.s32 4294967295, %s1141_s9   ;;  %p795_p0 = scmp.ge.s32.totalorder %s1141_s9, 1  ;;  %s1141_s9 = sphi %s1158_s9, %s12_s9  }
   0x2   : > { %p113_p1 = scmp.lt.s32.totalorder %s1141_s9, 3 }
   0x4   : > { %p114_p2 = pnand %p795_p0, %p113_p1 }
   0x5   : > { %v179_v0 = vld [vmem:[%s1360_s1] sm:$0xff] (!%p114_p2)  ;;  %v180_v1 = vld [vmem:[%s1360_s1 + $0x8] sm:$0xff] (!%p114_p2)  ;;  %v181_v2 = vld [vmem:[%s1360_s1 + $0x10] sm:$0xff] (!%p114_p2)  ;;  %s796_s17 = sshll.u32 (!%p114_p2), %s791_s10, 5  ;;  %vm188_vm0 = vcmask (!%p114_p2), 588800   ;;  %vm702_vm1 = vcmask (!%p114_p2), 31744  }
   0x6   : > { %117 = sbr.rel (%p114_p2) target bundleno = 323 (0x143), region = 28  ;;  %v973_v3 = vpack.c.bf16 (!%p114_p2), %v180_v1, %v179_v0  ;;  %v182_v4 = vld [vmem:[%s1360_s1 + $0x18] sm:$0xff] (!%p114_p2)  ;;  %p136_p3 = scmp.lt.s32.totalorder (!%p114_p2), %s796_s17, 63  ;;  %v183_v6 = vld [vmem:[%s1360_s1 + $0x20] sm:$0xff] (!%p114_p2)  ;;  %v184_v7 = vld [vmem:[%s1360_s1 + $0x28] sm:$0xff] (!%p114_p2) }
   0x7   : > { %v977_v5 = vpack.c.bf16 (!%p114_p2), %v182_v4, %v181_v2  ;;  %v981_v8 = vpack.c.bf16 (!%p114_p2), %v184_v7, %v183_v6  ;;  %v185_v9 = vld [vmem:[%s1360_s1 + $0x30] sm:$0xff] (!%p114_p2)  ;;  %v186_v10 = vld [vmem:[%s1360_s1 + $0x38] sm:$0xff] (!%p114_p2)  ;;  %v187_v14 = vld [vmem:[%s1360_s1 + $0x40] sm:$0xff] (!%p114_p2) }
   0x8   : > { %974 = vmatprep.subr.bf16.mxu0 (!%p114_p2), %v973_v3  ;;  %989 = vmatprep.subr.bf16.mxu1 (!%p114_p2), %v973_v3  ;;  %v985_v13 = vpack.c.bf16 (!%p114_p2), %v186_v10, %v185_v9 }
   0x9   : > { %976 = vmatpush3.bf16.msra.mxu0 (!%p114_p2), %v973_v3  ;;  %994 = vmatpush3.bf16.msra.mxu1 (!%p114_p2), %v973_v3 }
   0xa   : > { %978 = vmatprep.subr.bf16.mxu0 (!%p114_p2), %v977_v5  ;;  %990 = vmatprep.subr.bf16.mxu1 (!%p114_p2), %v977_v5 }
   0xd   : > { %s1363_s17 = smov (!%p136_p3, %s796_s17), 63  ;;  %980 = vmatpush3.bf16.msra.mxu0 %v977_v5  ;;  %995 = vmatpush3.bf16.msra.mxu1 %v977_v5 }
   0xe   : > { %s797_s24 = sshll.u32 %s1363_s17, 3  ;;  %982 = vmatprep.subr.bf16.mxu0 %v981_v8  ;;  %991 = vmatprep.subr.bf16.mxu1 %v981_v8 }
   0xf   : > { %s1198_s3 = scalar_lea.vmem %s1359_s0, %s797_s24  ;;  %s1272_s8 = scalar_lea.vmem %s1361_s2, %s797_s24 }
  0x10   : > { %v147_v11 = vld [vmem:[%s1198_s3] sm:$0xff]  ;;  %v148_v15 = vld [vmem:[%s1198_s3 + $0x8] sm:$0xff]  ;;  %v149_v17 = vld [vmem:[%s1198_s3 + $0x10] sm:$0xff] }
  0x11   : > { %v163_v12 = vld [vmem:[%s1198_s3 + $0x80] sm:$0xff]  ;;  %925 = vmatprep.mubr.msk.f32.mxu0 %vm188_vm0, %v147_v11  ;;  %984 = vmatpush3.bf16.msra.mxu0 %v981_v8  ;;  %v164_v16 = vld [vmem:[%s1198_s3 + $0x88] sm:$0xff]  ;;  %v165_v18 = vld [vmem:[%s1198_s3 + $0x90] sm:$0xff] }
  0x12   : > { %949 = vmatprep.mubr.msk.f32.mxu1 %vm188_vm0, %v163_v12  ;;  %996 = vmatpush3.bf16.msra.mxu1 %v981_v8  ;;  %v150_v19 = vld [vmem:[%s1198_s3 + $0x18] sm:$0xff]  ;;  %v151_v21 = vld [vmem:[%s1198_s3 + $0x20] sm:$0xff]  ;;  %v152_v23 = vld [vmem:[%s1198_s3 + $0x28] sm:$0xff] }
  0x13   : > { %986 = vmatprep.subr.bf16.mxu0 %v985_v13  ;;  %992 = vmatprep.subr.bf16.mxu1 %v985_v13  ;;  %v166_v20 = vld [vmem:[%s1198_s3 + $0x98] sm:$0xff]  ;;  %v167_v22 = vld [vmem:[%s1198_s3 + $0xa0] sm:$0xff]  ;;  %v168_v24 = vld [vmem:[%s1198_s3 + $0xa8] sm:$0xff] }
  0x14   : > { %v153_v25 = vld [vmem:[%s1198_s3 + $0x30] sm:$0xff]  ;;  %v154_v27 = vld [vmem:[%s1198_s3 + $0x38] sm:$0xff]  ;;  %v155_v29 = vld [vmem:[%s1198_s3 + $0x40] sm:$0xff] }
  0x15   : > { %988 = vmatpush3.bf16.msra.mxu0 %v985_v13  ;;  %v169_v26 = vld [vmem:[%s1198_s3 + $0xb0] sm:$0xff]  ;;  %v170_v28 = vld [vmem:[%s1198_s3 + $0xb8] sm:$0xff]  ;;  %v171_v30 = vld [vmem:[%s1198_s3 + $0xc0] sm:$0xff] }
  0x16   : > { %997 = vmatpush3.bf16.msra.mxu1 %v985_v13  ;;  %923 = vmatprep.subr.mxu0 %v187_v14  ;;  %v156_v31 = vld [vmem:[%s1198_s3 + $0x48] sm:$0xff]  ;;  %v157_v33 = vld [vmem:[%s1198_s3 + $0x50] sm:$0xff]  ;;  %v158_v35 = vld [vmem:[%s1198_s3 + $0x58] sm:$0xff] }
  0x17   : > { %993 = vmatprep.subr.mxu1 %v187_v14  ;;  %v172_v32 = vld [vmem:[%s1198_s3 + $0xc8] sm:$0xff]  ;;  %v173_v34 = vld [vmem:[%s1198_s3 + $0xd0] sm:$0xff]  ;;  %v174_v36 = vld [vmem:[%s1198_s3 + $0xd8] sm:$0xff] }
  0x18   : > { %v159_v37 = vld [vmem:[%s1198_s3 + $0x60] sm:$0xff]  ;;  %v160_v39 = vld [vmem:[%s1198_s3 + $0x68] sm:$0xff]  ;;  %v161_v41 = vld [vmem:[%s1198_s3 + $0x70] sm:$0xff] }
  0x19   : > { %924 = vmatpush3.msra.mxu0 %v187_v14  ;;  %v175_v38 = vld [vmem:[%s1198_s3 + $0xe0] sm:$0xff]  ;;  %v176_v40 = vld [vmem:[%s1198_s3 + $0xe8] sm:$0xff]  ;;  %v177_v42 = vld [vmem:[%s1198_s3 + $0xf0] sm:$0xff] }
  0x1a   : > { %998 = vmatpush3.msra.mxu1 %v187_v14  ;;  %926 = vmatmul.mubr.msk.f32.vlgmr.msra.gmra.mrb[0].mxu0 %vm188_vm0, %v148_v15  ;;  %v162_v43 = vld [vmem:[%s1198_s3 + $0x78] sm:$0xff] }
  0x1b   : > { %950 = vmatmul.mubr.msk.f32.vlgmr.msra.gmra.mrb[0].mxu1 %vm188_vm0, %v164_v16  ;;  %928 = vmatprep.mubr.msk.f32.mxu0 %vm188_vm0, %v149_v17  ;;  %v178_v44 = vld [vmem:[%s1198_s3 + $0xf8] sm:$0xff] }
  0x1c   : > { %952 = vmatprep.mubr.msk.f32.mxu1 %vm188_vm0, %v165_v18 }
  0x1e   : > { %929 = vmatmul.mubr.msk.f32.gmra.mrb[2].mxu0 %vm188_vm0, %v150_v19 }
  0x1f   : > { %953 = vmatmul.mubr.msk.f32.gmra.mrb[2].mxu1 %vm188_vm0, %v166_v20  ;;  %931 = vmatprep.mubr.msk.f32.mxu0 %vm188_vm0, %v151_v21 }
  0x20   : > { %955 = vmatprep.mubr.msk.f32.mxu1 %vm188_vm0, %v167_v22 }
  0x22   : > { %932 = vmatmul.mubr.msk.f32.gmra.mrb[4].mxu0 %vm188_vm0, %v152_v23 }
  0x23   : > { %956 = vmatmul.mubr.msk.f32.gmra.mrb[4].mxu1 %vm188_vm0, %v168_v24  ;;  %934 = vmatprep.mubr.msk.f32.mxu0 %vm188_vm0, %v153_v25 }
  0x24   : > { %958 = vmatprep.mubr.msk.f32.mxu1 %vm188_vm0, %v169_v26 }
  0x26   : > { %935 = vmatmul.mubr.msk.f32.gmra.mrb[6].mxu0 %vm188_vm0, %v154_v27 }
  0x27   : > { %959 = vmatmul.mubr.msk.f32.gmra.mrb[6].mxu1 %vm188_vm0, %v170_v28  ;;  %937 = vmatprep.mubr.msk.f32.mxu0 %vm188_vm0, %v155_v29 }
  0x28   : > { %961 = vmatprep.mubr.msk.f32.mxu1 %vm188_vm0, %v171_v30 }
  0x2a   : > { %938 = vmatmul.mubr.msk.f32.gmra.mrb[8].mxu0 %vm188_vm0, %v156_v31 }
  0x2b   : > { %962 = vmatmul.mubr.msk.f32.gmra.mrb[8].mxu1 %vm188_vm0, %v172_v32  ;;  %940 = vmatprep.mubr.msk.f32.mxu0 %vm188_vm0, %v157_v33 }
  0x2c   : > { %964 = vmatprep.mubr.msk.f32.mxu1 %vm188_vm0, %v173_v34 }
  0x2e   : > { %941 = vmatmul.mubr.msk.f32.gmra.mrb[10].mxu0 %vm188_vm0, %v158_v35 }
  0x2f   : > { %965 = vmatmul.mubr.msk.f32.gmra.mrb[10].mxu1 %vm188_vm0, %v174_v36  ;;  %943 = vmatprep.mubr.msk.f32.mxu0 %vm188_vm0, %v159_v37 }
  0x30   : > { %967 = vmatprep.mubr.msk.f32.mxu1 %vm188_vm0, %v175_v38 }
  0x32   : > { %944 = vmatmul.mubr.msk.f32.gmra.mrb[12].mxu0 %vm188_vm0, %v160_v39 }
  0x33   : > { %968 = vmatmul.mubr.msk.f32.gmra.mrb[12].mxu1 %vm188_vm0, %v176_v40  ;;  %946 = vmatprep.mubr.msk.f32.mxu0 %vm188_vm0, %v161_v41 }
  0x34   : > { %970 = vmatprep.mubr.msk.f32.mxu1 %vm188_vm0, %v177_v42 }
  0x36   : > { %947 = vmatmul.mubr.msk.f32.gmra.mrb[14].mxu0 %vm188_vm0, %v162_v43 }
  0x37   : > { %971 = vmatmul.mubr.msk.f32.gmra.mrb[14].mxu1 %vm188_vm0, %v178_v44 }
  0xed   : > { %v927_v45 = vpop.f32.mrb[0].mxu0 }
  0xee   : > { %v951_v46 = vpop.f32.mrb[0].mxu1  ;;  %v833_v47 = vmul.f32 -1.442695, %v927_v45  ;;  %v351_v49 = vpop.f32.mrb[1].mxu0 }
  0xef   : > { %v849_v48 = vmul.f32 -1.442695, %v951_v46  ;;  %v431_v50 = vpop.f32.mrb[1].mxu1  ;;  %v832_v51 = vmul.f32 -1.442695, %v351_v49 }
  0xf0   : > { %v848_v52 = vmul.f32 -1.442695, %v431_v50  ;;  %1007 = vpow2.f32 %v833_v47 }
  0xf1   : > { %1009 = vpow2.f32 %v849_v48  ;;  %v930_v53 = vpop.f32.mrb[2].mxu0 }
  0xf2   : > { %v954_v54 = vpop.f32.mrb[2].mxu1  ;;  %1011 = vpow2.f32 %v832_v51  ;;  %v835_v55 = vmul.f32 -1.442695, %v930_v53  ;;  %v361_v57 = vpop.f32.mrb[3].mxu0 }
  0xf3   : > { %v851_v56 = vmul.f32 -1.442695, %v954_v54  ;;  %v441_v58 = vpop.f32.mrb[3].mxu1  ;;  %1013 = vpow2.f32 %v848_v52  ;;  %v834_v59 = vmul.f32 -1.442695, %v361_v57 }
  0xf4   : > { %v850_v60 = vmul.f32 -1.442695, %v441_v58  ;;  %1015 = vpow2.f32 %v835_v55 }
  0xf5   : > { %1017 = vpow2.f32 %v851_v56  ;;  %v933_v61 = vpop.f32.mrb[4].mxu0 }
  0xf6   : > { %v957_v62 = vpop.f32.mrb[4].mxu1  ;;  %1019 = vpow2.f32 %v834_v59  ;;  %v837_v63 = vmul.f32 -1.442695, %v933_v61  ;;  %v371_v1 = vpop.f32.mrb[5].mxu0 }
  0xf7   : > { %v853_v0 = vmul.f32 -1.442695, %v957_v62  ;;  %v451_v2 = vpop.f32.mrb[5].mxu1  ;;  %1021 = vpow2.f32 %v850_v60  ;;  %v836_v3 = vmul.f32 -1.442695, %v371_v1 }
  0xf8   : > { %v852_v4 = vmul.f32 -1.442695, %v451_v2  ;;  %1023 = vpow2.f32 %v837_v63 }
  0xf9   : > { %1025 = vpow2.f32 %v853_v0  ;;  %v936_v5 = vpop.f32.mrb[6].mxu0 }
  0xfa   : > { %v960_v6 = vpop.f32.mrb[6].mxu1  ;;  %v1008_v7 = vpop.eup %1007  ;;  %1027 = vpow2.f32 %v836_v3  ;;  %v839_v8 = vmul.f32 -1.442695, %v936_v5 }
  0xfb   : > { %v381_v9 = vpop.f32.mrb[7].mxu0  ;;  %v461_v10 = vpop.f32.mrb[7].mxu1  ;;  %v607_v12 = vadd.f32 1.0, %v1008_v7  ;;  %1029 = vpow2.f32 %v852_v4  ;;  %v855_v45 = vmul.f32 -1.442695, %v960_v6 }
  0xfc   : > { %v1010_v11 = vpop.eup %1009  ;;  %1031 = vpow2.f32 %v839_v8  ;;  %v838_v49 = vmul.f32 -1.442695, %v381_v9  ;;  %v854_v52 = vmul.f32 -1.442695, %v461_v10 }
  0xfd   : > { %v1012_v13 = vpop.eup %1011  ;;  %v623_v14 = vadd.f32 1.0, %v1010_v11  ;;  %1033 = vrcp.f32 %v607_v12  ;;  %v939_v17 = vpop.f32.mrb[8].mxu0 }
  0xfe   : > { %v1014_v15 = vpop.eup %1013  ;;  %v606_v16 = vadd.f32 1.0, %v1012_v13  ;;  %v963_v18 = vpop.f32.mrb[8].mxu1  ;;  %v841_v54 = vmul.f32 -1.442695, %v939_v17 }
  0xff   : > { %v1016_v19 = vpop.eup %1015  ;;  %1035 = vrcp.f32 %v623_v14  ;;  %v622_v20 = vadd.f32 1.0, %v1014_v15  ;;  %v391_v21 = vpop.f32.mrb[9].mxu0  ;;  %v857_v58 = vmul.f32 -1.442695, %v963_v18 }
 0x100   : > { %v1018_v22 = vpop.eup %1017  ;;  %1037 = vrcp.f32 %v606_v16  ;;  %v609_v23 = vadd.f32 1.0, %v1016_v19  ;;  %v471_v24 = vpop.f32.mrb[9].mxu1  ;;  %v840_v62 = vmul.f32 -1.442695, %v391_v21 }
 0x101   : > { %v1020_v25 = vpop.eup %1019  ;;  %1039 = vrcp.f32 %v622_v20  ;;  %v625_v26 = vadd.f32 1.0, %v1018_v22  ;;  %v942_v29 = vpop.f32.mrb[10].mxu0  ;;  %v856_v0 = vmul.f32 -1.442695, %v471_v24 }
 0x102   : > { %v1022_v27 = vpop.eup %1021  ;;  %1041 = vrcp.f32 %v609_v23  ;;  %v608_v28 = vadd.f32 1.0, %v1020_v25  ;;  %v966_v30 = vpop.f32.mrb[10].mxu1  ;;  %v843_v2 = vmul.f32 -1.442695, %v942_v29 }
 0x103   : > { %v1024_v31 = vpop.eup %1023  ;;  %1043 = vrcp.f32 %v625_v26  ;;  %v624_v32 = vadd.f32 1.0, %v1022_v27  ;;  %v401_v33 = vpop.f32.mrb[11].mxu0  ;;  %v859_v4 = vmul.f32 -1.442695, %v966_v30 }
 0x104   : > { %v1026_v34 = vpop.eup %1025  ;;  %1045 = vrcp.f32 %v608_v28  ;;  %v611_v35 = vadd.f32 1.0, %v1024_v31  ;;  %v481_v36 = vpop.f32.mrb[11].mxu1  ;;  %v842_v6 = vmul.f32 -1.442695, %v401_v33 }
 0x105   : > { %v1028_v37 = vpop.eup %1027  ;;  %1047 = vrcp.f32 %v624_v32  ;;  %v627_v38 = vadd.f32 1.0, %v1026_v34  ;;  %v945_v41 = vpop.f32.mrb[12].mxu0  ;;  %v858_v8 = vmul.f32 -1.442695, %v481_v36 }
 0x106   : > { %v1030_v39 = vpop.eup %1029  ;;  %1049 = vrcp.f32 %v611_v35  ;;  %v610_v40 = vadd.f32 1.0, %v1028_v37  ;;  %v969_v42 = vpop.f32.mrb[12].mxu1  ;;  %v845_v10 = vmul.f32 -1.442695, %v945_v41 }
 0x107   : > { %v1032_v43 = vpop.eup %1031  ;;  %1051 = vrcp.f32 %v627_v38  ;;  %v626_v44 = vadd.f32 1.0, %v1030_v39  ;;  %v1274_v46 = vpop.f32.mrb[13].mxu0  ;;  %v861_v12 = vmul.f32 -1.442695, %v969_v42 }
 0x108   : > { %v1034_v47 = vpop.eup %1033  ;;  %1053 = vrcp.f32 %v610_v40  ;;  %v613_v48 = vadd.f32 1.0, %v1032_v43  ;;  %v1276_v50 = vpop.f32.mrb[13].mxu1  ;;  %v844_v39 = vmul.f32 -1.442695, %v1274_v46 }
 0x109   : > { %v1036_v51 = vpop.eup %1035  ;;  %704 = vst.msk [vmem:[%s1272_s8 + $0x8] sm:$0xff] %vm702_vm1, %v1034_v47  ;;  %1055 = vrcp.f32 %v626_v44  ;;  %v1282_v55 = vpop.f32.mrb[14].mxu0  ;;  %v860_v42 = vmul.f32 -1.442695, %v1276_v50 }
 0x10a   : > { %v1038_v53 = vpop.eup %1037  ;;  %720 = vst.msk [vmem:[%s1272_s8 + $0x88] sm:$0xff] %vm702_vm1, %v1036_v51  ;;  %1057 = vrcp.f32 %v613_v48  ;;  %v1284_v56 = vpop.f32.mrb[14].mxu1  ;;  %v847_v44 = vmul.f32 -1.442695, %v1282_v55 }
 0x10b   : > { %v1040_v57 = vpop.eup %1039  ;;  %703 = vst.msk [vmem:[%s1272_s8] sm:$0xff] %vm702_vm1, %v1038_v53  ;;  %1059 = vpow2.f32 %v855_v45  ;;  %v1288_v59 = vpop.f32.mrb[15].mxu0  ;;  %v863_v46 = vmul.f32 -1.442695, %v1284_v56 }
 0x10c   : > { %v1290_v60 = vpop.f32.mrb[15].mxu1  ;;  %v1042_v61 = vpop.eup %1041  ;;  %719 = vst.msk [vmem:[%s1272_s8 + $0x80] sm:$0xff] %vm702_vm1, %v1040_v57  ;;  %1061 = vpow2.f32 %v838_v49  ;;  %v846_v48 = vmul.f32 -1.442695, %v1288_v59 }
 0x10d   : > { %v1044_v63 = vpop.eup %1043  ;;  %706 = vst.msk [vmem:[%s1272_s8 + $0x18] sm:$0xff] %vm702_vm1, %v1042_v61  ;;  %1063 = vpow2.f32 %v854_v52  ;;  %v862_v50 = vmul.f32 -1.442695, %v1290_v60 }
 0x10e   : > { %v1046_v1 = vpop.eup %1045  ;;  %722 = vst.msk [vmem:[%s1272_s8 + $0x98] sm:$0xff] %vm702_vm1, %v1044_v63  ;;  %1065 = vpow2.f32 %v841_v54 }
 0x10f   : > { %v1048_v3 = vpop.eup %1047  ;;  %705 = vst.msk [vmem:[%s1272_s8 + $0x10] sm:$0xff] %vm702_vm1, %v1046_v1  ;;  %1067 = vpow2.f32 %v857_v58 }
 0x110   : > { %v1050_v5 = vpop.eup %1049  ;;  %721 = vst.msk [vmem:[%s1272_s8 + $0x90] sm:$0xff] %vm702_vm1, %v1048_v3  ;;  %1069 = vpow2.f32 %v840_v62 }
 0x111   : > { %v1052_v7 = vpop.eup %1051  ;;  %708 = vst.msk [vmem:[%s1272_s8 + $0x28] sm:$0xff] %vm702_vm1, %v1050_v5  ;;  %1071 = vpow2.f32 %v856_v0 }
 0x112   : > { %v1054_v9 = vpop.eup %1053  ;;  %724 = vst.msk [vmem:[%s1272_s8 + $0xa8] sm:$0xff] %vm702_vm1, %v1052_v7  ;;  %1073 = vpow2.f32 %v843_v2 }
 0x113   : > { %v1056_v11 = vpop.eup %1055  ;;  %707 = vst.msk [vmem:[%s1272_s8 + $0x20] sm:$0xff] %vm702_vm1, %v1054_v9  ;;  %1075 = vpow2.f32 %v859_v4 }
 0x114   : > { %v1058_v13 = vpop.eup %1057  ;;  %723 = vst.msk [vmem:[%s1272_s8 + $0xa0] sm:$0xff] %vm702_vm1, %v1056_v11  ;;  %1077 = vpow2.f32 %v842_v6 }
 0x115   : > { %v1060_v14 = vpop.eup %1059  ;;  %710 = vst.msk [vmem:[%s1272_s8 + $0x38] sm:$0xff] %vm702_vm1, %v1058_v13  ;;  %1079 = vpow2.f32 %v858_v8 }
 0x116   : > { %v1062_v15 = vpop.eup %1061  ;;  %v629_v16 = vadd.f32 1.0, %v1060_v14  ;;  %1081 = vpow2.f32 %v845_v10 }
 0x117   : > { %v1064_v17 = vpop.eup %1063  ;;  %v612_v18 = vadd.f32 1.0, %v1062_v15  ;;  %1083 = vpow2.f32 %v861_v12 }
 0x118   : > { %v1066_v19 = vpop.eup %1065  ;;  %1085 = vrcp.f32 %v629_v16  ;;  %v628_v20 = vadd.f32 1.0, %v1064_v17 }
 0x119   : > { %v1068_v21 = vpop.eup %1067  ;;  %1087 = vrcp.f32 %v612_v18  ;;  %v615_v22 = vadd.f32 1.0, %v1066_v19 }
 0x11a   : > { %v1070_v23 = vpop.eup %1069  ;;  %1089 = vrcp.f32 %v628_v20  ;;  %v631_v24 = vadd.f32 1.0, %v1068_v21 }
 0x11b   : > { %v1072_v25 = vpop.eup %1071  ;;  %1091 = vrcp.f32 %v615_v22  ;;  %v614_v26 = vadd.f32 1.0, %v1070_v23 }
 0x11c   : > { %v1074_v27 = vpop.eup %1073  ;;  %1093 = vrcp.f32 %v631_v24  ;;  %v630_v28 = vadd.f32 1.0, %v1072_v25 }
 0x11d   : > { %v1076_v29 = vpop.eup %1075  ;;  %1095 = vrcp.f32 %v614_v26  ;;  %v617_v30 = vadd.f32 1.0, %v1074_v27 }
 0x11e   : > { %v1078_v31 = vpop.eup %1077  ;;  %1097 = vrcp.f32 %v630_v28  ;;  %v633_v32 = vadd.f32 1.0, %v1076_v29 }
 0x11f   : > { %v1080_v33 = vpop.eup %1079  ;;  %1099 = vrcp.f32 %v617_v30  ;;  %v616_v34 = vadd.f32 1.0, %v1078_v31 }
 0x120   : > { %v1082_v35 = vpop.eup %1081  ;;  %1101 = vrcp.f32 %v633_v32  ;;  %v632_v36 = vadd.f32 1.0, %v1080_v33 }
 0x121   : > { %v1084_v37 = vpop.eup %1083  ;;  %1103 = vrcp.f32 %v616_v34  ;;  %v619_v38 = vadd.f32 1.0, %v1082_v35 }
 0x122   : > { %v1086_v40 = vpop.eup %1085  ;;  %1105 = vrcp.f32 %v632_v36  ;;  %v635_v41 = vadd.f32 1.0, %v1084_v37 }
 0x123   : > { %v1088_v43 = vpop.eup %1087  ;;  %726 = vst.msk [vmem:[%s1272_s8 + $0xb8] sm:$0xff] %vm702_vm1, %v1086_v40  ;;  %1107 = vrcp.f32 %v619_v38 }
 0x124   : > { %v1090_v45 = vpop.eup %1089  ;;  %709 = vst.msk [vmem:[%s1272_s8 + $0x30] sm:$0xff] %vm702_vm1, %v1088_v43  ;;  %1109 = vrcp.f32 %v635_v41 }
 0x125   : > { %v1092_v47 = vpop.eup %1091  ;;  %725 = vst.msk [vmem:[%s1272_s8 + $0xb0] sm:$0xff] %vm702_vm1, %v1090_v45  ;;  %1111 = vpow2.f32 %v844_v39 }
 0x126   : > { %v1094_v49 = vpop.eup %1093  ;;  %712 = vst.msk [vmem:[%s1272_s8 + $0x48] sm:$0xff] %vm702_vm1, %v1092_v47  ;;  %1113 = vpow2.f32 %v860_v42 }
 0x127   : > { %v1096_v51 = vpop.eup %1095  ;;  %728 = vst.msk [vmem:[%s1272_s8 + $0xc8] sm:$0xff] %vm702_vm1, %v1094_v49  ;;  %1115 = vpow2.f32 %v847_v44 }
 0x128   : > { %v1098_v52 = vpop.eup %1097  ;;  %711 = vst.msk [vmem:[%s1272_s8 + $0x40] sm:$0xff] %vm702_vm1, %v1096_v51  ;;  %1117 = vpow2.f32 %v863_v46 }
 0x129   : > { %v1100_v53 = vpop.eup %1099  ;;  %727 = vst.msk [vmem:[%s1272_s8 + $0xc0] sm:$0xff] %vm702_vm1, %v1098_v52  ;;  %1119 = vpow2.f32 %v846_v48 }
 0x12a   : > { %v1102_v54 = vpop.eup %1101  ;;  %714 = vst.msk [vmem:[%s1272_s8 + $0x58] sm:$0xff] %vm702_vm1, %v1100_v53  ;;  %1121 = vpow2.f32 %v862_v50 }
 0x12b   : > { %v1104_v55 = vpop.eup %1103  ;;  %730 = vst.msk [vmem:[%s1272_s8 + $0xd8] sm:$0xff] %vm702_vm1, %v1102_v54 }
 0x12c   : > { %v1106_v56 = vpop.eup %1105  ;;  %713 = vst.msk [vmem:[%s1272_s8 + $0x50] sm:$0xff] %vm702_vm1, %v1104_v55 }
 0x12d   : > { %v1108_v57 = vpop.eup %1107  ;;  %729 = vst.msk [vmem:[%s1272_s8 + $0xd0] sm:$0xff] %vm702_vm1, %v1106_v56 }
 0x12e   : > { %v1110_v58 = vpop.eup %1109  ;;  %716 = vst.msk [vmem:[%s1272_s8 + $0x68] sm:$0xff] %vm702_vm1, %v1108_v57 }
 0x12f   : > { %v1112_v59 = vpop.eup %1111  ;;  %732 = vst.msk [vmem:[%s1272_s8 + $0xe8] sm:$0xff] %vm702_vm1, %v1110_v58 }
 0x130   : > { %v1114_v60 = vpop.eup %1113  ;;  %v618_v61 = vadd.f32 1.0, %v1112_v59 }
 0x131   : > { %v1116_v62 = vpop.eup %1115  ;;  %v634_v63 = vadd.f32 1.0, %v1114_v60 }
 0x132   : > { %v1118_v0 = vpop.eup %1117  ;;  %1123 = vrcp.f32 %v618_v61  ;;  %v621_v1 = vadd.f32 1.0, %v1116_v62 }
 0x133   : > { %v1120_v2 = vpop.eup %1119  ;;  %1125 = vrcp.f32 %v634_v63  ;;  %v637_v3 = vadd.f32 1.0, %v1118_v0 }
 0x134   : > { %v1122_v4 = vpop.eup %1121  ;;  %1127 = vrcp.f32 %v621_v1  ;;  %v620_v5 = vadd.f32 1.0, %v1120_v2 }
 0x135   : > { %1129 = vrcp.f32 %v637_v3  ;;  %v636_v6 = vadd.f32 1.0, %v1122_v4 }
 0x136   : > { %1131 = vrcp.f32 %v620_v5 }
 0x137   : > { %1133 = vrcp.f32 %v636_v6 }
 0x13c   : > { %v1124_v7 = vpop.eup %1123 }
 0x13d   : > { %v1126_v8 = vpop.eup %1125  ;;  %715 = vst.msk [vmem:[%s1272_s8 + $0x60] sm:$0xff] %vm702_vm1, %v1124_v7 }
 0x13e   : > { %v1128_v9 = vpop.eup %1127  ;;  %731 = vst.msk [vmem:[%s1272_s8 + $0xe0] sm:$0xff] %vm702_vm1, %v1126_v8 }
 0x13f   : > { %v1130_v10 = vpop.eup %1129  ;;  %718 = vst.msk [vmem:[%s1272_s8 + $0x78] sm:$0xff] %vm702_vm1, %v1128_v9 }
 0x140   : > { %v1132_v11 = vpop.eup %1131  ;;  %734 = vst.msk [vmem:[%s1272_s8 + $0xf8] sm:$0xff] %vm702_vm1, %v1130_v10 }
 0x141   : > { %v1134_v12 = vpop.eup %1133  ;;  %717 = vst.msk [vmem:[%s1272_s8 + $0x70] sm:$0xff] %vm702_vm1, %v1132_v11 }
 0x142   : > { %733 = vst.msk [vmem:[%s1272_s8 + $0xf0] sm:$0xff] %vm702_vm1, %v1134_v12 }
 0x143 PF: > { %s12_s9 = sadd.s32 1, %s1141_s9  }
 0x144   : > { %p9_p4 = scmp.ge.s32.totalorder %s12_s9, 4  }
 0x146   :  { %11 = sbr.rel (!%p9_p4) target bundleno = 1 (0x1), region = 58 }

// kernel: mrg_forward.19
= control target key start
LH: loop header
LB: loop body
LE: loop exit
PB: predicated region body
PF: predicated region fallthrough
CT: control target
= control target key end

     0   :  { %s1936_s21 = smov 0   ;;  %s2806_s0 = inlined_call_operand.vmem [shape: f32[512,32], index: 0, kind: input, shape index: {}]   ;;  %s2807_s1 = inlined_call_operand.vmem [shape: f32[512,4], index: 1, kind: input, shape index: {}]   ;;  %s2808_s2 = inlined_call_operand.vmem [shape: f32[1,32], index: 2, kind: input, shape index: {}]   ;;  %s2809_s3 = inlined_call_operand.vmem [shape: f32[1,32], index: 3, kind: input, shape index: {}]   ;;  %s2810_s4 = inlined_call_operand.vmem [shape: f32[32,32], index: 4, kind: input, shape index: {}]   ;;  %s2811_s5 = inlined_call_operand.vmem [shape: f32[512,32], index: 5, kind: output, shape index: {0}]   ;;  %s2812_s6 = inlined_call_operand.vmem [shape: f32[512,32], index: 6, kind: output, shape index: {1}]  }
   0x1 LB: > { %s1696_s22 = sadd.s32 4294967295, %s1895_s21   ;;  %p1700_p0 = scmp.ge.s32.totalorder %s1895_s21, 1  ;;  %s1895_s21 = sphi %s1936_s21, %s17_s21  }
   0x2   : > { %p227_p1 = scmp.lt.s32.totalorder %s1895_s21, 3 }
   0x4   : > { %p228_p2 = pnand %p1700_p0, %p227_p1 }
   0x6   : > { %231 = sbr.rel (%p228_p2) target bundleno = 688 (0x2b0), region = 40 }
   0xd   : > { %s1701_s23 = sshll.u32 %s1696_s22, 5  ;;  %v1897_v0 = vmov 0   ;;  %v2815_v33 = vmov 1   ;;  %v2817_v34 = vmov 2   ;;  %v2813_v35 = vmov 3   ;;  %v1237_v36 = vld [vmem:[%s2810_s4] sm:$0xff] }
   0xe   : > { %1862 = vset.pattern.permute.xlu1 %v1897_v0  ;;  %1861 = vset.pattern.permute.xlu0 %v1897_v0  ;;  %p268_p3 = scmp.lt.s32.totalorder %s1701_s23, 63  ;;  %v1238_v37 = vld [vmem:[%s2810_s4 + $0x8] sm:$0xff]  ;;  %v1239_v41 = vld [vmem:[%s2810_s4 + $0x10] sm:$0xff]  ;;  %v1240_v42 = vld [vmem:[%s2810_s4 + $0x18] sm:$0xff]  ;;  %vm1073_vm0 = vcmask 64512   ;;  %vm1139_vm2 = vcmask 195584  }
   0xf   : > { %v1837_v38 = vpack.c.bf16 %v1238_v37, %v1237_v36  ;;  %v1841_v43 = vpack.c.bf16 %v1240_v42, %v1239_v41  ;;  %vm1106_vm3 = vcmask 130048   ;;  %vm1204_vm4 = vcmask 261120  }
  0x10   : > { %s2875_s23 = smov (!%p268_p3, %s1701_s23), 63 }
  0x11   : > { %s1944_s24 = sshll.u32 %s2875_s23, 3  ;;  %1838 = vmatprep.subr.bf16.mxu0 %v1837_v38  ;;  %1845 = vmatprep.subr.bf16.mxu1 %v1837_v38 }
  0x12   : > { %s1950_s27 = scalar_lea.vmem %s2807_s1, %s1944_s24  ;;  %1840 = vmatpush3.bf16.msra.mxu0 %v1837_v38  ;;  %1847 = vmatpush3.bf16.msra.mxu1 %v1837_v38  ;;  %s2286_s14 = scalar_lea.vmem %s2806_s0, %s1944_s24 }
  0x13   : > { %v1953_v1 = vld [vmem:[%s1950_s27 + $0x10] sm:$0xff]  ;;  %v1956_v2 = vld [vmem:[%s1950_s27] sm:$0xff]  ;;  %v1961_v3 = vld [vmem:[%s1950_s27 + $0x18] sm:$0xff]  ;;  %1842 = vmatprep.subr.bf16.mxu0 %v1841_v43  ;;  %1846 = vmatprep.subr.bf16.mxu1 %v1841_v43  ;;  %s2337_s22 = scalar_lea.vmem %s2811_s5, %s1944_s24  ;;  %s2737_s26 = scalar_lea.vmem %s2812_s6, %s1944_s24 }
  0x14   : > { %541 = vperm.xlu1 %1862, %v1953_v1   ;;  %531 = vperm.xlu0 %1861, %v1956_v2   ;;  %v1964_v4 = vld [vmem:[%s1950_s27 + $0x8] sm:$0xff]  ;;  %v1972_v6 = vld [vmem:[%s1950_s27 + $0x20] sm:$0xff]  ;;  %v1977_v7 = vld [vmem:[%s1950_s27 + $0x38] sm:$0xff] }
  0x15   : > { %v1969_v5 = vld [vmem:[%s1950_s27 + $0x28] sm:$0xff]  ;;  %v1980_v8 = vld [vmem:[%s1950_s27 + $0x30] sm:$0xff]  ;;  %v1988_v10 = vld [vmem:[%s1950_s27 + $0x40] sm:$0xff] }
  0x16   : > { %v1985_v9 = vld [vmem:[%s1950_s27 + $0x48] sm:$0xff]  ;;  %v1993_v11 = vld [vmem:[%s1950_s27 + $0x58] sm:$0xff]  ;;  %v1996_v12 = vld [vmem:[%s1950_s27 + $0x50] sm:$0xff]  ;;  %1844 = vmatpush3.bf16.msra.mxu0 %v1841_v43  ;;  %1848 = vmatpush3.bf16.msra.mxu1 %v1841_v43 }
  0x17   : > { %v2001_v13 = vld [vmem:[%s1950_s27 + $0x68] sm:$0xff]  ;;  %v2004_v14 = vld [vmem:[%s1950_s27 + $0x60] sm:$0xff]  ;;  %v2009_v15 = vld [vmem:[%s1950_s27 + $0x78] sm:$0xff] }
  0x18   : > { %546 = vperm.xlu1 %1862, %v1961_v3   ;;  %536 = vperm.xlu0 %1861, %v1964_v4   ;;  %v2012_v16 = vld [vmem:[%s1950_s27 + $0x70] sm:$0xff]  ;;  %v2017_v17 = vld [vmem:[%s1950_s27 + $0x88] sm:$0xff]  ;;  %v2020_v18 = vld [vmem:[%s1950_s27 + $0x80] sm:$0xff] }
  0x19   : > { %v2025_v19 = vld [vmem:[%s1950_s27 + $0x98] sm:$0xff]  ;;  %v2028_v20 = vld [vmem:[%s1950_s27 + $0x90] sm:$0xff]  ;;  %v2033_v21 = vld [vmem:[%s1950_s27 + $0xa8] sm:$0xff] }
  0x1a   : > { %v2036_v22 = vld [vmem:[%s1950_s27 + $0xa0] sm:$0xff]  ;;  %v2041_v23 = vld [vmem:[%s1950_s27 + $0xb8] sm:$0xff]  ;;  %v2044_v24 = vld [vmem:[%s1950_s27 + $0xb0] sm:$0xff] }
  0x1b   : > { %v2049_v25 = vld [vmem:[%s1950_s27 + $0xc8] sm:$0xff]  ;;  %v2052_v26 = vld [vmem:[%s1950_s27 + $0xc0] sm:$0xff]  ;;  %v2057_v27 = vld [vmem:[%s1950_s27 + $0xd8] sm:$0xff] }
  0x1c   : > { %556 = vperm.xlu1 %1862, %v1969_v5   ;;  %551 = vperm.xlu0 %1861, %v1972_v6   ;;  %v2060_v28 = vld [vmem:[%s1950_s27 + $0xd0] sm:$0xff]  ;;  %v2065_v29 = vld [vmem:[%s1950_s27 + $0xe8] sm:$0xff]  ;;  %v2068_v30 = vld [vmem:[%s1950_s27 + $0xe0] sm:$0xff] }
  0x1d   : > { %v2073_v31 = vld [vmem:[%s1950_s27 + $0xf8] sm:$0xff]  ;;  %v2076_v32 = vld [vmem:[%s1950_s27 + $0xf0] sm:$0xff] }
  0x20   : > { %566 = vperm.xlu1 %1862, %v1977_v7   ;;  %561 = vperm.xlu0 %1861, %v1980_v8  }
  0x24   : > { %576 = vperm.xlu1 %1862, %v1985_v9   ;;  %571 = vperm.xlu0 %1861, %v1988_v10  }
  0x28   : > { %586 = vperm.xlu1 %1862, %v1993_v11   ;;  %581 = vperm.xlu0 %1861, %v1996_v12  }
  0x2c   : > { %596 = vperm.xlu1 %1862, %v2001_v13   ;;  %591 = vperm.xlu0 %1861, %v2004_v14  }
  0x30   : > { %606 = vperm.xlu1 %1862, %v2009_v15   ;;  %601 = vperm.xlu0 %1861, %v2012_v16  }
  0x34   : > { %616 = vperm.xlu1 %1862, %v2017_v17   ;;  %611 = vperm.xlu0 %1861, %v2020_v18  }
  0x38   : > { %626 = vperm.xlu1 %1862, %v2025_v19   ;;  %621 = vperm.xlu0 %1861, %v2028_v20  }
  0x3c   : > { %636 = vperm.xlu1 %1862, %v2033_v21   ;;  %631 = vperm.xlu0 %1861, %v2036_v22  }
  0x40   : > { %646 = vperm.xlu1 %1862, %v2041_v23   ;;  %641 = vperm.xlu0 %1861, %v2044_v24  }
  0x44   : > { %656 = vperm.xlu1 %1862, %v2049_v25   ;;  %651 = vperm.xlu0 %1861, %v2052_v26  }
  0x48   : > { %666 = vperm.xlu1 %1862, %v2057_v27   ;;  %661 = vperm.xlu0 %1861, %v2060_v28  }
  0x4c   : > { %676 = vperm.xlu1 %1862, %v2065_v29   ;;  %671 = vperm.xlu0 %1861, %v2068_v30  }
  0x50   : > { %686 = vperm.xlu1 %1862, %v2073_v31   ;;  %681 = vperm.xlu0 %1861, %v2076_v32  }
  0x54   : > { %1864 = vset.pattern.permute.xlu1 %v2815_v33  ;;  %1863 = vset.pattern.permute.xlu0 %v2815_v33 }
  0x55   : > { %694 = vperm.xlu1 %1864, %v1964_v4   ;;  %690 = vperm.xlu0 %1863, %v1956_v2  }
  0x59   : > { %698 = vperm.xlu1 %1864, %v1953_v1   ;;  %702 = vperm.xlu0 %1863, %v1961_v3  }
  0x5d   : > { %706 = vperm.xlu1 %1864, %v1972_v6   ;;  %710 = vperm.xlu0 %1863, %v1969_v5  }
  0x61   : > { %714 = vperm.xlu1 %1864, %v1980_v8   ;;  %718 = vperm.xlu0 %1863, %v1977_v7  }
  0x65   : > { %722 = vperm.xlu1 %1864, %v1988_v10   ;;  %726 = vperm.xlu0 %1863, %v1985_v9  }
  0x69   : > { %730 = vperm.xlu1 %1864, %v1996_v12   ;;  %734 = vperm.xlu0 %1863, %v1993_v11  }
  0x6d   : > { %738 = vperm.xlu1 %1864, %v2004_v14   ;;  %742 = vperm.xlu0 %1863, %v2001_v13  }
  0x71   : > { %746 = vperm.xlu1 %1864, %v2012_v16   ;;  %750 = vperm.xlu0 %1863, %v2009_v15  }
  0x75   : > { %754 = vperm.xlu1 %1864, %v2020_v18   ;;  %758 = vperm.xlu0 %1863, %v2017_v17  }
  0x79   : > { %762 = vperm.xlu1 %1864, %v2028_v20   ;;  %766 = vperm.xlu0 %1863, %v2025_v19  }
  0x7d   : > { %1865 = vset.pattern.permute.xlu1 %v2817_v34  ;;  %770 = vperm.xlu0 %1863, %v2036_v22  }
  0x7e   : > { %882 = vperm.xlu1 %1865, %v2020_v18  }
  0x81   : > { %782 = vperm.xlu0 %1863, %v2041_v23  }
  0x82   : > { %822 = vperm.xlu1 %1865, %v1964_v4  }
  0x85   : > { %786 = vperm.xlu0 %1863, %v2052_v26  }
  0x86   : > { %1866 = vset.pattern.permute.xlu1 %v2813_v35 }
  0x87   : > { %946 = vperm.xlu1 %1866, %v1956_v2  }
  0x89   : > { %798 = vperm.xlu0 %1863, %v2057_v27  }
  0x8b   : > { %950 = vperm.xlu1 %1866, %v1964_v4  }
  0x8d   : > { %802 = vperm.xlu0 %1863, %v2068_v30  }
  0x8f   : > { %1014 = vperm.xlu1 %1866, %v2017_v17  }
  0x91   : > { %814 = vperm.xlu0 %1863, %v2073_v31  }
  0x93   : > { %v2121_v39 = vpop.permute.xlu1 %541  ;;  %1867 = vset.pattern.permute.xlu1 %v2817_v34  ;;  %v2124_v40 = vpop.permute.xlu0 %531 }
  0x94   : > { %826 = vperm.xlu1 %1867, %v1953_v1  }
  0x95   : > { %1885 = vset.pattern.permute.xlu0 %v2817_v34 }
  0x96   : > { %818 = vperm.xlu0 %1885, %v1956_v2  }
  0x97   : > { %v2135_v44 = vpop.permute.xlu1 %546  ;;  %v2137_v45 = vpop.permute.xlu0 %536 }
  0x98   : > { %890 = vperm.xlu1 %1867, %v2028_v20  }
  0x9a   : > { %886 = vperm.xlu0 %1885, %v2017_v17  }
  0x9b   : > { %v2141_v46 = vpop.permute.xlu1 %556  ;;  %v2143_v47 = vpop.permute.xlu0 %551 }
  0x9c   : > { %894 = vperm.xlu1 %1867, %v2025_v19  }
  0x9e   : > { %830 = vperm.xlu0 %1885, %v1961_v3  }
  0x9f   : > { %v2147_v48 = vpop.permute.xlu1 %566  ;;  %v2149_v49 = vpop.permute.xlu0 %561 }
  0xa0   : > { %2819 = vst [vmem:[#allocation2_spill] sm:$0xff] %v2147_v48  ;;  %2820 = vst [vmem:[#allocation3_spill] sm:$0xff] %v2149_v49  ;;  %1868 = vset.pattern.permute.xlu1 %v2813_v35 }
  0xa1   : > { %954 = vperm.xlu1 %1868, %v1953_v1  }
  0xa2   : > { %898 = vperm.xlu0 %1885, %v2036_v22  }
  0xa3   : > { %v2154_v50 = vpop.permute.xlu1 %576  ;;  %v2156_v51 = vpop.permute.xlu0 %571 }
  0xa4   : > { %2821 = vst [vmem:[#allocation4_spill] sm:$0xff] %v2154_v50  ;;  %2822 = vst [vmem:[#allocation5_spill] sm:$0xff] %v2156_v51  ;;  %v291_v50 = vld [vmem:[%s2286_s14] sm:$0xff] }
  0xa5   : > { %958 = vperm.xlu1 %1868, %v1961_v3  }
  0xa6   : > { %846 = vperm.xlu0 %1885, %v1977_v7  }
  0xa7   : > { %v2160_v52 = vpop.permute.xlu1 %586  ;;  %v2162_v53 = vpop.permute.xlu0 %581 }
  0xa8   : > { %2823 = vst [vmem:[#allocation6_spill] sm:$0xff] %v2162_v53 }
  0xa9   : > { %1022 = vperm.xlu1 %1868, %v2025_v19  }
  0xaa   : > { %914 = vperm.xlu0 %1885, %v2052_v26  }
  0xab   : > { %v2166_v54 = vpop.permute.xlu1 %596  ;;  %v2168_v55 = vpop.permute.xlu0 %591 }
  0xac   : > { %2824 = vst [vmem:[#allocation7_spill] sm:$0xff] %v2166_v54  ;;  %2825 = vst [vmem:[#allocation8_spill] sm:$0xff] %v2168_v55  ;;  %v2297_v54 = vld [vmem:[%s2808_s2] ss:$0 sm:$0xff] }
  0xad   : > { %1869 = vset.pattern.permute.xlu1 %v2815_v33 }
  0xae   : > { %774 = vperm.xlu1 %1869, %v2033_v21   ;;  %862 = vperm.xlu0 %1885, %v1993_v11  }
  0xaf   : > { %v2173_v56 = vpop.permute.xlu1 %606  ;;  %v2175_v57 = vpop.permute.xlu0 %601 }
  0xb0   : > { %2826 = vst [vmem:[#allocation9_spill] sm:$0xff] %v2175_v57 }
  0xb2   : > { %1870 = vset.pattern.permute.xlu1 %v2817_v34  ;;  %930 = vperm.xlu0 %1885, %v2068_v30  }
  0xb3   : > { %v2179_v58 = vpop.permute.xlu1 %616  ;;  %834 = vperm.xlu1 %1870, %v1972_v6   ;;  %v2182_v59 = vpop.permute.xlu0 %611 }
  0xb6   : > { %878 = vperm.xlu0 %1885, %v2009_v15  }
  0xb7   : > { %v2185_v60 = vpop.permute.xlu1 %626  ;;  %838 = vperm.xlu1 %1870, %v1969_v5   ;;  %v2188_v61 = vpop.permute.xlu0 %621 }
  0xba   : > { %1887 = vset.pattern.permute.xlu0 %v2813_v35 }
  0xbb   : > { %v2191_v62 = vpop.permute.xlu1 %636  ;;  %902 = vperm.xlu1 %1870, %v2033_v21   ;;  %1010 = vperm.xlu0 %1887, %v2020_v18   ;;  %v2195_v63 = vpop.permute.xlu0 %631 }
  0xbf   : > { %v2197_v0 = vpop.permute.xlu1 %646  ;;  %1871 = vset.pattern.permute.xlu1 %v2813_v35  ;;  %1018 = vperm.xlu0 %1887, %v2028_v20   ;;  %v2201_v1 = vpop.permute.xlu0 %641 }
  0xc0   : > { %2827 = vst [vmem:[#allocation10_spill] sm:$0xff] %v2197_v0  ;;  %1026 = vperm.xlu1 %1871, %v2036_v22   ;;  %v308_v0 = vld [vmem:[%s2286_s14 + $0x88] sm:$0xff] }
  0xc3   : > { %v2204_v2 = vpop.permute.xlu1 %656  ;;  %962 = vperm.xlu0 %1887, %v1972_v6   ;;  %v2207_v3 = vpop.permute.xlu0 %651 }
  0xc4   : > { %2828 = vst [vmem:[#allocation11_spill] sm:$0xff] %v2204_v2  ;;  %966 = vperm.xlu1 %1871, %v1969_v5  }
  0xc7   : > { %v2210_v4 = vpop.permute.xlu1 %666  ;;  %1030 = vperm.xlu0 %1887, %v2033_v21   ;;  %v2213_v17 = vpop.permute.xlu0 %661 }
  0xc8   : > { %2829 = vst [vmem:[#allocation12_spill] sm:$0xff] %v2210_v4  ;;  %2830 = vst [vmem:[#allocation13_spill] sm:$0xff] %v2213_v17  ;;  %1872 = vset.pattern.permute.xlu1 %v2815_v33  ;;  %v2844_v17 = vmov 1  }
  0xc9   : > { %778 = vperm.xlu1 %1872, %v2044_v24  }
  0xcb   : > { %v2217_v18 = vpop.permute.xlu1 %676  ;;  %v2219_v19 = vpop.permute.xlu0 %671  ;;  %1034 = vperm.xlu0 %1887, %v2044_v24  }
  0xcc   : > { %2831 = vst [vmem:[#allocation14_spill] sm:$0xff] %v2217_v18 }
  0xcd   : > { %1873 = vset.pattern.permute.xlu1 %v2817_v34 }
  0xce   : > { %842 = vperm.xlu1 %1873, %v1980_v8  }
  0xcf   : > { %v2224_v5 = vpop.permute.xlu1 %686  ;;  %v2226_v6 = vpop.permute.xlu0 %681  ;;  %978 = vperm.xlu0 %1887, %v1988_v10  }
  0xd0   : > { %2832 = vst [vmem:[#allocation15_spill] sm:$0xff] %v2224_v5  ;;  %2833 = vst [vmem:[#allocation16_spill] sm:$0xff] %v2226_v6 }
  0xd2   : > { %906 = vperm.xlu1 %1873, %v2044_v24  }
  0xd3   : > { %1046 = vperm.xlu0 %1887, %v2049_v25  }
  0xd4   : > { %v2231_v20 = vpop.permute.xlu1 %694  ;;  %v2233_v21 = vpop.permute.xlu0 %690 }
  0xd5   : > { %v1075_v2 = vsel %vm1073_vm0, %v2137_v45, %v2231_v20 }
  0xd6   : > { %910 = vperm.xlu1 %1873, %v2041_v23  }
  0xd7   : > { %1050 = vperm.xlu0 %1887, %v2060_v28  }
  0xd8   : > { %v2237_v22 = vpop.permute.xlu1 %698  ;;  %v2239_v36 = vpop.permute.xlu0 %702 }
  0xda   : > { %1874 = vset.pattern.permute.xlu1 %v2813_v35 }
  0xdb   : > { %970 = vperm.xlu1 %1874, %v1980_v8   ;;  %994 = vperm.xlu0 %1887, %v2004_v14  }
  0xdc   : > { %v2244_v24 = vpop.permute.xlu1 %706  ;;  %v2246_v37 = vpop.permute.xlu0 %710 }
  0xdf   : > { %974 = vperm.xlu1 %1874, %v1977_v7   ;;  %1062 = vperm.xlu0 %1887, %v2065_v29  }
  0xe0   : > { %v2250_v38 = vpop.permute.xlu1 %714  ;;  %v2252_v41 = vpop.permute.xlu0 %718 }
  0xe1   : > { %2834 = vst [vmem:[#allocation17_spill] sm:$0xff] %v2250_v38  ;;  %2835 = vst [vmem:[#allocation18_spill] sm:$0xff] %v2252_v41  ;;  %v310_v38 = vld [vmem:[%s2286_s14 + $0x98] sm:$0xff] }
  0xe3   : > { %1038 = vperm.xlu1 %1874, %v2041_v23   ;;  %1066 = vperm.xlu0 %1887, %v2076_v32  }
  0xe4   : > { %v2256_v42 = vpop.permute.xlu1 %722  ;;  %v2258_v8 = vpop.permute.xlu0 %726 }
  0xe5   : > { %2836 = vst [vmem:[#allocation19_spill] sm:$0xff] %v2256_v42  ;;  %2837 = vst [vmem:[#allocation20_spill] sm:$0xff] %v2258_v8  ;;  %v2845_v8 = vmov 2  }
  0xe7   : > { %1875 = vset.pattern.permute.xlu1 %v2815_v33 }
  0xe8   : > { %v2261_v43 = vpop.permute.xlu1 %730  ;;  %790 = vperm.xlu1 %1875, %v2049_v25   ;;  %v2264_v7 = vpop.permute.xlu0 %734 }
  0xe9   : > { %2838 = vst [vmem:[#allocation21_spill] sm:$0xff] %v2261_v43 }
  0xec   : > { %v2266_v35 = vpop.permute.xlu1 %738  ;;  %1876 = vset.pattern.permute.xlu1 %v2817_v34  ;;  %v2269_v23 = vpop.permute.xlu0 %742 }
  0xed   : > { %2839 = vst [vmem:[#allocation22_spill] sm:$0xff] %v2266_v35  ;;  %2840 = vst [vmem:[#allocation23_spill] sm:$0xff] %v2269_v23  ;;  %850 = vperm.xlu1 %1876, %v1988_v10  }
  0xf0   : > { %v2272_v5 = vpop.permute.xlu1 %746  ;;  %v2274_v57 = vpop.permute.xlu0 %750 }
  0xf1   : > { %2841 = vst [vmem:[#allocation24_spill] sm:$0xff] %v2272_v5  ;;  %854 = vperm.xlu1 %1876, %v1985_v9   ;;  %v2842_v5 = vmov 3  }
  0xf4   : > { %v2277_v33 = vpop.permute.xlu1 %754  ;;  %v2279_v6 = vpop.permute.xlu0 %758 }
  0xf5   : > { %918 = vperm.xlu1 %1876, %v2049_v25   ;;  %v292_v25 = vld [vmem:[%s2286_s14 + $0x8] sm:$0xff] }
  0xf6   : > { %v331_v35 = vmul.f32 %v2297_v54, %v292_v25 }
  0xf8   : > { %v2288_v34 = vpop.permute.xlu1 %762  ;;  %v2290_v10 = vpop.permute.xlu0 %766 }
  0xf9   : > { %1877 = vset.pattern.permute.xlu1 %v2842_v5 }
  0xfa   : > { %1042 = vperm.xlu1 %1877, %v2052_v26   ;;  %v2311_v26 = vld [vmem:[%s2809_s3] ss:$0 sm:$0xff] }
  0xfb   : > { %v370_v43 = vadd.f32 %v2311_v26, %v331_v35 }
  0xfc   : > { %v771_v23 = vpop.permute.xlu0 %770 }
  0xfd   : > { %v2302_v18 = vsel %vm1073_vm0, %v2195_v63, %v771_v23  ;;  %v2304_v55 = vpop.permute.xlu1 %882  ;;  %vm402_vm1 = vcmp.ge.f32.partialorder %v370_v43, 0.0 }
  0xfe   : > { %982 = vperm.xlu1 %1877, %v1985_v9   ;;  %v434_v9 = vmul.f32 0.1, %v370_v43 }
 0x100   : > { %v2313_v4 = vpop.permute.xlu0 %782  ;;  %v466_v51 = vsel %vm402_vm1, %v370_v43, %v434_v9 }
 0x101   : > { %2843 = vst [vmem:[#allocation25_spill] sm:$0xff] %v2313_v4  ;;  %v823_v53 = vpop.permute.xlu1 %822 }
 0x102   : > { %1878 = vset.pattern.permute.xlu1 %v2844_v17 }
 0x103   : > { %794 = vperm.xlu1 %1878, %v2060_v28  }
 0x104   : > { %v787_v63 = vpop.permute.xlu0 %786 }
 0x105   : > { %v2320_v23 = vsel %vm1073_vm0, %v2207_v3, %v787_v63  ;;  %v330_v3 = vmul.f32 %v2297_v54, %v291_v50  ;;  %v1108_v63 = vsel %vm1106_vm3, %v1075_v2, %v823_v53  ;;  %v347_v53 = vmul.f32 %v2297_v54, %v308_v0  ;;  %v294_v0 = vld [vmem:[%s2286_s14 + $0x18] sm:$0xff] }
 0x106   : > { %v947_v25 = vpop.permute.xlu1 %946  ;;  %v333_v41 = vmul.f32 %v2297_v54, %v294_v0 }
 0x107   : > { %1879 = vset.pattern.permute.xlu1 %v2845_v8  ;;  %v369_v2 = vadd.f32 %v2311_v26, %v330_v3 }
 0x108   : > { %858 = vperm.xlu1 %1879, %v1996_v12   ;;  %v2325_v35 = vpop.permute.xlu0 %798  ;;  %v372_v0 = vadd.f32 %v2311_v26, %v333_v41 }
 0x109   : > { %2846 = vst [vmem:[#allocation26_spill] sm:$0xff] %v2325_v35  ;;  %vm401_vm5 = vcmp.ge.f32.partialorder %v369_v2, 0.0 }
 0x10a   : > { %v951_v42 = vpop.permute.xlu1 %950  ;;  %vm404_vm8 = vcmp.ge.f32.partialorder %v372_v0, 0.0 }
 0x10b   : > { %v1141_v35 = vsel %vm1139_vm2, %v1108_v63, %v951_v42  ;;  %v433_v42 = vmul.f32 0.1, %v369_v2 }
 0x10c   : > { %v1173_v4 = vmul.f32 %v1141_v35, %v466_v51  ;;  %922 = vperm.xlu1 %1879, %v2060_v28   ;;  %v803_v45 = vpop.permute.xlu0 %802  ;;  %v293_v51 = vld [vmem:[%s2286_s14 + $0x10] sm:$0xff]  ;;  %v386_v28 = vadd.f32 %v2311_v26, %v347_v53  ;;  %v1074_v35 = vsel %vm1073_vm0, %v2124_v40, %v2233_v21 }
 0x10d   : > { %v2343_v50 = vsel %vm1073_vm0, %v2219_v19, %v803_v45  ;;  %v332_v19 = vmul.f32 %v2297_v54, %v293_v51  ;;  %v465_v45 = vsel %vm401_vm5, %v369_v2, %v433_v42 }
 0x10e   : > { %1206 = vst.msk [vmem:[%s2337_s22 + $0x8] sm:$0xff] %vm1204_vm4, %v1173_v4  ;;  %v1015_v20 = vpop.permute.xlu1 %1014  ;;  %v450_v63 = vmul.f32 0.1, %v386_v28  ;;  %vm418_vm6 = vcmp.ge.f32.partialorder %v386_v28, 0.0 }
 0x10f   : > { %v371_v48 = vadd.f32 %v2311_v26, %v332_v19 }
 0x110   : > { %926 = vperm.xlu1 %1879, %v2057_v27   ;;  %v2350_v43 = vpop.permute.xlu0 %814  ;;  %v482_v21 = vsel %vm418_vm6, %v386_v28, %v450_v63 }
 0x111   : > { %2847 = vst [vmem:[#allocation27_spill] sm:$0xff] %v2350_v43  ;;  %v435_v19 = vmul.f32 0.1, %v371_v48  ;;  %vm403_vm7 = vcmp.ge.f32.partialorder %v371_v48, 0.0 }
 0x113   : > { %v827_v9 = vpop.permute.xlu1 %826 }
 0x114   : > { %1880 = vset.pattern.permute.xlu1 %v2842_v5 }
 0x115   : > { %986 = vperm.xlu1 %1880, %v1996_v12   ;;  %v819_v3 = vpop.permute.xlu0 %818  ;;  %v1091_v12 = vsel %vm1073_vm0, %v2179_v58, %v2279_v6  ;;  %v349_v58 = vmul.f32 %v2297_v54, %v310_v38 }
 0x116   : > { %v1107_v53 = vsel %vm1106_vm3, %v1074_v35, %v819_v3 }
 0x117   : > { %v2362_v43 = vpop.permute.xlu1 %890  ;;  %v1140_v51 = vsel %vm1139_vm2, %v1107_v53, %v947_v25  ;;  %v388_v41 = vadd.f32 %v2311_v26, %v349_v58 }
 0x118   : > { %v1172_v49 = vmul.f32 %v1140_v51, %v465_v45 }
 0x119   : > { %990 = vperm.xlu1 %1880, %v1993_v11   ;;  %v887_v40 = vpop.permute.xlu0 %886  ;;  %vm420_vm9 = vcmp.ge.f32.partialorder %v388_v41, 0.0 }
 0x11a   : > { %v1124_v2 = vsel %vm1106_vm3, %v1091_v12, %v887_v40  ;;  %1205 = vst.msk [vmem:[%s2337_s22] sm:$0xff] %vm1204_vm4, %v1172_v49  ;;  %1789 = vmatprep.mubr.msk.f32.mxu0 %vm1204_vm4, %v1172_v49  ;;  %v1076_v49 = vsel %vm1073_vm0, %v2121_v39, %v2237_v22  ;;  %v1077_v39 = vsel %vm1073_vm0, %v2135_v44, %v2239_v36  ;;  %v452_v22 = vmul.f32 0.1, %v388_v41 }
 0x11b   : > { %v1157_v25 = vsel %vm1139_vm2, %v1124_v2, %v1015_v20  ;;  %v895_v42 = vpop.permute.xlu1 %894  ;;  %1790 = vmatmul.mubr.msk.f32.vlgmr.msra.gmra.mrb[0].mxu0 %vm1204_vm4, %v1173_v4  ;;  %v467_v4 = vsel %vm403_vm7, %v371_v48, %v435_v19  ;;  %v436_v20 = vmul.f32 0.1, %v372_v0  ;;  %v1109_v38 = vsel %vm1106_vm3, %v1076_v49, %v827_v9 }
 0x11c   : > { %v2380_v11 = vmul.f32 %v1157_v25, %v482_v21  ;;  %v1093_v44 = vsel %vm1073_vm0, %v2185_v60, %v2290_v10  ;;  %v484_v36 = vsel %vm420_vm9, %v388_v41, %v452_v22  ;;  %v307_v25 = vld [vmem:[%s2286_s14 + $0x80] sm:$0xff]  ;;  %v1085_v10 = vsel %vm1073_vm0, %v2160_v52, %v2264_v7 }
 0x11d   : > { %1054 = vperm.xlu1 %1880, %v2057_v27   ;;  %v831_v6 = vpop.permute.xlu0 %830  ;;  %v468_v48 = vsel %vm404_vm8, %v372_v0, %v436_v20  ;;  %v1126_v12 = vsel %vm1106_vm3, %v1093_v44, %v895_v42 }
 0x11e   : > { %1222 = vst.msk [vmem:[%s2337_s22 + $0x88] sm:$0xff] %vm1204_vm4, %v2380_v11  ;;  %v1110_v9 = vsel %vm1106_vm3, %v1077_v39, %v831_v6  ;;  %v311_v6 = vld [vmem:[%s2286_s14 + $0xa0] sm:$0xff] }
 0x11f   : > { %v350_v7 = vmul.f32 %v2297_v54, %v311_v6 }
 0x120   : > { %v955_v28 = vpop.permute.xlu1 %954 }
 0x121   : > { %v1142_v35 = vsel %vm1139_vm2, %v1109_v38, %v955_v28  ;;  %1881 = vset.pattern.permute.xlu1 %v2844_v17  ;;  %v2393_v27 = vpop.permute.xlu0 %898  ;;  %v295_v38 = vld [vmem:[%s2286_s14 + $0x20] sm:$0xff]  ;;  %v296_v28 = vld [vmem:[%s2286_s14 + $0x28] sm:$0xff] }
 0x122   : > { %v1174_v3 = vmul.f32 %v1142_v35, %v467_v4  ;;  %806 = vperm.xlu1 %1881, %v2065_v29   ;;  %v1089_v35 = vsel %vm1073_vm0, %v2173_v56, %v2274_v57  ;;  %v1090_v56 = vsel %vm1073_vm0, %v2182_v59, %v2277_v33  ;;  %v1092_v59 = vsel %vm1073_vm0, %v2188_v61, %v2288_v34 }
 0x123   : > { %v1127_v34 = vsel %vm1106_vm3, %v2302_v18, %v2393_v27 }
 0x124   : > { %1207 = vst.msk [vmem:[%s2337_s22 + $0x10] sm:$0xff] %vm1204_vm4, %v1174_v3  ;;  %v959_v63 = vpop.permute.xlu1 %958  ;;  %1792 = vmatprep.mubr.msk.f32.mxu0 %vm1204_vm4, %v1174_v3 }
 0x125   : > { %v1143_v45 = vsel %vm1139_vm2, %v1110_v9, %v959_v63  ;;  %v2404_v53 = vpop.permute.xlu0 %846  ;;  %v389_v9 = vadd.f32 %v2311_v26, %v350_v7  ;;  %v335_v63 = vmul.f32 %v2297_v54, %v296_v28  ;;  %v1079_v7 = vsel %vm1073_vm0, %v2141_v46, %v2246_v37 }
 0x126   : > { %v1175_v51 = vmul.f32 %v1143_v45, %v468_v48  ;;  %1882 = vset.pattern.permute.xlu1 %v2845_v8 }
 0x127   : > { %866 = vperm.xlu1 %1882, %v2004_v14   ;;  %v346_v14 = vmul.f32 %v2297_v54, %v307_v25  ;;  %vm421_vm12 = vcmp.ge.f32.partialorder %v389_v9, 0.0 }
 0x128   : > { %1208 = vst.msk [vmem:[%s2337_s22 + $0x18] sm:$0xff] %vm1204_vm4, %v1175_v51  ;;  %v1023_v40 = vpop.permute.xlu1 %1022  ;;  %1793 = vmatmul.mubr.msk.f32.gmra.mrb[2].mxu0 %vm1204_vm4, %v1175_v51 }
 0x129   : > { %v1159_v21 = vsel %vm1139_vm2, %v1126_v12, %v1023_v40  ;;  %v915_v2 = vpop.permute.xlu0 %914  ;;  %v385_v49 = vadd.f32 %v2311_v26, %v346_v14 }
 0x12a   : > { %v2417_v19 = vmul.f32 %v1159_v21, %v484_v36  ;;  %v2421_v60 = vsel %vm1106_vm3, %v2320_v23, %v915_v2  ;;  %v309_v23 = vld [vmem:[%s2286_s14 + $0x90] sm:$0xff]  ;;  %v1123_v36 = vsel %vm1106_vm3, %v1090_v56, %v2304_v55  ;;  %v453_v21 = vmul.f32 0.1, %v389_v9  ;;  %v298_v56 = vld [vmem:[%s2286_s14 + $0x38] sm:$0xff] }
 0x12b   : > { %870 = vperm.xlu1 %1882, %v2001_v13   ;;  %v348_v20 = vmul.f32 %v2297_v54, %v309_v23  ;;  %vm417_vm10 = vcmp.ge.f32.partialorder %v385_v49, 0.0 }
 0x12c   : > { %1224 = vst.msk [vmem:[%s2337_s22 + $0x98] sm:$0xff] %vm1204_vm4, %v2417_v19 }
 0x12d   : > { %v2431_v42 = vpop.permute.xlu1 %774  ;;  %v863_v0 = vpop.permute.xlu0 %862  ;;  %v387_v39 = vadd.f32 %v2311_v26, %v348_v20 }
 0x12e   : > { %v2434_v58 = vsel %vm1106_vm3, %v1085_v10, %v863_v0  ;;  %v1125_v10 = vsel %vm1106_vm3, %v1092_v59, %v2362_v43 }
 0x12f   : > { %934 = vperm.xlu1 %1882, %v2065_v29   ;;  %v449_v29 = vmul.f32 0.1, %v385_v49  ;;  %v451_v57 = vmul.f32 0.1, %v387_v39  ;;  %vm419_vm11 = vcmp.ge.f32.partialorder %v387_v39, 0.0 }
 0x131   : > { %v931_v4 = vpop.permute.xlu0 %930  ;;  %v481_v45 = vsel %vm417_vm10, %v385_v49, %v449_v29  ;;  %v483_v55 = vsel %vm419_vm11, %v387_v39, %v451_v57  ;;  %v1095_v29 = vsel %vm1073_vm0, %v2191_v62, %v2431_v42 }
 0x132   : > { %v2443_v41 = vsel %vm1106_vm3, %v2343_v50, %v931_v4  ;;  %v835_v52 = vpop.permute.xlu1 %834  ;;  %v334_v50 = vmul.f32 %v2297_v54, %v295_v38  ;;  %v1078_v4 = vsel %vm1073_vm0, %v2143_v47, %v2244_v24  ;;  %v313_v47 = vld [vmem:[%s2286_s14 + $0xb0] sm:$0xff] }
 0x133   : > { %1883 = vset.pattern.permute.xlu1 %v2842_v5  ;;  %v352_v39 = vmul.f32 %v2297_v54, %v313_v47  ;;  %v2853_v47 = vld [vmem:[#allocation10_spill] sm:$0xff] }
 0x134   : > { %1058 = vperm.xlu1 %1883, %v2068_v30   ;;  %v312_v30 = vld [vmem:[%s2286_s14 + $0xa8] sm:$0xff]  ;;  %v373_v51 = vadd.f32 %v2311_v26, %v334_v50 }
 0x135   : > { %v879_v3 = vpop.permute.xlu0 %878  ;;  %v351_v44 = vmul.f32 %v2297_v54, %v312_v30 }
 0x136   : > { %v2456_v48 = vsel %vm1106_vm3, %v1089_v35, %v879_v3  ;;  %v839_v22 = vpop.permute.xlu1 %838  ;;  %v437_v25 = vmul.f32 0.1, %v373_v51  ;;  %vm405_vm13 = vcmp.ge.f32.partialorder %v373_v51, 0.0 }
 0x137   : > { %v390_v14 = vadd.f32 %v2311_v26, %v351_v44  ;;  %v1112_v24 = vsel %vm1106_vm3, %v1079_v7, %v839_v22 }
 0x138   : > { %998 = vperm.xlu1 %1883, %v2001_v13   ;;  %v374_v13 = vadd.f32 %v2311_v26, %v335_v63  ;;  %v469_v18 = vsel %vm405_vm13, %v373_v51, %v437_v25  ;;  %v2849_v25 = vld [vmem:[#allocation3_spill] sm:$0xff] }
 0x139   : > { %v454_v27 = vmul.f32 0.1, %v390_v14  ;;  %vm422_vm15 = vcmp.ge.f32.partialorder %v390_v14, 0.0 }
 0x13a   : > { %v903_v12 = vpop.permute.xlu1 %902  ;;  %v1011_v40 = vpop.permute.xlu0 %1010  ;;  %v438_v23 = vmul.f32 0.1, %v374_v13  ;;  %vm406_vm14 = vcmp.ge.f32.partialorder %v374_v13, 0.0 }
 0x13b   : > { %v1156_v2 = vsel %vm1139_vm2, %v1123_v36, %v1011_v40  ;;  %v486_v3 = vsel %vm422_vm15, %v390_v14, %v454_v27  ;;  %v1128_v50 = vsel %vm1106_vm3, %v1095_v29, %v903_v12  ;;  %v337_v40 = vmul.f32 %v2297_v54, %v298_v56 }
 0x13c   : > { %1884 = vset.pattern.permute.xlu1 %v2844_v17  ;;  %v1188_v33 = vmul.f32 %v1156_v2, %v481_v45  ;;  %v485_v17 = vsel %vm421_vm12, %v389_v9, %v453_v21  ;;  %v470_v28 = vsel %vm406_vm14, %v374_v13, %v438_v23  ;;  %v391_v9 = vadd.f32 %v2311_v26, %v352_v39  ;;  %v314_v13 = vld [vmem:[%s2286_s14 + $0xb8] sm:$0xff] }
 0x13d   : > { %810 = vperm.xlu1 %1884, %v2076_v32   ;;  %v376_v59 = vadd.f32 %v2311_v26, %v337_v40 }
 0x13e   : > { %v1019_v0 = vpop.permute.xlu0 %1018  ;;  %1221 = vst.msk [vmem:[%s2337_s22 + $0x80] sm:$0xff] %vm1204_vm4, %v1188_v33  ;;  %1813 = vmatprep.mubr.msk.f32.mxu1 %vm1204_vm4, %v1188_v33  ;;  %v455_v30 = vmul.f32 0.1, %v391_v9  ;;  %vm423_vm1 = vcmp.ge.f32.partialorder %v391_v9, 0.0 }
 0x13f   : > { %v1158_v61 = vsel %vm1139_vm2, %v1125_v10, %v1019_v0  ;;  %v1027_v6 = vpop.permute.xlu1 %1026  ;;  %1814 = vmatmul.mubr.msk.f32.vlgmr.msra.gmra.mrb[0].mxu1 %vm1204_vm4, %v2380_v11  ;;  %v1111_v11 = vsel %vm1106_vm3, %v1078_v4, %v835_v52  ;;  %v440_v10 = vmul.f32 0.1, %v376_v59  ;;  %vm408_vm6 = vcmp.ge.f32.partialorder %v376_v59, 0.0 }
 0x140   : > { %v1190_v43 = vmul.f32 %v1158_v61, %v483_v55  ;;  %v1160_v49 = vsel %vm1139_vm2, %v1127_v34, %v1027_v6  ;;  %v487_v36 = vsel %vm423_vm1, %v391_v9, %v455_v30  ;;  %v2848_v55 = vld [vmem:[#allocation17_spill] sm:$0xff]  ;;  %v2850_v6 = vld [vmem:[#allocation18_spill] sm:$0xff] }
 0x141   : > { %v1192_v20 = vmul.f32 %v1160_v49, %v485_v17  ;;  %1886 = vset.pattern.permute.xlu1 %v2845_v8  ;;  %v472_v49 = vsel %vm408_vm6, %v376_v59, %v440_v10 }
 0x142   : > { %1223 = vst.msk [vmem:[%s2337_s22 + $0x90] sm:$0xff] %vm1204_vm4, %v1190_v43  ;;  %874 = vperm.xlu1 %1886, %v2012_v16   ;;  %v963_v38 = vpop.permute.xlu0 %962  ;;  %1816 = vmatprep.mubr.msk.f32.mxu1 %vm1204_vm4, %v1190_v43  ;;  %v2851_v43 = vld [vmem:[#allocation2_spill] sm:$0xff] }
 0x143   : > { %1225 = vst.msk [vmem:[%s2337_s22 + $0xa0] sm:$0xff] %vm1204_vm4, %v1192_v20  ;;  %v1144_v46 = vsel %vm1139_vm2, %v1111_v11, %v963_v38  ;;  %v967_v37 = vpop.permute.xlu1 %966  ;;  %1817 = vmatmul.mubr.msk.f32.gmra.mrb[2].mxu1 %vm1204_vm4, %v2417_v19 }
 0x144   : > { %v1176_v8 = vmul.f32 %v1144_v46, %v469_v18  ;;  %v1145_v52 = vsel %vm1139_vm2, %v1112_v24, %v967_v37  ;;  %1819 = vmatprep.mubr.msk.f32.mxu1 %vm1204_vm4, %v1192_v20  ;;  %v299_v20 = vld [vmem:[%s2286_s14 + $0x40] sm:$0xff] }
 0x145   : > { %v1177_v35 = vmul.f32 %v1145_v52, %v470_v28  ;;  %v338_v38 = vmul.f32 %v2297_v54, %v299_v20  ;;  %v2852_v28 = vld [vmem:[#allocation25_spill] sm:$0xff] }
 0x146   : > { %1209 = vst.msk [vmem:[%s2337_s22 + $0x20] sm:$0xff] %vm1204_vm4, %v1176_v8  ;;  %938 = vperm.xlu1 %1886, %v2076_v32   ;;  %v1031_v19 = vpop.permute.xlu0 %1030  ;;  %1795 = vmatprep.mubr.msk.f32.mxu0 %vm1204_vm4, %v1176_v8  ;;  %v297_v32 = vld [vmem:[%s2286_s14 + $0x30] sm:$0xff]  ;;  %v1097_v24 = vsel %vm1073_vm0, %v2853_v47, %v2852_v28 }
 0x147   : > { %1210 = vst.msk [vmem:[%s2337_s22 + $0x28] sm:$0xff] %vm1204_vm4, %v1177_v35  ;;  %v1161_v22 = vsel %vm1139_vm2, %v1128_v50, %v1031_v19  ;;  %1796 = vmatmul.mubr.msk.f32.gmra.mrb[4].mxu0 %vm1204_vm4, %v1177_v35  ;;  %v336_v45 = vmul.f32 %v2297_v54, %v297_v32  ;;  %v377_v29 = vadd.f32 %v2311_v26, %v338_v38  ;;  %v316_v35 = vld [vmem:[%s2286_s14 + $0xc8] sm:$0xff]  ;;  %v315_v19 = vld [vmem:[%s2286_s14 + $0xc0] sm:$0xff] }
 0x148   : > { %v1193_v62 = vmul.f32 %v1161_v22, %v486_v3  ;;  %v779_v42 = vpop.permute.xlu1 %778  ;;  %v355_v50 = vmul.f32 %v2297_v54, %v316_v35 }
 0x149   : > { %v1096_v51 = vsel %vm1073_vm0, %v2201_v1, %v779_v42  ;;  %v375_v12 = vadd.f32 %v2311_v26, %v336_v45  ;;  %v353_v1 = vmul.f32 %v2297_v54, %v314_v13  ;;  %v441_v39 = vmul.f32 0.1, %v377_v29  ;;  %v2855_v42 = vld [vmem:[#allocation5_spill] sm:$0xff] }
 0x14a   : > { %1226 = vst.msk [vmem:[%s2337_s22 + $0xa8] sm:$0xff] %vm1204_vm4, %v1193_v62  ;;  %942 = vperm.xlu1 %1886, %v2073_v31   ;;  %1820 = vmatmul.mubr.msk.f32.gmra.mrb[4].mxu1 %vm1204_vm4, %v1193_v62  ;;  %v1035_v57 = vpop.permute.xlu0 %1034  ;;  %vm409_vm8 = vcmp.ge.f32.partialorder %v377_v29, 0.0  ;;  %v2854_v62 = vld [vmem:[#allocation19_spill] sm:$0xff]  ;;  %v394_v30 = vadd.f32 %v2311_v26, %v355_v50  ;;  %v354_v45 = vmul.f32 %v2297_v54, %v315_v19 }
 0x14b   : > { %v439_v33 = vmul.f32 0.1, %v375_v12  ;;  %vm407_vm5 = vcmp.ge.f32.partialorder %v375_v12, 0.0  ;;  %v392_v0 = vadd.f32 %v2311_v26, %v353_v1  ;;  %v1082_v9 = vsel %vm1073_vm0, %v2855_v42, %v2854_v62 }
 0x14c   : > { %v393_v40 = vadd.f32 %v2311_v26, %v354_v45  ;;  %vm426_vm9 = vcmp.ge.f32.partialorder %v394_v30, 0.0 }
 0x14d   : > { %v843_v63 = vpop.permute.xlu1 %842  ;;  %v471_v14 = vsel %vm407_vm5, %v375_v12, %v439_v33  ;;  %v456_v4 = vmul.f32 0.1, %v392_v0  ;;  %vm424_vm7 = vcmp.ge.f32.partialorder %v392_v0, 0.0  ;;  %v458_v12 = vmul.f32 0.1, %v394_v30 }
 0x14e   : > { %1888 = vset.pattern.permute.xlu1 %v2842_v5  ;;  %v979_v22 = vpop.permute.xlu0 %978  ;;  %v457_v59 = vmul.f32 0.1, %v393_v40  ;;  %vm425_vm10 = vcmp.ge.f32.partialorder %v393_v40, 0.0 }
 0x14f   : > { %1002 = vperm.xlu1 %1888, %v2012_v16   ;;  %v488_v46 = vsel %vm424_vm7, %v392_v0, %v456_v4  ;;  %v490_v33 = vsel %vm426_vm9, %v394_v30, %v458_v12 }
 0x151   : > { %v907_v44 = vpop.permute.xlu1 %906 }
 0x152   : > { %v1129_v21 = vsel %vm1106_vm3, %v1096_v51, %v907_v44  ;;  %v1047_v13 = vpop.permute.xlu0 %1046 }
 0x153   : > { %v1162_v5 = vsel %vm1139_vm2, %v1129_v21, %v1035_v57  ;;  %1006 = vperm.xlu1 %1888, %v2009_v15   ;;  %v1080_v15 = vsel %vm1073_vm0, %v2849_v25, %v2848_v55  ;;  %v300_v57 = vld [vmem:[%s2286_s14 + $0x48] sm:$0xff] }
 0x154   : > { %v1194_v2 = vmul.f32 %v1162_v5, %v487_v36  ;;  %v1113_v17 = vsel %vm1106_vm3, %v1080_v15, %v843_v63  ;;  %v473_v63 = vsel %vm409_vm8, %v377_v29, %v441_v39  ;;  %v339_v21 = vmul.f32 %v2297_v54, %v300_v57  ;;  %v2856_v5 = vld [vmem:[#allocation11_spill] sm:$0xff]  ;;  %v318_v39 = vld [vmem:[%s2286_s14 + $0xd8] sm:$0xff] }
 0x155   : > { %v911_v16 = vpop.permute.xlu1 %910 }
 0x156   : > { %1227 = vst.msk [vmem:[%s2337_s22 + $0xb0] sm:$0xff] %vm1204_vm4, %v1194_v2  ;;  %1822 = vmatprep.mubr.msk.f32.mxu1 %vm1204_vm4, %v1194_v2  ;;  %v378_v1 = vadd.f32 %v2311_v26, %v339_v21 }
 0x157   : > { %1070 = vperm.xlu1 %1888, %v2073_v31   ;;  %v1081_v31 = vsel %vm1073_vm0, %v2851_v43, %v2850_v6 }
 0x158   : > { %v1114_v18 = vsel %vm1106_vm3, %v1081_v31, %v2404_v53  ;;  %v1130_v53 = vsel %vm1106_vm3, %v1097_v24, %v911_v16  ;;  %v442_v10 = vmul.f32 0.1, %v378_v1  ;;  %vm410_vm11 = vcmp.ge.f32.partialorder %v378_v1, 0.0  ;;  %v317_v31 = vld [vmem:[%s2286_s14 + $0xd0] sm:$0xff]  ;;  %v302_v24 = vld [vmem:[%s2286_s14 + $0x58] sm:$0xff] }
 0x159   : > { %v341_v35 = vmul.f32 %v2297_v54, %v302_v24 }
 0x15a   : > { %v971_v23 = vpop.permute.xlu1 %970  ;;  %v474_v43 = vsel %vm410_vm11, %v378_v1, %v442_v10  ;;  %v2863_v1 = vld [vmem:[#allocation12_spill] sm:$0xff] }
 0x15b   : > { %v1146_v34 = vsel %vm1139_vm2, %v1113_v17, %v971_v23  ;;  %v380_v42 = vadd.f32 %v2311_v26, %v341_v35 }
 0x15c   : > { %v1178_v61 = vmul.f32 %v1146_v34, %v471_v14  ;;  %v489_v14 = vsel %vm425_vm10, %v393_v40, %v457_v59  ;;  %v2857_v34 = vld [vmem:[#allocation20_spill] sm:$0xff]  ;;  %v2862_v59 = vld [vmem:[#allocation26_spill] sm:$0xff] }
 0x15d   : > { %vm412_vm14 = vcmp.ge.f32.partialorder %v380_v42, 0.0 }
 0x15e   : > { %1211 = vst.msk [vmem:[%s2337_s22 + $0x30] sm:$0xff] %vm1204_vm4, %v1178_v61  ;;  %v975_v27 = vpop.permute.xlu1 %974  ;;  %1798 = vmatprep.mubr.msk.f32.mxu0 %vm1204_vm4, %v1178_v61  ;;  %v2858_v61 = vld [vmem:[#allocation4_spill] sm:$0xff] }
 0x15f   : > { %v1147_v7 = vsel %vm1139_vm2, %v1114_v18, %v975_v27  ;;  %v1083_v6 = vsel %vm1073_vm0, %v2858_v61, %v2857_v34  ;;  %v356_v18 = vmul.f32 %v2297_v54, %v317_v31  ;;  %v2865_v31 = vld [vmem:[#allocation8_spill] sm:$0xff] }
 0x160   : > { %v1179_v11 = vmul.f32 %v1147_v7, %v472_v49 }
 0x161   : > { %v395_v7 = vadd.f32 %v2311_v26, %v356_v18 }
 0x162   : > { %1212 = vst.msk [vmem:[%s2337_s22 + $0x38] sm:$0xff] %vm1204_vm4, %v1179_v11  ;;  %v1039_v37 = vpop.permute.xlu1 %1038  ;;  %1799 = vmatmul.mubr.msk.f32.gmra.mrb[6].mxu0 %vm1204_vm4, %v1179_v11  ;;  %v301_v11 = vld [vmem:[%s2286_s14 + $0x50] sm:$0xff] }
 0x163   : > { %v1163_v8 = vsel %vm1139_vm2, %v1130_v53, %v1039_v37  ;;  %v459_v28 = vmul.f32 0.1, %v395_v7  ;;  %v340_v47 = vmul.f32 %v2297_v54, %v301_v11  ;;  %vm427_vm12 = vcmp.ge.f32.partialorder %v395_v7, 0.0  ;;  %v2859_v53 = vld [vmem:[#allocation13_spill] sm:$0xff]  ;;  %v304_v11 = vld [vmem:[%s2286_s14 + $0x68] sm:$0xff] }
 0x164   : > { %v1195_v52 = vmul.f32 %v1163_v8, %v488_v46  ;;  %v1051_v46 = vpop.permute.xlu0 %1050 }
 0x165   : > { %v379_v29 = vadd.f32 %v2311_v26, %v340_v47 }
 0x166   : > { %1228 = vst.msk [vmem:[%s2337_s22 + $0xb8] sm:$0xff] %vm1204_vm4, %v1195_v52  ;;  %1823 = vmatmul.mubr.msk.f32.gmra.mrb[6].mxu1 %vm1204_vm4, %v1195_v52  ;;  %v491_v52 = vsel %vm427_vm12, %v395_v7, %v459_v28 }
 0x167   : > { %v791_v3 = vpop.permute.xlu1 %790  ;;  %v443_v62 = vmul.f32 0.1, %v379_v29  ;;  %vm411_vm13 = vcmp.ge.f32.partialorder %v379_v29, 0.0 }
 0x168   : > { %v1099_v2 = vsel %vm1073_vm0, %v2856_v5, %v791_v3 }
 0x169   : > { %v475_v45 = vsel %vm411_vm13, %v379_v29, %v443_v62 }
 0x16c   : > { %v851_v32 = vpop.permute.xlu1 %850 }
 0x16d   : > { %v1115_v56 = vsel %vm1106_vm3, %v1082_v9, %v851_v32  ;;  %v357_v9 = vmul.f32 %v2297_v54, %v318_v39  ;;  %v2860_v32 = vld [vmem:[#allocation21_spill] sm:$0xff] }
 0x16e   : > { %v1148_v51 = vsel %vm1139_vm2, %v1115_v56, %v979_v22  ;;  %v444_v56 = vmul.f32 0.1, %v380_v42 }
 0x16f   : > { %v1180_v44 = vmul.f32 %v1148_v51, %v473_v63  ;;  %v2861_v63 = vld [vmem:[#allocation6_spill] sm:$0xff]  ;;  %v396_v57 = vadd.f32 %v2311_v26, %v357_v9 }
 0x170   : > { %v855_v36 = vpop.permute.xlu1 %854  ;;  %v1084_v30 = vsel %vm1073_vm0, %v2861_v63, %v2860_v32  ;;  %v476_v40 = vsel %vm412_vm14, %v380_v42, %v444_v56 }
 0x171   : > { %1213 = vst.msk [vmem:[%s2337_s22 + $0x40] sm:$0xff] %vm1204_vm4, %v1180_v44  ;;  %1801 = vmatprep.mubr.msk.f32.mxu0 %vm1204_vm4, %v1180_v44  ;;  %v1116_v49 = vsel %vm1106_vm3, %v1083_v6, %v855_v36  ;;  %v460_v21 = vmul.f32 0.1, %v396_v57  ;;  %vm428_vm15 = vcmp.ge.f32.partialorder %v396_v57, 0.0  ;;  %v319_v6 = vld [vmem:[%s2286_s14 + $0xe0] sm:$0xff] }
 0x172   : > { %v358_v18 = vmul.f32 %v2297_v54, %v319_v6 }
 0x174   : > { %v919_v16 = vpop.permute.xlu1 %918 }
 0x175   : > { %v1132_v55 = vsel %vm1106_vm3, %v1099_v2, %v919_v16 }
 0x176   : > { %v1165_v25 = vsel %vm1139_vm2, %v1132_v55, %v1047_v13  ;;  %v303_v13 = vld [vmem:[%s2286_s14 + $0x60] sm:$0xff]  ;;  %v1101_v55 = vsel %vm1073_vm0, %v2863_v1, %v2862_v59  ;;  %v306_v59 = vld [vmem:[%s2286_s14 + $0x78] sm:$0xff]  ;;  %v2869_v1 = vld [vmem:[#allocation16_spill] sm:$0xff] }
 0x177   : > { %v1197_v15 = vmul.f32 %v1165_v25, %v490_v33  ;;  %v342_v33 = vmul.f32 %v2297_v54, %v303_v13  ;;  %v492_v25 = vsel %vm428_vm15, %v396_v57, %v460_v21 }
 0x179   : > { %1230 = vst.msk [vmem:[%s2337_s22 + $0xc8] sm:$0xff] %vm1204_vm4, %v1197_v15  ;;  %v1043_v0 = vpop.permute.xlu1 %1042 }
 0x17a   : > { %v1164_v17 = vsel %vm1139_vm2, %v2421_v60, %v1043_v0 }
 0x17b   : > { %v1196_v23 = vmul.f32 %v1164_v17, %v489_v14  ;;  %v320_v17 = vld [vmem:[%s2286_s14 + $0xe8] sm:$0xff] }
 0x17c   : > { %v359_v61 = vmul.f32 %v2297_v54, %v320_v17  ;;  %v322_v17 = vld [vmem:[%s2286_s14 + $0xf8] sm:$0xff] }
 0x17d   : > { %1229 = vst.msk [vmem:[%s2337_s22 + $0xc0] sm:$0xff] %vm1204_vm4, %v1196_v23  ;;  %v983_v4 = vpop.permute.xlu1 %982  ;;  %1825 = vmatprep.mubr.msk.f32.mxu1 %vm1204_vm4, %v1196_v23 }
 0x17e   : > { %v1149_v20 = vsel %vm1139_vm2, %v1116_v49, %v983_v4  ;;  %1826 = vmatmul.mubr.msk.f32.gmra.mrb[8].mxu1 %vm1204_vm4, %v1197_v15 }
 0x17f   : > { %v1181_v60 = vmul.f32 %v1149_v20, %v474_v43  ;;  %v2864_v43 = vld [vmem:[#allocation22_spill] sm:$0xff] }
 0x180   : > { %v1086_v49 = vsel %vm1073_vm0, %v2865_v31, %v2864_v43  ;;  %v361_v31 = vmul.f32 %v2297_v54, %v322_v17 }
 0x181   : > { %1214 = vst.msk [vmem:[%s2337_s22 + $0x48] sm:$0xff] %vm1204_vm4, %v1181_v60  ;;  %1802 = vmatmul.mubr.msk.f32.gmra.mrb[8].mxu0 %vm1204_vm4, %v1181_v60  ;;  %v398_v60 = vadd.f32 %v2311_v26, %v359_v61 }
 0x182   : > { %v795_v27 = vpop.permute.xlu1 %794 }
 0x183   : > { %v1100_v37 = vsel %vm1073_vm0, %v2859_v53, %v795_v27  ;;  %v995_v27 = vpop.permute.xlu0 %994  ;;  %v462_v24 = vmul.f32 0.1, %v398_v60  ;;  %v343_v53 = vmul.f32 %v2297_v54, %v304_v11  ;;  %vm430_vm5 = vcmp.ge.f32.partialorder %v398_v60, 0.0 }
 0x185   : > { %v494_v29 = vsel %vm430_vm5, %v398_v60, %v462_v24 }
 0x187   : > { %v859_v38 = vpop.permute.xlu1 %858  ;;  %v1063_v39 = vpop.permute.xlu0 %1062 }
 0x188   : > { %v1117_v51 = vsel %vm1106_vm3, %v1084_v30, %v859_v38  ;;  %v2867_v30 = vld [vmem:[#allocation23_spill] sm:$0xff] }
 0x18b   : > { %v923_v8 = vpop.permute.xlu1 %922 }
 0x18c   : > { %v1133_v3 = vsel %vm1106_vm3, %v1100_v37, %v923_v8  ;;  %v2866_v37 = vld [vmem:[#allocation14_spill] sm:$0xff] }
 0x18d   : > { %v1166_v50 = vsel %vm1139_vm2, %v1133_v3, %v1051_v46  ;;  %v397_v46 = vadd.f32 %v2311_v26, %v358_v18  ;;  %v382_v3 = vadd.f32 %v2311_v26, %v343_v53  ;;  %v2872_v53 = vld [vmem:[#allocation27_spill] sm:$0xff] }
 0x18e   : > { %v1198_v19 = vmul.f32 %v1166_v50, %v491_v52 }
 0x18f   : > { %v927_v22 = vpop.permute.xlu1 %926  ;;  %v461_v35 = vmul.f32 0.1, %v397_v46  ;;  %vm429_vm6 = vcmp.ge.f32.partialorder %v397_v46, 0.0  ;;  %v446_v42 = vmul.f32 0.1, %v382_v3  ;;  %vm414_vm7 = vcmp.ge.f32.partialorder %v382_v3, 0.0 }
 0x190   : > { %1231 = vst.msk [vmem:[%s2337_s22 + $0xd0] sm:$0xff] %vm1204_vm4, %v1198_v19  ;;  %1828 = vmatprep.mubr.msk.f32.mxu1 %vm1204_vm4, %v1198_v19  ;;  %v1134_v15 = vsel %vm1106_vm3, %v1101_v55, %v927_v22 }
 0x191   : > { %v493_v62 = vsel %vm429_vm6, %v397_v46, %v461_v35  ;;  %v478_v57 = vsel %vm414_vm7, %v382_v3, %v446_v42 }
 0x194   : > { %v987_v44 = vpop.permute.xlu1 %986 }
 0x195   : > { %v1150_v36 = vsel %vm1139_vm2, %v1117_v51, %v987_v44  ;;  %v321_v51 = vld [vmem:[%s2286_s14 + $0xf0] sm:$0xff] }
 0x196   : > { %v1182_v12 = vmul.f32 %v1150_v36, %v475_v45  ;;  %v2868_v45 = vld [vmem:[#allocation7_spill] sm:$0xff] }
 0x197   : > { %v1087_v56 = vsel %vm1073_vm0, %v2868_v45, %v2867_v30 }
 0x198   : > { %1215 = vst.msk [vmem:[%s2337_s22 + $0x50] sm:$0xff] %vm1204_vm4, %v1182_v12  ;;  %v991_v5 = vpop.permute.xlu1 %990  ;;  %1804 = vmatprep.mubr.msk.f32.mxu0 %vm1204_vm4, %v1182_v12 }
 0x199   : > { %v1151_v2 = vsel %vm1139_vm2, %v2434_v58, %v991_v5  ;;  %v381_v58 = vadd.f32 %v2311_v26, %v342_v33  ;;  %v305_v5 = vld [vmem:[%s2286_s14 + $0x70] sm:$0xff] }
 0x19a   : > { %v1183_v16 = vmul.f32 %v1151_v2, %v476_v40  ;;  %v360_v40 = vmul.f32 %v2297_v54, %v321_v51  ;;  %v344_v33 = vmul.f32 %v2297_v54, %v305_v5 }
 0x19b   : > { %v445_v34 = vmul.f32 0.1, %v381_v58  ;;  %vm413_vm1 = vcmp.ge.f32.partialorder %v381_v58, 0.0 }
 0x19c   : > { %1216 = vst.msk [vmem:[%s2337_s22 + $0x58] sm:$0xff] %vm1204_vm4, %v1183_v16  ;;  %v1055_v14 = vpop.permute.xlu1 %1054  ;;  %1805 = vmatmul.mubr.msk.f32.gmra.mrb[10].mxu0 %vm1204_vm4, %v1183_v16  ;;  %v399_v13 = vadd.f32 %v2311_v26, %v360_v40 }
 0x19d   : > { %v1167_v10 = vsel %vm1139_vm2, %v1134_v15, %v1055_v14  ;;  %v477_v20 = vsel %vm413_vm1, %v381_v58, %v445_v34  ;;  %v383_v14 = vadd.f32 %v2311_v26, %v344_v33 }
 0x19e   : > { %v1199_v0 = vmul.f32 %v1167_v10, %v492_v25  ;;  %v463_v16 = vmul.f32 0.1, %v399_v13  ;;  %vm431_vm8 = vcmp.ge.f32.partialorder %v399_v13, 0.0  ;;  %v345_v10 = vmul.f32 %v2297_v54, %v306_v59 }
 0x19f   : > { %v447_v6 = vmul.f32 0.1, %v383_v14  ;;  %vm415_vm9 = vcmp.ge.f32.partialorder %v383_v14, 0.0 }
 0x1a0   : > { %1232 = vst.msk [vmem:[%s2337_s22 + $0xd8] sm:$0xff] %vm1204_vm4, %v1199_v0  ;;  %1829 = vmatmul.mubr.msk.f32.gmra.mrb[10].mxu1 %vm1204_vm4, %v1199_v0  ;;  %v495_v15 = vsel %vm431_vm8, %v399_v13, %v463_v16  ;;  %v1067_v0 = vpop.permute.xlu0 %1066  ;;  %v384_v43 = vadd.f32 %v2311_v26, %v345_v10 }
 0x1a1   : > { %v807_v23 = vpop.permute.xlu1 %806  ;;  %v479_v60 = vsel %vm415_vm9, %v383_v14, %v447_v6 }
 0x1a2   : > { %v1103_v8 = vsel %vm1073_vm0, %v2866_v37, %v807_v23  ;;  %v448_v18 = vmul.f32 0.1, %v384_v43  ;;  %vm416_vm10 = vcmp.ge.f32.partialorder %v384_v43, 0.0  ;;  %v2873_v37 = vld [vmem:[#allocation15_spill] sm:$0xff] }
 0x1a6   : > { %v867_v4 = vpop.permute.xlu1 %866 }
 0x1a7   : > { %v1119_v7 = vsel %vm1106_vm3, %v1086_v49, %v867_v4  ;;  %v2870_v49 = vld [vmem:[#allocation24_spill] sm:$0xff]  ;;  %v2871_v4 = vld [vmem:[#allocation9_spill] sm:$0xff] }
 0x1a8   : > { %v1152_v38 = vsel %vm1139_vm2, %v1119_v7, %v995_v27  ;;  %v400_v27 = vadd.f32 %v2311_v26, %v361_v31 }
 0x1a9   : > { %v1184_v28 = vmul.f32 %v1152_v38, %v477_v20  ;;  %v1088_v20 = vsel %vm1073_vm0, %v2871_v4, %v2870_v49 }
 0x1aa   : > { %v871_v47 = vpop.permute.xlu1 %870  ;;  %vm432_vm11 = vcmp.ge.f32.partialorder %v400_v27, 0.0 }
 0x1ab   : > { %1217 = vst.msk [vmem:[%s2337_s22 + $0x60] sm:$0xff] %vm1204_vm4, %v1184_v28  ;;  %1807 = vmatprep.mubr.msk.f32.mxu0 %vm1204_vm4, %v1184_v28  ;;  %v1120_v44 = vsel %vm1106_vm3, %v1087_v56, %v871_v47  ;;  %v480_v28 = vsel %vm416_vm10, %v384_v43, %v448_v18  ;;  %v464_v47 = vmul.f32 0.1, %v400_v27 }
 0x1ae   : > { %v935_v52 = vpop.permute.xlu1 %934 }
 0x1af   : > { %v1136_v50 = vsel %vm1106_vm3, %v1103_v8, %v935_v52  ;;  %v1105_v8 = vsel %vm1073_vm0, %v2873_v37, %v2872_v53  ;;  %v496_v52 = vsel %vm432_vm11, %v400_v27, %v464_v47 }
 0x1b0   : > { %v1169_v19 = vsel %vm1139_vm2, %v1136_v50, %v1063_v39 }
 0x1b1   : > { %v1201_v22 = vmul.f32 %v1169_v19, %v494_v29 }
 0x1b3   : > { %1234 = vst.msk [vmem:[%s2337_s22 + $0xe8] sm:$0xff] %vm1204_vm4, %v1201_v22  ;;  %v1059_v9 = vpop.permute.xlu1 %1058 }
 0x1b4   : > { %v1168_v32 = vsel %vm1139_vm2, %v2443_v41, %v1059_v9 }
 0x1b5   : > { %v1200_v63 = vmul.f32 %v1168_v32, %v493_v62 }
 0x1b7   : > { %1233 = vst.msk [vmem:[%s2337_s22 + $0xe0] sm:$0xff] %vm1204_vm4, %v1200_v63  ;;  %v999_v36 = vpop.permute.xlu1 %998  ;;  %1831 = vmatprep.mubr.msk.f32.mxu1 %vm1204_vm4, %v1200_v63 }
 0x1b8   : > { %v1153_v12 = vsel %vm1139_vm2, %v1120_v44, %v999_v36  ;;  %1832 = vmatmul.mubr.msk.f32.gmra.mrb[12].mxu1 %vm1204_vm4, %v1201_v22 }
 0x1b9   : > { %v1185_v41 = vmul.f32 %v1153_v12, %v478_v57 }
 0x1bb   : > { %1218 = vst.msk [vmem:[%s2337_s22 + $0x68] sm:$0xff] %vm1204_vm4, %v1185_v41  ;;  %1808 = vmatmul.mubr.msk.f32.gmra.mrb[12].mxu0 %vm1204_vm4, %v1185_v41 }
 0x1bc   : > { %v811_v21 = vpop.permute.xlu1 %810 }
 0x1bd   : > { %v1104_v55 = vsel %vm1073_vm0, %v2869_v1, %v811_v21 }
 0x1c1   : > { %v875_v2 = vpop.permute.xlu1 %874 }
 0x1c2   : > { %v1121_v7 = vsel %vm1106_vm3, %v1088_v20, %v875_v2 }
 0x1c5   : > { %v939_v25 = vpop.permute.xlu1 %938 }
 0x1c6   : > { %v1137_v58 = vsel %vm1106_vm3, %v1104_v55, %v939_v25 }
 0x1c7   : > { %v1170_v23 = vsel %vm1139_vm2, %v1137_v58, %v1067_v0 }
 0x1c8   : > { %v1202_v34 = vmul.f32 %v1170_v23, %v495_v15 }
 0x1c9   : > { %v943_v61 = vpop.permute.xlu1 %942 }
 0x1ca   : > { %1235 = vst.msk [vmem:[%s2337_s22 + $0xf0] sm:$0xff] %vm1204_vm4, %v1202_v34  ;;  %1834 = vmatprep.mubr.msk.f32.mxu1 %vm1204_vm4, %v1202_v34  ;;  %v1138_v29 = vsel %vm1106_vm3, %v1105_v8, %v943_v61 }
 0x1ce   : > { %v1003_v11 = vpop.permute.xlu1 %1002 }
 0x1cf   : > { %v1154_v54 = vsel %vm1139_vm2, %v1121_v7, %v1003_v11 }
 0x1d0   : > { %v1186_v38 = vmul.f32 %v1154_v54, %v479_v60 }
 0x1d2   : > { %1219 = vst.msk [vmem:[%s2337_s22 + $0x70] sm:$0xff] %vm1204_vm4, %v1186_v38  ;;  %v1007_v24 = vpop.permute.xlu1 %1006  ;;  %1810 = vmatprep.mubr.msk.f32.mxu0 %vm1204_vm4, %v1186_v38 }
 0x1d3   : > { %v1155_v26 = vsel %vm1139_vm2, %v2456_v48, %v1007_v24 }
 0x1d4   : > { %v1187_v46 = vmul.f32 %v1155_v26, %v480_v28 }
 0x1d6   : > { %1220 = vst.msk [vmem:[%s2337_s22 + $0x78] sm:$0xff] %vm1204_vm4, %v1187_v46  ;;  %v1071_v35 = vpop.permute.xlu1 %1070  ;;  %1811 = vmatmul.mubr.msk.f32.gmra.mrb[14].mxu0 %vm1204_vm4, %v1187_v46 }
 0x1d7   : > { %v1171_v3 = vsel %vm1139_vm2, %v1138_v29, %v1071_v35 }
 0x1d8   : > { %v1203_v39 = vmul.f32 %v1171_v3, %v496_v52 }
 0x1da   : > { %1236 = vst.msk [vmem:[%s2337_s22 + $0xf8] sm:$0xff] %vm1204_vm4, %v1203_v39  ;;  %1835 = vmatmul.mubr.msk.f32.gmra.mrb[14].mxu1 %vm1204_vm4, %v1203_v39 }
 0x1ee   : > { %v1791_v48 = vpop.f32.mrb[0].mxu0 }
 0x1ef   : > { %1563 = vst.msk [vmem:[%s2737_s26 + $0x8] sm:$0xff] %vm1204_vm4, %v1791_v48  ;;  %v1403_v50 = vpop.f32.mrb[1].mxu0 }
 0x1f0   : > { %1562 = vst.msk [vmem:[%s2737_s26] sm:$0xff] %vm1204_vm4, %v1403_v50 }
 0x1fb   : > { %v1794_v19 = vpop.f32.mrb[2].mxu0 }
 0x1fc   : > { %1565 = vst.msk [vmem:[%s2737_s26 + $0x18] sm:$0xff] %vm1204_vm4, %v1794_v19  ;;  %v1413_v22 = vpop.f32.mrb[3].mxu0 }
 0x1fd   : > { %1564 = vst.msk [vmem:[%s2737_s26 + $0x10] sm:$0xff] %vm1204_vm4, %v1413_v22 }
 0x212   : > { %v1815_v62 = vpop.f32.mrb[0].mxu1 }
 0x213   : > { %1579 = vst.msk [vmem:[%s2737_s26 + $0x88] sm:$0xff] %vm1204_vm4, %v1815_v62  ;;  %v1483_v42 = vpop.f32.mrb[1].mxu1 }
 0x214   : > { %1578 = vst.msk [vmem:[%s2737_s26 + $0x80] sm:$0xff] %vm1204_vm4, %v1483_v42 }
 0x216   : > { %v1818_v9 = vpop.f32.mrb[2].mxu1 }
 0x217   : > { %1581 = vst.msk [vmem:[%s2737_s26 + $0x98] sm:$0xff] %vm1204_vm4, %v1818_v9  ;;  %v1493_v32 = vpop.f32.mrb[3].mxu1 }
 0x218   : > { %1580 = vst.msk [vmem:[%s2737_s26 + $0x90] sm:$0xff] %vm1204_vm4, %v1493_v32 }
 0x21a   : > { %v1797_v63 = vpop.f32.mrb[4].mxu0 }
 0x21b   : > { %1567 = vst.msk [vmem:[%s2737_s26 + $0x28] sm:$0xff] %vm1204_vm4, %v1797_v63  ;;  %v1423_v30 = vpop.f32.mrb[5].mxu0 }
 0x21c   : > { %1566 = vst.msk [vmem:[%s2737_s26 + $0x20] sm:$0xff] %vm1204_vm4, %v1423_v30 }
 0x21d   : > { %v1821_v45 = vpop.f32.mrb[4].mxu1 }
 0x21e   : > { %1583 = vst.msk [vmem:[%s2737_s26 + $0xa8] sm:$0xff] %vm1204_vm4, %v1821_v45  ;;  %v1503_v56 = vpop.f32.mrb[5].mxu1 }
 0x21f   : > { %1582 = vst.msk [vmem:[%s2737_s26 + $0xa0] sm:$0xff] %vm1204_vm4, %v1503_v56 }
 0x235   : > { %v1800_v57 = vpop.f32.mrb[6].mxu0 }
 0x236   : > { %1569 = vst.msk [vmem:[%s2737_s26 + $0x38] sm:$0xff] %vm1204_vm4, %v1800_v57  ;;  %v1433_v51 = vpop.f32.mrb[7].mxu0 }
 0x237   : > { %1568 = vst.msk [vmem:[%s2737_s26 + $0x30] sm:$0xff] %vm1204_vm4, %v1433_v51 }
 0x239   : > { %v1824_v44 = vpop.f32.mrb[6].mxu1 }
 0x23a   : > { %1585 = vst.msk [vmem:[%s2737_s26 + $0xb8] sm:$0xff] %vm1204_vm4, %v1824_v44  ;;  %v1513_v36 = vpop.f32.mrb[7].mxu1 }
 0x23b   : > { %1584 = vst.msk [vmem:[%s2737_s26 + $0xb0] sm:$0xff] %vm1204_vm4, %v1513_v36 }
 0x251   : > { %v1827_v12 = vpop.f32.mrb[8].mxu1 }
 0x252   : > { %1587 = vst.msk [vmem:[%s2737_s26 + $0xc8] sm:$0xff] %vm1204_vm4, %v1827_v12  ;;  %v1523_v41 = vpop.f32.mrb[9].mxu1 }
 0x253   : > { %1586 = vst.msk [vmem:[%s2737_s26 + $0xc0] sm:$0xff] %vm1204_vm4, %v1523_v41 }
 0x254   : > { %v1803_v40 = vpop.f32.mrb[8].mxu0 }
 0x255   : > { %1571 = vst.msk [vmem:[%s2737_s26 + $0x48] sm:$0xff] %vm1204_vm4, %v1803_v40  ;;  %v1443_v21 = vpop.f32.mrb[9].mxu0 }
 0x256   : > { %1570 = vst.msk [vmem:[%s2737_s26 + $0x40] sm:$0xff] %vm1204_vm4, %v1443_v21 }
 0x26f   : > { %v1806_v13 = vpop.f32.mrb[10].mxu0 }
 0x270   : > { %1573 = vst.msk [vmem:[%s2737_s26 + $0x58] sm:$0xff] %vm1204_vm4, %v1806_v13  ;;  %v1453_v5 = vpop.f32.mrb[11].mxu0 }
 0x271   : > { %1572 = vst.msk [vmem:[%s2737_s26 + $0x50] sm:$0xff] %vm1204_vm4, %v1453_v5 }
 0x273   : > { %v1830_v2 = vpop.f32.mrb[10].mxu1 }
 0x274   : > { %1589 = vst.msk [vmem:[%s2737_s26 + $0xd8] sm:$0xff] %vm1204_vm4, %v1830_v2  ;;  %v1533_v16 = vpop.f32.mrb[11].mxu1 }
 0x275   : > { %1588 = vst.msk [vmem:[%s2737_s26 + $0xd0] sm:$0xff] %vm1204_vm4, %v1533_v16 }
 0x28b   : > { %v1833_v33 = vpop.f32.mrb[12].mxu1 }
 0x28c   : > { %1591 = vst.msk [vmem:[%s2737_s26 + $0xe8] sm:$0xff] %vm1204_vm4, %v1833_v33  ;;  %v1543_v59 = vpop.f32.mrb[13].mxu1 }
 0x28d   : > { %1590 = vst.msk [vmem:[%s2737_s26 + $0xe0] sm:$0xff] %vm1204_vm4, %v1543_v59 }
 0x28e   : > { %v1809_v1 = vpop.f32.mrb[12].mxu0 }
 0x28f   : > { %1575 = vst.msk [vmem:[%s2737_s26 + $0x68] sm:$0xff] %vm1204_vm4, %v1809_v1  ;;  %v1463_v55 = vpop.f32.mrb[13].mxu0 }
 0x290   : > { %1574 = vst.msk [vmem:[%s2737_s26 + $0x60] sm:$0xff] %vm1204_vm4, %v1463_v55 }
 0x2a9   : > { %v1812_v25 = vpop.f32.mrb[14].mxu0 }
 0x2aa   : > { %1577 = vst.msk [vmem:[%s2737_s26 + $0x78] sm:$0xff] %vm1204_vm4, %v1812_v25  ;;  %v1473_v15 = vpop.f32.mrb[15].mxu0 }
 0x2ab   : > { %1576 = vst.msk [vmem:[%s2737_s26 + $0x70] sm:$0xff] %vm1204_vm4, %v1473_v15 }
 0x2ad   : > { %v1836_v14 = vpop.f32.mrb[14].mxu1 }
 0x2ae   : > { %1593 = vst.msk [vmem:[%s2737_s26 + $0xf8] sm:$0xff] %vm1204_vm4, %v1836_v14  ;;  %v1553_v10 = vpop.f32.mrb[15].mxu1 }
 0x2af   : > { %1592 = vst.msk [vmem:[%s2737_s26 + $0xf0] sm:$0xff] %vm1204_vm4, %v1553_v10 }
 0x2b0 PF: > { %s17_s21 = sadd.s32 1, %s1895_s21  }
 0x2b1   : > { %p14_p4 = scmp.ge.s32.totalorder %s17_s21, 4  }
 0x2b3   :  { %16 = sbr.rel (!%p14_p4) target bundleno = 1 (0x1), region = 85 }

// kernel: mrg_forward.17
= control target key start
LH: loop header
LB: loop body
LE: loop exit
PB: predicated region body
PF: predicated region fallthrough
CT: control target
= control target key end

     0   :  { %s1975_s12 = smov 0   ;;  %s3860_s0 = inlined_call_operand.vmem [shape: f32[512,32], index: 0, kind: input, shape index: {}]   ;;  %s3861_s1 = inlined_call_operand.vmem [shape: f32[1,32], index: 1, kind: input, shape index: {}]   ;;  %s3862_s2 = inlined_call_operand.vmem [shape: f32[1,32], index: 2, kind: input, shape index: {}]   ;;  %s3863_s3 = inlined_call_operand.vmem [shape: f32[512,8], index: 3, kind: output, shape index: {}]  }
   0x1 LB: > { %s1920_s13 = sadd.s32 4294967295, %s1950_s12   ;;  %p1924_p0 = scmp.ge.s32.totalorder %s1950_s12, 1  ;;  %s1950_s12 = sphi %s1975_s12, %s13_s12  }
   0x2   : > { %p138_p1 = scmp.lt.s32.totalorder %s1950_s12, 3 }
   0x4   : > { %p139_p2 = pnand %p1924_p0, %p138_p1 }
   0x6   : > { %142 = sbr.rel (%p139_p2) target bundleno = 1122 (0x462), region = 32 }
   0xd   : > { %s1925_s14 = sshll.u32 %s1920_s13, 5  ;;  %v1989_v0 = vld [vmem:[%s3861_s1] ss:$0 sm:$0xff]  ;;  %vm380_vm0 = vcmask 64512   ;;  %s1952_s23 = smov 120  }
   0xe   : > { %p163_p3 = scmp.lt.s32.totalorder %s1925_s14, 63  ;;  %v2001_v1 = vld [vmem:[%s3862_s2] ss:$0 sm:$0xff]  ;;  %s1953_s24 = smov 112  }
   0xf   : > { %s1954_s25 = smov 104  }
  0x10   : > { %s4253_s14 = smov (!%p163_p3, %s1925_s14), 63 }
  0x11   : > { %s1926_s15 = sshll.u32 %s4253_s14, 3 }
  0x12   : > { %s1996_s20 = scalar_lea.vmem %s3860_s0, %s1926_s15  ;;  %s3439_s28 = scalar_lea.vmem %s3863_s3, %s1926_s15 }
  0x13   : > { %v176_v2 = vld [vmem:[%s1996_s20 + $0x10] sm:$0xff]  ;;  %v174_v3 = vld [vmem:[%s1996_s20] sm:$0xff]  ;;  %v177_v4 = vld [vmem:[%s1996_s20 + $0x18] sm:$0xff] }
  0x14   : > { %v215_v5 = vmul.f32 %v1989_v0, %v176_v2  ;;  %v213_v6 = vmul.f32 %v1989_v0, %v174_v3  ;;  %v216_v7 = vmul.f32 %v1989_v0, %v177_v4  ;;  %v175_v8 = vld [vmem:[%s1996_s20 + $0x8] sm:$0xff]  ;;  %v178_v10 = vld [vmem:[%s1996_s20 + $0x20] sm:$0xff]  ;;  %v181_v14 = vld [vmem:[%s1996_s20 + $0x38] sm:$0xff] }
  0x15   : > { %v179_v9 = vld [vmem:[%s1996_s20 + $0x28] sm:$0xff]  ;;  %v214_v11 = vmul.f32 %v1989_v0, %v175_v8  ;;  %v217_v13 = vmul.f32 %v1989_v0, %v178_v10  ;;  %v180_v15 = vld [vmem:[%s1996_s20 + $0x30] sm:$0xff]  ;;  %v220_v19 = vmul.f32 %v1989_v0, %v181_v14  ;;  %v182_v36 = vld [vmem:[%s1996_s20 + $0x40] sm:$0xff] }
  0x16   : > { %v218_v12 = vmul.f32 %v1989_v0, %v179_v9  ;;  %v254_v16 = vadd.f32 %v2001_v1, %v215_v5  ;;  %v252_v17 = vadd.f32 %v2001_v1, %v213_v6  ;;  %v255_v18 = vadd.f32 %v2001_v1, %v216_v7  ;;  %v183_v31 = vld [vmem:[%s1996_s20 + $0x48] sm:$0xff]  ;;  %v185_v37 = vld [vmem:[%s1996_s20 + $0x58] sm:$0xff]  ;;  %v184_v38 = vld [vmem:[%s1996_s20 + $0x50] sm:$0xff] }
  0x17   : > { %v253_v20 = vadd.f32 %v2001_v1, %v214_v11  ;;  %v256_v22 = vadd.f32 %v2001_v1, %v217_v13  ;;  %v219_v23 = vmul.f32 %v1989_v0, %v180_v15  ;;  %v259_v44 = vadd.f32 %v2001_v1, %v220_v19  ;;  %v187_v50 = vld [vmem:[%s1996_s20 + $0x68] sm:$0xff]  ;;  %v186_v63 = vld [vmem:[%s1996_s20 + $0x60] sm:$0xff]  ;;  %v189_v3 = vld [vmem:[%s1996_s20 + $0x78] sm:$0xff] }
  0x18   : > { %v257_v21 = vadd.f32 %v2001_v1, %v218_v12  ;;  %vm286_vm1 = vcmp.ge.f32.partialorder %v254_v16, 0.0  ;;  %v318_v24 = vmul.f32 0.1, %v254_v16  ;;  %vm284_vm2 = vcmp.ge.f32.partialorder %v252_v17, 0.0  ;;  %v188_v12 = vld [vmem:[%s1996_s20 + $0x70] sm:$0xff]  ;;  %v191_v14 = vld [vmem:[%s1996_s20 + $0x88] sm:$0xff] }
  0x19   : > { %v316_v25 = vmul.f32 0.1, %v252_v17  ;;  %vm287_vm3 = vcmp.ge.f32.partialorder %v255_v18, 0.0  ;;  %v319_v26 = vmul.f32 0.1, %v255_v18  ;;  %vm285_vm4 = vcmp.ge.f32.partialorder %v253_v20, 0.0 }
  0x1a   : > { %v317_v27 = vmul.f32 0.1, %v253_v20  ;;  %v2025_v28 = vsel %vm286_vm1, %v254_v16, %v318_v24  ;;  %vm289_vm5 = vcmp.ge.f32.partialorder %v257_v21, 0.0  ;;  %v321_v30 = vmul.f32 0.1, %v257_v21  ;;  %v190_v15 = vld [vmem:[%s1996_s20 + $0x80] sm:$0xff] }
  0x1b   : > { %v2027_v29 = vsel %vm284_vm2, %v252_v17, %v316_v25  ;;  %v387_v32 = vsel %vm380_vm0, %v2025_v28, 0.0  ;;  %v2034_v34 = vsel %vm287_vm3, %v255_v18, %v319_v26  ;;  %vm288_vm6 = vcmp.ge.f32.partialorder %v256_v22, 0.0  ;;  %v192_v25 = vld [vmem:[%s1996_s20 + $0x90] sm:$0xff] }
  0x1c   : > { %v381_v33 = vsel %vm380_vm0, %v2027_v29, 0.0  ;;  %v2036_v35 = vsel %vm285_vm4, %v253_v20, %v317_v27  ;;  %388 = vadd.xlane.f32.xlu1 %v387_v32  ;;  %v390_v39 = vsel %vm380_vm0, %v2034_v34, 0.0  ;;  %v2045_v41 = vsel %vm289_vm5, %v257_v21, %v321_v30  ;;  %v193_v20 = vld [vmem:[%s1996_s20 + $0x98] sm:$0xff] }
  0x1d   : > { %382 = vadd.xlane.f32.xlu0 %v381_v33  ;;  %v384_v40 = vsel %vm380_vm0, %v2036_v35, 0.0  ;;  %v396_v42 = vsel %vm380_vm0, %v2045_v41, 0.0  ;;  %v320_v43 = vmul.f32 0.1, %v256_v22  ;;  %v258_v45 = vadd.f32 %v2001_v1, %v219_v23 }
  0x1e   : > { %v222_v46 = vmul.f32 %v1989_v0, %v183_v31  ;;  %v221_v47 = vmul.f32 %v1989_v0, %v182_v36  ;;  %v224_v48 = vmul.f32 %v1989_v0, %v185_v37  ;;  %v223_v49 = vmul.f32 %v1989_v0, %v184_v38 }
  0x1f   : > { %v2056_v51 = vsel %vm288_vm6, %v256_v22, %v320_v43  ;;  %vm291_vm7 = vcmp.ge.f32.partialorder %v259_v44, 0.0  ;;  %v323_v52 = vmul.f32 0.1, %v259_v44  ;;  %vm290_vm8 = vcmp.ge.f32.partialorder %v258_v45, 0.0 }
  0x20   : > { %391 = vadd.xlane.f32.xlu1 %v390_v39  ;;  %v393_v53 = vsel %vm380_vm0, %v2056_v51, 0.0  ;;  %v322_v54 = vmul.f32 0.1, %v258_v45  ;;  %v261_v55 = vadd.f32 %v2001_v1, %v222_v46  ;;  %v260_v56 = vadd.f32 %v2001_v1, %v221_v47  ;;  %v194_v46 = vld [vmem:[%s1996_s20 + $0xa0] sm:$0xff] }
  0x21   : > { %385 = vadd.xlane.f32.xlu0 %v384_v40  ;;  %v2062_v57 = vsel %vm291_vm7, %v259_v44, %v323_v52  ;;  %v263_v58 = vadd.f32 %v2001_v1, %v224_v48  ;;  %v262_v59 = vadd.f32 %v2001_v1, %v223_v49  ;;  %v226_v60 = vmul.f32 %v1989_v0, %v187_v50  ;;  %v195_v40 = vld [vmem:[%s1996_s20 + $0xa8] sm:$0xff] }
  0x22   : > { %v2067_v61 = vsel %vm290_vm8, %v258_v45, %v322_v54  ;;  %vm293_vm9 = vcmp.ge.f32.partialorder %v261_v55, 0.0  ;;  %v325_v62 = vmul.f32 0.1, %v261_v55  ;;  %vm292_vm10 = vcmp.ge.f32.partialorder %v260_v56, 0.0 }
  0x23   : > { %v324_v2 = vmul.f32 0.1, %v260_v56  ;;  %v402_v4 = vsel %vm380_vm0, %v2062_v57, 0.0  ;;  %v399_v5 = vsel %vm380_vm0, %v2067_v61, 0.0  ;;  %v327_v7 = vmul.f32 0.1, %v263_v58 }
  0x24   : > { %397 = vadd.xlane.f32.xlu1 %v396_v42  ;;  %v2075_v6 = vsel %vm293_vm9, %v261_v55, %v325_v62  ;;  %v326_v9 = vmul.f32 0.1, %v262_v59  ;;  %v265_v10 = vadd.f32 %v2001_v1, %v226_v60  ;;  %v225_v11 = vmul.f32 %v1989_v0, %v186_v63  ;;  %v197_v55 = vld [vmem:[%s1996_s20 + $0xb8] sm:$0xff]  ;;  %v196_v60 = vld [vmem:[%s1996_s20 + $0xb0] sm:$0xff] }
  0x25   : > { %394 = vadd.xlane.f32.xlu0 %v393_v53  ;;  %v2077_v8 = vsel %vm292_vm10, %v260_v56, %v324_v2  ;;  %vm295_vm11 = vcmp.ge.f32.partialorder %v263_v58, 0.0  ;;  %vm294_vm12 = vcmp.ge.f32.partialorder %v262_v59, 0.0  ;;  %v228_v13 = vmul.f32 %v1989_v0, %v189_v3 }
  0x26   : > { %v408_v16 = vsel %vm380_vm0, %v2075_v6, 0.0  ;;  %v405_v17 = vsel %vm380_vm0, %v2077_v8, 0.0  ;;  %v264_v18 = vadd.f32 %v2001_v1, %v225_v11  ;;  %v227_v19 = vmul.f32 %v1989_v0, %v188_v12  ;;  %v198_v12 = vld [vmem:[%s1996_s20 + $0xc0] sm:$0xff] }
  0x27   : > { %v2092_v21 = vsel %vm295_vm11, %v263_v58, %v327_v7  ;;  %v2094_v22 = vsel %vm294_vm12, %v262_v59, %v326_v9  ;;  %v329_v23 = vmul.f32 0.1, %v265_v10  ;;  %v230_v24 = vmul.f32 %v1989_v0, %v191_v14  ;;  %v199_v7 = vld [vmem:[%s1996_s20 + $0xc8] sm:$0xff] }
  0x28   : > { %403 = vadd.xlane.f32.xlu1 %v402_v4  ;;  %vm297_vm13 = vcmp.ge.f32.partialorder %v265_v10, 0.0  ;;  %v328_v26 = vmul.f32 0.1, %v264_v18  ;;  %v267_v27 = vadd.f32 %v2001_v1, %v228_v13  ;;  %v229_v30 = vmul.f32 %v1989_v0, %v190_v15 }
  0x29   : > { %400 = vadd.xlane.f32.xlu0 %v399_v5  ;;  %vm296_vm14 = vcmp.ge.f32.partialorder %v264_v18, 0.0  ;;  %v266_v31 = vadd.f32 %v2001_v1, %v227_v19  ;;  %v269_v32 = vadd.f32 %v2001_v1, %v230_v24  ;;  %v232_v33 = vmul.f32 %v1989_v0, %v193_v20 }
  0x2a   : > { %v231_v36 = vmul.f32 %v1989_v0, %v192_v25  ;;  %v414_v37 = vsel %vm380_vm0, %v2092_v21, 0.0  ;;  %v411_v38 = vsel %vm380_vm0, %v2094_v22, 0.0  ;;  %v2108_v39 = vsel %vm297_vm13, %v265_v10, %v329_v23 }
  0x2b   : > { %v2111_v42 = vsel %vm296_vm14, %v264_v18, %v328_v26  ;;  %v331_v43 = vmul.f32 0.1, %v267_v27  ;;  %v330_v44 = vmul.f32 0.1, %v266_v31  ;;  %v268_v45 = vadd.f32 %v2001_v1, %v229_v30  ;;  %v201_v26 = vld [vmem:[%s1996_s20 + $0xd8] sm:$0xff] }
  0x2c   : > { %409 = vadd.xlane.f32.xlu1 %v408_v16  ;;  %vm299_vm15 = vcmp.ge.f32.partialorder %v267_v27, 0.0  ;;  %vm298_vm1 = vcmp.ge.f32.partialorder %v266_v31, 0.0  ;;  %v333_v47 = vmul.f32 0.1, %v269_v32  ;;  %v271_v48 = vadd.f32 %v2001_v1, %v232_v33 }
  0x2d   : > { %406 = vadd.xlane.f32.xlu0 %v405_v17  ;;  %vm301_vm2 = vcmp.ge.f32.partialorder %v269_v32, 0.0  ;;  %v270_v49 = vadd.f32 %v2001_v1, %v231_v36  ;;  %v234_v50 = vmul.f32 %v1989_v0, %v195_v40  ;;  %v420_v52 = vsel %vm380_vm0, %v2108_v39, 0.0 }
  0x2e   : > { %v417_v53 = vsel %vm380_vm0, %v2111_v42, 0.0  ;;  %v233_v54 = vmul.f32 %v1989_v0, %v194_v46  ;;  %v2124_v56 = vsel %vm299_vm15, %v267_v27, %v331_v43  ;;  %v2126_v58 = vsel %vm298_vm1, %v266_v31, %v330_v44  ;;  %v200_v27 = vld [vmem:[%s1996_s20 + $0xd0] sm:$0xff] }
  0x2f   : > { %vm300_vm3 = vcmp.ge.f32.partialorder %v268_v45, 0.0  ;;  %v332_v59 = vmul.f32 0.1, %v268_v45  ;;  %v2129_v62 = vsel %vm301_vm2, %v269_v32, %v333_v47  ;;  %vm303_vm4 = vcmp.ge.f32.partialorder %v271_v48, 0.0  ;;  %v203_v47 = vld [vmem:[%s1996_s20 + $0xe8] sm:$0xff] }
  0x30   : > { %415 = vadd.xlane.f32.xlu1 %v414_v37  ;;  %v335_v63 = vmul.f32 0.1, %v271_v48  ;;  %v334_v2 = vmul.f32 0.1, %v270_v49  ;;  %vm302_vm5 = vcmp.ge.f32.partialorder %v270_v49, 0.0  ;;  %v273_v3 = vadd.f32 %v2001_v1, %v234_v50 }
  0x31   : > { %412 = vadd.xlane.f32.xlu0 %v411_v38  ;;  %v272_v4 = vadd.f32 %v2001_v1, %v233_v54  ;;  %v236_v5 = vmul.f32 %v1989_v0, %v197_v55  ;;  %v426_v9 = vsel %vm380_vm0, %v2124_v56, 0.0  ;;  %v423_v10 = vsel %vm380_vm0, %v2126_v58, 0.0 }
  0x32   : > { %v235_v11 = vmul.f32 %v1989_v0, %v196_v60  ;;  %v2142_v13 = vsel %vm300_vm3, %v268_v45, %v332_v59  ;;  %v432_v14 = vsel %vm380_vm0, %v2129_v62, 0.0  ;;  %v2147_v15 = vsel %vm303_vm4, %v271_v48, %v335_v63  ;;  %v202_v48 = vld [vmem:[%s1996_s20 + $0xe0] sm:$0xff]  ;;  %v205_v63 = vld [vmem:[%s1996_s20 + $0xf8] sm:$0xff] }
  0x33   : > { %v2149_v16 = vsel %vm302_vm5, %v270_v49, %v334_v2  ;;  %v238_v17 = vmul.f32 %v1989_v0, %v199_v7  ;;  %v337_v18 = vmul.f32 0.1, %v273_v3  ;;  %v336_v19 = vmul.f32 0.1, %v272_v4  ;;  %v204_v2 = vld [vmem:[%s1996_s20 + $0xf0] sm:$0xff] }
  0x34   : > { %421 = vadd.xlane.f32.xlu1 %v420_v52  ;;  %v275_v20 = vadd.f32 %v2001_v1, %v236_v5  ;;  %v237_v23 = vmul.f32 %v1989_v0, %v198_v12  ;;  %v429_v24 = vsel %vm380_vm0, %v2142_v13, 0.0  ;;  %vm305_vm6 = vcmp.ge.f32.partialorder %v273_v3, 0.0 }
  0x35   : > { %418 = vadd.xlane.f32.xlu0 %v417_v53  ;;  %vm304_vm7 = vcmp.ge.f32.partialorder %v272_v4, 0.0  ;;  %v274_v25 = vadd.f32 %v2001_v1, %v235_v11  ;;  %v438_v30 = vsel %vm380_vm0, %v2147_v15, 0.0  ;;  %v435_v31 = vsel %vm380_vm0, %v2149_v16, 0.0 }
  0x36   : > { %v277_v32 = vadd.f32 %v2001_v1, %v238_v17  ;;  %v2164_v33 = vsel %vm305_vm6, %v273_v3, %v337_v18  ;;  %v2166_v36 = vsel %vm304_vm7, %v272_v4, %v336_v19  ;;  %v339_v37 = vmul.f32 0.1, %v275_v20 }
  0x37   : > { %v276_v38 = vadd.f32 %v2001_v1, %v237_v23  ;;  %vm307_vm8 = vcmp.ge.f32.partialorder %v275_v20, 0.0  ;;  %v338_v40 = vmul.f32 0.1, %v274_v25  ;;  %v240_v43 = vmul.f32 %v1989_v0, %v201_v26 }
  0x38   : > { %427 = vadd.xlane.f32.xlu1 %v426_v9  ;;  %v239_v44 = vmul.f32 %v1989_v0, %v200_v27  ;;  %vm306_vm9 = vcmp.ge.f32.partialorder %v274_v25, 0.0  ;;  %v444_v45 = vsel %vm380_vm0, %v2164_v33, 0.0  ;;  %v441_v46 = vsel %vm380_vm0, %v2166_v36, 0.0 }
  0x39   : > { %424 = vadd.xlane.f32.xlu0 %v423_v10  ;;  %v2177_v49 = vsel %vm307_vm8, %v275_v20, %v339_v37  ;;  %vm309_vm10 = vcmp.ge.f32.partialorder %v277_v32, 0.0  ;;  %v341_v50 = vmul.f32 0.1, %v277_v32  ;;  %v340_v52 = vmul.f32 0.1, %v276_v38 }
  0x3a   : > { %v2179_v53 = vsel %vm306_vm9, %v274_v25, %v338_v40  ;;  %vm308_vm11 = vcmp.ge.f32.partialorder %v276_v38, 0.0  ;;  %v279_v54 = vadd.f32 %v2001_v1, %v240_v43  ;;  %v278_v55 = vadd.f32 %v2001_v1, %v239_v44 }
  0x3b   : > { %v242_v59 = vmul.f32 %v1989_v0, %v203_v47  ;;  %v241_v60 = vmul.f32 %v1989_v0, %v202_v48  ;;  %v450_v3 = vsel %vm380_vm0, %v2177_v49, 0.0  ;;  %v447_v4 = vsel %vm380_vm0, %v2179_v53, 0.0 }
  0x3c   : > { %433 = vadd.xlane.f32.xlu1 %v432_v14  ;;  %v2191_v5 = vsel %vm309_vm10, %v277_v32, %v341_v50  ;;  %v2193_v7 = vsel %vm308_vm11, %v276_v38, %v340_v52  ;;  %vm311_vm12 = vcmp.ge.f32.partialorder %v279_v54, 0.0  ;;  %v343_v9 = vmul.f32 0.1, %v279_v54 }
  0x3d   : > { %430 = vadd.xlane.f32.xlu0 %v429_v24  ;;  %vm310_vm13 = vcmp.ge.f32.partialorder %v278_v55, 0.0  ;;  %v342_v10 = vmul.f32 0.1, %v278_v55  ;;  %v281_v11 = vadd.f32 %v2001_v1, %v242_v59  ;;  %v280_v12 = vadd.f32 %v2001_v1, %v241_v60 }
  0x3e   : > { %v244_v14 = vmul.f32 %v1989_v0, %v205_v63  ;;  %v243_v17 = vmul.f32 %v1989_v0, %v204_v2  ;;  %v456_v18 = vsel %vm380_vm0, %v2191_v5, 0.0  ;;  %v453_v19 = vsel %vm380_vm0, %v2193_v7, 0.0 }
  0x3f   : > { %v2203_v20 = vsel %vm311_vm12, %v279_v54, %v343_v9  ;;  %v2205_v23 = vsel %vm310_vm13, %v278_v55, %v342_v10  ;;  %v345_v24 = vmul.f32 0.1, %v281_v11  ;;  %v344_v25 = vmul.f32 0.1, %v280_v12 }
  0x40   : > { %439 = vadd.xlane.f32.xlu1 %v438_v30  ;;  %v283_v26 = vadd.f32 %v2001_v1, %v244_v14  ;;  %v282_v27 = vadd.f32 %v2001_v1, %v243_v17  ;;  %vm313_vm14 = vcmp.ge.f32.partialorder %v281_v11, 0.0  ;;  %vm312_vm15 = vcmp.ge.f32.partialorder %v280_v12, 0.0 }
  0x41   : > { %436 = vadd.xlane.f32.xlu0 %v435_v31  ;;  %v462_v0 = vsel %vm380_vm0, %v2203_v20, 0.0  ;;  %v459_v30 = vsel %vm380_vm0, %v2205_v23, 0.0  ;;  %v2213_v31 = vsel %vm313_vm14, %v281_v11, %v345_v24  ;;  %v2215_v32 = vsel %vm312_vm15, %v280_v12, %v344_v25 }
  0x42   : > { %v347_v37 = vmul.f32 0.1, %v283_v26  ;;  %v346_v38 = vmul.f32 0.1, %v282_v27  ;;  %vm315_vm1 = vcmp.ge.f32.partialorder %v283_v26, 0.0  ;;  %vm314_vm2 = vcmp.ge.f32.partialorder %v282_v27, 0.0 }
  0x43   : > { %v468_v1 = vsel %vm380_vm0, %v2213_v31, 0.0  ;;  %v465_v40 = vsel %vm380_vm0, %v2215_v32, 0.0  ;;  %v513_v47 = vsel %vm380_vm0, %v2036_v35, -inf  ;;  %v510_v48 = vsel %vm380_vm0, %v2027_v29, -inf }
  0x44   : > { %445 = vadd.xlane.f32.xlu1 %v444_v45  ;;  %v2221_v43 = vsel %vm315_vm1, %v283_v26, %v347_v37  ;;  %v2223_v44 = vsel %vm314_vm2, %v282_v27, %v346_v38  ;;  %v519_v50 = vsel %vm380_vm0, %v2034_v34, -inf  ;;  %v516_v52 = vsel %vm380_vm0, %v2025_v28, -inf }
  0x45   : > { %442 = vadd.xlane.f32.xlu0 %v441_v46  ;;  %v474_v45 = vsel %vm380_vm0, %v2221_v43, 0.0  ;;  %v471_v46 = vsel %vm380_vm0, %v2223_v44, 0.0  ;;  %v525_v54 = vsel %vm380_vm0, %v2045_v41, -inf  ;;  %v522_v55 = vsel %vm380_vm0, %v2056_v51, -inf }
  0x46   : > { %v531_v59 = vsel %vm380_vm0, %v2062_v57, -inf  ;;  %v528_v60 = vsel %vm380_vm0, %v2067_v61, -inf  ;;  %v537_v63 = vsel %vm380_vm0, %v2075_v6, -inf  ;;  %v534_v2 = vsel %vm380_vm0, %v2077_v8, -inf }
  0x47   : > { %v549_v9 = vsel %vm380_vm0, %v2108_v39, -inf  ;;  %v546_v10 = vsel %vm380_vm0, %v2111_v42, -inf  ;;  %v555_v11 = vsel %vm380_vm0, %v2124_v56, -inf  ;;  %v552_v12 = vsel %vm380_vm0, %v2126_v58, -inf }
  0x48   : > { %451 = vadd.xlane.f32.xlu1 %v450_v3  ;;  %v543_v3 = vsel %vm380_vm0, %v2092_v21, -inf  ;;  %v561_v14 = vsel %vm380_vm0, %v2129_v62, -inf  ;;  %v558_v17 = vsel %vm380_vm0, %v2142_v13, -inf  ;;  %v573_v24 = vsel %vm380_vm0, %v2164_v33, -inf }
  0x49   : > { %448 = vadd.xlane.f32.xlu0 %v447_v4  ;;  %v540_v4 = vsel %vm380_vm0, %v2094_v22, -inf  ;;  %v570_v25 = vsel %vm380_vm0, %v2166_v36, -inf  ;;  %v579_v26 = vsel %vm380_vm0, %v2177_v49, -inf  ;;  %v576_v27 = vsel %vm380_vm0, %v2179_v53, -inf }
  0x4a   : > { %v591_v37 = vsel %vm380_vm0, %v2203_v20, -inf  ;;  %v588_v38 = vsel %vm380_vm0, %v2205_v23, -inf  ;;  %vm862_vm3 = vcmask 130112   ;;  %vm1183_vm4 = vcmask 195712  }
  0x4b   : > { %vm1504_vm5 = vcmask 261312   ;;  %vm1601_vm6 = vcmask 7168   ;;  %vm1634_vm7 = vcmask 15360   ;;  %vm1667_vm8 = vcmask 23552  }
  0x4c   : > { %457 = vadd.xlane.f32.xlu1 %v456_v18  ;;  %v567_v18 = vsel %vm380_vm0, %v2147_v15, -inf  ;;  %vm1700_vm9 = vcmask 31744   ;;  %vm1733_vm10 = vcmask 39936   ;;  %vm1766_vm11 = vcmask 48128  }
  0x4d   : > { %454 = vadd.xlane.f32.xlu0 %v453_v19  ;;  %v564_v19 = vsel %vm380_vm0, %v2149_v16, -inf  ;;  %vm1799_vm12 = vcmask 56320  }
  0x50   : > { %463 = vadd.xlane.f32.xlu1 %v462_v0  ;;  %v585_v0 = vsel %vm380_vm0, %v2191_v5, -inf }
  0x51   : > { %460 = vadd.xlane.f32.xlu0 %v459_v30  ;;  %v582_v30 = vsel %vm380_vm0, %v2193_v7, -inf }
  0x54   : > { %469 = vadd.xlane.f32.xlu1 %v468_v1  ;;  %v597_v1 = vsel %vm380_vm0, %v2213_v31, -inf }
  0x55   : > { %466 = vadd.xlane.f32.xlu0 %v465_v40  ;;  %v594_v40 = vsel %vm380_vm0, %v2215_v32, -inf }
  0x58   : > { %475 = vadd.xlane.f32.xlu1 %v474_v45  ;;  %v603_v45 = vsel %vm380_vm0, %v2221_v43, -inf }
  0x59   : > { %472 = vadd.xlane.f32.xlu0 %v471_v46  ;;  %v600_v46 = vsel %vm380_vm0, %v2223_v44, -inf }
  0x5c   : > { %514 = vmax.xlane.f32.xlu1 %v513_v47 }
  0x5d   : > { %511 = vmax.xlane.f32.xlu0 %v510_v48 }
  0x60   : > { %520 = vmax.xlane.f32.xlu1 %v519_v50 }
  0x61   : > { %517 = vmax.xlane.f32.xlu0 %v516_v52 }
  0x64   : > { %526 = vmax.xlane.f32.xlu1 %v525_v54 }
  0x65   : > { %523 = vmax.xlane.f32.xlu0 %v522_v55 }
  0x68   : > { %532 = vmax.xlane.f32.xlu1 %v531_v59 }
  0x69   : > { %529 = vmax.xlane.f32.xlu0 %v528_v60 }
  0x6c   : > { %538 = vmax.xlane.f32.xlu1 %v537_v63 }
  0x6d   : > { %535 = vmax.xlane.f32.xlu0 %v534_v2 }
  0x70   : > { %544 = vmax.xlane.f32.xlu1 %v543_v3 }
  0x71   : > { %541 = vmax.xlane.f32.xlu0 %v540_v4 }
  0x74   : > { %550 = vmax.xlane.f32.xlu1 %v549_v9 }
  0x75   : > { %547 = vmax.xlane.f32.xlu0 %v546_v10 }
  0x78   : > { %556 = vmax.xlane.f32.xlu1 %v555_v11 }
  0x79   : > { %553 = vmax.xlane.f32.xlu0 %v552_v12 }
  0x7c   : > { %562 = vmax.xlane.f32.xlu1 %v561_v14 }
  0x7d   : > { %559 = vmax.xlane.f32.xlu0 %v558_v17 }
  0x80   : > { %568 = vmax.xlane.f32.xlu1 %v567_v18 }
  0x81   : > { %565 = vmax.xlane.f32.xlu0 %v564_v19 }
  0x84   : > { %574 = vmax.xlane.f32.xlu1 %v573_v24 }
  0x85   : > { %571 = vmax.xlane.f32.xlu0 %v570_v25 }
  0x88   : > { %580 = vmax.xlane.f32.xlu1 %v579_v26 }
  0x89   : > { %577 = vmax.xlane.f32.xlu0 %v576_v27 }
  0x8c   : > { %586 = vmax.xlane.f32.xlu1 %v585_v0 }
  0x8d   : > { %583 = vmax.xlane.f32.xlu0 %v582_v30 }
  0x90   : > { %592 = vmax.xlane.f32.xlu1 %v591_v37 }
  0x91   : > { %589 = vmax.xlane.f32.xlu0 %v588_v38 }
  0x94   : > { %598 = vmax.xlane.f32.xlu1 %v597_v1 }
  0x95   : > { %595 = vmax.xlane.f32.xlu0 %v594_v40 }
  0x98   : > { %604 = vmax.xlane.f32.xlu1 %v603_v45 }
  0x99   : > { %601 = vmax.xlane.f32.xlu0 %v600_v46 }
  0xa9   : > { %v2293_v47 = vpop.xlane.xlu1 %388  ;;  %640 = vrot.lane.b32.xlu1 %v2036_v35, %s1952_s23 }
  0xaa   : > { %v2295_v48 = vpop.xlane.xlu0 %382 }
  0xad   : > { %v2299_v50 = vpop.xlane.xlu1 %391  ;;  %642 = vrot.lane.b32.xlu1 %v2025_v28, %s1952_s23 }
  0xae   : > { %v2301_v52 = vpop.xlane.xlu0 %385 }
  0xaf   : > { %638 = vrot.lane.b32.xlu0 %v2027_v29, %s1952_s23 }
  0xb1   : > { %v2307_v54 = vpop.xlane.xlu1 %397  ;;  %644 = vrot.lane.b32.xlu1 %v2034_v34, %s1952_s23 }
  0xb2   : > { %v2309_v55 = vpop.xlane.xlu0 %394 }
  0xb3   : > { %646 = vrot.lane.b32.xlu0 %v2056_v51, %s1952_s23 }
  0xb5   : > { %v2315_v59 = vpop.xlane.xlu1 %403  ;;  %648 = vrot.lane.b32.xlu1 %v2045_v41, %s1952_s23 }
  0xb6   : > { %v2317_v60 = vpop.xlane.xlu0 %400 }
  0xb7   : > { %650 = vrot.lane.b32.xlu0 %v2067_v61, %s1952_s23 }
  0xb9   : > { %v2323_v63 = vpop.xlane.xlu1 %409  ;;  %652 = vrot.lane.b32.xlu1 %v2062_v57, %s1952_s23 }
  0xba   : > { %v2325_v2 = vpop.xlane.xlu0 %406 }
  0xbb   : > { %654 = vrot.lane.b32.xlu0 %v2077_v8, %s1952_s23 }
  0xbd   : > { %v2331_v3 = vpop.xlane.xlu1 %415  ;;  %656 = vrot.lane.b32.xlu1 %v2075_v6, %s1952_s23 }
  0xbe   : > { %v2333_v4 = vpop.xlane.xlu0 %412 }
  0xbf   : > { %658 = vrot.lane.b32.xlu0 %v2094_v22, %s1952_s23 }
  0xc1   : > { %v2339_v9 = vpop.xlane.xlu1 %421  ;;  %660 = vrot.lane.b32.xlu1 %v2092_v21, %s1952_s23 }
  0xc2   : > { %v2341_v10 = vpop.xlane.xlu0 %418 }
  0xc3   : > { %662 = vrot.lane.b32.xlu0 %v2111_v42, %s1952_s23 }
  0xc5   : > { %v2347_v11 = vpop.xlane.xlu1 %427  ;;  %664 = vrot.lane.b32.xlu1 %v2108_v39, %s1952_s23 }
  0xc6   : > { %v2349_v12 = vpop.xlane.xlu0 %424 }
  0xc7   : > { %666 = vrot.lane.b32.xlu0 %v2126_v58, %s1952_s23 }
  0xc9   : > { %v2355_v14 = vpop.xlane.xlu1 %433  ;;  %668 = vrot.lane.b32.xlu1 %v2124_v56, %s1952_s23 }
  0xca   : > { %v2357_v17 = vpop.xlane.xlu0 %430 }
  0xcb   : > { %670 = vrot.lane.b32.xlu0 %v2142_v13, %s1952_s23 }
  0xcd   : > { %v2363_v18 = vpop.xlane.xlu1 %439  ;;  %672 = vrot.lane.b32.xlu1 %v2129_v62, %s1952_s23 }
  0xce   : > { %v2365_v19 = vpop.xlane.xlu0 %436 }
  0xcf   : > { %3864 = vst [vmem:[#allocation2_spill] sm:$0xff] %v2365_v19  ;;  %674 = vrot.lane.b32.xlu0 %v2149_v16, %s1952_s23 }
  0xd1   : > { %v2371_v24 = vpop.xlane.xlu1 %445  ;;  %676 = vrot.lane.b32.xlu1 %v2147_v15, %s1952_s23 }
  0xd2   : > { %3865 = vst [vmem:[#allocation3_spill] sm:$0xff] %v2371_v24  ;;  %v2373_v25 = vpop.xlane.xlu0 %442 }
  0xd3   : > { %3866 = vst [vmem:[#allocation4_spill] sm:$0xff] %v2373_v25  ;;  %678 = vrot.lane.b32.xlu0 %v2166_v36, %s1952_s23 }
  0xd5   : > { %v2379_v26 = vpop.xlane.xlu1 %451  ;;  %680 = vrot.lane.b32.xlu1 %v2164_v33, %s1952_s23 }
  0xd6   : > { %3867 = vst [vmem:[#allocation5_spill] sm:$0xff] %v2379_v26  ;;  %v2381_v27 = vpop.xlane.xlu0 %448 }
  0xd7   : > { %3868 = vst [vmem:[#allocation6_spill] sm:$0xff] %v2381_v27  ;;  %682 = vrot.lane.b32.xlu0 %v2179_v53, %s1952_s23 }
  0xd9   : > { %v2387_v0 = vpop.xlane.xlu1 %457  ;;  %684 = vrot.lane.b32.xlu1 %v2177_v49, %s1952_s23 }
  0xda   : > { %3869 = vst [vmem:[#allocation7_spill] sm:$0xff] %v2387_v0  ;;  %v2389_v30 = vpop.xlane.xlu0 %454 }
  0xdb   : > { %3870 = vst [vmem:[#allocation8_spill] sm:$0xff] %v2389_v30  ;;  %686 = vrot.lane.b32.xlu0 %v2193_v7, %s1952_s23 }
  0xdd   : > { %v2395_v37 = vpop.xlane.xlu1 %463  ;;  %688 = vrot.lane.b32.xlu1 %v2191_v5, %s1952_s23 }
  0xde   : > { %3871 = vst [vmem:[#allocation9_spill] sm:$0xff] %v2395_v37  ;;  %v2397_v38 = vpop.xlane.xlu0 %460 }
  0xdf   : > { %3872 = vst [vmem:[#allocation10_spill] sm:$0xff] %v2397_v38  ;;  %690 = vrot.lane.b32.xlu0 %v2205_v23, %s1952_s23 }
  0xe1   : > { %v2403_v1 = vpop.xlane.xlu1 %469  ;;  %692 = vrot.lane.b32.xlu1 %v2203_v20, %s1952_s23 }
  0xe2   : > { %3873 = vst [vmem:[#allocation11_spill] sm:$0xff] %v2403_v1  ;;  %v2405_v40 = vpop.xlane.xlu0 %466 }
  0xe3   : > { %3874 = vst [vmem:[#allocation12_spill] sm:$0xff] %v2405_v40  ;;  %694 = vrot.lane.b32.xlu0 %v2215_v32, %s1952_s23 }
  0xe5   : > { %v2411_v45 = vpop.xlane.xlu1 %475  ;;  %696 = vrot.lane.b32.xlu1 %v2213_v31, %s1952_s23 }
  0xe6   : > { %3875 = vst [vmem:[#allocation13_spill] sm:$0xff] %v2411_v45  ;;  %v2413_v46 = vpop.xlane.xlu0 %472 }
  0xe7   : > { %3876 = vst [vmem:[#allocation14_spill] sm:$0xff] %v2413_v46  ;;  %698 = vrot.lane.b32.xlu0 %v2223_v44, %s1952_s23 }
  0xe9   : > { %v2419_v38 = vpop.xlane.xlu1 %514  ;;  %700 = vrot.lane.b32.xlu1 %v2221_v43, %s1952_s23 }
  0xea   : > { %3877 = vst [vmem:[#allocation15_spill] sm:$0xff] %v2419_v38  ;;  %v2421_v1 = vpop.xlane.xlu0 %511 }
  0xeb   : > { %3878 = vst [vmem:[#allocation16_spill] sm:$0xff] %v2421_v1 }
  0xed   : > { %v2425_v40 = vpop.xlane.xlu1 %520 }
  0xee   : > { %3879 = vst [vmem:[#allocation17_spill] sm:$0xff] %v2425_v40  ;;  %v2427_v37 = vpop.xlane.xlu0 %517 }
  0xef   : > { %3880 = vst [vmem:[#allocation18_spill] sm:$0xff] %v2427_v37 }
  0xf1   : > { %v2429_v45 = vpop.xlane.xlu1 %526 }
  0xf2   : > { %3881 = vst [vmem:[#allocation19_spill] sm:$0xff] %v2429_v45  ;;  %v2431_v46 = vpop.xlane.xlu0 %523 }
  0xf3   : > { %3882 = vst [vmem:[#allocation20_spill] sm:$0xff] %v2431_v46 }
  0xf5   : > { %v2433_v30 = vpop.xlane.xlu1 %532 }
  0xf6   : > { %3883 = vst [vmem:[#allocation21_spill] sm:$0xff] %v2433_v30  ;;  %v2435_v0 = vpop.xlane.xlu0 %529 }
  0xf7   : > { %3884 = vst [vmem:[#allocation22_spill] sm:$0xff] %v2435_v0 }
  0xf9   : > { %v2437_v27 = vpop.xlane.xlu1 %538 }
  0xfa   : > { %3885 = vst [vmem:[#allocation23_spill] sm:$0xff] %v2437_v27  ;;  %v2439_v38 = vpop.xlane.xlu0 %535 }
  0xfb   : > { %3886 = vst [vmem:[#allocation24_spill] sm:$0xff] %v2439_v38 }
  0xfd   : > { %v2441_v1 = vpop.xlane.xlu1 %544 }
  0xfe   : > { %3887 = vst [vmem:[#allocation25_spill] sm:$0xff] %v2441_v1  ;;  %v2443_v26 = vpop.xlane.xlu0 %541 }
  0xff   : > { %3888 = vst [vmem:[#allocation26_spill] sm:$0xff] %v2443_v26 }
 0x101   : > { %v2445_v25 = vpop.xlane.xlu1 %550 }
 0x102   : > { %3889 = vst [vmem:[#allocation27_spill] sm:$0xff] %v2445_v25  ;;  %v2447_v40 = vpop.xlane.xlu0 %547 }
 0x103   : > { %3890 = vst [vmem:[#allocation28_spill] sm:$0xff] %v2447_v40 }
 0x105   : > { %v2449_v37 = vpop.xlane.xlu1 %556 }
 0x106   : > { %3891 = vst [vmem:[#allocation29_spill] sm:$0xff] %v2449_v37  ;;  %v2451_v45 = vpop.xlane.xlu0 %553 }
 0x107   : > { %3892 = vst [vmem:[#allocation30_spill] sm:$0xff] %v2451_v45 }
 0x109   : > { %v2453_v46 = vpop.xlane.xlu1 %562 }
 0x10a   : > { %3893 = vst [vmem:[#allocation31_spill] sm:$0xff] %v2453_v46  ;;  %v2455_v30 = vpop.xlane.xlu0 %559 }
 0x10b   : > { %3894 = vst [vmem:[#allocation32_spill] sm:$0xff] %v2455_v30 }
 0x10d   : > { %v2457_v0 = vpop.xlane.xlu1 %568 }
 0x10e   : > { %3895 = vst [vmem:[#allocation33_spill] sm:$0xff] %v2457_v0  ;;  %v2459_v27 = vpop.xlane.xlu0 %565 }
 0x10f   : > { %3896 = vst [vmem:[#allocation34_spill] sm:$0xff] %v2459_v27 }
 0x111   : > { %v2461_v38 = vpop.xlane.xlu1 %574 }
 0x112   : > { %3897 = vst [vmem:[#allocation35_spill] sm:$0xff] %v2461_v38  ;;  %v2463_v1 = vpop.xlane.xlu0 %571 }
 0x113   : > { %3898 = vst [vmem:[#allocation36_spill] sm:$0xff] %v2463_v1 }
 0x115   : > { %v2465_v26 = vpop.xlane.xlu1 %580 }
 0x116   : > { %3899 = vst [vmem:[#allocation37_spill] sm:$0xff] %v2465_v26  ;;  %v2467_v25 = vpop.xlane.xlu0 %577 }
 0x117   : > { %3900 = vst [vmem:[#allocation38_spill] sm:$0xff] %v2467_v25 }
 0x119   : > { %v2469_v40 = vpop.xlane.xlu1 %586 }
 0x11a   : > { %3901 = vst [vmem:[#allocation39_spill] sm:$0xff] %v2469_v40  ;;  %v2471_v37 = vpop.xlane.xlu0 %583 }
 0x11b   : > { %3902 = vst [vmem:[#allocation40_spill] sm:$0xff] %v2471_v37 }
 0x11d   : > { %v2473_v45 = vpop.xlane.xlu1 %592 }
 0x11e   : > { %3903 = vst [vmem:[#allocation41_spill] sm:$0xff] %v2473_v45  ;;  %v2475_v46 = vpop.xlane.xlu0 %589 }
 0x11f   : > { %3904 = vst [vmem:[#allocation42_spill] sm:$0xff] %v2475_v46 }
 0x121   : > { %v2477_v30 = vpop.xlane.xlu1 %598 }
 0x122   : > { %3905 = vst [vmem:[#allocation43_spill] sm:$0xff] %v2477_v30  ;;  %v2479_v0 = vpop.xlane.xlu0 %595 }
 0x123   : > { %3906 = vst [vmem:[#allocation44_spill] sm:$0xff] %v2479_v0 }
 0x125   : > { %v2481_v27 = vpop.xlane.xlu1 %604 }
 0x126   : > { %3907 = vst [vmem:[#allocation45_spill] sm:$0xff] %v2481_v27  ;;  %v2483_v38 = vpop.xlane.xlu0 %601 }
 0x127   : > { %3908 = vst [vmem:[#allocation46_spill] sm:$0xff] %v2483_v38 }
 0x129   : > { %v641_v1 = vpop.permute.xlu1 %640 }
 0x12a   : > { %v639_v26 = vpop.permute.xlu0 %638  ;;  %v737_v25 = vsel %vm380_vm0, %v641_v1, 0.0 }
 0x12b   : > { %v734_v40 = vsel %vm380_vm0, %v639_v26, 0.0  ;;  %738 = vadd.xlane.f32.xlu1 %v737_v25 }
 0x12c   : > { %735 = vadd.xlane.f32.xlu0 %v734_v40 }
 0x12d   : > { %v643_v37 = vpop.permute.xlu1 %642 }
 0x12e   : > { %v647_v45 = vpop.permute.xlu0 %646  ;;  %v740_v46 = vsel %vm380_vm0, %v643_v37, 0.0 }
 0x12f   : > { %v746_v38 = vsel %vm380_vm0, %v647_v45, 0.0 }
 0x130   : > { %741 = vadd.xlane.f32.xlu0 %v740_v46 }
 0x131   : > { %v645_v30 = vpop.permute.xlu1 %644 }
 0x132   : > { %v651_v24 = vpop.permute.xlu0 %650  ;;  %v743_v0 = vsel %vm380_vm0, %v645_v30, 0.0 }
 0x133   : > { %v752_v25 = vsel %vm380_vm0, %v651_v24, 0.0 }
 0x134   : > { %744 = vadd.xlane.f32.xlu0 %v743_v0 }
 0x135   : > { %v649_v27 = vpop.permute.xlu1 %648 }
 0x136   : > { %v655_v19 = vpop.permute.xlu0 %654  ;;  %v749_v1 = vsel %vm380_vm0, %v649_v27, 0.0 }
 0x137   : > { %750 = vadd.xlane.f32.xlu1 %v749_v1  ;;  %v758_v46 = vsel %vm380_vm0, %v655_v19, 0.0 }
 0x138   : > { %747 = vadd.xlane.f32.xlu0 %v746_v38 }
 0x139   : > { %v653_v26 = vpop.permute.xlu1 %652 }
 0x13a   : > { %v659_v40 = vpop.permute.xlu0 %658  ;;  %v755_v37 = vsel %vm380_vm0, %v653_v26, 0.0 }
 0x13b   : > { %756 = vadd.xlane.f32.xlu1 %v755_v37  ;;  %v764_v27 = vsel %vm380_vm0, %v659_v40, 0.0 }
 0x13c   : > { %753 = vadd.xlane.f32.xlu0 %v752_v25 }
 0x13d   : > { %v657_v30 = vpop.permute.xlu1 %656 }
 0x13e   : > { %v663_v0 = vpop.permute.xlu0 %662  ;;  %v761_v45 = vsel %vm380_vm0, %v657_v30, 0.0 }
 0x13f   : > { %762 = vadd.xlane.f32.xlu1 %v761_v45  ;;  %v770_v26 = vsel %vm380_vm0, %v663_v0, 0.0 }
 0x140   : > { %759 = vadd.xlane.f32.xlu0 %v758_v46 }
 0x141   : > { %v661_v1 = vpop.permute.xlu1 %660 }
 0x142   : > { %v667_v38 = vpop.permute.xlu0 %666  ;;  %v767_v24 = vsel %vm380_vm0, %v661_v1, 0.0 }
 0x143   : > { %768 = vadd.xlane.f32.xlu1 %v767_v24  ;;  %v776_v30 = vsel %vm380_vm0, %v667_v38, 0.0 }
 0x144   : > { %765 = vadd.xlane.f32.xlu0 %v764_v27 }
 0x145   : > { %v665_v37 = vpop.permute.xlu1 %664 }
 0x146   : > { %v671_v25 = vpop.permute.xlu0 %670  ;;  %v773_v19 = vsel %vm380_vm0, %v665_v37, 0.0 }
 0x147   : > { %774 = vadd.xlane.f32.xlu1 %v773_v19  ;;  %v782_v1 = vsel %vm380_vm0, %v671_v25, 0.0 }
 0x148   : > { %771 = vadd.xlane.f32.xlu0 %v770_v26 }
 0x149   : > { %v669_v45 = vpop.permute.xlu1 %668 }
 0x14a   : > { %v675_v46 = vpop.permute.xlu0 %674  ;;  %v779_v40 = vsel %vm380_vm0, %v669_v45, 0.0 }
 0x14b   : > { %780 = vadd.xlane.f32.xlu1 %v779_v40  ;;  %v788_v37 = vsel %vm380_vm0, %v675_v46, 0.0 }
 0x14c   : > { %777 = vadd.xlane.f32.xlu0 %v776_v30 }
 0x14d   : > { %v673_v24 = vpop.permute.xlu1 %672 }
 0x14e   : > { %v679_v27 = vpop.permute.xlu0 %678  ;;  %v785_v0 = vsel %vm380_vm0, %v673_v24, 0.0 }
 0x14f   : > { %786 = vadd.xlane.f32.xlu1 %v785_v0  ;;  %v794_v45 = vsel %vm380_vm0, %v679_v27, 0.0 }
 0x150   : > { %783 = vadd.xlane.f32.xlu0 %v782_v1 }
 0x151   : > { %v677_v19 = vpop.permute.xlu1 %676 }
 0x152   : > { %v683_v26 = vpop.permute.xlu0 %682  ;;  %v791_v38 = vsel %vm380_vm0, %v677_v19, 0.0 }
 0x153   : > { %792 = vadd.xlane.f32.xlu1 %v791_v38  ;;  %v800_v24 = vsel %vm380_vm0, %v683_v26, 0.0 }
 0x154   : > { %789 = vadd.xlane.f32.xlu0 %v788_v37 }
 0x155   : > { %v681_v40 = vpop.permute.xlu1 %680 }
 0x156   : > { %v687_v30 = vpop.permute.xlu0 %686  ;;  %v797_v25 = vsel %vm380_vm0, %v681_v40, 0.0 }
 0x157   : > { %798 = vadd.xlane.f32.xlu1 %v797_v25  ;;  %v806_v19 = vsel %vm380_vm0, %v687_v30, 0.0 }
 0x158   : > { %795 = vadd.xlane.f32.xlu0 %v794_v45 }
 0x159   : > { %v685_v0 = vpop.permute.xlu1 %684 }
 0x15a   : > { %v691_v1 = vpop.permute.xlu0 %690  ;;  %v803_v46 = vsel %vm380_vm0, %v685_v0, 0.0 }
 0x15b   : > { %804 = vadd.xlane.f32.xlu1 %v803_v46  ;;  %v812_v40 = vsel %vm380_vm0, %v691_v1, 0.0  ;;  %v866_v1 = vsel %vm862_vm3, %v2036_v35, -inf }
 0x15c   : > { %801 = vadd.xlane.f32.xlu0 %v800_v24 }
 0x15d   : > { %v689_v38 = vpop.permute.xlu1 %688 }
 0x15e   : > { %v809_v37 = vsel %vm380_vm0, %v689_v38, 0.0  ;;  %v695_v27 = vpop.permute.xlu0 %694 }
 0x15f   : > { %810 = vadd.xlane.f32.xlu1 %v809_v37  ;;  %v818_v26 = vsel %vm380_vm0, %v695_v27, 0.0  ;;  %v863_v37 = vsel %vm862_vm3, %v2027_v29, -inf  ;;  %v872_v27 = vsel %vm862_vm3, %v2034_v34, -inf }
 0x160   : > { %807 = vadd.xlane.f32.xlu0 %v806_v19 }
 0x161   : > { %v693_v25 = vpop.permute.xlu1 %692 }
 0x162   : > { %v815_v45 = vsel %vm380_vm0, %v693_v25, 0.0  ;;  %v699_v46 = vpop.permute.xlu0 %698  ;;  %v878_v25 = vsel %vm862_vm3, %v2045_v41, -inf }
 0x163   : > { %816 = vadd.xlane.f32.xlu1 %v815_v45  ;;  %v824_v30 = vsel %vm380_vm0, %v699_v46, 0.0  ;;  %v875_v45 = vsel %vm862_vm3, %v2056_v51, -inf  ;;  %v890_v46 = vsel %vm862_vm3, %v2075_v6, -inf }
 0x164   : > { %813 = vadd.xlane.f32.xlu0 %v812_v40  ;;  %v869_v40 = vsel %vm862_vm3, %v2025_v28, -inf }
 0x165   : > { %v697_v0 = vpop.permute.xlu1 %696 }
 0x166   : > { %v821_v24 = vsel %vm380_vm0, %v697_v0, 0.0  ;;  %v881_v0 = vsel %vm862_vm3, %v2067_v61, -inf }
 0x167   : > { %822 = vadd.xlane.f32.xlu1 %v821_v24  ;;  %v887_v24 = vsel %vm862_vm3, %v2077_v8, -inf }
 0x168   : > { %819 = vadd.xlane.f32.xlu0 %v818_v26  ;;  %v884_v26 = vsel %vm862_vm3, %v2062_v57, -inf }
 0x169   : > { %v701_v38 = vpop.permute.xlu1 %700 }
 0x16a   : > { %v827_v19 = vsel %vm380_vm0, %v701_v38, 0.0  ;;  %v893_v38 = vsel %vm862_vm3, %v2094_v22, -inf }
 0x16b   : > { %828 = vadd.xlane.f32.xlu1 %v827_v19  ;;  %v902_v19 = vsel %vm862_vm3, %v2108_v39, -inf }
 0x16c   : > { %825 = vadd.xlane.f32.xlu0 %v824_v30  ;;  %v896_v30 = vsel %vm862_vm3, %v2092_v21, -inf }
 0x16f   : > { %867 = vmax.xlane.f32.xlu1 %v866_v1  ;;  %v899_v1 = vsel %vm862_vm3, %v2111_v42, -inf }
 0x170   : > { %864 = vmax.xlane.f32.xlu0 %v863_v37  ;;  %v908_v37 = vsel %vm862_vm3, %v2124_v56, -inf }
 0x173   : > { %873 = vmax.xlane.f32.xlu1 %v872_v27  ;;  %v905_v27 = vsel %vm862_vm3, %v2126_v58, -inf }
 0x174   : > { %870 = vmax.xlane.f32.xlu0 %v869_v40  ;;  %v914_v40 = vsel %vm862_vm3, %v2129_v62, -inf }
 0x177   : > { %879 = vmax.xlane.f32.xlu1 %v878_v25  ;;  %v911_v25 = vsel %vm862_vm3, %v2142_v13, -inf }
 0x178   : > { %876 = vmax.xlane.f32.xlu0 %v875_v45  ;;  %v920_v45 = vsel %vm862_vm3, %v2147_v15, -inf }
 0x17b   : > { %885 = vmax.xlane.f32.xlu1 %v884_v26  ;;  %v917_v26 = vsel %vm862_vm3, %v2149_v16, -inf }
 0x17c   : > { %882 = vmax.xlane.f32.xlu0 %v881_v0  ;;  %v926_v0 = vsel %vm862_vm3, %v2164_v33, -inf }
 0x17f   : > { %891 = vmax.xlane.f32.xlu1 %v890_v46  ;;  %v923_v46 = vsel %vm862_vm3, %v2166_v36, -inf }
 0x180   : > { %888 = vmax.xlane.f32.xlu0 %v887_v24  ;;  %v932_v24 = vsel %vm862_vm3, %v2177_v49, -inf }
 0x183   : > { %897 = vmax.xlane.f32.xlu1 %v896_v30  ;;  %v929_v30 = vsel %vm862_vm3, %v2179_v53, -inf }
 0x184   : > { %894 = vmax.xlane.f32.xlu0 %v893_v38  ;;  %v938_v38 = vsel %vm862_vm3, %v2191_v5, -inf }
 0x187   : > { %903 = vmax.xlane.f32.xlu1 %v902_v19  ;;  %v935_v19 = vsel %vm862_vm3, %v2193_v7, -inf }
 0x188   : > { %900 = vmax.xlane.f32.xlu0 %v899_v1  ;;  %v944_v1 = vsel %vm862_vm3, %v2203_v20, -inf }
 0x18b   : > { %909 = vmax.xlane.f32.xlu1 %v908_v37  ;;  %v941_v37 = vsel %vm862_vm3, %v2205_v23, -inf }
 0x18c   : > { %906 = vmax.xlane.f32.xlu0 %v905_v27  ;;  %v950_v27 = vsel %vm862_vm3, %v2213_v31, -inf }
 0x18f   : > { %915 = vmax.xlane.f32.xlu1 %v914_v40  ;;  %v947_v40 = vsel %vm862_vm3, %v2215_v32, -inf }
 0x190   : > { %912 = vmax.xlane.f32.xlu0 %v911_v25  ;;  %v956_v25 = vsel %vm862_vm3, %v2221_v43, -inf }
 0x193   : > { %921 = vmax.xlane.f32.xlu1 %v920_v45  ;;  %v953_v45 = vsel %vm862_vm3, %v2223_v44, -inf }
 0x194   : > { %918 = vmax.xlane.f32.xlu0 %v917_v26 }
 0x197   : > { %927 = vmax.xlane.f32.xlu1 %v926_v0 }
 0x198   : > { %924 = vmax.xlane.f32.xlu0 %v923_v46 }
 0x19b   : > { %933 = vmax.xlane.f32.xlu1 %v932_v24 }
 0x19c   : > { %930 = vmax.xlane.f32.xlu0 %v929_v30 }
 0x19f   : > { %939 = vmax.xlane.f32.xlu1 %v938_v38 }
 0x1a0   : > { %936 = vmax.xlane.f32.xlu0 %v935_v19 }
 0x1a3   : > { %945 = vmax.xlane.f32.xlu1 %v944_v1 }
 0x1a4   : > { %942 = vmax.xlane.f32.xlu0 %v941_v37 }
 0x1a7   : > { %951 = vmax.xlane.f32.xlu1 %v950_v27 }
 0x1a8   : > { %948 = vmax.xlane.f32.xlu0 %v947_v40 }
 0x1ab   : > { %957 = vmax.xlane.f32.xlu1 %v956_v25 }
 0x1ac   : > { %954 = vmax.xlane.f32.xlu0 %v953_v45 }
 0x1b8   : > { %v2587_v46 = vpop.xlane.xlu1 %738 }
 0x1b9   : > { %v2581_v26 = vpop.xlane.xlu0 %735  ;;  %3911 = vst [vmem:[#allocation49_spill] sm:$0xff] %v2587_v46 }
 0x1ba   : > { %3909 = vst [vmem:[#allocation47_spill] sm:$0xff] %v2581_v26 }
 0x1bc   : > { %961 = vrot.lane.b32.xlu1 %v2036_v35, %s1953_s24 }
 0x1bd   : > { %v2583_v0 = vpop.xlane.xlu0 %741 }
 0x1be   : > { %3910 = vst [vmem:[#allocation48_spill] sm:$0xff] %v2583_v0 }
 0x1c0   : > { %963 = vrot.lane.b32.xlu1 %v2025_v28, %s1953_s24 }
 0x1c1   : > { %v2589_v24 = vpop.xlane.xlu0 %744 }
 0x1c2   : > { %3912 = vst [vmem:[#allocation50_spill] sm:$0xff] %v2589_v24  ;;  %959 = vrot.lane.b32.xlu0 %v2027_v29, %s1953_s24 }
 0x1c4   : > { %v2595_v30 = vpop.xlane.xlu1 %750  ;;  %965 = vrot.lane.b32.xlu1 %v2034_v34, %s1953_s24 }
 0x1c5   : > { %3913 = vst [vmem:[#allocation51_spill] sm:$0xff] %v2595_v30  ;;  %v2597_v38 = vpop.xlane.xlu0 %747 }
 0x1c6   : > { %3914 = vst [vmem:[#allocation52_spill] sm:$0xff] %v2597_v38  ;;  %967 = vrot.lane.b32.xlu0 %v2056_v51, %s1953_s24 }
 0x1c8   : > { %v2603_v19 = vpop.xlane.xlu1 %756  ;;  %969 = vrot.lane.b32.xlu1 %v2045_v41, %s1953_s24 }
 0x1c9   : > { %3915 = vst [vmem:[#allocation53_spill] sm:$0xff] %v2603_v19  ;;  %v2605_v1 = vpop.xlane.xlu0 %753 }
 0x1ca   : > { %3916 = vst [vmem:[#allocation54_spill] sm:$0xff] %v2605_v1  ;;  %971 = vrot.lane.b32.xlu0 %v2067_v61, %s1953_s24 }
 0x1cc   : > { %v2611_v37 = vpop.xlane.xlu1 %762  ;;  %973 = vrot.lane.b32.xlu1 %v2062_v57, %s1953_s24 }
 0x1cd   : > { %3917 = vst [vmem:[#allocation55_spill] sm:$0xff] %v2611_v37  ;;  %v2613_v27 = vpop.xlane.xlu0 %759 }
 0x1ce   : > { %3918 = vst [vmem:[#allocation56_spill] sm:$0xff] %v2613_v27  ;;  %975 = vrot.lane.b32.xlu0 %v2077_v8, %s1953_s24 }
 0x1d0   : > { %v2619_v40 = vpop.xlane.xlu1 %768  ;;  %977 = vrot.lane.b32.xlu1 %v2075_v6, %s1953_s24 }
 0x1d1   : > { %3919 = vst [vmem:[#allocation57_spill] sm:$0xff] %v2619_v40  ;;  %v2621_v25 = vpop.xlane.xlu0 %765 }
 0x1d2   : > { %3920 = vst [vmem:[#allocation58_spill] sm:$0xff] %v2621_v25  ;;  %979 = vrot.lane.b32.xlu0 %v2094_v22, %s1953_s24 }
 0x1d4   : > { %v2627_v45 = vpop.xlane.xlu1 %774  ;;  %981 = vrot.lane.b32.xlu1 %v2092_v21, %s1953_s24 }
 0x1d5   : > { %3921 = vst [vmem:[#allocation59_spill] sm:$0xff] %v2627_v45  ;;  %v2629_v37 = vpop.xlane.xlu0 %771 }
 0x1d6   : > { %3922 = vst [vmem:[#allocation60_spill] sm:$0xff] %v2629_v37  ;;  %983 = vrot.lane.b32.xlu0 %v2111_v42, %s1953_s24 }
 0x1d8   : > { %v2635_v27 = vpop.xlane.xlu1 %780  ;;  %985 = vrot.lane.b32.xlu1 %v2108_v39, %s1953_s24 }
 0x1d9   : > { %3923 = vst [vmem:[#allocation61_spill] sm:$0xff] %v2635_v27  ;;  %v2637_v40 = vpop.xlane.xlu0 %777 }
 0x1da   : > { %3924 = vst [vmem:[#allocation62_spill] sm:$0xff] %v2637_v40  ;;  %987 = vrot.lane.b32.xlu0 %v2126_v58, %s1953_s24 }
 0x1dc   : > { %v2643_v25 = vpop.xlane.xlu1 %786  ;;  %989 = vrot.lane.b32.xlu1 %v2124_v56, %s1953_s24 }
 0x1dd   : > { %3925 = vst [vmem:[#allocation63_spill] sm:$0xff] %v2643_v25  ;;  %v2645_v45 = vpop.xlane.xlu0 %783 }
 0x1de   : > { %3926 = vst [vmem:[#allocation64_spill] sm:$0xff] %v2645_v45  ;;  %991 = vrot.lane.b32.xlu0 %v2142_v13, %s1953_s24 }
 0x1e0   : > { %v2651_v37 = vpop.xlane.xlu1 %792  ;;  %993 = vrot.lane.b32.xlu1 %v2129_v62, %s1953_s24 }
 0x1e1   : > { %3927 = vst [vmem:[#allocation65_spill] sm:$0xff] %v2651_v37  ;;  %v2653_v27 = vpop.xlane.xlu0 %789 }
 0x1e2   : > { %3928 = vst [vmem:[#allocation66_spill] sm:$0xff] %v2653_v27  ;;  %995 = vrot.lane.b32.xlu0 %v2149_v16, %s1953_s24 }
 0x1e4   : > { %v2659_v40 = vpop.xlane.xlu1 %798  ;;  %997 = vrot.lane.b32.xlu1 %v2147_v15, %s1953_s24 }
 0x1e5   : > { %3929 = vst [vmem:[#allocation67_spill] sm:$0xff] %v2659_v40  ;;  %v2661_v25 = vpop.xlane.xlu0 %795 }
 0x1e6   : > { %3930 = vst [vmem:[#allocation68_spill] sm:$0xff] %v2661_v25  ;;  %999 = vrot.lane.b32.xlu0 %v2166_v36, %s1953_s24 }
 0x1e8   : > { %v2667_v45 = vpop.xlane.xlu1 %804  ;;  %1001 = vrot.lane.b32.xlu1 %v2164_v33, %s1953_s24 }
 0x1e9   : > { %3931 = vst [vmem:[#allocation69_spill] sm:$0xff] %v2667_v45  ;;  %v2669_v37 = vpop.xlane.xlu0 %801 }
 0x1ea   : > { %3932 = vst [vmem:[#allocation70_spill] sm:$0xff] %v2669_v37  ;;  %1003 = vrot.lane.b32.xlu0 %v2179_v53, %s1953_s24 }
 0x1ec   : > { %v2675_v27 = vpop.xlane.xlu1 %810  ;;  %1005 = vrot.lane.b32.xlu1 %v2177_v49, %s1953_s24 }
 0x1ed   : > { %3933 = vst [vmem:[#allocation71_spill] sm:$0xff] %v2675_v27  ;;  %v2677_v40 = vpop.xlane.xlu0 %807 }
 0x1ee   : > { %3934 = vst [vmem:[#allocation72_spill] sm:$0xff] %v2677_v40  ;;  %1007 = vrot.lane.b32.xlu0 %v2193_v7, %s1953_s24 }
 0x1f0   : > { %v2683_v25 = vpop.xlane.xlu1 %816  ;;  %1009 = vrot.lane.b32.xlu1 %v2191_v5, %s1953_s24 }
 0x1f1   : > { %3935 = vst [vmem:[#allocation73_spill] sm:$0xff] %v2683_v25  ;;  %v2685_v45 = vpop.xlane.xlu0 %813 }
 0x1f2   : > { %3936 = vst [vmem:[#allocation74_spill] sm:$0xff] %v2685_v45  ;;  %1011 = vrot.lane.b32.xlu0 %v2205_v23, %s1953_s24 }
 0x1f4   : > { %v2691_v37 = vpop.xlane.xlu1 %822  ;;  %1013 = vrot.lane.b32.xlu1 %v2203_v20, %s1953_s24 }
 0x1f5   : > { %3937 = vst [vmem:[#allocation75_spill] sm:$0xff] %v2691_v37  ;;  %v2693_v27 = vpop.xlane.xlu0 %819 }
 0x1f6   : > { %3938 = vst [vmem:[#allocation76_spill] sm:$0xff] %v2693_v27  ;;  %1015 = vrot.lane.b32.xlu0 %v2215_v32, %s1953_s24 }
 0x1f8   : > { %v2699_v40 = vpop.xlane.xlu1 %828  ;;  %1017 = vrot.lane.b32.xlu1 %v2213_v31, %s1953_s24 }
 0x1f9   : > { %3939 = vst [vmem:[#allocation77_spill] sm:$0xff] %v2699_v40  ;;  %v2701_v25 = vpop.xlane.xlu0 %825 }
 0x1fa   : > { %3940 = vst [vmem:[#allocation78_spill] sm:$0xff] %v2701_v25  ;;  %1019 = vrot.lane.b32.xlu0 %v2223_v44, %s1953_s24 }
 0x1fc   : > { %v2707_v45 = vpop.xlane.xlu1 %867  ;;  %1021 = vrot.lane.b32.xlu1 %v2221_v43, %s1953_s24 }
 0x1fd   : > { %3941 = vst [vmem:[#allocation79_spill] sm:$0xff] %v2707_v45  ;;  %v2709_v37 = vpop.xlane.xlu0 %864 }
 0x1fe   : > { %3942 = vst [vmem:[#allocation80_spill] sm:$0xff] %v2709_v37 }
 0x200   : > { %v2713_v27 = vpop.xlane.xlu1 %873 }
 0x201   : > { %3943 = vst [vmem:[#allocation81_spill] sm:$0xff] %v2713_v27  ;;  %v2715_v1 = vpop.xlane.xlu0 %870 }
 0x202   : > { %3944 = vst [vmem:[#allocation82_spill] sm:$0xff] %v2715_v1 }
 0x204   : > { %v2717_v40 = vpop.xlane.xlu1 %879 }
 0x205   : > { %3945 = vst [vmem:[#allocation83_spill] sm:$0xff] %v2717_v40  ;;  %v2719_v25 = vpop.xlane.xlu0 %876 }
 0x206   : > { %3946 = vst [vmem:[#allocation84_spill] sm:$0xff] %v2719_v25 }
 0x208   : > { %v2721_v19 = vpop.xlane.xlu1 %885 }
 0x209   : > { %3947 = vst [vmem:[#allocation85_spill] sm:$0xff] %v2721_v19  ;;  %v2723_v38 = vpop.xlane.xlu0 %882 }
 0x20a   : > { %3948 = vst [vmem:[#allocation86_spill] sm:$0xff] %v2723_v38 }
 0x20c   : > { %v2725_v30 = vpop.xlane.xlu1 %891 }
 0x20d   : > { %3949 = vst [vmem:[#allocation87_spill] sm:$0xff] %v2725_v30  ;;  %v2727_v45 = vpop.xlane.xlu0 %888 }
 0x20e   : > { %3950 = vst [vmem:[#allocation88_spill] sm:$0xff] %v2727_v45 }
 0x210   : > { %v2729_v37 = vpop.xlane.xlu1 %897 }
 0x211   : > { %3951 = vst [vmem:[#allocation89_spill] sm:$0xff] %v2729_v37  ;;  %v2731_v24 = vpop.xlane.xlu0 %894 }
 0x212   : > { %3952 = vst [vmem:[#allocation90_spill] sm:$0xff] %v2731_v24 }
 0x214   : > { %v2733_v0 = vpop.xlane.xlu1 %903 }
 0x215   : > { %3953 = vst [vmem:[#allocation91_spill] sm:$0xff] %v2733_v0  ;;  %v2735_v27 = vpop.xlane.xlu0 %900 }
 0x216   : > { %3954 = vst [vmem:[#allocation92_spill] sm:$0xff] %v2735_v27 }
 0x218   : > { %v2737_v1 = vpop.xlane.xlu1 %909 }
 0x219   : > { %3955 = vst [vmem:[#allocation93_spill] sm:$0xff] %v2737_v1  ;;  %v2739_v40 = vpop.xlane.xlu0 %906 }
 0x21a   : > { %3956 = vst [vmem:[#allocation94_spill] sm:$0xff] %v2739_v40 }
 0x21c   : > { %v2741_v25 = vpop.xlane.xlu1 %915 }
 0x21d   : > { %3957 = vst [vmem:[#allocation95_spill] sm:$0xff] %v2741_v25  ;;  %v2743_v19 = vpop.xlane.xlu0 %912 }
 0x21e   : > { %3958 = vst [vmem:[#allocation96_spill] sm:$0xff] %v2743_v19 }
 0x220   : > { %v2745_v38 = vpop.xlane.xlu1 %921 }
 0x221   : > { %3959 = vst [vmem:[#allocation97_spill] sm:$0xff] %v2745_v38  ;;  %v2747_v30 = vpop.xlane.xlu0 %918 }
 0x222   : > { %3960 = vst [vmem:[#allocation98_spill] sm:$0xff] %v2747_v30 }
 0x224   : > { %v2749_v45 = vpop.xlane.xlu1 %927 }
 0x225   : > { %3961 = vst [vmem:[#allocation99_spill] sm:$0xff] %v2749_v45  ;;  %v2751_v37 = vpop.xlane.xlu0 %924 }
 0x226   : > { %3962 = vst [vmem:[#allocation100_spill] sm:$0xff] %v2751_v37 }
 0x228   : > { %v2753_v24 = vpop.xlane.xlu1 %933 }
 0x229   : > { %3963 = vst [vmem:[#allocation101_spill] sm:$0xff] %v2753_v24  ;;  %v2755_v0 = vpop.xlane.xlu0 %930 }
 0x22a   : > { %3964 = vst [vmem:[#allocation102_spill] sm:$0xff] %v2755_v0 }
 0x22c   : > { %v2757_v27 = vpop.xlane.xlu1 %939 }
 0x22d   : > { %3965 = vst [vmem:[#allocation103_spill] sm:$0xff] %v2757_v27  ;;  %v2759_v1 = vpop.xlane.xlu0 %936 }
 0x22e   : > { %3966 = vst [vmem:[#allocation104_spill] sm:$0xff] %v2759_v1 }
 0x230   : > { %v2761_v40 = vpop.xlane.xlu1 %945 }
 0x231   : > { %3967 = vst [vmem:[#allocation105_spill] sm:$0xff] %v2761_v40  ;;  %v2763_v25 = vpop.xlane.xlu0 %942 }
 0x232   : > { %3968 = vst [vmem:[#allocation106_spill] sm:$0xff] %v2763_v25 }
 0x234   : > { %v2765_v19 = vpop.xlane.xlu1 %951 }
 0x235   : > { %3969 = vst [vmem:[#allocation107_spill] sm:$0xff] %v2765_v19  ;;  %v2767_v38 = vpop.xlane.xlu0 %948 }
 0x236   : > { %3970 = vst [vmem:[#allocation108_spill] sm:$0xff] %v2767_v38 }
 0x238   : > { %v2769_v30 = vpop.xlane.xlu1 %957 }
 0x239   : > { %3971 = vst [vmem:[#allocation109_spill] sm:$0xff] %v2769_v30  ;;  %v2771_v45 = vpop.xlane.xlu0 %954 }
 0x23a   : > { %3972 = vst [vmem:[#allocation110_spill] sm:$0xff] %v2771_v45 }
 0x23c   : > { %v962_v37 = vpop.permute.xlu1 %961 }
 0x23d   : > { %v960_v24 = vpop.permute.xlu0 %959  ;;  %v1058_v0 = vsel %vm380_vm0, %v962_v37, 0.0 }
 0x23e   : > { %v1055_v27 = vsel %vm380_vm0, %v960_v24, 0.0  ;;  %1059 = vadd.xlane.f32.xlu1 %v1058_v0 }
 0x23f   : > { %1056 = vadd.xlane.f32.xlu0 %v1055_v27 }
 0x240   : > { %v964_v1 = vpop.permute.xlu1 %963 }
 0x241   : > { %v968_v40 = vpop.permute.xlu0 %967  ;;  %v1061_v25 = vsel %vm380_vm0, %v964_v1, 0.0 }
 0x242   : > { %v1067_v45 = vsel %vm380_vm0, %v968_v40, 0.0 }
 0x243   : > { %1062 = vadd.xlane.f32.xlu0 %v1061_v25 }
 0x244   : > { %v966_v19 = vpop.permute.xlu1 %965 }
 0x245   : > { %v972_v26 = vpop.permute.xlu0 %971  ;;  %v1064_v38 = vsel %vm380_vm0, %v966_v19, 0.0 }
 0x246   : > { %v1073_v0 = vsel %vm380_vm0, %v972_v26, 0.0 }
 0x247   : > { %1065 = vadd.xlane.f32.xlu0 %v1064_v38 }
 0x248   : > { %v970_v30 = vpop.permute.xlu1 %969 }
 0x249   : > { %v976_v46 = vpop.permute.xlu0 %975  ;;  %v1070_v37 = vsel %vm380_vm0, %v970_v30, 0.0 }
 0x24a   : > { %1071 = vadd.xlane.f32.xlu1 %v1070_v37  ;;  %v1079_v25 = vsel %vm380_vm0, %v976_v46, 0.0 }
 0x24b   : > { %1068 = vadd.xlane.f32.xlu0 %v1067_v45 }
 0x24c   : > { %v974_v24 = vpop.permute.xlu1 %973 }
 0x24d   : > { %v980_v27 = vpop.permute.xlu0 %979  ;;  %v1076_v1 = vsel %vm380_vm0, %v974_v24, 0.0 }
 0x24e   : > { %1077 = vadd.xlane.f32.xlu1 %v1076_v1  ;;  %v1085_v30 = vsel %vm380_vm0, %v980_v27, 0.0 }
 0x24f   : > { %1074 = vadd.xlane.f32.xlu0 %v1073_v0 }
 0x250   : > { %v978_v19 = vpop.permute.xlu1 %977 }
 0x251   : > { %v984_v38 = vpop.permute.xlu0 %983  ;;  %v1082_v40 = vsel %vm380_vm0, %v978_v19, 0.0 }
 0x252   : > { %1083 = vadd.xlane.f32.xlu1 %v1082_v40  ;;  %v1091_v24 = vsel %vm380_vm0, %v984_v38, 0.0 }
 0x253   : > { %1080 = vadd.xlane.f32.xlu0 %v1079_v25 }
 0x254   : > { %v982_v37 = vpop.permute.xlu1 %981 }
 0x255   : > { %v988_v45 = vpop.permute.xlu0 %987  ;;  %v1088_v26 = vsel %vm380_vm0, %v982_v37, 0.0 }
 0x256   : > { %1089 = vadd.xlane.f32.xlu1 %v1088_v26  ;;  %v1097_v19 = vsel %vm380_vm0, %v988_v45, 0.0 }
 0x257   : > { %1086 = vadd.xlane.f32.xlu0 %v1085_v30 }
 0x258   : > { %v986_v1 = vpop.permute.xlu1 %985 }
 0x259   : > { %v992_v0 = vpop.permute.xlu0 %991  ;;  %v1094_v46 = vsel %vm380_vm0, %v986_v1, 0.0 }
 0x25a   : > { %1095 = vadd.xlane.f32.xlu1 %v1094_v46  ;;  %v1103_v37 = vsel %vm380_vm0, %v992_v0, 0.0 }
 0x25b   : > { %1092 = vadd.xlane.f32.xlu0 %v1091_v24 }
 0x25c   : > { %v990_v40 = vpop.permute.xlu1 %989 }
 0x25d   : > { %v996_v25 = vpop.permute.xlu0 %995  ;;  %v1100_v27 = vsel %vm380_vm0, %v990_v40, 0.0 }
 0x25e   : > { %1101 = vadd.xlane.f32.xlu1 %v1100_v27  ;;  %v1109_v1 = vsel %vm380_vm0, %v996_v25, 0.0 }
 0x25f   : > { %1098 = vadd.xlane.f32.xlu0 %v1097_v19 }
 0x260   : > { %v994_v26 = vpop.permute.xlu1 %993 }
 0x261   : > { %v1000_v30 = vpop.permute.xlu0 %999  ;;  %v1106_v38 = vsel %vm380_vm0, %v994_v26, 0.0 }
 0x262   : > { %1107 = vadd.xlane.f32.xlu1 %v1106_v38  ;;  %v1115_v40 = vsel %vm380_vm0, %v1000_v30, 0.0 }
 0x263   : > { %1104 = vadd.xlane.f32.xlu0 %v1103_v37 }
 0x264   : > { %v998_v46 = vpop.permute.xlu1 %997 }
 0x265   : > { %v1004_v24 = vpop.permute.xlu0 %1003  ;;  %v1112_v45 = vsel %vm380_vm0, %v998_v46, 0.0 }
 0x266   : > { %1113 = vadd.xlane.f32.xlu1 %v1112_v45  ;;  %v1121_v26 = vsel %vm380_vm0, %v1004_v24, 0.0 }
 0x267   : > { %1110 = vadd.xlane.f32.xlu0 %v1109_v1 }
 0x268   : > { %v1002_v27 = vpop.permute.xlu1 %1001 }
 0x269   : > { %v1008_v19 = vpop.permute.xlu0 %1007  ;;  %v1118_v0 = vsel %vm380_vm0, %v1002_v27, 0.0 }
 0x26a   : > { %1119 = vadd.xlane.f32.xlu1 %v1118_v0  ;;  %v1127_v46 = vsel %vm380_vm0, %v1008_v19, 0.0 }
 0x26b   : > { %1116 = vadd.xlane.f32.xlu0 %v1115_v40 }
 0x26c   : > { %v1006_v38 = vpop.permute.xlu1 %1005 }
 0x26d   : > { %v1012_v37 = vpop.permute.xlu0 %1011  ;;  %v1124_v25 = vsel %vm380_vm0, %v1006_v38, 0.0 }
 0x26e   : > { %1125 = vadd.xlane.f32.xlu1 %v1124_v25  ;;  %v1133_v27 = vsel %vm380_vm0, %v1012_v37, 0.0  ;;  %v1187_v37 = vsel %vm1183_vm4, %v2036_v35, -inf }
 0x26f   : > { %1122 = vadd.xlane.f32.xlu0 %v1121_v26 }
 0x270   : > { %v1010_v45 = vpop.permute.xlu1 %1009 }
 0x271   : > { %v1130_v1 = vsel %vm380_vm0, %v1010_v45, 0.0  ;;  %v1016_v30 = vpop.permute.xlu0 %1015 }
 0x272   : > { %1131 = vadd.xlane.f32.xlu1 %v1130_v1  ;;  %v1139_v24 = vsel %vm380_vm0, %v1016_v30, 0.0  ;;  %v1184_v1 = vsel %vm1183_vm4, %v2027_v29, -inf  ;;  %v1193_v30 = vsel %vm1183_vm4, %v2034_v34, -inf }
 0x273   : > { %1128 = vadd.xlane.f32.xlu0 %v1127_v46 }
 0x274   : > { %v1014_v0 = vpop.permute.xlu1 %1013 }
 0x275   : > { %v1136_v40 = vsel %vm380_vm0, %v1014_v0, 0.0  ;;  %v1020_v25 = vpop.permute.xlu0 %1019  ;;  %v1199_v0 = vsel %vm1183_vm4, %v2045_v41, -inf }
 0x276   : > { %1137 = vadd.xlane.f32.xlu1 %v1136_v40  ;;  %v1145_v19 = vsel %vm380_vm0, %v1020_v25, 0.0  ;;  %v1196_v40 = vsel %vm1183_vm4, %v2056_v51, -inf  ;;  %v1211_v25 = vsel %vm1183_vm4, %v2075_v6, -inf }
 0x277   : > { %1134 = vadd.xlane.f32.xlu0 %v1133_v27  ;;  %v1190_v27 = vsel %vm1183_vm4, %v2025_v28, -inf }
 0x278   : > { %v1018_v38 = vpop.permute.xlu1 %1017 }
 0x279   : > { %v1142_v26 = vsel %vm380_vm0, %v1018_v38, 0.0  ;;  %v1202_v38 = vsel %vm1183_vm4, %v2067_v61, -inf }
 0x27a   : > { %1143 = vadd.xlane.f32.xlu1 %v1142_v26  ;;  %v1208_v26 = vsel %vm1183_vm4, %v2077_v8, -inf }
 0x27b   : > { %1140 = vadd.xlane.f32.xlu0 %v1139_v24  ;;  %v1205_v24 = vsel %vm1183_vm4, %v2062_v57, -inf }
 0x27c   : > { %v1022_v45 = vpop.permute.xlu1 %1021 }
 0x27d   : > { %v1148_v46 = vsel %vm380_vm0, %v1022_v45, 0.0  ;;  %v1214_v45 = vsel %vm1183_vm4, %v2094_v22, -inf }
 0x27e   : > { %1149 = vadd.xlane.f32.xlu1 %v1148_v46  ;;  %v1223_v46 = vsel %vm1183_vm4, %v2108_v39, -inf }
 0x27f   : > { %1146 = vadd.xlane.f32.xlu0 %v1145_v19  ;;  %v1217_v19 = vsel %vm1183_vm4, %v2092_v21, -inf }
 0x282   : > { %1188 = vmax.xlane.f32.xlu1 %v1187_v37  ;;  %v1220_v37 = vsel %vm1183_vm4, %v2111_v42, -inf }
 0x283   : > { %1185 = vmax.xlane.f32.xlu0 %v1184_v1  ;;  %v1229_v1 = vsel %vm1183_vm4, %v2124_v56, -inf }
 0x286   : > { %1194 = vmax.xlane.f32.xlu1 %v1193_v30  ;;  %v1226_v30 = vsel %vm1183_vm4, %v2126_v58, -inf }
 0x287   : > { %1191 = vmax.xlane.f32.xlu0 %v1190_v27  ;;  %v1235_v27 = vsel %vm1183_vm4, %v2129_v62, -inf }
 0x28a   : > { %1200 = vmax.xlane.f32.xlu1 %v1199_v0  ;;  %v1232_v0 = vsel %vm1183_vm4, %v2142_v13, -inf }
 0x28b   : > { %1197 = vmax.xlane.f32.xlu0 %v1196_v40  ;;  %v1241_v40 = vsel %vm1183_vm4, %v2147_v15, -inf }
 0x28e   : > { %1206 = vmax.xlane.f32.xlu1 %v1205_v24  ;;  %v1238_v24 = vsel %vm1183_vm4, %v2149_v16, -inf }
 0x28f   : > { %1203 = vmax.xlane.f32.xlu0 %v1202_v38  ;;  %v1247_v38 = vsel %vm1183_vm4, %v2164_v33, -inf }
 0x292   : > { %1212 = vmax.xlane.f32.xlu1 %v1211_v25  ;;  %v1244_v25 = vsel %vm1183_vm4, %v2166_v36, -inf }
 0x293   : > { %1209 = vmax.xlane.f32.xlu0 %v1208_v26  ;;  %v1253_v26 = vsel %vm1183_vm4, %v2177_v49, -inf }
 0x296   : > { %1218 = vmax.xlane.f32.xlu1 %v1217_v19  ;;  %v1250_v19 = vsel %vm1183_vm4, %v2179_v53, -inf }
 0x297   : > { %1215 = vmax.xlane.f32.xlu0 %v1214_v45  ;;  %v1259_v45 = vsel %vm1183_vm4, %v2191_v5, -inf }
 0x29a   : > { %1224 = vmax.xlane.f32.xlu1 %v1223_v46  ;;  %v1256_v46 = vsel %vm1183_vm4, %v2193_v7, -inf }
 0x29b   : > { %1221 = vmax.xlane.f32.xlu0 %v1220_v37  ;;  %v1265_v37 = vsel %vm1183_vm4, %v2203_v20, -inf }
 0x29e   : > { %1230 = vmax.xlane.f32.xlu1 %v1229_v1  ;;  %v1262_v1 = vsel %vm1183_vm4, %v2205_v23, -inf }
 0x29f   : > { %1227 = vmax.xlane.f32.xlu0 %v1226_v30  ;;  %v1271_v30 = vsel %vm1183_vm4, %v2213_v31, -inf }
 0x2a2   : > { %1236 = vmax.xlane.f32.xlu1 %v1235_v27  ;;  %v1268_v27 = vsel %vm1183_vm4, %v2215_v32, -inf }
 0x2a3   : > { %1233 = vmax.xlane.f32.xlu0 %v1232_v0  ;;  %v1277_v0 = vsel %vm1183_vm4, %v2221_v43, -inf }
 0x2a6   : > { %1242 = vmax.xlane.f32.xlu1 %v1241_v40  ;;  %v1274_v40 = vsel %vm1183_vm4, %v2223_v44, -inf }
 0x2a7   : > { %1239 = vmax.xlane.f32.xlu0 %v1238_v24 }
 0x2aa   : > { %1248 = vmax.xlane.f32.xlu1 %v1247_v38 }
 0x2ab   : > { %1245 = vmax.xlane.f32.xlu0 %v1244_v25 }
 0x2ae   : > { %1254 = vmax.xlane.f32.xlu1 %v1253_v26 }
 0x2af   : > { %1251 = vmax.xlane.f32.xlu0 %v1250_v19 }
 0x2b2   : > { %1260 = vmax.xlane.f32.xlu1 %v1259_v45 }
 0x2b3   : > { %1257 = vmax.xlane.f32.xlu0 %v1256_v46 }
 0x2b6   : > { %1266 = vmax.xlane.f32.xlu1 %v1265_v37 }
 0x2b7   : > { %1263 = vmax.xlane.f32.xlu0 %v1262_v1 }
 0x2ba   : > { %1272 = vmax.xlane.f32.xlu1 %v1271_v30 }
 0x2bb   : > { %1269 = vmax.xlane.f32.xlu0 %v1268_v27 }
 0x2be   : > { %1278 = vmax.xlane.f32.xlu1 %v1277_v0 }
 0x2bf   : > { %1275 = vmax.xlane.f32.xlu0 %v1274_v40 }
 0x2cb   : > { %v2875_v25 = vpop.xlane.xlu1 %1059 }
 0x2cc   : > { %v2869_v24 = vpop.xlane.xlu0 %1056  ;;  %3975 = vst [vmem:[#allocation113_spill] sm:$0xff] %v2875_v25 }
 0x2cd   : > { %3973 = vst [vmem:[#allocation111_spill] sm:$0xff] %v2869_v24 }
 0x2cf   : > { %1282 = vrot.lane.b32.xlu1 %v2036_v35, %s1954_s25 }
 0x2d0   : > { %v2871_v38 = vpop.xlane.xlu0 %1062 }
 0x2d1   : > { %3974 = vst [vmem:[#allocation112_spill] sm:$0xff] %v2871_v38 }
 0x2d3   : > { %1284 = vrot.lane.b32.xlu1 %v2025_v28, %s1954_s25 }
 0x2d4   : > { %v2877_v26 = vpop.xlane.xlu0 %1065 }
 0x2d5   : > { %3976 = vst [vmem:[#allocation114_spill] sm:$0xff] %v2877_v26  ;;  %1280 = vrot.lane.b32.xlu0 %v2027_v29, %s1954_s25 }
 0x2d7   : > { %v2883_v19 = vpop.xlane.xlu1 %1071  ;;  %1286 = vrot.lane.b32.xlu1 %v2034_v34, %s1954_s25 }
 0x2d8   : > { %3977 = vst [vmem:[#allocation115_spill] sm:$0xff] %v2883_v19  ;;  %v2885_v45 = vpop.xlane.xlu0 %1068 }
 0x2d9   : > { %3978 = vst [vmem:[#allocation116_spill] sm:$0xff] %v2885_v45  ;;  %1288 = vrot.lane.b32.xlu0 %v2056_v51, %s1954_s25 }
 0x2db   : > { %v2891_v46 = vpop.xlane.xlu1 %1077  ;;  %1290 = vrot.lane.b32.xlu1 %v2045_v41, %s1954_s25 }
 0x2dc   : > { %3979 = vst [vmem:[#allocation117_spill] sm:$0xff] %v2891_v46  ;;  %v2893_v37 = vpop.xlane.xlu0 %1074 }
 0x2dd   : > { %3980 = vst [vmem:[#allocation118_spill] sm:$0xff] %v2893_v37  ;;  %1292 = vrot.lane.b32.xlu0 %v2067_v61, %s1954_s25 }
 0x2df   : > { %v2899_v1 = vpop.xlane.xlu1 %1083  ;;  %1294 = vrot.lane.b32.xlu1 %v2062_v57, %s1954_s25 }
 0x2e0   : > { %3981 = vst [vmem:[#allocation119_spill] sm:$0xff] %v2899_v1  ;;  %v2901_v30 = vpop.xlane.xlu0 %1080 }
 0x2e1   : > { %3982 = vst [vmem:[#allocation120_spill] sm:$0xff] %v2901_v30  ;;  %1296 = vrot.lane.b32.xlu0 %v2077_v8, %s1954_s25 }
 0x2e3   : > { %v2907_v27 = vpop.xlane.xlu1 %1089  ;;  %1298 = vrot.lane.b32.xlu1 %v2075_v6, %s1954_s25 }
 0x2e4   : > { %3983 = vst [vmem:[#allocation121_spill] sm:$0xff] %v2907_v27  ;;  %v2909_v0 = vpop.xlane.xlu0 %1086 }
 0x2e5   : > { %3984 = vst [vmem:[#allocation122_spill] sm:$0xff] %v2909_v0  ;;  %1300 = vrot.lane.b32.xlu0 %v2094_v22, %s1954_s25 }
 0x2e7   : > { %v2915_v40 = vpop.xlane.xlu1 %1095  ;;  %1302 = vrot.lane.b32.xlu1 %v2092_v21, %s1954_s25 }
 0x2e8   : > { %3985 = vst [vmem:[#allocation123_spill] sm:$0xff] %v2915_v40  ;;  %v2917_v1 = vpop.xlane.xlu0 %1092 }
 0x2e9   : > { %3986 = vst [vmem:[#allocation124_spill] sm:$0xff] %v2917_v1  ;;  %1304 = vrot.lane.b32.xlu0 %v2111_v42, %s1954_s25 }
 0x2eb   : > { %v2923_v30 = vpop.xlane.xlu1 %1101  ;;  %1306 = vrot.lane.b32.xlu1 %v2108_v39, %s1954_s25 }
 0x2ec   : > { %3987 = vst [vmem:[#allocation125_spill] sm:$0xff] %v2923_v30  ;;  %v2925_v27 = vpop.xlane.xlu0 %1098 }
 0x2ed   : > { %3988 = vst [vmem:[#allocation126_spill] sm:$0xff] %v2925_v27  ;;  %1308 = vrot.lane.b32.xlu0 %v2126_v58, %s1954_s25 }
 0x2ef   : > { %v2931_v0 = vpop.xlane.xlu1 %1107  ;;  %1310 = vrot.lane.b32.xlu1 %v2124_v56, %s1954_s25 }
 0x2f0   : > { %3989 = vst [vmem:[#allocation127_spill] sm:$0xff] %v2931_v0  ;;  %v2933_v40 = vpop.xlane.xlu0 %1104 }
 0x2f1   : > { %3990 = vst [vmem:[#allocation128_spill] sm:$0xff] %v2933_v40  ;;  %1312 = vrot.lane.b32.xlu0 %v2142_v13, %s1954_s25 }
 0x2f3   : > { %v2939_v1 = vpop.xlane.xlu1 %1113  ;;  %1314 = vrot.lane.b32.xlu1 %v2129_v62, %s1954_s25 }
 0x2f4   : > { %3991 = vst [vmem:[#allocation129_spill] sm:$0xff] %v2939_v1  ;;  %v2941_v30 = vpop.xlane.xlu0 %1110 }
 0x2f5   : > { %3992 = vst [vmem:[#allocation130_spill] sm:$0xff] %v2941_v30  ;;  %1316 = vrot.lane.b32.xlu0 %v2149_v16, %s1954_s25 }
 0x2f7   : > { %v2947_v27 = vpop.xlane.xlu1 %1119  ;;  %1318 = vrot.lane.b32.xlu1 %v2147_v15, %s1954_s25 }
 0x2f8   : > { %3993 = vst [vmem:[#allocation131_spill] sm:$0xff] %v2947_v27  ;;  %v2949_v0 = vpop.xlane.xlu0 %1116 }
 0x2f9   : > { %3994 = vst [vmem:[#allocation132_spill] sm:$0xff] %v2949_v0  ;;  %1320 = vrot.lane.b32.xlu0 %v2166_v36, %s1954_s25 }
 0x2fb   : > { %v2955_v40 = vpop.xlane.xlu1 %1125  ;;  %1322 = vrot.lane.b32.xlu1 %v2164_v33, %s1954_s25 }
 0x2fc   : > { %3995 = vst [vmem:[#allocation133_spill] sm:$0xff] %v2955_v40  ;;  %v2957_v1 = vpop.xlane.xlu0 %1122 }
 0x2fd   : > { %3996 = vst [vmem:[#allocation134_spill] sm:$0xff] %v2957_v1  ;;  %1324 = vrot.lane.b32.xlu0 %v2179_v53, %s1954_s25 }
 0x2ff   : > { %v2963_v30 = vpop.xlane.xlu1 %1131  ;;  %1326 = vrot.lane.b32.xlu1 %v2177_v49, %s1954_s25 }
 0x300   : > { %3997 = vst [vmem:[#allocation135_spill] sm:$0xff] %v2963_v30  ;;  %v2965_v27 = vpop.xlane.xlu0 %1128 }
 0x301   : > { %3998 = vst [vmem:[#allocation136_spill] sm:$0xff] %v2965_v27  ;;  %1328 = vrot.lane.b32.xlu0 %v2193_v7, %s1954_s25 }
 0x303   : > { %v2971_v0 = vpop.xlane.xlu1 %1137  ;;  %1330 = vrot.lane.b32.xlu1 %v2191_v5, %s1954_s25 }
 0x304   : > { %3999 = vst [vmem:[#allocation137_spill] sm:$0xff] %v2971_v0  ;;  %v2973_v40 = vpop.xlane.xlu0 %1134 }
 0x305   : > { %4000 = vst [vmem:[#allocation138_spill] sm:$0xff] %v2973_v40  ;;  %1332 = vrot.lane.b32.xlu0 %v2205_v23, %s1954_s25 }
 0x307   : > { %v2979_v1 = vpop.xlane.xlu1 %1143  ;;  %1334 = vrot.lane.b32.xlu1 %v2203_v20, %s1954_s25 }
 0x308   : > { %4001 = vst [vmem:[#allocation139_spill] sm:$0xff] %v2979_v1  ;;  %v2981_v30 = vpop.xlane.xlu0 %1140 }
 0x309   : > { %4002 = vst [vmem:[#allocation140_spill] sm:$0xff] %v2981_v30  ;;  %1336 = vrot.lane.b32.xlu0 %v2215_v32, %s1954_s25 }
 0x30b   : > { %v2987_v27 = vpop.xlane.xlu1 %1149  ;;  %1338 = vrot.lane.b32.xlu1 %v2213_v31, %s1954_s25 }
 0x30c   : > { %4003 = vst [vmem:[#allocation141_spill] sm:$0xff] %v2987_v27  ;;  %v2989_v0 = vpop.xlane.xlu0 %1146 }
 0x30d   : > { %4004 = vst [vmem:[#allocation142_spill] sm:$0xff] %v2989_v0  ;;  %1340 = vrot.lane.b32.xlu0 %v2223_v44, %s1954_s25 }
 0x30f   : > { %v2995_v40 = vpop.xlane.xlu1 %1188  ;;  %1342 = vrot.lane.b32.xlu1 %v2221_v43, %s1954_s25 }
 0x310   : > { %4005 = vst [vmem:[#allocation143_spill] sm:$0xff] %v2995_v40  ;;  %v2997_v1 = vpop.xlane.xlu0 %1185 }
 0x311   : > { %4006 = vst [vmem:[#allocation144_spill] sm:$0xff] %v2997_v1 }
 0x313   : > { %v3001_v30 = vpop.xlane.xlu1 %1194 }
 0x314   : > { %4007 = vst [vmem:[#allocation145_spill] sm:$0xff] %v3001_v30  ;;  %v3003_v37 = vpop.xlane.xlu0 %1191 }
 0x315   : > { %4008 = vst [vmem:[#allocation146_spill] sm:$0xff] %v3003_v37 }
 0x317   : > { %v3005_v27 = vpop.xlane.xlu1 %1200 }
 0x318   : > { %4009 = vst [vmem:[#allocation147_spill] sm:$0xff] %v3005_v27  ;;  %v3007_v0 = vpop.xlane.xlu0 %1197 }
 0x319   : > { %4010 = vst [vmem:[#allocation148_spill] sm:$0xff] %v3007_v0 }
 0x31b   : > { %v3009_v46 = vpop.xlane.xlu1 %1206 }
 0x31c   : > { %4011 = vst [vmem:[#allocation149_spill] sm:$0xff] %v3009_v46  ;;  %v3011_v45 = vpop.xlane.xlu0 %1203 }
 0x31d   : > { %4012 = vst [vmem:[#allocation150_spill] sm:$0xff] %v3011_v45 }
 0x31f   : > { %v3013_v19 = vpop.xlane.xlu1 %1212 }
 0x320   : > { %4013 = vst [vmem:[#allocation151_spill] sm:$0xff] %v3013_v19  ;;  %v3015_v40 = vpop.xlane.xlu0 %1209 }
 0x321   : > { %4014 = vst [vmem:[#allocation152_spill] sm:$0xff] %v3015_v40 }
 0x323   : > { %v3017_v1 = vpop.xlane.xlu1 %1218 }
 0x324   : > { %4015 = vst [vmem:[#allocation153_spill] sm:$0xff] %v3017_v1  ;;  %v3019_v26 = vpop.xlane.xlu0 %1215 }
 0x325   : > { %4016 = vst [vmem:[#allocation154_spill] sm:$0xff] %v3019_v26 }
 0x327   : > { %v3021_v38 = vpop.xlane.xlu1 %1224 }
 0x328   : > { %4017 = vst [vmem:[#allocation155_spill] sm:$0xff] %v3021_v38  ;;  %v3023_v30 = vpop.xlane.xlu0 %1221 }
 0x329   : > { %4018 = vst [vmem:[#allocation156_spill] sm:$0xff] %v3023_v30 }
 0x32b   : > { %v3025_v37 = vpop.xlane.xlu1 %1230 }
 0x32c   : > { %4019 = vst [vmem:[#allocation157_spill] sm:$0xff] %v3025_v37  ;;  %v3027_v27 = vpop.xlane.xlu0 %1227 }
 0x32d   : > { %4020 = vst [vmem:[#allocation158_spill] sm:$0xff] %v3027_v27 }
 0x32f   : > { %v3029_v0 = vpop.xlane.xlu1 %1236 }
 0x330   : > { %4021 = vst [vmem:[#allocation159_spill] sm:$0xff] %v3029_v0  ;;  %v3031_v46 = vpop.xlane.xlu0 %1233 }
 0x331   : > { %4022 = vst [vmem:[#allocation160_spill] sm:$0xff] %v3031_v46 }
 0x333   : > { %v3033_v45 = vpop.xlane.xlu1 %1242 }
 0x334   : > { %4023 = vst [vmem:[#allocation161_spill] sm:$0xff] %v3033_v45  ;;  %v3035_v19 = vpop.xlane.xlu0 %1239 }
 0x335   : > { %4024 = vst [vmem:[#allocation162_spill] sm:$0xff] %v3035_v19 }
 0x337   : > { %v3037_v40 = vpop.xlane.xlu1 %1248 }
 0x338   : > { %4025 = vst [vmem:[#allocation163_spill] sm:$0xff] %v3037_v40  ;;  %v3039_v1 = vpop.xlane.xlu0 %1245 }
 0x339   : > { %4026 = vst [vmem:[#allocation164_spill] sm:$0xff] %v3039_v1 }
 0x33b   : > { %v3041_v26 = vpop.xlane.xlu1 %1254 }
 0x33c   : > { %4027 = vst [vmem:[#allocation165_spill] sm:$0xff] %v3041_v26  ;;  %v3043_v38 = vpop.xlane.xlu0 %1251 }
 0x33d   : > { %4028 = vst [vmem:[#allocation166_spill] sm:$0xff] %v3043_v38 }
 0x33f   : > { %v3045_v30 = vpop.xlane.xlu1 %1260 }
 0x340   : > { %4029 = vst [vmem:[#allocation167_spill] sm:$0xff] %v3045_v30  ;;  %v3047_v37 = vpop.xlane.xlu0 %1257 }
 0x341   : > { %4030 = vst [vmem:[#allocation168_spill] sm:$0xff] %v3047_v37 }
 0x343   : > { %v3049_v27 = vpop.xlane.xlu1 %1266 }
 0x344   : > { %4031 = vst [vmem:[#allocation169_spill] sm:$0xff] %v3049_v27  ;;  %v3051_v0 = vpop.xlane.xlu0 %1263 }
 0x345   : > { %4032 = vst [vmem:[#allocation170_spill] sm:$0xff] %v3051_v0 }
 0x347   : > { %v3053_v46 = vpop.xlane.xlu1 %1272 }
 0x348   : > { %4033 = vst [vmem:[#allocation171_spill] sm:$0xff] %v3053_v46  ;;  %v3055_v45 = vpop.xlane.xlu0 %1269 }
 0x349   : > { %4034 = vst [vmem:[#allocation172_spill] sm:$0xff] %v3055_v45 }
 0x34b   : > { %v3057_v19 = vpop.xlane.xlu1 %1278 }
 0x34c   : > { %4035 = vst [vmem:[#allocation173_spill] sm:$0xff] %v3057_v19  ;;  %v3059_v40 = vpop.xlane.xlu0 %1275 }
 0x34d   : > { %4036 = vst [vmem:[#allocation174_spill] sm:$0xff] %v3059_v40 }
 0x34f   : > { %v1283_v1 = vpop.permute.xlu1 %1282 }
 0x350   : > { %v1281_v26 = vpop.permute.xlu0 %1280  ;;  %v1379_v38 = vsel %vm380_vm0, %v1283_v1, 0.0 }
 0x351   : > { %v1376_v30 = vsel %vm380_vm0, %v1281_v26, 0.0  ;;  %1380 = vadd.xlane.f32.xlu1 %v1379_v38 }
 0x352   : > { %1377 = vadd.xlane.f32.xlu0 %v1376_v30 }
 0x353   : > { %v1285_v37 = vpop.permute.xlu1 %1284 }
 0x354   : > { %v1289_v27 = vpop.permute.xlu0 %1288  ;;  %v1382_v0 = vsel %vm380_vm0, %v1285_v37, 0.0 }
 0x355   : > { %v1388_v40 = vsel %vm380_vm0, %v1289_v27, 0.0 }
 0x356   : > { %1383 = vadd.xlane.f32.xlu0 %v1382_v0 }
 0x357   : > { %v1287_v46 = vpop.permute.xlu1 %1286 }
 0x358   : > { %v1293_v24 = vpop.permute.xlu0 %1292  ;;  %v1385_v45 = vsel %vm380_vm0, %v1287_v46, 0.0 }
 0x359   : > { %v1394_v38 = vsel %vm380_vm0, %v1293_v24, 0.0 }
 0x35a   : > { %1386 = vadd.xlane.f32.xlu0 %v1385_v45 }
 0x35b   : > { %v1291_v19 = vpop.permute.xlu1 %1290 }
 0x35c   : > { %v1297_v25 = vpop.permute.xlu0 %1296  ;;  %v1391_v1 = vsel %vm380_vm0, %v1291_v19, 0.0 }
 0x35d   : > { %1392 = vadd.xlane.f32.xlu1 %v1391_v1  ;;  %v1400_v0 = vsel %vm380_vm0, %v1297_v25, 0.0 }
 0x35e   : > { %1389 = vadd.xlane.f32.xlu0 %v1388_v40 }
 0x35f   : > { %v1295_v26 = vpop.permute.xlu1 %1294 }
 0x360   : > { %v1301_v30 = vpop.permute.xlu0 %1300  ;;  %v1397_v37 = vsel %vm380_vm0, %v1295_v26, 0.0 }
 0x361   : > { %1398 = vadd.xlane.f32.xlu1 %v1397_v37  ;;  %v1406_v19 = vsel %vm380_vm0, %v1301_v30, 0.0 }
 0x362   : > { %1395 = vadd.xlane.f32.xlu0 %v1394_v38 }
 0x363   : > { %v1299_v46 = vpop.permute.xlu1 %1298 }
 0x364   : > { %v1305_v45 = vpop.permute.xlu0 %1304  ;;  %v1403_v27 = vsel %vm380_vm0, %v1299_v46, 0.0 }
 0x365   : > { %1404 = vadd.xlane.f32.xlu1 %v1403_v27  ;;  %v1412_v26 = vsel %vm380_vm0, %v1305_v45, 0.0 }
 0x366   : > { %1401 = vadd.xlane.f32.xlu0 %v1400_v0 }
 0x367   : > { %v1303_v1 = vpop.permute.xlu1 %1302 }
 0x368   : > { %v1309_v40 = vpop.permute.xlu0 %1308  ;;  %v1409_v24 = vsel %vm380_vm0, %v1303_v1, 0.0 }
 0x369   : > { %1410 = vadd.xlane.f32.xlu1 %v1409_v24  ;;  %v1418_v46 = vsel %vm380_vm0, %v1309_v40, 0.0 }
 0x36a   : > { %1407 = vadd.xlane.f32.xlu0 %v1406_v19 }
 0x36b   : > { %v1307_v37 = vpop.permute.xlu1 %1306 }
 0x36c   : > { %v1313_v38 = vpop.permute.xlu0 %1312  ;;  %v1415_v25 = vsel %vm380_vm0, %v1307_v37, 0.0 }
 0x36d   : > { %1416 = vadd.xlane.f32.xlu1 %v1415_v25  ;;  %v1424_v1 = vsel %vm380_vm0, %v1313_v38, 0.0 }
 0x36e   : > { %1413 = vadd.xlane.f32.xlu0 %v1412_v26 }
 0x36f   : > { %v1311_v27 = vpop.permute.xlu1 %1310 }
 0x370   : > { %v1317_v0 = vpop.permute.xlu0 %1316  ;;  %v1421_v30 = vsel %vm380_vm0, %v1311_v27, 0.0 }
 0x371   : > { %1422 = vadd.xlane.f32.xlu1 %v1421_v30  ;;  %v1430_v37 = vsel %vm380_vm0, %v1317_v0, 0.0 }
 0x372   : > { %1419 = vadd.xlane.f32.xlu0 %v1418_v46 }
 0x373   : > { %v1315_v24 = vpop.permute.xlu1 %1314 }
 0x374   : > { %v1321_v19 = vpop.permute.xlu0 %1320  ;;  %v1427_v45 = vsel %vm380_vm0, %v1315_v24, 0.0 }
 0x375   : > { %1428 = vadd.xlane.f32.xlu1 %v1427_v45  ;;  %v1436_v27 = vsel %vm380_vm0, %v1321_v19, 0.0 }
 0x376   : > { %1425 = vadd.xlane.f32.xlu0 %v1424_v1 }
 0x377   : > { %v1319_v25 = vpop.permute.xlu1 %1318 }
 0x378   : > { %v1325_v26 = vpop.permute.xlu0 %1324  ;;  %v1433_v40 = vsel %vm380_vm0, %v1319_v25, 0.0 }
 0x379   : > { %1434 = vadd.xlane.f32.xlu1 %v1433_v40  ;;  %v1442_v24 = vsel %vm380_vm0, %v1325_v26, 0.0 }
 0x37a   : > { %1431 = vadd.xlane.f32.xlu0 %v1430_v37 }
 0x37b   : > { %v1323_v30 = vpop.permute.xlu1 %1322 }
 0x37c   : > { %v1329_v46 = vpop.permute.xlu0 %1328  ;;  %v1439_v38 = vsel %vm380_vm0, %v1323_v30, 0.0 }
 0x37d   : > { %1440 = vadd.xlane.f32.xlu1 %v1439_v38  ;;  %v1448_v25 = vsel %vm380_vm0, %v1329_v46, 0.0 }
 0x37e   : > { %1437 = vadd.xlane.f32.xlu0 %v1436_v27 }
 0x37f   : > { %v1327_v45 = vpop.permute.xlu1 %1326 }
 0x380   : > { %v1333_v1 = vpop.permute.xlu0 %1332  ;;  %v1445_v0 = vsel %vm380_vm0, %v1327_v45, 0.0 }
 0x381   : > { %1446 = vadd.xlane.f32.xlu1 %v1445_v0  ;;  %v1454_v30 = vsel %vm380_vm0, %v1333_v1, 0.0  ;;  %v1508_v1 = vsel %vm1504_vm5, %v2036_v35, -inf  ;;  %v1523_v35 = vsel %vm1504_vm5, %v2067_v61, -inf  ;;  %v1541_v61 = vsel %vm1504_vm5, %v2111_v42, -inf }
 0x382   : > { %1443 = vadd.xlane.f32.xlu0 %v1442_v24  ;;  %v1559_v42 = vsel %vm1504_vm5, %v2149_v16, -inf  ;;  %v1577_v16 = vsel %vm1504_vm5, %v2193_v7, -inf  ;;  %v1595_v7 = vsel %vm1504_vm5, %v2223_v44, -inf }
 0x383   : > { %v1331_v40 = vpop.permute.xlu1 %1330 }
 0x384   : > { %v1451_v37 = vsel %vm380_vm0, %v1331_v40, 0.0  ;;  %v1337_v19 = vpop.permute.xlu0 %1336 }
 0x385   : > { %1452 = vadd.xlane.f32.xlu1 %v1451_v37  ;;  %v1460_v26 = vsel %vm380_vm0, %v1337_v19, 0.0  ;;  %v1505_v37 = vsel %vm1504_vm5, %v2027_v29, -inf  ;;  %v1514_v19 = vsel %vm1504_vm5, %v2034_v34, -inf  ;;  %v1526_v29 = vsel %vm1504_vm5, %v2062_v57, -inf }
 0x386   : > { %1449 = vadd.xlane.f32.xlu0 %v1448_v25  ;;  %v1529_v34 = vsel %vm1504_vm5, %v2077_v8, -inf  ;;  %v1544_v57 = vsel %vm1504_vm5, %v2108_v39, -inf  ;;  %v1547_v8 = vsel %vm1504_vm5, %v2126_v58, -inf  ;;  %v1562_v39 = vsel %vm1504_vm5, %v2147_v15, -inf }
 0x387   : > { %v1335_v38 = vpop.permute.xlu1 %1334  ;;  %v1565_v58 = vsel %vm1504_vm5, %v2166_v36, -inf  ;;  %v1580_v15 = vsel %vm1504_vm5, %v2191_v5, -inf  ;;  %v1583_v36 = vsel %vm1504_vm5, %v2205_v23, -inf  ;;  %v1598_v5 = vsel %vm1504_vm5, %v2221_v43, -inf }
 0x388   : > { %v1457_v27 = vsel %vm380_vm0, %v1335_v38, 0.0  ;;  %v1341_v0 = vpop.permute.xlu0 %1340  ;;  %v1520_v38 = vsel %vm1504_vm5, %v2045_v41, -inf  ;;  %v1538_v41 = vsel %vm1504_vm5, %v2092_v21, -inf  ;;  %v1556_v21 = vsel %vm1504_vm5, %v2129_v62, -inf }
 0x389   : > { %1458 = vadd.xlane.f32.xlu1 %v1457_v27  ;;  %v1466_v46 = vsel %vm380_vm0, %v1341_v0, 0.0  ;;  %v1517_v27 = vsel %vm1504_vm5, %v2056_v51, -inf  ;;  %v1535_v51 = vsel %vm1504_vm5, %v2094_v22, -inf  ;;  %v1553_v22 = vsel %vm1504_vm5, %v2142_v13, -inf }
 0x38a   : > { %1455 = vadd.xlane.f32.xlu0 %v1454_v30  ;;  %v1511_v30 = vsel %vm1504_vm5, %v2025_v28, -inf  ;;  %v1532_v28 = vsel %vm1504_vm5, %v2075_v6, -inf  ;;  %v1550_v6 = vsel %vm1504_vm5, %v2124_v56, -inf  ;;  %v1568_v56 = vsel %vm1504_vm5, %v2164_v33, -inf }
 0x38b   : > { %v1339_v45 = vpop.permute.xlu1 %1338  ;;  %v1574_v62 = vsel %vm1504_vm5, %v2177_v49, -inf  ;;  %v1571_v13 = vsel %vm1504_vm5, %v2179_v53, -inf  ;;  %v1586_v33 = vsel %vm1504_vm5, %v2203_v20, -inf  ;;  %v1592_v49 = vsel %vm1504_vm5, %v2213_v31, -inf }
 0x38c   : > { %v1463_v24 = vsel %vm380_vm0, %v1339_v45, 0.0  ;;  %v1589_v53 = vsel %vm1504_vm5, %v2215_v32, -inf }
 0x38d   : > { %1464 = vadd.xlane.f32.xlu1 %v1463_v24 }
 0x38e   : > { %1461 = vadd.xlane.f32.xlu0 %v1460_v26 }
 0x38f   : > { %v1343_v40 = vpop.permute.xlu1 %1342 }
 0x390   : > { %v1469_v25 = vsel %vm380_vm0, %v1343_v40, 0.0 }
 0x391   : > { %1470 = vadd.xlane.f32.xlu1 %v1469_v25 }
 0x392   : > { %1467 = vadd.xlane.f32.xlu0 %v1466_v46 }
 0x395   : > { %1509 = vmax.xlane.f32.xlu1 %v1508_v1 }
 0x396   : > { %1506 = vmax.xlane.f32.xlu0 %v1505_v37 }
 0x399   : > { %1515 = vmax.xlane.f32.xlu1 %v1514_v19 }
 0x39a   : > { %1512 = vmax.xlane.f32.xlu0 %v1511_v30 }
 0x39d   : > { %1521 = vmax.xlane.f32.xlu1 %v1520_v38 }
 0x39e   : > { %1518 = vmax.xlane.f32.xlu0 %v1517_v27  ;;  %v480_v27 = vmul.f32 0.125, %v2293_v47 }
 0x3a1   : > { %1527 = vmax.xlane.f32.xlu1 %v1526_v29  ;;  %v478_v29 = vmul.f32 0.125, %v2295_v48 }
 0x3a2   : > { %1524 = vmax.xlane.f32.xlu0 %v1523_v35  ;;  %v481_v35 = vmul.f32 0.125, %v2299_v50  ;;  %v489_v50 = vmul.f32 0.125, %v2331_v3 }
 0x3a5   : > { %1533 = vmax.xlane.f32.xlu1 %v1532_v28  ;;  %v479_v28 = vmul.f32 0.125, %v2301_v52  ;;  %v488_v52 = vmul.f32 0.125, %v2333_v4 }
 0x3a6   : > { %1530 = vmax.xlane.f32.xlu0 %v1529_v34  ;;  %v483_v34 = vmul.f32 0.125, %v2307_v54  ;;  %v491_v54 = vmul.f32 0.125, %v2339_v9 }
 0x3a9   : > { %1539 = vmax.xlane.f32.xlu1 %v1538_v41  ;;  %v482_v41 = vmul.f32 0.125, %v2309_v55  ;;  %v490_v55 = vmul.f32 0.125, %v2341_v10 }
 0x3aa   : > { %1536 = vmax.xlane.f32.xlu0 %v1535_v51  ;;  %v485_v51 = vmul.f32 0.125, %v2315_v59  ;;  %v493_v59 = vmul.f32 0.125, %v2347_v11 }
 0x3ad   : > { %1545 = vmax.xlane.f32.xlu1 %v1544_v57  ;;  %v484_v57 = vmul.f32 0.125, %v2317_v60  ;;  %v492_v60 = vmul.f32 0.125, %v2349_v12 }
 0x3ae   : > { %1542 = vmax.xlane.f32.xlu0 %v1541_v61  ;;  %v487_v61 = vmul.f32 0.125, %v2323_v63  ;;  %v495_v63 = vmul.f32 0.125, %v2355_v14 }
 0x3b1   : > { %1551 = vmax.xlane.f32.xlu1 %v1550_v6  ;;  %v486_v6 = vmul.f32 0.125, %v2325_v2  ;;  %v494_v2 = vmul.f32 0.125, %v2357_v17  ;;  %v4051_v17 = vld [vmem:[#allocation9_spill] sm:$0xff] }
 0x3b2   : > { %1548 = vmax.xlane.f32.xlu0 %v1547_v8  ;;  %v497_v8 = vmul.f32 0.125, %v2363_v18  ;;  %v505_v18 = vmul.f32 0.125, %v4051_v17  ;;  %v4060_v17 = vld [vmem:[#allocation18_spill] sm:$0xff] }
 0x3b5   : > { %1557 = vmax.xlane.f32.xlu1 %v1556_v21  ;;  %v4042_v21 = vld [vmem:[#allocation2_spill] sm:$0xff] }
 0x3b6   : > { %1554 = vmax.xlane.f32.xlu0 %v1553_v22  ;;  %v496_v22 = vmul.f32 0.125, %v4042_v21 }
 0x3b9   : > { %1563 = vmax.xlane.f32.xlu1 %v1562_v39  ;;  %v4043_v39 = vld [vmem:[#allocation3_spill] sm:$0xff] }
 0x3ba   : > { %1560 = vmax.xlane.f32.xlu0 %v1559_v42  ;;  %v499_v3 = vmul.f32 0.125, %v4043_v39  ;;  %v4044_v42 = vld [vmem:[#allocation4_spill] sm:$0xff]  ;;  %v4056_v39 = vld [vmem:[#allocation14_spill] sm:$0xff] }
 0x3bb   : > { %v498_v4 = vmul.f32 0.125, %v4044_v42  ;;  %v508_v42 = vmul.f32 0.125, %v4056_v39 }
 0x3bd   : > { %1569 = vmax.xlane.f32.xlu1 %v1568_v56  ;;  %v4045_v56 = vld [vmem:[#allocation5_spill] sm:$0xff] }
 0x3be   : > { %1566 = vmax.xlane.f32.xlu0 %v1565_v58  ;;  %v501_v9 = vmul.f32 0.125, %v4045_v56  ;;  %v4046_v58 = vld [vmem:[#allocation6_spill] sm:$0xff]  ;;  %v4057_v56 = vld [vmem:[#allocation15_spill] sm:$0xff] }
 0x3bf   : > { %v500_v10 = vmul.f32 0.125, %v4046_v58  ;;  %v1603_v58 = vsel %vm1601_vm6, %v479_v28, %v4057_v56  ;;  %v4065_v56 = vld [vmem:[#allocation23_spill] sm:$0xff] }
 0x3c1   : > { %1575 = vmax.xlane.f32.xlu1 %v1574_v62  ;;  %v4047_v62 = vld [vmem:[#allocation7_spill] sm:$0xff] }
 0x3c2   : > { %1572 = vmax.xlane.f32.xlu0 %v1571_v13  ;;  %v503_v11 = vmul.f32 0.125, %v4047_v62  ;;  %v4048_v13 = vld [vmem:[#allocation8_spill] sm:$0xff] }
 0x3c3   : > { %v502_v12 = vmul.f32 0.125, %v4048_v13  ;;  %v4058_v62 = vld [vmem:[#allocation16_spill] sm:$0xff] }
 0x3c4   : > { %v1602_v13 = vsel %vm1601_vm6, %v478_v29, %v4058_v62  ;;  %v1611_v29 = vsel %vm1601_vm6, %v487_v61, %v4065_v56  ;;  %v4066_v62 = vld [vmem:[#allocation24_spill] sm:$0xff]  ;;  %v4073_v61 = vld [vmem:[#allocation29_spill] sm:$0xff] }
 0x3c5   : > { %1581 = vmax.xlane.f32.xlu1 %v1580_v15 }
 0x3c6   : > { %1578 = vmax.xlane.f32.xlu0 %v1577_v16  ;;  %v4052_v16 = vld [vmem:[#allocation10_spill] sm:$0xff] }
 0x3c9   : > { %1587 = vmax.xlane.f32.xlu1 %v1586_v33  ;;  %v504_v33 = vmul.f32 0.125, %v4052_v16  ;;  %v1604_v16 = vsel %vm1601_vm6, %v480_v27, %v4060_v17 }
 0x3ca   : > { %1584 = vmax.xlane.f32.xlu0 %v1583_v36  ;;  %v4053_v36 = vld [vmem:[#allocation11_spill] sm:$0xff] }
 0x3cd   : > { %1593 = vmax.xlane.f32.xlu1 %v1592_v49  ;;  %v507_v49 = vmul.f32 0.125, %v4053_v36 }
 0x3ce   : > { %1590 = vmax.xlane.f32.xlu0 %v1589_v53  ;;  %v4054_v53 = vld [vmem:[#allocation12_spill] sm:$0xff] }
 0x3d1   : > { %1599 = vmax.xlane.f32.xlu1 %v1598_v5  ;;  %v506_v5 = vmul.f32 0.125, %v4054_v53  ;;  %v4062_v53 = vld [vmem:[#allocation20_spill] sm:$0xff] }
 0x3d2   : > { %1596 = vmax.xlane.f32.xlu0 %v1595_v7  ;;  %v4055_v7 = vld [vmem:[#allocation13_spill] sm:$0xff] }
 0x3d3   : > { %v509_v21 = vmul.f32 0.125, %v4055_v7  ;;  %v1606_v7 = vsel %vm1601_vm6, %v482_v41, %v4062_v53  ;;  %v4070_v41 = vld [vmem:[#allocation26_spill] sm:$0xff]  ;;  %v1617_v53 = vsel %vm1601_vm6, %v493_v59, %v4073_v61  ;;  %v4079_v59 = vld [vmem:[#allocation35_spill] sm:$0xff] }
 0x3d4   : > { %v1612_v17 = vsel %vm1601_vm6, %v488_v52, %v4070_v41  ;;  %v4082_v61 = vld [vmem:[#allocation38_spill] sm:$0xff] }
 0x3de   : > { %v3161_v26 = vpop.xlane.xlu1 %1380 }
 0x3df   : > { %v3157_v20 = vpop.xlane.xlu0 %1377 }
 0x3e3   : > { %v3159_v23 = vpop.xlane.xlu0 %1383 }
 0x3e7   : > { %v3163_v31 = vpop.xlane.xlu0 %1386 }
 0x3ea   : > { %v3165_v45 = vpop.xlane.xlu1 %1392 }
 0x3eb   : > { %v3167_v32 = vpop.xlane.xlu0 %1389 }
 0x3ee   : > { %v3169_v0 = vpop.xlane.xlu1 %1398 }
 0x3ef   : > { %v3171_v43 = vpop.xlane.xlu0 %1395 }
 0x3f2   : > { %v3173_v24 = vpop.xlane.xlu1 %1404 }
 0x3f3   : > { %v3175_v44 = vpop.xlane.xlu0 %1401 }
 0x3f6   : > { %v3177_v46 = vpop.xlane.xlu1 %1410 }
 0x3f7   : > { %v3179_v40 = vpop.xlane.xlu0 %1407 }
 0x3fa   : > { %v3181_v25 = vpop.xlane.xlu1 %1416 }
 0x3fb   : > { %v3183_v1 = vpop.xlane.xlu0 %1413 }
 0x3fe   : > { %v3185_v37 = vpop.xlane.xlu1 %1422 }
 0x3ff   : > { %v3187_v19 = vpop.xlane.xlu0 %1419 }
 0x400   : > { %4037 = vst [vmem:[#allocation175_spill] sm:$0xff] %v3187_v19 }
 0x402   : > { %v3189_v30 = vpop.xlane.xlu1 %1428 }
 0x403   : > { %4038 = vst [vmem:[#allocation176_spill] sm:$0xff] %v3189_v30  ;;  %v3191_v38 = vpop.xlane.xlu0 %1425 }
 0x404   : > { %4039 = vst [vmem:[#allocation177_spill] sm:$0xff] %v3191_v38  ;;  %v4064_v38 = vld [vmem:[#allocation22_spill] sm:$0xff] }
 0x405   : > { %v1608_v28 = vsel %vm1601_vm6, %v484_v57, %v4064_v38  ;;  %v4072_v38 = vld [vmem:[#allocation28_spill] sm:$0xff] }
 0x406   : > { %v3203_v47 = vpop.xlane.xlu1 %1434  ;;  %v1614_v57 = vsel %vm1601_vm6, %v490_v55, %v4072_v38  ;;  %v4078_v55 = vld [vmem:[#allocation34_spill] sm:$0xff]  ;;  %v4081_v38 = vld [vmem:[#allocation37_spill] sm:$0xff] }
 0x407   : > { %4040 = vst [vmem:[#allocation178_spill] sm:$0xff] %v3203_v47  ;;  %v3205_v48 = vpop.xlane.xlu0 %1431  ;;  %v4063_v47 = vld [vmem:[#allocation21_spill] sm:$0xff]  ;;  %v3285_v41 = vsel %vm1601_vm6, %v496_v22, %v4078_v55  ;;  %v4091_v55 = vld [vmem:[#allocation42_spill] sm:$0xff] }
 0x408   : > { %4041 = vst [vmem:[#allocation179_spill] sm:$0xff] %v3205_v48  ;;  %v4061_v48 = vld [vmem:[#allocation19_spill] sm:$0xff]  ;;  %v1609_v39 = vsel %vm1601_vm6, %v485_v51, %v4063_v47 }
 0x409   : > { %v1607_v36 = vsel %vm1601_vm6, %v483_v34, %v4061_v48  ;;  %v4069_v34 = vld [vmem:[#allocation25_spill] sm:$0xff]  ;;  %v4071_v51 = vld [vmem:[#allocation27_spill] sm:$0xff] }
 0x40a   : > { %v3223_v15 = vpop.xlane.xlu1 %1440  ;;  %v1613_v48 = vsel %vm1601_vm6, %v489_v50, %v4069_v34  ;;  %v1615_v47 = vsel %vm1601_vm6, %v491_v54, %v4071_v51  ;;  %v4076_v50 = vld [vmem:[#allocation32_spill] sm:$0xff]  ;;  %v4077_v34 = vld [vmem:[#allocation33_spill] sm:$0xff] }
 0x40b   : > { %4049 = vst [vmem:[#allocation2_spill] sm:$0xff] %v3223_v15  ;;  %v3225_v14 = vpop.xlane.xlu0 %1437  ;;  %v4059_v15 = vld [vmem:[#allocation17_spill] sm:$0xff]  ;;  %v3277_v52 = vsel %vm1601_vm6, %v494_v2, %v4076_v50  ;;  %v3281_v54 = vsel %vm1601_vm6, %v497_v8, %v4077_v34  ;;  %v4080_v51 = vld [vmem:[#allocation36_spill] sm:$0xff]  ;;  %v3297_v2 = vsel %vm1601_vm6, %v501_v9, %v4081_v38  ;;  %v3301_v8 = vsel %vm1601_vm6, %v500_v10, %v4082_v61 }
 0x40c   : > { %4050 = vst [vmem:[#allocation3_spill] sm:$0xff] %v3225_v14  ;;  %v1605_v14 = vsel %vm1601_vm6, %v481_v35, %v4059_v15  ;;  %v1610_v35 = vsel %vm1601_vm6, %v486_v6, %v4066_v62  ;;  %v4074_v6 = vld [vmem:[#allocation30_spill] sm:$0xff]  ;;  %v4075_v62 = vld [vmem:[#allocation31_spill] sm:$0xff]  ;;  %v4089_v34 = vld [vmem:[#allocation41_spill] sm:$0xff]  ;;  %v3321_v10 = vsel %vm1601_vm6, %v504_v33, %v4091_v55 }
 0x40d   : > { %v3269_v56 = vsel %vm1601_vm6, %v492_v60, %v4074_v6  ;;  %v3289_v60 = vsel %vm1601_vm6, %v499_v3, %v4079_v59  ;;  %v4083_v6 = vld [vmem:[#allocation39_spill] sm:$0xff]  ;;  %v3317_v9 = vsel %vm1601_vm6, %v505_v18, %v4089_v34  ;;  %4092 = vst [vmem:[#allocation11_spill] sm:$0xff] %v3321_v10  ;;  %v4100_v18 = vld [vmem:[#allocation45_spill] sm:$0xff]  ;;  %v4102_v33 = vld [vmem:[#allocation46_spill] sm:$0xff] }
 0x40e   : > { %v3253_v15 = vpop.xlane.xlu1 %1446  ;;  %v3305_v22 = vsel %vm1601_vm6, %v503_v11, %v4083_v6  ;;  %4090 = vst [vmem:[#allocation10_spill] sm:$0xff] %v3317_v9  ;;  %v4093_v59 = vld [vmem:[#allocation43_spill] sm:$0xff]  ;;  %v3336_v34 = vsel %vm1601_vm6, %v509_v21, %v4100_v18  ;;  %v3340_v55 = vsel %vm1601_vm6, %v508_v42, %v4102_v33  ;;  %v4112_v18 = vld [vmem:[#allocation56_spill] sm:$0xff]  ;;  %v4113_v42 = vld [vmem:[#allocation57_spill] sm:$0xff] }
 0x40f   : > { %4067 = vst [vmem:[#allocation4_spill] sm:$0xff] %v3253_v15  ;;  %v3255_v27 = vpop.xlane.xlu0 %1443  ;;  %4084 = vst [vmem:[#allocation6_spill] sm:$0xff] %v3305_v22  ;;  %v3325_v11 = vsel %vm1601_vm6, %v507_v49, %v4093_v59  ;;  %v4098_v6 = vld [vmem:[#allocation47_spill] sm:$0xff]  ;;  %v4104_v49 = vld [vmem:[#allocation50_spill] sm:$0xff]  ;;  %v841_v33 = vmul.f32 0.125, %v4113_v42 }
 0x410   : > { %4068 = vst [vmem:[#allocation5_spill] sm:$0xff] %v3255_v27  ;;  %v3273_v27 = vsel %vm1601_vm6, %v495_v63, %v4075_v62  ;;  %v3293_v63 = vsel %vm1601_vm6, %v498_v4, %v4080_v51  ;;  %v4085_v62 = vld [vmem:[#allocation40_spill] sm:$0xff]  ;;  %4094 = vst [vmem:[#allocation12_spill] sm:$0xff] %v3325_v11  ;;  %v4095_v51 = vld [vmem:[#allocation49_spill] sm:$0xff]  ;;  %v833_v59 = vmul.f32 0.125, %v4104_v49 }
 0x411   : > { %v3309_v3 = vsel %vm1601_vm6, %v502_v12, %v4085_v62  ;;  %v831_v38 = vmul.f32 0.125, %v4095_v51  ;;  %v4096_v12 = vld [vmem:[#allocation44_spill] sm:$0xff]  ;;  %v830_v62 = vmul.f32 0.125, %v4098_v6  ;;  %4101 = vst [vmem:[#allocation14_spill] sm:$0xff] %v3336_v34  ;;  %4103 = vst [vmem:[#allocation15_spill] sm:$0xff] %v3340_v55  ;;  %v4105_v51 = vld [vmem:[#allocation51_spill] sm:$0xff] }
 0x412   : > { %4086 = vst [vmem:[#allocation7_spill] sm:$0xff] %v3309_v3  ;;  %v3311_v50 = vpop.xlane.xlu1 %1452  ;;  %v3330_v61 = vsel %vm1601_vm6, %v506_v5, %v4096_v12  ;;  %v835_v11 = vmul.f32 0.125, %v4105_v51  ;;  %v4106_v15 = vld [vmem:[#allocation52_spill] sm:$0xff]  ;;  %v4107_v12 = vld [vmem:[#allocation53_spill] sm:$0xff]  ;;  %v4108_v6 = vld [vmem:[#allocation54_spill] sm:$0xff]  ;;  %v838_v34 = vmul.f32 0.125, %v4112_v18 }
 0x413   : > { %4087 = vst [vmem:[#allocation8_spill] sm:$0xff] %v3311_v50  ;;  %v3313_v4 = vpop.xlane.xlu0 %1449  ;;  %4097 = vst [vmem:[#allocation13_spill] sm:$0xff] %v3330_v61  ;;  %v834_v5 = vmul.f32 0.125, %v4106_v15  ;;  %v837_v61 = vmul.f32 0.125, %v4107_v12  ;;  %v836_v10 = vmul.f32 0.125, %v4108_v6  ;;  %v1636_v49 = vsel %vm1634_vm7, %v1603_v58, %v831_v38  ;;  %v4114_v51 = vld [vmem:[#allocation58_spill] sm:$0xff] }
 0x414   : > { %4088 = vst [vmem:[#allocation9_spill] sm:$0xff] %v3313_v4  ;;  %v4099_v4 = vld [vmem:[#allocation48_spill] sm:$0xff]  ;;  %v840_v55 = vmul.f32 0.125, %v4114_v51  ;;  %v4115_v15 = vld [vmem:[#allocation59_spill] sm:$0xff]  ;;  %v1635_v12 = vsel %vm1634_vm7, %v1602_v13, %v830_v62  ;;  %v3363_v18 = vsel %vm1634_vm7, %v1607_v36, %v835_v11  ;;  %v3383_v36 = vsel %vm1634_vm7, %v1610_v35, %v838_v34 }
 0x415   : > { %v832_v50 = vmul.f32 0.125, %v4099_v4  ;;  %v4109_v4 = vld [vmem:[#allocation55_spill] sm:$0xff]  ;;  %v843_v22 = vmul.f32 0.125, %v4115_v15  ;;  %v3366_v42 = vsel %vm1634_vm7, %v1606_v7, %v834_v5  ;;  %v3369_v58 = vsel %vm1634_vm7, %v1609_v39, %v837_v61  ;;  %v4119_v39 = vld [vmem:[#allocation113_spill] sm:$0xff]  ;;  %v4124_v51 = vld [vmem:[#allocation80_spill] sm:$0xff] }
 0x416   : > { %v839_v9 = vmul.f32 0.125, %v4109_v4  ;;  %v3348_v3 = vpop.xlane.xlu1 %1458  ;;  %v4116_v4 = vld [vmem:[#allocation60_spill] sm:$0xff]  ;;  %v3372_v38 = vsel %vm1634_vm7, %v1608_v28, %v836_v10  ;;  %v3386_v7 = vsel %vm1634_vm7, %v1613_v48, %v841_v33  ;;  %v1152_v11 = vmul.f32 0.125, %v4119_v39  ;;  %v4121_v61 = vld [vmem:[#allocation63_spill] sm:$0xff] }
 0x417   : > { %4110 = vst [vmem:[#allocation16_spill] sm:$0xff] %v3348_v3  ;;  %v3350_v21 = vpop.xlane.xlu0 %1455  ;;  %v1637_v6 = vsel %vm1634_vm7, %v1604_v16, %v832_v50  ;;  %v842_v30 = vmul.f32 0.125, %v4116_v4  ;;  %v4117_v3 = vld [vmem:[#allocation61_spill] sm:$0xff]  ;;  %v3390_v28 = vsel %vm1634_vm7, %v1612_v17, %v840_v55  ;;  %v847_v62 = vmul.f32 0.125, %v4121_v61  ;;  %v4123_v34 = vld [vmem:[#allocation79_spill] sm:$0xff] }
 0x418   : > { %4111 = vst [vmem:[#allocation17_spill] sm:$0xff] %v3350_v21  ;;  %v845_v19 = vmul.f32 0.125, %v4117_v3  ;;  %v1638_v21 = vsel %vm1634_vm7, %v1605_v14, %v833_v59  ;;  %v3375_v13 = vsel %vm1634_vm7, %v1611_v29, %v839_v9  ;;  %v4118_v14 = vld [vmem:[#allocation62_spill] sm:$0xff]  ;;  %v3393_v29 = vsel %vm1634_vm7, %v1615_v47, %v843_v22  ;;  %v4120_v9 = vld [vmem:[#allocation111_spill] sm:$0xff]  ;;  %v4122_v59 = vld [vmem:[#allocation64_spill] sm:$0xff] }
 0x419   : > { %v844_v50 = vmul.f32 0.125, %v4118_v14  ;;  %v1151_v10 = vmul.f32 0.125, %v4120_v9  ;;  %v846_v5 = vmul.f32 0.125, %v4122_v59  ;;  %v3399_v35 = vsel %vm1634_vm7, %v1614_v57, %v842_v30 }
 0x41a   : > { %v3377_v16 = vpop.xlane.xlu1 %1464  ;;  %v3402_v48 = vsel %vm1634_vm7, %v1617_v53, %v845_v19  ;;  %v1669_v17 = vsel %vm1667_vm8, %v1636_v49, %v4123_v34  ;;  %v1473_v47 = vmul.f32 0.125, %v3161_v26  ;;  %v1472_v22 = vmul.f32 0.125, %v3157_v20  ;;  %v4125_v53 = vld [vmem:[#allocation112_spill] sm:$0xff]  ;;  %v4126_v26 = vld [vmem:[#allocation114_spill] sm:$0xff] }
 0x41b   : > { %v3379_v3 = vpop.xlane.xlu0 %1461  ;;  %v1668_v30 = vsel %vm1667_vm8, %v1635_v12, %v4124_v51  ;;  %v3416_v19 = vsel %vm1634_vm7, %v3269_v56, %v844_v50  ;;  %v1702_v57 = vsel %vm1700_vm9, %v1669_v17, %v1152_v11  ;;  %v1153_v49 = vmul.f32 0.125, %v4125_v53  ;;  %v4127_v56 = vld [vmem:[#allocation143_spill] sm:$0xff]  ;;  %v4128_v50 = vld [vmem:[#allocation144_spill] sm:$0xff] }
 0x41c   : > { %v1154_v15 = vmul.f32 0.125, %v4126_v26  ;;  %v1701_v20 = vsel %vm1700_vm9, %v1668_v30, %v1151_v10  ;;  %v3424_v4 = vsel %vm1634_vm7, %v3273_v27, %v847_v62  ;;  %v3428_v12 = vsel %vm1634_vm7, %v3277_v52, %v846_v5  ;;  %v4129_v62 = vld [vmem:[#allocation81_spill] sm:$0xff]  ;;  %v4130_v5 = vld [vmem:[#allocation82_spill] sm:$0xff]  ;;  %v4131_v30 = vld [vmem:[#allocation115_spill] sm:$0xff] }
 0x41d   : > { %v1735_v14 = vsel %vm1733_vm10, %v1702_v57, %v4127_v56  ;;  %v1734_v39 = vsel %vm1733_vm10, %v1701_v20, %v4128_v50  ;;  %v1474_v27 = vmul.f32 0.125, %v3159_v23  ;;  %v1475_v11 = vmul.f32 0.125, %v3163_v31  ;;  %v4132_v57 = vld [vmem:[#allocation116_spill] sm:$0xff]  ;;  %v4134_v26 = vld [vmem:[#allocation66_spill] sm:$0xff]  ;;  %v4135_v20 = vld [vmem:[#allocation145_spill] sm:$0xff] }
 0x41e   : > { %v3408_v55 = vpop.xlane.xlu1 %1470  ;;  %v1768_v9 = vsel %vm1766_vm11, %v1735_v14, %v1473_v47  ;;  %v1767_v10 = vsel %vm1766_vm11, %v1734_v39, %v1472_v22  ;;  %v1671_v59 = vsel %vm1667_vm8, %v1638_v21, %v4129_v62  ;;  %v1670_v34 = vsel %vm1667_vm8, %v1637_v6, %v4130_v5  ;;  %v4133_v21 = vld [vmem:[#allocation65_spill] sm:$0xff]  ;;  %v4136_v14 = vld [vmem:[#allocation146_spill] sm:$0xff] }
 0x41f   : > { %v3410_v33 = vpop.xlane.xlu0 %1467  ;;  %v1156_v23 = vmul.f32 0.125, %v4131_v30  ;;  %v1155_v31 = vmul.f32 0.125, %v4132_v57  ;;  %v1704_v53 = vsel %vm1700_vm9, %v1671_v59, %v1154_v15  ;;  %v1703_v47 = vsel %vm1700_vm9, %v1670_v34, %v1153_v49  ;;  %v4138_v59 = vld [vmem:[#allocation84_spill] sm:$0xff]  ;;  %v4141_v57 = vld [vmem:[#allocation147_spill] sm:$0xff] }
 0x420   : > { %v849_v22 = vmul.f32 0.125, %v4133_v21  ;;  %v848_v6 = vmul.f32 0.125, %v4134_v26  ;;  %v1737_v56 = vsel %vm1733_vm10, %v1704_v53, %v4135_v20  ;;  %v1736_v50 = vsel %vm1733_vm10, %v1703_v47, %v4136_v14  ;;  %v4142_v47 = vld [vmem:[#allocation148_spill] sm:$0xff] }
 0x421   : > { %v1477_v15 = vmul.f32 0.125, %v3165_v45  ;;  %v1476_v49 = vmul.f32 0.125, %v3167_v32  ;;  %v1672_v5 = vsel %vm1667_vm8, %v3366_v42, %v4138_v59  ;;  %v1478_v21 = vmul.f32 0.125, %v3171_v43 }
 0x422   : > { %v1510_v52 = vpop.xlane.xlu1 %1509  ;;  %v3491_v42 = vsel %vm1634_vm7, %v3285_v41, %v848_v6  ;;  %v4143_v41 = vld [vmem:[#allocation85_spill] sm:$0xff] }
 0x423   : > { %v1507_v61 = vpop.xlane.xlu0 %1506  ;;  %v1801_v17 = vsel %vm1799_vm12, %v1768_v9, %v1510_v52  ;;  %v1770_v52 = vsel %vm1766_vm11, %v1737_v56, %v1475_v11  ;;  %v1769_v9 = vsel %vm1766_vm11, %v1736_v50, %v1474_v27  ;;  %v1705_v27 = vsel %vm1700_vm9, %v1672_v5, %v1155_v31  ;;  %v4144_v56 = vld [vmem:[#allocation86_spill] sm:$0xff] }
 0x424   : > { %v1800_v51 = vsel %vm1799_vm12, %v1767_v10, %v1507_v61  ;;  %1833 = vst.msk [vmem:[%s3439_s28 + $0x8] sm:$0xff] %vm380_vm0, %v1801_v17  ;;  %v4137_v61 = vld [vmem:[#allocation83_spill] sm:$0xff]  ;;  %v4139_v17 = vld [vmem:[#allocation117_spill] sm:$0xff]  ;;  %v1479_v31 = vmul.f32 0.125, %v3169_v0  ;;  %v1675_v6 = vsel %vm1667_vm8, %v3369_v58, %v4143_v41  ;;  %v1674_v14 = vsel %vm1667_vm8, %v3372_v38, %v4144_v56  ;;  %v4150_v5 = vld [vmem:[#allocation150_spill] sm:$0xff] }
 0x425   : > { %1832 = vst.msk [vmem:[%s3439_s28] sm:$0xff] %vm380_vm0, %v1800_v51  ;;  %v1673_v62 = vsel %vm1667_vm8, %v3363_v18, %v4137_v61  ;;  %v1158_v32 = vmul.f32 0.125, %v4139_v17  ;;  %v4140_v51 = vld [vmem:[#allocation118_spill] sm:$0xff]  ;;  %v3487_v18 = vsel %vm1634_vm7, %v3281_v54, %v849_v22  ;;  %v4147_v58 = vld [vmem:[#allocation67_spill] sm:$0xff]  ;;  %v4148_v61 = vld [vmem:[#allocation68_spill] sm:$0xff]  ;;  %v1480_v17 = vmul.f32 0.125, %v3175_v44 }
 0x426   : > { %v1516_v39 = vpop.xlane.xlu1 %1515  ;;  %v1157_v30 = vmul.f32 0.125, %v4140_v51  ;;  %v1706_v11 = vsel %vm1700_vm9, %v1673_v62, %v1156_v23  ;;  %v1738_v23 = vsel %vm1733_vm10, %v1705_v27, %v4142_v47  ;;  %v850_v38 = vmul.f32 0.125, %v4148_v61  ;;  %v4149_v62 = vld [vmem:[#allocation149_spill] sm:$0xff]  ;;  %v4151_v27 = vld [vmem:[#allocation87_spill] sm:$0xff] }
 0x427   : > { %v1513_v10 = vpop.xlane.xlu0 %1512  ;;  %v1803_v34 = vsel %vm1799_vm12, %v1770_v52, %v1516_v39  ;;  %v1739_v53 = vsel %vm1733_vm10, %v1706_v11, %v4141_v57  ;;  %v1771_v22 = vsel %vm1766_vm11, %v1738_v23, %v1476_v49  ;;  %v4145_v39 = vld [vmem:[#allocation119_spill] sm:$0xff]  ;;  %v4146_v52 = vld [vmem:[#allocation120_spill] sm:$0xff]  ;;  %v1677_v57 = vsel %vm1667_vm8, %v3375_v13, %v4151_v27 }
 0x428   : > { %v1802_v45 = vsel %vm1799_vm12, %v1769_v9, %v1513_v10  ;;  %1835 = vst.msk [vmem:[%s3439_s28 + $0x18] sm:$0xff] %vm380_vm0, %v1803_v34  ;;  %v1772_v26 = vsel %vm1766_vm11, %v1739_v53, %v1477_v15  ;;  %v1160_v43 = vmul.f32 0.125, %v4145_v39  ;;  %v1159_v15 = vmul.f32 0.125, %v4146_v52  ;;  %v4152_v53 = vld [vmem:[#allocation88_spill] sm:$0xff] }
 0x429   : > { %1834 = vst.msk [vmem:[%s3439_s28 + $0x10] sm:$0xff] %vm380_vm0, %v1802_v45  ;;  %v1708_v9 = vsel %vm1700_vm9, %v1675_v6, %v1158_v32  ;;  %v1707_v49 = vsel %vm1700_vm9, %v1674_v14, %v1157_v30  ;;  %v851_v10 = vmul.f32 0.125, %v4147_v58  ;;  %v1481_v45 = vmul.f32 0.125, %v3173_v24  ;;  %v4156_v6 = vld [vmem:[#allocation152_spill] sm:$0xff]  ;;  %v4159_v58 = vld [vmem:[#allocation123_spill] sm:$0xff] }
 0x42a   : > { %v1522_v54 = vpop.xlane.xlu1 %1521  ;;  %v1741_v59 = vsel %vm1733_vm10, %v1708_v9, %v4149_v62  ;;  %v1740_v34 = vsel %vm1733_vm10, %v1707_v49, %v4150_v5  ;;  %v1676_v47 = vsel %vm1667_vm8, %v3383_v36, %v4152_v53  ;;  %v3549_v36 = vsel %vm1634_vm7, %v3293_v63, %v850_v38  ;;  %v4157_v63 = vld [vmem:[#allocation89_spill] sm:$0xff]  ;;  %v4162_v5 = vld [vmem:[#allocation70_spill] sm:$0xff] }
 0x42b   : > { %v1519_v20 = vpop.xlane.xlu0 %1518  ;;  %v1805_v50 = vsel %vm1799_vm12, %v1772_v26, %v1522_v54  ;;  %v1774_v32 = vsel %vm1766_vm11, %v1741_v59, %v1479_v31  ;;  %v1773_v30 = vsel %vm1766_vm11, %v1740_v34, %v1478_v21  ;;  %v4153_v26 = vld [vmem:[#allocation121_spill] sm:$0xff]  ;;  %v4154_v54 = vld [vmem:[#allocation122_spill] sm:$0xff]  ;;  %v1709_v21 = vsel %vm1700_vm9, %v1676_v47, %v1159_v15  ;;  %v4165_v47 = vld [vmem:[#allocation91_spill] sm:$0xff] }
 0x42c   : > { %v1804_v0 = vsel %vm1799_vm12, %v1771_v22, %v1519_v20  ;;  %1837 = vst.msk [vmem:[%s3439_s28 + $0x28] sm:$0xff] %vm380_vm0, %v1805_v50  ;;  %v1162_v44 = vmul.f32 0.125, %v4153_v26  ;;  %v1161_v31 = vmul.f32 0.125, %v4154_v54  ;;  %v1710_v22 = vsel %vm1700_vm9, %v1677_v57, %v1160_v43  ;;  %v4155_v20 = vld [vmem:[#allocation151_spill] sm:$0xff]  ;;  %v4158_v15 = vld [vmem:[#allocation90_spill] sm:$0xff]  ;;  %v4163_v34 = vld [vmem:[#allocation153_spill] sm:$0xff] }
 0x42d   : > { %1836 = vst.msk [vmem:[%s3439_s28 + $0x20] sm:$0xff] %vm380_vm0, %v1804_v0  ;;  %v3545_v13 = vsel %vm1634_vm7, %v3289_v60, %v851_v10  ;;  %v1743_v41 = vsel %vm1733_vm10, %v1710_v22, %v4155_v20  ;;  %v1742_v56 = vsel %vm1733_vm10, %v1709_v21, %v4156_v6  ;;  %v1483_v14 = vmul.f32 0.125, %v3177_v46  ;;  %v4160_v10 = vld [vmem:[#allocation124_spill] sm:$0xff]  ;;  %v4167_v54 = vld [vmem:[#allocation125_spill] sm:$0xff] }
 0x42e   : > { %v1528_v51 = vpop.xlane.xlu1 %1527  ;;  %v1482_v50 = vmul.f32 0.125, %v3179_v40  ;;  %v1776_v0 = vsel %vm1766_vm11, %v1743_v41, %v1481_v45  ;;  %v1775_v39 = vsel %vm1766_vm11, %v1742_v56, %v1480_v17  ;;  %v1679_v52 = vsel %vm1667_vm8, %v3386_v7, %v4157_v63  ;;  %v4161_v7 = vld [vmem:[#allocation69_spill] sm:$0xff]  ;;  %v4164_v17 = vld [vmem:[#allocation154_spill] sm:$0xff]  ;;  %v4169_v41 = vld [vmem:[#allocation155_spill] sm:$0xff] }
 0x42f   : > { %v1525_v11 = vpop.xlane.xlu0 %1524  ;;  %v1807_v23 = vsel %vm1799_vm12, %v1774_v32, %v1528_v51  ;;  %v1678_v9 = vsel %vm1667_vm8, %v3390_v28, %v4158_v15  ;;  %v1164_v40 = vmul.f32 0.125, %v4159_v58  ;;  %v1163_v61 = vmul.f32 0.125, %v4160_v10  ;;  %v4170_v56 = vld [vmem:[#allocation156_spill] sm:$0xff]  ;;  %v4173_v15 = vld [vmem:[#allocation94_spill] sm:$0xff] }
 0x430   : > { %v1806_v24 = vsel %vm1799_vm12, %v1773_v30, %v1525_v11  ;;  %1839 = vst.msk [vmem:[%s3439_s28 + $0x38] sm:$0xff] %vm380_vm0, %v1807_v23  ;;  %v1712_v38 = vsel %vm1700_vm9, %v1679_v52, %v1162_v44  ;;  %v1711_v62 = vsel %vm1700_vm9, %v1678_v9, %v1161_v31  ;;  %v853_v59 = vmul.f32 0.125, %v4161_v7  ;;  %v4168_v31 = vld [vmem:[#allocation126_spill] sm:$0xff]  ;;  %v4177_v7 = vld [vmem:[#allocation72_spill] sm:$0xff] }
 0x431   : > { %1838 = vst.msk [vmem:[%s3439_s28 + $0x30] sm:$0xff] %vm380_vm0, %v1806_v24  ;;  %v852_v28 = vmul.f32 0.125, %v4162_v5  ;;  %v1745_v45 = vsel %vm1733_vm10, %v1712_v38, %v4163_v34  ;;  %v1744_v32 = vsel %vm1733_vm10, %v1711_v62, %v4164_v17  ;;  %v1485_v51 = vmul.f32 0.125, %v3181_v25  ;;  %v4166_v24 = vld [vmem:[#allocation92_spill] sm:$0xff] }
 0x432   : > { %v1534_v60 = vpop.xlane.xlu1 %1533  ;;  %v1484_v30 = vmul.f32 0.125, %v3183_v1  ;;  %v1778_v11 = vsel %vm1766_vm11, %v1745_v45, %v1483_v14  ;;  %v1777_v57 = vsel %vm1766_vm11, %v1744_v32, %v1482_v50  ;;  %v1681_v23 = vsel %vm1667_vm8, %v3393_v29, %v4165_v47  ;;  %v4180_v45 = vld [vmem:[#allocation176_spill] sm:$0xff]  ;;  %v4181_v32 = vld [vmem:[#allocation177_spill] sm:$0xff] }
 0x433   : > { %v1531_v43 = vpop.xlane.xlu0 %1530  ;;  %v1809_v49 = vsel %vm1799_vm12, %v1776_v0, %v1534_v60  ;;  %v1680_v26 = vsel %vm1667_vm8, %v3399_v35, %v4166_v24  ;;  %v1166_v1 = vmul.f32 0.125, %v4167_v54  ;;  %v1165_v22 = vmul.f32 0.125, %v4168_v31  ;;  %v4171_v0 = vld [vmem:[#allocation175_spill] sm:$0xff] }
 0x434   : > { %v1808_v46 = vsel %vm1799_vm12, %v1775_v39, %v1531_v43  ;;  %1841 = vst.msk [vmem:[%s3439_s28 + $0x48] sm:$0xff] %vm380_vm0, %v1809_v49  ;;  %v1714_v21 = vsel %vm1700_vm9, %v1681_v23, %v1164_v40  ;;  %v1713_v20 = vsel %vm1700_vm9, %v1680_v26, %v1163_v61  ;;  %v3603_v29 = vsel %vm1634_vm7, %v3297_v2, %v853_v59  ;;  %v4175_v40 = vld [vmem:[#allocation128_spill] sm:$0xff]  ;;  %v4178_v59 = vld [vmem:[#allocation157_spill] sm:$0xff] }
 0x435   : > { %1840 = vst.msk [vmem:[%s3439_s28 + $0x40] sm:$0xff] %vm380_vm0, %v1808_v46  ;;  %v3607_v35 = vsel %vm1634_vm7, %v3301_v8, %v852_v28  ;;  %v1747_v6 = vsel %vm1733_vm10, %v1714_v21, %v4169_v41  ;;  %v1746_v14 = vsel %vm1733_vm10, %v1713_v20, %v4170_v56  ;;  %v1487_v50 = vmul.f32 0.125, %v3185_v37  ;;  %v4172_v8 = vld [vmem:[#allocation93_spill] sm:$0xff]  ;;  %v4174_v46 = vld [vmem:[#allocation127_spill] sm:$0xff]  ;;  %v4179_v28 = vld [vmem:[#allocation158_spill] sm:$0xff] }
 0x436   : > { %v1540_v27 = vpop.xlane.xlu1 %1539  ;;  %v1486_v60 = vmul.f32 0.125, %v4171_v0  ;;  %v1780_v39 = vsel %vm1766_vm11, %v1747_v6, %v1485_v51  ;;  %v1779_v43 = vsel %vm1766_vm11, %v1746_v14, %v1484_v30  ;;  %v1683_v52 = vsel %vm1667_vm8, %v3402_v48, %v4172_v8  ;;  %v4176_v48 = vld [vmem:[#allocation71_spill] sm:$0xff]  ;;  %v4183_v23 = vld [vmem:[#allocation96_spill] sm:$0xff]  ;;  %v4190_v0 = vld [vmem:[#allocation178_spill] sm:$0xff] }
 0x437   : > { %v1537_v53 = vpop.xlane.xlu0 %1536  ;;  %v1811_v44 = vsel %vm1799_vm12, %v1778_v11, %v1540_v27  ;;  %v1682_v9 = vsel %vm1667_vm8, %v3416_v19, %v4173_v15  ;;  %v1168_v58 = vmul.f32 0.125, %v4174_v46  ;;  %v1167_v10 = vmul.f32 0.125, %v4175_v40  ;;  %v4188_v6 = vld [vmem:[#allocation159_spill] sm:$0xff]  ;;  %v4189_v14 = vld [vmem:[#allocation160_spill] sm:$0xff]  ;;  %v4192_v15 = vld [vmem:[#allocation97_spill] sm:$0xff] }
 0x438   : > { %v1810_v25 = vsel %vm1799_vm12, %v1777_v57, %v1537_v53  ;;  %1843 = vst.msk [vmem:[%s3439_s28 + $0x58] sm:$0xff] %vm380_vm0, %v1811_v44  ;;  %v1716_v61 = vsel %vm1700_vm9, %v1683_v52, %v1166_v1  ;;  %v1715_v38 = vsel %vm1700_vm9, %v1682_v9, %v1165_v22  ;;  %v855_v62 = vmul.f32 0.125, %v4176_v48  ;;  %v4182_v53 = vld [vmem:[#allocation95_spill] sm:$0xff]  ;;  %v4185_v1 = vld [vmem:[#allocation130_spill] sm:$0xff] }
 0x439   : > { %1842 = vst.msk [vmem:[%s3439_s28 + $0x50] sm:$0xff] %vm380_vm0, %v1810_v25  ;;  %v854_v19 = vmul.f32 0.125, %v4177_v7  ;;  %v1749_v5 = vsel %vm1733_vm10, %v1716_v61, %v4178_v59  ;;  %v1748_v34 = vsel %vm1733_vm10, %v1715_v38, %v4179_v28  ;;  %v1489_v17 = vmul.f32 0.125, %v4180_v45  ;;  %v4184_v25 = vld [vmem:[#allocation129_spill] sm:$0xff]  ;;  %v4194_v40 = vld [vmem:[#allocation131_spill] sm:$0xff]  ;;  %v4195_v61 = vld [vmem:[#allocation132_spill] sm:$0xff] }
 0x43a   : > { %v1546_v2 = vpop.xlane.xlu1 %1545  ;;  %v1488_v51 = vmul.f32 0.125, %v4181_v32  ;;  %v1782_v30 = vsel %vm1766_vm11, %v1749_v5, %v1487_v50  ;;  %v1781_v27 = vsel %vm1766_vm11, %v1748_v34, %v1486_v60  ;;  %v1685_v47 = vsel %vm1667_vm8, %v3424_v4, %v4182_v53  ;;  %v4186_v4 = vld [vmem:[#allocation6_spill] sm:$0xff]  ;;  %v4198_v59 = vld [vmem:[#allocation161_spill] sm:$0xff]  ;;  %v4201_v32 = vld [vmem:[#allocation3_spill] sm:$0xff] }
 0x43b   : > { %v1543_v63 = vpop.xlane.xlu0 %1542  ;;  %v1813_v49 = vsel %vm1799_vm12, %v1780_v39, %v1546_v2  ;;  %v1684_v24 = vsel %vm1667_vm8, %v3428_v12, %v4183_v23  ;;  %v1170_v54 = vmul.f32 0.125, %v4184_v25  ;;  %v1169_v31 = vmul.f32 0.125, %v4185_v1  ;;  %v4187_v12 = vld [vmem:[#allocation7_spill] sm:$0xff]  ;;  %v4199_v28 = vld [vmem:[#allocation162_spill] sm:$0xff]  ;;  %v4203_v23 = vld [vmem:[#allocation100_spill] sm:$0xff] }
 0x43c   : > { %v1812_v37 = vsel %vm1799_vm12, %v1779_v43, %v1543_v63  ;;  %1845 = vst.msk [vmem:[%s3439_s28 + $0x68] sm:$0xff] %vm380_vm0, %v1813_v49  ;;  %v1718_v22 = vsel %vm1700_vm9, %v1685_v47, %v1168_v58  ;;  %v1717_v21 = vsel %vm1700_vm9, %v1684_v24, %v1167_v10  ;;  %v3661_v20 = vsel %vm1634_vm7, %v4186_v4, %v855_v62  ;;  %v4191_v39 = vld [vmem:[#allocation179_spill] sm:$0xff]  ;;  %v4193_v49 = vld [vmem:[#allocation98_spill] sm:$0xff]  ;;  %v4204_v25 = vld [vmem:[#allocation133_spill] sm:$0xff] }
 0x43d   : > { %1844 = vst.msk [vmem:[%s3439_s28 + $0x60] sm:$0xff] %vm380_vm0, %v1812_v37  ;;  %v3665_v41 = vsel %vm1634_vm7, %v4187_v12, %v854_v19  ;;  %v1751_v56 = vsel %vm1733_vm10, %v1718_v22, %v4188_v6  ;;  %v1750_v50 = vsel %vm1733_vm10, %v1717_v21, %v4189_v14  ;;  %v1491_v60 = vmul.f32 0.125, %v4190_v0  ;;  %v4197_v19 = vld [vmem:[#allocation74_spill] sm:$0xff]  ;;  %v4202_v53 = vld [vmem:[#allocation99_spill] sm:$0xff]  ;;  %v4209_v14 = vld [vmem:[#allocation164_spill] sm:$0xff] }
 0x43e   : > { %v1552_v11 = vpop.xlane.xlu1 %1551  ;;  %v1490_v2 = vmul.f32 0.125, %v4191_v39  ;;  %v1784_v43 = vsel %vm1766_vm11, %v1751_v56, %v1489_v17  ;;  %v1783_v8 = vsel %vm1766_vm11, %v1750_v50, %v1488_v51  ;;  %v1687_v9 = vsel %vm1667_vm8, %v3487_v18, %v4192_v15  ;;  %v4196_v18 = vld [vmem:[#allocation73_spill] sm:$0xff]  ;;  %v4200_v45 = vld [vmem:[#allocation2_spill] sm:$0xff]  ;;  %v4208_v6 = vld [vmem:[#allocation163_spill] sm:$0xff] }
 0x43f   : > { %v1549_v57 = vpop.xlane.xlu0 %1548  ;;  %v1815_v26 = vsel %vm1799_vm12, %v1782_v30, %v1552_v11  ;;  %v1686_v37 = vsel %vm1667_vm8, %v3491_v42, %v4193_v49  ;;  %v1172_v10 = vmul.f32 0.125, %v4194_v40  ;;  %v1171_v38 = vmul.f32 0.125, %v4195_v61  ;;  %v4205_v1 = vld [vmem:[#allocation134_spill] sm:$0xff]  ;;  %v4210_v0 = vld [vmem:[#allocation4_spill] sm:$0xff]  ;;  %v4211_v39 = vld [vmem:[#allocation5_spill] sm:$0xff] }
 0x440   : > { %v1814_v44 = vsel %vm1799_vm12, %v1781_v27, %v1549_v57  ;;  %1847 = vst.msk [vmem:[%s3439_s28 + $0x78] sm:$0xff] %vm380_vm0, %v1815_v26  ;;  %v1720_v48 = vsel %vm1700_vm9, %v1687_v9, %v1170_v54  ;;  %v1719_v62 = vsel %vm1700_vm9, %v1686_v37, %v1169_v31  ;;  %v857_v7 = vmul.f32 0.125, %v4196_v18  ;;  %v4212_v15 = vld [vmem:[#allocation101_spill] sm:$0xff]  ;;  %v4213_v49 = vld [vmem:[#allocation102_spill] sm:$0xff]  ;;  %v4214_v40 = vld [vmem:[#allocation135_spill] sm:$0xff] }
 0x441   : > { %1846 = vst.msk [vmem:[%s3439_s28 + $0x70] sm:$0xff] %vm380_vm0, %v1814_v44  ;;  %v856_v42 = vmul.f32 0.125, %v4197_v19  ;;  %v1753_v5 = vsel %vm1733_vm10, %v1720_v48, %v4198_v59  ;;  %v1752_v34 = vsel %vm1733_vm10, %v1719_v62, %v4199_v28  ;;  %v1493_v17 = vmul.f32 0.125, %v4200_v45  ;;  %v4215_v61 = vld [vmem:[#allocation136_spill] sm:$0xff]  ;;  %v4218_v19 = vld [vmem:[#allocation165_spill] sm:$0xff]  ;;  %v4219_v59 = vld [vmem:[#allocation166_spill] sm:$0xff] }
 0x442   : > { %v1558_v63 = vpop.xlane.xlu1 %1557  ;;  %v1492_v51 = vmul.f32 0.125, %v4201_v32  ;;  %v1786_v30 = vsel %vm1766_vm11, %v1753_v5, %v1491_v60  ;;  %v1785_v27 = vsel %vm1766_vm11, %v1752_v34, %v1490_v2  ;;  %v1689_v47 = vsel %vm1667_vm8, %v3545_v13, %v4202_v53  ;;  %v4206_v13 = vld [vmem:[#allocation10_spill] sm:$0xff]  ;;  %v4220_v28 = vld [vmem:[#allocation8_spill] sm:$0xff]  ;;  %v4221_v45 = vld [vmem:[#allocation9_spill] sm:$0xff] }
 0x443   : > { %v1555_v52 = vpop.xlane.xlu0 %1554  ;;  %v1817_v46 = vsel %vm1799_vm12, %v1784_v43, %v1558_v63  ;;  %v1688_v24 = vsel %vm1667_vm8, %v3549_v36, %v4203_v23  ;;  %v1174_v54 = vmul.f32 0.125, %v4204_v25  ;;  %v1173_v31 = vmul.f32 0.125, %v4205_v1  ;;  %v4207_v36 = vld [vmem:[#allocation11_spill] sm:$0xff]  ;;  %v4223_v53 = vld [vmem:[#allocation104_spill] sm:$0xff]  ;;  %v4225_v25 = vld [vmem:[#allocation138_spill] sm:$0xff] }
 0x444   : > { %v1816_v58 = vsel %vm1799_vm12, %v1783_v8, %v1555_v52  ;;  %1849 = vst.msk [vmem:[%s3439_s28 + $0x88] sm:$0xff] %vm380_vm0, %v1817_v46  ;;  %v1722_v22 = vsel %vm1700_vm9, %v1689_v47, %v1172_v10  ;;  %v1721_v21 = vsel %vm1700_vm9, %v1688_v24, %v1171_v38  ;;  %v1662_v4 = vsel %vm1634_vm7, %v4206_v13, %v857_v7  ;;  %v4217_v7 = vld [vmem:[#allocation76_spill] sm:$0xff]  ;;  %v4228_v13 = vld [vmem:[#allocation167_spill] sm:$0xff] }
 0x445   : > { %1848 = vst.msk [vmem:[%s3439_s28 + $0x80] sm:$0xff] %vm380_vm0, %v1816_v58  ;;  %v1661_v12 = vsel %vm1634_vm7, %v4207_v36, %v856_v42  ;;  %v1755_v56 = vsel %vm1733_vm10, %v1722_v22, %v4208_v6  ;;  %v1754_v50 = vsel %vm1733_vm10, %v1721_v21, %v4209_v14  ;;  %v1495_v60 = vmul.f32 0.125, %v4210_v0  ;;  %v4229_v6 = vld [vmem:[#allocation168_spill] sm:$0xff]  ;;  %v4231_v0 = vld [vmem:[#allocation17_spill] sm:$0xff] }
 0x446   : > { %v1564_v11 = vpop.xlane.xlu1 %1563  ;;  %v1494_v2 = vmul.f32 0.125, %v4211_v39  ;;  %v1788_v43 = vsel %vm1766_vm11, %v1755_v56, %v1493_v17  ;;  %v1787_v8 = vsel %vm1766_vm11, %v1754_v50, %v1492_v51  ;;  %v1691_v9 = vsel %vm1667_vm8, %v3603_v29, %v4212_v15  ;;  %v4216_v29 = vld [vmem:[#allocation75_spill] sm:$0xff]  ;;  %v4230_v14 = vld [vmem:[#allocation16_spill] sm:$0xff]  ;;  %v4233_v15 = vld [vmem:[#allocation106_spill] sm:$0xff] }
 0x447   : > { %v1561_v57 = vpop.xlane.xlu0 %1560  ;;  %v1819_v26 = vsel %vm1799_vm12, %v1786_v30, %v1564_v11  ;;  %v1690_v37 = vsel %vm1667_vm8, %v3607_v35, %v4213_v49  ;;  %v1176_v10 = vmul.f32 0.125, %v4214_v40  ;;  %v1175_v38 = vmul.f32 0.125, %v4215_v61  ;;  %v4235_v40 = vld [vmem:[#allocation140_spill] sm:$0xff] }
 0x448   : > { %v1818_v44 = vsel %vm1799_vm12, %v1785_v27, %v1561_v57  ;;  %1851 = vst.msk [vmem:[%s3439_s28 + $0x98] sm:$0xff] %vm380_vm0, %v1819_v26  ;;  %v1724_v48 = vsel %vm1700_vm9, %v1691_v9, %v1174_v54  ;;  %v1723_v62 = vsel %vm1700_vm9, %v1690_v37, %v1173_v31  ;;  %v859_v18 = vmul.f32 0.125, %v4216_v29  ;;  %v4222_v27 = vld [vmem:[#allocation103_spill] sm:$0xff]  ;;  %v4224_v26 = vld [vmem:[#allocation137_spill] sm:$0xff] }
 0x449   : > { %1850 = vst.msk [vmem:[%s3439_s28 + $0x90] sm:$0xff] %vm380_vm0, %v1818_v44  ;;  %v858_v35 = vmul.f32 0.125, %v4217_v7  ;;  %v1757_v42 = vsel %vm1733_vm10, %v1724_v48, %v4218_v19  ;;  %v1756_v5 = vsel %vm1733_vm10, %v1723_v62, %v4219_v59  ;;  %v1497_v34 = vmul.f32 0.125, %v4220_v28  ;;  %v4237_v62 = vld [vmem:[#allocation78_spill] sm:$0xff]  ;;  %v4238_v29 = vld [vmem:[#allocation169_spill] sm:$0xff] }
 0x44a   : > { %v1570_v63 = vpop.xlane.xlu1 %1569  ;;  %v1496_v17 = vmul.f32 0.125, %v4221_v45  ;;  %v1790_v32 = vsel %vm1766_vm11, %v1757_v42, %v1495_v60  ;;  %v1789_v30 = vsel %vm1766_vm11, %v1756_v5, %v1494_v2  ;;  %v1693_v57 = vsel %vm1667_vm8, %v3661_v20, %v4222_v27  ;;  %v4226_v20 = vld [vmem:[#allocation12_spill] sm:$0xff]  ;;  %v4239_v7 = vld [vmem:[#allocation170_spill] sm:$0xff]  ;;  %v4240_v45 = vld [vmem:[#allocation107_spill] sm:$0xff] }
 0x44b   : > { %v1567_v52 = vpop.xlane.xlu0 %1566  ;;  %v1821_v46 = vsel %vm1799_vm12, %v1788_v43, %v1570_v63  ;;  %v1692_v47 = vsel %vm1667_vm8, %v3665_v41, %v4223_v53  ;;  %v1178_v44 = vmul.f32 0.125, %v4224_v26  ;;  %v1177_v54 = vmul.f32 0.125, %v4225_v25  ;;  %v4227_v41 = vld [vmem:[#allocation13_spill] sm:$0xff]  ;;  %v4245_v26 = vld [vmem:[#allocation15_spill] sm:$0xff] }
 0x44c   : > { %v1820_v58 = vsel %vm1799_vm12, %v1787_v8, %v1567_v52  ;;  %1853 = vst.msk [vmem:[%s3439_s28 + $0xa8] sm:$0xff] %vm380_vm0, %v1821_v46  ;;  %v1726_v1 = vsel %vm1700_vm9, %v1693_v57, %v1176_v10  ;;  %v1725_v31 = vsel %vm1700_vm9, %v1692_v47, %v1175_v38  ;;  %v1664_v22 = vsel %vm1634_vm7, %v4226_v20, %v859_v18  ;;  %v4232_v8 = vld [vmem:[#allocation105_spill] sm:$0xff]  ;;  %v4234_v46 = vld [vmem:[#allocation139_spill] sm:$0xff]  ;;  %v4243_v57 = vld [vmem:[#allocation142_spill] sm:$0xff] }
 0x44d   : > { %1852 = vst.msk [vmem:[%s3439_s28 + $0xa0] sm:$0xff] %vm380_vm0, %v1820_v58  ;;  %v1663_v21 = vsel %vm1634_vm7, %v4227_v41, %v858_v35  ;;  %v1759_v36 = vsel %vm1733_vm10, %v1726_v1, %v4228_v13  ;;  %v1758_v56 = vsel %vm1733_vm10, %v1725_v31, %v4229_v6  ;;  %v1499_v50 = vmul.f32 0.125, %v4230_v14  ;;  %v4242_v27 = vld [vmem:[#allocation141_spill] sm:$0xff]  ;;  %v4246_v25 = vld [vmem:[#allocation171_spill] sm:$0xff]  ;;  %v4247_v1 = vld [vmem:[#allocation172_spill] sm:$0xff] }
 0x44e   : > { %v1576_v51 = vpop.xlane.xlu1 %1575  ;;  %v1498_v60 = vmul.f32 0.125, %v4231_v0  ;;  %v1792_v39 = vsel %vm1766_vm11, %v1759_v36, %v1497_v34  ;;  %v1791_v43 = vsel %vm1766_vm11, %v1758_v56, %v1496_v17  ;;  %v1695_v52 = vsel %vm1667_vm8, %v1662_v4, %v4232_v8  ;;  %v4236_v4 = vld [vmem:[#allocation77_spill] sm:$0xff]  ;;  %v4249_v14 = vld [vmem:[#allocation110_spill] sm:$0xff] }
 0x44f   : > { %v1573_v11 = vpop.xlane.xlu0 %1572  ;;  %v1823_v23 = vsel %vm1799_vm12, %v1790_v32, %v1576_v51  ;;  %v1694_v9 = vsel %vm1667_vm8, %v1661_v12, %v4233_v15  ;;  %v1180_v58 = vmul.f32 0.125, %v4234_v46  ;;  %v1179_v10 = vmul.f32 0.125, %v4235_v40  ;;  %v4241_v32 = vld [vmem:[#allocation108_spill] sm:$0xff]  ;;  %v4248_v6 = vld [vmem:[#allocation109_spill] sm:$0xff] }
 0x450   : > { %v1822_v24 = vsel %vm1799_vm12, %v1789_v30, %v1573_v11  ;;  %1855 = vst.msk [vmem:[%s3439_s28 + $0xb8] sm:$0xff] %vm380_vm0, %v1823_v23  ;;  %v1728_v61 = vsel %vm1700_vm9, %v1695_v52, %v1178_v44  ;;  %v1727_v38 = vsel %vm1700_vm9, %v1694_v9, %v1177_v54  ;;  %v861_v48 = vmul.f32 0.125, %v4236_v4  ;;  %v4244_v23 = vld [vmem:[#allocation14_spill] sm:$0xff] }
 0x451   : > { %1854 = vst.msk [vmem:[%s3439_s28 + $0xb0] sm:$0xff] %vm380_vm0, %v1822_v24  ;;  %v860_v12 = vmul.f32 0.125, %v4237_v62  ;;  %v1761_v18 = vsel %vm1733_vm10, %v1728_v61, %v4238_v29  ;;  %v1760_v35 = vsel %vm1733_vm10, %v1727_v38, %v4239_v7  ;;  %v1501_v19 = vmul.f32 0.125, %v3377_v16 }
 0x452   : > { %v1582_v2 = vpop.xlane.xlu1 %1581  ;;  %v1500_v42 = vmul.f32 0.125, %v3379_v3  ;;  %v1794_v59 = vsel %vm1766_vm11, %v1761_v18, %v1499_v50  ;;  %v1793_v28 = vsel %vm1766_vm11, %v1760_v35, %v1498_v60  ;;  %v1697_v17 = vsel %vm1667_vm8, %v1664_v22, %v4240_v45 }
 0x453   : > { %v1579_v63 = vpop.xlane.xlu0 %1578  ;;  %v1825_v49 = vsel %vm1799_vm12, %v1792_v39, %v1582_v2  ;;  %v1696_v51 = vsel %vm1667_vm8, %v1663_v21, %v4241_v32  ;;  %v1182_v16 = vmul.f32 0.125, %v4242_v27  ;;  %v1181_v3 = vmul.f32 0.125, %v4243_v57  ;;  %v4250_v39 = vld [vmem:[#allocation173_spill] sm:$0xff] }
 0x454   : > { %v1824_v37 = vsel %vm1799_vm12, %v1791_v43, %v1579_v63  ;;  %1857 = vst.msk [vmem:[%s3439_s28 + $0xc8] sm:$0xff] %vm380_vm0, %v1825_v49  ;;  %v1730_v53 = vsel %vm1700_vm9, %v1697_v17, %v1180_v58  ;;  %v1729_v47 = vsel %vm1700_vm9, %v1696_v51, %v1179_v10  ;;  %v1666_v24 = vsel %vm1634_vm7, %v4244_v23, %v861_v48  ;;  %v4251_v43 = vld [vmem:[#allocation174_spill] sm:$0xff] }
 0x455   : > { %1856 = vst.msk [vmem:[%s3439_s28 + $0xc0] sm:$0xff] %vm380_vm0, %v1824_v37  ;;  %v1665_v44 = vsel %vm1634_vm7, %v4245_v26, %v860_v12  ;;  %v1763_v54 = vsel %vm1733_vm10, %v1730_v53, %v4246_v25  ;;  %v1762_v31 = vsel %vm1733_vm10, %v1729_v47, %v4247_v1  ;;  %v1503_v20 = vmul.f32 0.125, %v3408_v55 }
 0x456   : > { %v1588_v5 = vpop.xlane.xlu1 %1587  ;;  %v1502_v22 = vmul.f32 0.125, %v3410_v33  ;;  %v1796_v41 = vsel %vm1766_vm11, %v1763_v54, %v1501_v19  ;;  %v1795_v13 = vsel %vm1766_vm11, %v1762_v31, %v1500_v42  ;;  %v1699_v56 = vsel %vm1667_vm8, %v1666_v24, %v4248_v6 }
 0x457   : > { %v1585_v34 = vpop.xlane.xlu0 %1584  ;;  %v1827_v30 = vsel %vm1799_vm12, %v1794_v59, %v1588_v5  ;;  %v1698_v50 = vsel %vm1667_vm8, %v1665_v44, %v4249_v14  ;;  %v1732_v33 = vsel %vm1700_vm9, %v1699_v56, %v1182_v16 }
 0x458   : > { %v1826_v11 = vsel %vm1799_vm12, %v1793_v28, %v1585_v34  ;;  %1859 = vst.msk [vmem:[%s3439_s28 + $0xd8] sm:$0xff] %vm380_vm0, %v1827_v30  ;;  %v1731_v60 = vsel %vm1700_vm9, %v1698_v50, %v1181_v3  ;;  %v1765_v2 = vsel %vm1733_vm10, %v1732_v33, %v4250_v39 }
 0x459   : > { %1858 = vst.msk [vmem:[%s3439_s28 + $0xd0] sm:$0xff] %vm380_vm0, %v1826_v11  ;;  %v1764_v63 = vsel %vm1733_vm10, %v1731_v60, %v4251_v43  ;;  %v1798_v8 = vsel %vm1766_vm11, %v1765_v2, %v1503_v20 }
 0x45a   : > { %v1594_v21 = vpop.xlane.xlu1 %1593  ;;  %v1797_v15 = vsel %vm1766_vm11, %v1764_v63, %v1502_v22 }
 0x45b   : > { %v1591_v36 = vpop.xlane.xlu0 %1590  ;;  %v1829_v0 = vsel %vm1799_vm12, %v1796_v41, %v1594_v21 }
 0x45c   : > { %v1828_v55 = vsel %vm1799_vm12, %v1795_v13, %v1591_v36  ;;  %1861 = vst.msk [vmem:[%s3439_s28 + $0xe8] sm:$0xff] %vm380_vm0, %v1829_v0 }
 0x45d   : > { %1860 = vst.msk [vmem:[%s3439_s28 + $0xe0] sm:$0xff] %vm380_vm0, %v1828_v55 }
 0x45e   : > { %v1600_v52 = vpop.xlane.xlu1 %1599 }
 0x45f   : > { %v1597_v9 = vpop.xlane.xlu0 %1596  ;;  %v1831_v49 = vsel %vm1799_vm12, %v1798_v8, %v1600_v52 }
 0x460   : > { %v1830_v37 = vsel %vm1799_vm12, %v1797_v15, %v1597_v9  ;;  %1863 = vst.msk [vmem:[%s3439_s28 + $0xf8] sm:$0xff] %vm380_vm0, %v1831_v49 }
 0x461   : > { %1862 = vst.msk [vmem:[%s3439_s28 + $0xf0] sm:$0xff] %vm380_vm0, %v1830_v37 }
 0x462 PF: > { %s13_s12 = sadd.s32 1, %s1950_s12  }
 0x463   : > { %p10_p4 = scmp.ge.s32.totalorder %s13_s12, 4  }
 0x465   :  { %12 = sbr.rel (!%p10_p4) target bundleno = 1 (0x1), region = 62 }

// kernel: mrg_forward.20
= control target key start
LH: loop header
LB: loop body
LE: loop exit
PB: predicated region body
PF: predicated region fallthrough
CT: control target
= control target key end

     0   :  { %s1988_s21 = smov 0   ;;  %s2860_s0 = inlined_call_operand.vmem [shape: f32[512,32], index: 0, kind: input, shape index: {}]   ;;  %s2861_s1 = inlined_call_operand.vmem [shape: f32[512,32], index: 1, kind: input, shape index: {}]   ;;  %s2862_s2 = inlined_call_operand.vmem [shape: f32[512,4], index: 2, kind: input, shape index: {}]   ;;  %s2863_s3 = inlined_call_operand.vmem [shape: f32[1,32], index: 3, kind: input, shape index: {}]   ;;  %s2864_s4 = inlined_call_operand.vmem [shape: f32[1,32], index: 4, kind: input, shape index: {}]   ;;  %s2865_s5 = inlined_call_operand.vmem [shape: f32[32,32], index: 5, kind: input, shape index: {}]   ;;  %s2866_s6 = inlined_call_operand.vmem [shape: f32[512,32], index: 6, kind: output, shape index: {}]  }
   0x1 LB: > { %s1746_s22 = sadd.s32 4294967295, %s1947_s21   ;;  %p1750_p0 = scmp.ge.s32.totalorder %s1947_s21, 1  ;;  %s1947_s21 = sphi %s1988_s21, %s16_s21  }
   0x2   : > { %p235_p1 = scmp.lt.s32.totalorder %s1947_s21, 3 }
   0x4   : > { %p236_p2 = pnand %p1750_p0, %p235_p1 }
   0x6   : > { %239 = sbr.rel (%p236_p2) target bundleno = 693 (0x2b5), region = 44 }
   0xd   : > { %s1751_s23 = sshll.u32 %s1746_s22, 5  ;;  %v1949_v0 = vmov 0   ;;  %v2871_v33 = vmov 1   ;;  %v2869_v34 = vmov 2   ;;  %v2867_v35 = vmov 3   ;;  %v1308_v54 = vld [vmem:[%s2865_s5] sm:$0xff] }
   0xe   : > { %1912 = vset.pattern.permute.xlu1 %v1949_v0  ;;  %1911 = vset.pattern.permute.xlu0 %v1949_v0  ;;  %p276_p3 = scmp.lt.s32.totalorder %s1751_s23, 63  ;;  %v1309_v55 = vld [vmem:[%s2865_s5 + $0x8] sm:$0xff]  ;;  %v1310_v59 = vld [vmem:[%s2865_s5 + $0x10] sm:$0xff]  ;;  %v1311_v60 = vld [vmem:[%s2865_s5 + $0x18] sm:$0xff]  ;;  %vm1081_vm0 = vcmask 64512   ;;  %vm1114_vm2 = vcmask 130048  }
   0xf   : > { %v1887_v56 = vpack.c.bf16 %v1309_v55, %v1308_v54  ;;  %v1891_v61 = vpack.c.bf16 %v1311_v60, %v1310_v59  ;;  %vm1147_vm3 = vcmask 195584   ;;  %vm1312_vm4 = vcmask 261120  }
  0x10   : > { %s2948_s23 = smov (!%p276_p3, %s1751_s23), 63 }
  0x11   : > { %s1996_s24 = sshll.u32 %s2948_s23, 3  ;;  %1888 = vmatprep.subr.bf16.mxu0 %v1887_v56  ;;  %1895 = vmatprep.subr.bf16.mxu1 %v1887_v56 }
  0x12   : > { %s2002_s27 = scalar_lea.vmem %s2862_s2, %s1996_s24  ;;  %1890 = vmatpush3.bf16.msra.mxu0 %v1887_v56  ;;  %1897 = vmatpush3.bf16.msra.mxu1 %v1887_v56  ;;  %s2358_s14 = scalar_lea.vmem %s2860_s0, %s1996_s24 }
  0x13   : > { %v2005_v1 = vld [vmem:[%s2002_s27 + $0x10] sm:$0xff]  ;;  %v2008_v2 = vld [vmem:[%s2002_s27] sm:$0xff]  ;;  %v2013_v3 = vld [vmem:[%s2002_s27 + $0x18] sm:$0xff]  ;;  %1892 = vmatprep.subr.bf16.mxu0 %v1891_v61  ;;  %1896 = vmatprep.subr.bf16.mxu1 %v1891_v61  ;;  %s2401_s22 = scalar_lea.vmem %s2861_s1, %s1996_s24  ;;  %s2791_s28 = scalar_lea.vmem %s2866_s6, %s1996_s24 }
  0x14   : > { %549 = vperm.xlu1 %1912, %v2005_v1   ;;  %539 = vperm.xlu0 %1911, %v2008_v2   ;;  %v2016_v4 = vld [vmem:[%s2002_s27 + $0x8] sm:$0xff]  ;;  %v2024_v6 = vld [vmem:[%s2002_s27 + $0x20] sm:$0xff]  ;;  %v2029_v7 = vld [vmem:[%s2002_s27 + $0x38] sm:$0xff] }
  0x15   : > { %v2021_v5 = vld [vmem:[%s2002_s27 + $0x28] sm:$0xff]  ;;  %v2032_v8 = vld [vmem:[%s2002_s27 + $0x30] sm:$0xff]  ;;  %v2040_v10 = vld [vmem:[%s2002_s27 + $0x40] sm:$0xff] }
  0x16   : > { %v2037_v9 = vld [vmem:[%s2002_s27 + $0x48] sm:$0xff]  ;;  %v2045_v11 = vld [vmem:[%s2002_s27 + $0x58] sm:$0xff]  ;;  %v2048_v12 = vld [vmem:[%s2002_s27 + $0x50] sm:$0xff]  ;;  %1894 = vmatpush3.bf16.msra.mxu0 %v1891_v61  ;;  %1898 = vmatpush3.bf16.msra.mxu1 %v1891_v61 }
  0x17   : > { %v2053_v13 = vld [vmem:[%s2002_s27 + $0x68] sm:$0xff]  ;;  %v2056_v14 = vld [vmem:[%s2002_s27 + $0x60] sm:$0xff]  ;;  %v2061_v15 = vld [vmem:[%s2002_s27 + $0x78] sm:$0xff] }
  0x18   : > { %554 = vperm.xlu1 %1912, %v2013_v3   ;;  %544 = vperm.xlu0 %1911, %v2016_v4   ;;  %2878 = vst [vmem:[#allocation2_spill] sm:$0xff] %v2061_v15  ;;  %v2064_v16 = vld [vmem:[%s2002_s27 + $0x70] sm:$0xff]  ;;  %v2069_v17 = vld [vmem:[%s2002_s27 + $0x88] sm:$0xff]  ;;  %v2072_v18 = vld [vmem:[%s2002_s27 + $0x80] sm:$0xff] }
  0x19   : > { %2879 = vst [vmem:[#allocation3_spill] sm:$0xff] %v2064_v16  ;;  %v2077_v19 = vld [vmem:[%s2002_s27 + $0x98] sm:$0xff]  ;;  %v2080_v20 = vld [vmem:[%s2002_s27 + $0x90] sm:$0xff]  ;;  %v2085_v21 = vld [vmem:[%s2002_s27 + $0xa8] sm:$0xff] }
  0x1a   : > { %v2088_v22 = vld [vmem:[%s2002_s27 + $0xa0] sm:$0xff]  ;;  %v2093_v23 = vld [vmem:[%s2002_s27 + $0xb8] sm:$0xff]  ;;  %v2096_v24 = vld [vmem:[%s2002_s27 + $0xb0] sm:$0xff] }
  0x1b   : > { %v2101_v25 = vld [vmem:[%s2002_s27 + $0xc8] sm:$0xff]  ;;  %v2104_v26 = vld [vmem:[%s2002_s27 + $0xc0] sm:$0xff]  ;;  %v2109_v27 = vld [vmem:[%s2002_s27 + $0xd8] sm:$0xff] }
  0x1c   : > { %564 = vperm.xlu1 %1912, %v2021_v5   ;;  %559 = vperm.xlu0 %1911, %v2024_v6   ;;  %v2112_v28 = vld [vmem:[%s2002_s27 + $0xd0] sm:$0xff]  ;;  %v2117_v29 = vld [vmem:[%s2002_s27 + $0xe8] sm:$0xff]  ;;  %v2120_v30 = vld [vmem:[%s2002_s27 + $0xe0] sm:$0xff] }
  0x1d   : > { %v2125_v31 = vld [vmem:[%s2002_s27 + $0xf8] sm:$0xff]  ;;  %v2128_v32 = vld [vmem:[%s2002_s27 + $0xf0] sm:$0xff] }
  0x1e   : > { %2880 = vst [vmem:[#allocation4_spill] sm:$0xff] %v2125_v31 }
  0x20   : > { %574 = vperm.xlu1 %1912, %v2029_v7   ;;  %569 = vperm.xlu0 %1911, %v2032_v8  }
  0x24   : > { %584 = vperm.xlu1 %1912, %v2037_v9   ;;  %579 = vperm.xlu0 %1911, %v2040_v10  }
  0x28   : > { %594 = vperm.xlu1 %1912, %v2045_v11   ;;  %589 = vperm.xlu0 %1911, %v2048_v12  }
  0x2c   : > { %604 = vperm.xlu1 %1912, %v2053_v13   ;;  %599 = vperm.xlu0 %1911, %v2056_v14  }
  0x30   : > { %614 = vperm.xlu1 %1912, %v2061_v15   ;;  %609 = vperm.xlu0 %1911, %v2064_v16  }
  0x34   : > { %624 = vperm.xlu1 %1912, %v2069_v17   ;;  %619 = vperm.xlu0 %1911, %v2072_v18  }
  0x38   : > { %634 = vperm.xlu1 %1912, %v2077_v19   ;;  %629 = vperm.xlu0 %1911, %v2080_v20  }
  0x3c   : > { %644 = vperm.xlu1 %1912, %v2085_v21   ;;  %639 = vperm.xlu0 %1911, %v2088_v22  }
  0x40   : > { %654 = vperm.xlu1 %1912, %v2093_v23   ;;  %649 = vperm.xlu0 %1911, %v2096_v24  }
  0x44   : > { %664 = vperm.xlu1 %1912, %v2101_v25   ;;  %659 = vperm.xlu0 %1911, %v2104_v26  }
  0x48   : > { %674 = vperm.xlu1 %1912, %v2109_v27   ;;  %669 = vperm.xlu0 %1911, %v2112_v28  }
  0x4c   : > { %684 = vperm.xlu1 %1912, %v2117_v29   ;;  %679 = vperm.xlu0 %1911, %v2120_v30  }
  0x50   : > { %694 = vperm.xlu1 %1912, %v2125_v31   ;;  %689 = vperm.xlu0 %1911, %v2128_v32  }
  0x54   : > { %1914 = vset.pattern.permute.xlu1 %v2871_v33  ;;  %1913 = vset.pattern.permute.xlu0 %v2871_v33 }
  0x55   : > { %702 = vperm.xlu1 %1914, %v2016_v4   ;;  %698 = vperm.xlu0 %1913, %v2008_v2  }
  0x59   : > { %706 = vperm.xlu1 %1914, %v2005_v1   ;;  %710 = vperm.xlu0 %1913, %v2013_v3  }
  0x5d   : > { %714 = vperm.xlu1 %1914, %v2024_v6   ;;  %718 = vperm.xlu0 %1913, %v2021_v5  }
  0x61   : > { %722 = vperm.xlu1 %1914, %v2032_v8   ;;  %726 = vperm.xlu0 %1913, %v2029_v7  }
  0x65   : > { %730 = vperm.xlu1 %1914, %v2040_v10   ;;  %734 = vperm.xlu0 %1913, %v2037_v9  }
  0x69   : > { %738 = vperm.xlu1 %1914, %v2048_v12   ;;  %742 = vperm.xlu0 %1913, %v2045_v11  }
  0x6d   : > { %746 = vperm.xlu1 %1914, %v2056_v14   ;;  %750 = vperm.xlu0 %1913, %v2053_v13  }
  0x71   : > { %754 = vperm.xlu1 %1914, %v2064_v16   ;;  %758 = vperm.xlu0 %1913, %v2061_v15  }
  0x75   : > { %762 = vperm.xlu1 %1914, %v2072_v18   ;;  %766 = vperm.xlu0 %1913, %v2069_v17  }
  0x79   : > { %1915 = vset.pattern.permute.xlu1 %v2869_v34  ;;  %774 = vperm.xlu0 %1913, %v2077_v19  }
  0x7a   : > { %826 = vperm.xlu1 %1915, %v2008_v2  }
  0x7d   : > { %778 = vperm.xlu0 %1913, %v2088_v22  }
  0x7e   : > { %830 = vperm.xlu1 %1915, %v2016_v4  }
  0x81   : > { %790 = vperm.xlu0 %1913, %v2093_v23  }
  0x82   : > { %894 = vperm.xlu1 %1915, %v2069_v17  }
  0x85   : > { %794 = vperm.xlu0 %1913, %v2104_v26  }
  0x86   : > { %1916 = vset.pattern.permute.xlu1 %v2867_v35 }
  0x87   : > { %1018 = vperm.xlu1 %1916, %v2072_v18  }
  0x89   : > { %806 = vperm.xlu0 %1913, %v2109_v27  }
  0x8b   : > { %958 = vperm.xlu1 %1916, %v2016_v4  }
  0x8d   : > { %810 = vperm.xlu0 %1913, %v2120_v30  }
  0x8f   : > { %1917 = vset.pattern.permute.xlu1 %v2871_v33 }
  0x90   : > { %770 = vperm.xlu1 %1917, %v2080_v20  }
  0x91   : > { %822 = vperm.xlu0 %1913, %v2125_v31   ;;  %v319_v31 = vld [vmem:[%s2358_s14 + $0xa0] sm:$0xff] }
  0x93   : > { %v2168_v36 = vpop.permute.xlu1 %549  ;;  %v2170_v37 = vpop.permute.xlu0 %539 }
  0x94   : > { %1918 = vset.pattern.permute.xlu1 %v2869_v34 }
  0x95   : > { %834 = vperm.xlu1 %1918, %v2005_v1   ;;  %1936 = vset.pattern.permute.xlu0 %v2869_v34 }
  0x96   : > { %890 = vperm.xlu0 %1936, %v2072_v18  }
  0x97   : > { %v2176_v38 = vpop.permute.xlu1 %554  ;;  %v2178_v39 = vpop.permute.xlu0 %544 }
  0x99   : > { %898 = vperm.xlu1 %1918, %v2080_v20  }
  0x9a   : > { %838 = vperm.xlu0 %1936, %v2013_v3  }
  0x9b   : > { %v2182_v40 = vpop.permute.xlu1 %564  ;;  %v2184_v41 = vpop.permute.xlu0 %559 }
  0x9d   : > { %902 = vperm.xlu1 %1918, %v2077_v19  }
  0x9e   : > { %906 = vperm.xlu0 %1936, %v2088_v22  }
  0x9f   : > { %v2188_v42 = vpop.permute.xlu1 %574  ;;  %v2190_v43 = vpop.permute.xlu0 %569 }
  0xa0   : > { %2881 = vst [vmem:[#allocation5_spill] sm:$0xff] %v2188_v42  ;;  %2882 = vst [vmem:[#allocation6_spill] sm:$0xff] %v2190_v43  ;;  %v299_v42 = vld [vmem:[%s2358_s14] sm:$0xff]  ;;  %v316_v43 = vld [vmem:[%s2358_s14 + $0x88] sm:$0xff] }
  0xa1   : > { %1919 = vset.pattern.permute.xlu1 %v2867_v35 }
  0xa2   : > { %962 = vperm.xlu1 %1919, %v2005_v1   ;;  %854 = vperm.xlu0 %1936, %v2029_v7  }
  0xa3   : > { %v2195_v44 = vpop.permute.xlu1 %584  ;;  %v2197_v45 = vpop.permute.xlu0 %579 }
  0xa4   : > { %2883 = vst [vmem:[#allocation7_spill] sm:$0xff] %v2195_v44  ;;  %2884 = vst [vmem:[#allocation8_spill] sm:$0xff] %v2197_v45 }
  0xa6   : > { %966 = vperm.xlu1 %1919, %v2013_v3   ;;  %922 = vperm.xlu0 %1936, %v2104_v26  }
  0xa7   : > { %v2201_v46 = vpop.permute.xlu1 %594  ;;  %v2203_v47 = vpop.permute.xlu0 %589 }
  0xa8   : > { %2885 = vst [vmem:[#allocation9_spill] sm:$0xff] %v2203_v47 }
  0xaa   : > { %1030 = vperm.xlu1 %1919, %v2077_v19   ;;  %870 = vperm.xlu0 %1936, %v2045_v11  }
  0xab   : > { %v2207_v48 = vpop.permute.xlu1 %604  ;;  %v2209_v49 = vpop.permute.xlu0 %599 }
  0xac   : > { %2886 = vst [vmem:[#allocation10_spill] sm:$0xff] %v2207_v48  ;;  %2887 = vst [vmem:[#allocation11_spill] sm:$0xff] %v2209_v49 }
  0xae   : > { %1920 = vset.pattern.permute.xlu1 %v2871_v33  ;;  %938 = vperm.xlu0 %1936, %v2120_v30  }
  0xaf   : > { %v2213_v50 = vpop.permute.xlu1 %614  ;;  %782 = vperm.xlu1 %1920, %v2085_v21   ;;  %v2216_v51 = vpop.permute.xlu0 %609 }
  0xb0   : > { %2888 = vst [vmem:[#allocation12_spill] sm:$0xff] %v2216_v51 }
  0xb2   : > { %886 = vperm.xlu0 %1936, %v2061_v15  }
  0xb3   : > { %v2219_v52 = vpop.permute.xlu1 %624  ;;  %1921 = vset.pattern.permute.xlu1 %v2869_v34  ;;  %v2222_v53 = vpop.permute.xlu0 %619 }
  0xb4   : > { %842 = vperm.xlu1 %1921, %v2024_v6  }
  0xb6   : > { %1938 = vset.pattern.permute.xlu0 %v2867_v35 }
  0xb7   : > { %v2232_v57 = vpop.permute.xlu1 %634  ;;  %954 = vperm.xlu0 %1938, %v2008_v2   ;;  %v2235_v58 = vpop.permute.xlu0 %629 }
  0xb8   : > { %846 = vperm.xlu1 %1921, %v2021_v5  }
  0xbb   : > { %v2244_v62 = vpop.permute.xlu1 %644  ;;  %1022 = vperm.xlu0 %1938, %v2069_v17   ;;  %v2247_v63 = vpop.permute.xlu0 %639 }
  0xbc   : > { %2889 = vst [vmem:[#allocation13_spill] sm:$0xff] %v2244_v62  ;;  %910 = vperm.xlu1 %1921, %v2085_v21  }
  0xbf   : > { %v2250_v0 = vpop.permute.xlu1 %654  ;;  %1026 = vperm.xlu0 %1938, %v2080_v20   ;;  %v2253_v1 = vpop.permute.xlu0 %649 }
  0xc0   : > { %2890 = vst [vmem:[#allocation14_spill] sm:$0xff] %v2250_v0  ;;  %2891 = vst [vmem:[#allocation15_spill] sm:$0xff] %v2253_v1  ;;  %1922 = vset.pattern.permute.xlu1 %v2867_v35 }
  0xc1   : > { %1034 = vperm.xlu1 %1922, %v2088_v22  }
  0xc3   : > { %v2257_v2 = vpop.permute.xlu1 %664  ;;  %970 = vperm.xlu0 %1938, %v2024_v6   ;;  %v2260_v3 = vpop.permute.xlu0 %659 }
  0xc4   : > { %2892 = vst [vmem:[#allocation16_spill] sm:$0xff] %v2257_v2 }
  0xc5   : > { %974 = vperm.xlu1 %1922, %v2021_v5  }
  0xc7   : > { %v2263_v4 = vpop.permute.xlu1 %674  ;;  %1038 = vperm.xlu0 %1938, %v2085_v21   ;;  %v2266_v17 = vpop.permute.xlu0 %669 }
  0xc8   : > { %2893 = vst [vmem:[#allocation17_spill] sm:$0xff] %v2263_v4  ;;  %2894 = vst [vmem:[#allocation18_spill] sm:$0xff] %v2266_v17  ;;  %v2909_v4 = vmov 1  }
  0xc9   : > { %1923 = vset.pattern.permute.xlu1 %v2871_v33 }
  0xca   : > { %786 = vperm.xlu1 %1923, %v2096_v24  }
  0xcb   : > { %v2270_v18 = vpop.permute.xlu1 %684  ;;  %v2272_v19 = vpop.permute.xlu0 %679  ;;  %1042 = vperm.xlu0 %1938, %v2096_v24  }
  0xcc   : > { %2895 = vst [vmem:[#allocation19_spill] sm:$0xff] %v2270_v18 }
  0xce   : > { %1924 = vset.pattern.permute.xlu1 %v2869_v34 }
  0xcf   : > { %v2276_v6 = vpop.permute.xlu1 %694  ;;  %850 = vperm.xlu1 %1924, %v2032_v8   ;;  %v2279_v5 = vpop.permute.xlu0 %689  ;;  %986 = vperm.xlu0 %1938, %v2040_v10  }
  0xd0   : > { %2896 = vst [vmem:[#allocation20_spill] sm:$0xff] %v2276_v6  ;;  %2897 = vst [vmem:[#allocation21_spill] sm:$0xff] %v2279_v5  ;;  %v2905_v6 = vmov 2  }
  0xd3   : > { %914 = vperm.xlu1 %1924, %v2096_v24   ;;  %1054 = vperm.xlu0 %1938, %v2101_v25  }
  0xd4   : > { %v2284_v20 = vpop.permute.xlu1 %702  ;;  %v2286_v21 = vpop.permute.xlu0 %698 }
  0xd7   : > { %918 = vperm.xlu1 %1924, %v2093_v23   ;;  %1058 = vperm.xlu0 %1938, %v2112_v28  }
  0xd8   : > { %v2290_v22 = vpop.permute.xlu1 %706  ;;  %v2292_v54 = vpop.permute.xlu0 %710 }
  0xdb   : > { %1925 = vset.pattern.permute.xlu1 %v2867_v35  ;;  %1002 = vperm.xlu0 %1938, %v2056_v14  }
  0xdc   : > { %v2296_v55 = vpop.permute.xlu1 %714  ;;  %978 = vperm.xlu1 %1925, %v2032_v8   ;;  %v2299_v24 = vpop.permute.xlu0 %718 }
  0xdf   : > { %1070 = vperm.xlu0 %1938, %v2117_v29  }
  0xe0   : > { %v2302_v56 = vpop.permute.xlu1 %722  ;;  %982 = vperm.xlu1 %1925, %v2029_v7   ;;  %v2305_v59 = vpop.permute.xlu0 %726 }
  0xe1   : > { %2898 = vst [vmem:[#allocation22_spill] sm:$0xff] %v2302_v56  ;;  %2899 = vst [vmem:[#allocation23_spill] sm:$0xff] %v2305_v59  ;;  %v317_v56 = vld [vmem:[%s2358_s14 + $0x90] sm:$0xff] }
  0xe3   : > { %1074 = vperm.xlu0 %1938, %v2128_v32  }
  0xe4   : > { %v2308_v60 = vpop.permute.xlu1 %730  ;;  %1046 = vperm.xlu1 %1925, %v2093_v23   ;;  %v2311_v61 = vpop.permute.xlu0 %734 }
  0xe5   : > { %2900 = vst [vmem:[#allocation24_spill] sm:$0xff] %v2308_v60  ;;  %2901 = vst [vmem:[#allocation25_spill] sm:$0xff] %v2311_v61 }
  0xe8   : > { %v2313_v35 = vpop.permute.xlu1 %738  ;;  %1926 = vset.pattern.permute.xlu1 %v2871_v33  ;;  %v2316_v8 = vpop.permute.xlu0 %742 }
  0xe9   : > { %2902 = vst [vmem:[#allocation26_spill] sm:$0xff] %v2313_v35  ;;  %798 = vperm.xlu1 %1926, %v2101_v25  }
  0xec   : > { %v2319_v34 = vpop.permute.xlu1 %746  ;;  %v2321_v7 = vpop.permute.xlu0 %750 }
  0xed   : > { %2903 = vst [vmem:[#allocation27_spill] sm:$0xff] %v2319_v34  ;;  %2904 = vst [vmem:[#allocation28_spill] sm:$0xff] %v2321_v7  ;;  %1927 = vset.pattern.permute.xlu1 %v2905_v6  ;;  %v2907_v7 = vmov 3  }
  0xee   : > { %858 = vperm.xlu1 %1927, %v2040_v10  }
  0xf0   : > { %v2325_v51 = vpop.permute.xlu1 %754  ;;  %v2327_v23 = vpop.permute.xlu0 %758 }
  0xf1   : > { %2906 = vst [vmem:[#allocation29_spill] sm:$0xff] %v2325_v51 }
  0xf2   : > { %862 = vperm.xlu1 %1927, %v2037_v9  }
  0xf4   : > { %v763_v5 = vpop.permute.xlu1 %762  ;;  %v2330_v33 = vpop.permute.xlu0 %766 }
  0xf6   : > { %926 = vperm.xlu1 %1927, %v2101_v25  }
  0xf8   : > { %v2333_v48 = vpop.permute.xlu0 %774 }
  0xf9   : > { %v2335_v18 = vpop.permute.xlu1 %826 }
  0xfa   : > { %1928 = vset.pattern.permute.xlu1 %v2907_v7 }
  0xfb   : > { %1050 = vperm.xlu1 %1928, %v2104_v26  }
  0xfc   : > { %v779_v10 = vpop.permute.xlu0 %778 }
  0xfd   : > { %v2341_v51 = vsel %vm1081_vm0, %v2247_v63, %v779_v10  ;;  %v2343_v49 = vpop.permute.xlu1 %830  ;;  %v315_v63 = vld [vmem:[%s2358_s14 + $0x80] sm:$0xff] }
  0xfe   : > { %v2368_v10 = vld [vmem:[%s2863_s3] ss:$0 sm:$0xff] }
  0xff   : > { %990 = vperm.xlu1 %1928, %v2037_v9   ;;  %v356_v1 = vmul.f32 %v2368_v10, %v317_v56 }
 0x100   : > { %v2346_v25 = vpop.permute.xlu0 %790 }
 0x101   : > { %2908 = vst [vmem:[#allocation30_spill] sm:$0xff] %v2346_v25  ;;  %v2348_v34 = vpop.permute.xlu1 %894  ;;  %v1260_v25 = vld [vmem:[%s2401_s22 + $0x80] sm:$0xff] }
 0x103   : > { %1929 = vset.pattern.permute.xlu1 %v2909_v4 }
 0x104   : > { %802 = vperm.xlu1 %1929, %v2112_v28   ;;  %v795_v47 = vpop.permute.xlu0 %794 }
 0x105   : > { %v1106_v26 = vsel %vm1081_vm0, %v2260_v3, %v795_v47  ;;  %v354_v3 = vmul.f32 %v2368_v10, %v315_v63 }
 0x106   : > { %v1019_v35 = vpop.permute.xlu1 %1018 }
 0x108   : > { %1930 = vset.pattern.permute.xlu1 %v2905_v6  ;;  %v2361_v9 = vpop.permute.xlu0 %806 }
 0x109   : > { %2910 = vst [vmem:[#allocation31_spill] sm:$0xff] %v2361_v9  ;;  %866 = vperm.xlu1 %1930, %v2048_v12   ;;  %v2381_v9 = vld [vmem:[%s2864_s4] ss:$0 sm:$0xff] }
 0x10a   : > { %v2370_v47 = vpop.permute.xlu1 %958  ;;  %v393_v2 = vadd.f32 %v2381_v9, %v354_v3 }
 0x10c   : > { %v811_v17 = vpop.permute.xlu0 %810  ;;  %v457_v63 = vmul.f32 0.1, %v393_v2  ;;  %vm425_vm1 = vcmp.ge.f32.partialorder %v393_v2, 0.0 }
 0x10d   : > { %v2375_v44 = vsel %vm1081_vm0, %v2272_v19, %v811_v17  ;;  %930 = vperm.xlu1 %1930, %v2112_v28   ;;  %v1098_v28 = vsel %vm1081_vm0, %v2222_v53, %v763_v5 }
 0x10f   : > { %v2383_v61 = vpop.permute.xlu1 %770 }
 0x110   : > { %v2386_v45 = vpop.permute.xlu0 %822 }
 0x111   : > { %2911 = vst [vmem:[#allocation32_spill] sm:$0xff] %v2386_v45  ;;  %934 = vperm.xlu1 %1930, %v2109_v27   ;;  %v489_v45 = vsel %vm425_vm1, %v393_v2, %v457_v63 }
 0x114   : > { %v2389_v60 = vpop.permute.xlu1 %834 }
 0x115   : > { %1931 = vset.pattern.permute.xlu1 %v2907_v7  ;;  %v891_v17 = vpop.permute.xlu0 %890 }
 0x116   : > { %v1131_v19 = vsel %vm1114_vm2, %v1098_v28, %v891_v17  ;;  %994 = vperm.xlu1 %1931, %v2048_v12   ;;  %v300_v28 = vld [vmem:[%s2358_s14 + $0x8] sm:$0xff]  ;;  %v301_v17 = vld [vmem:[%s2358_s14 + $0x10] sm:$0xff] }
 0x117   : > { %v1164_v3 = vsel %vm1147_vm3, %v1131_v19, %v1019_v35  ;;  %v339_v19 = vmul.f32 %v2368_v10, %v300_v28 }
 0x118   : > { %v1196_v53 = vsub.f32 1.0, %v1164_v3  ;;  %v2403_v5 = vpop.permute.xlu1 %898 }
 0x119   : > { %v2405_v0 = vpop.permute.xlu0 %838 }
 0x11a   : > { %998 = vperm.xlu1 %1931, %v2045_v11   ;;  %v1228_v12 = vmul.f32 %v1196_v53, %v489_v45  ;;  %v340_v45 = vmul.f32 %v2368_v10, %v301_v17  ;;  %v318_v53 = vld [vmem:[%s2358_s14 + $0x98] sm:$0xff] }
 0x11c   : > { %v2409_v35 = vpop.permute.xlu1 %902  ;;  %v1292_v2 = vadd.f32 %v1260_v25, %v1228_v12  ;;  %v302_v25 = vld [vmem:[%s2358_s14 + $0x18] sm:$0xff]  ;;  %v379_v28 = vadd.f32 %v2381_v9, %v340_v45  ;;  %v1093_v45 = vsel %vm1081_vm0, %v2201_v46, %v2316_v8 }
 0x11d   : > { %v2411_v63 = vpop.permute.xlu0 %906  ;;  %v341_v17 = vmul.f32 %v2368_v10, %v302_v25 }
 0x11e   : > { %1062 = vperm.xlu1 %1931, %v2109_v27   ;;  %1863 = vmatprep.mubr.msk.f32.mxu1 %vm1312_vm4, %v1292_v2  ;;  %v378_v27 = vadd.f32 %v2381_v9, %v339_v19  ;;  %v338_v19 = vmul.f32 %v2368_v10, %v299_v42  ;;  %vm411_vm6 = vcmp.ge.f32.partialorder %v379_v28, 0.0 }
 0x120   : > { %vm410_vm5 = vcmp.ge.f32.partialorder %v378_v27, 0.0  ;;  %v442_v25 = vmul.f32 0.1, %v378_v27  ;;  %v377_v46 = vadd.f32 %v2381_v9, %v338_v19  ;;  %v1083_v19 = vsel %vm1081_vm0, %v2178_v39, %v2284_v20 }
 0x121   : > { %v963_v3 = vpop.permute.xlu1 %962  ;;  %v2418_v11 = vpop.permute.xlu0 %854 }
 0x122   : > { %2912 = vst [vmem:[#allocation33_spill] sm:$0xff] %v2418_v11  ;;  %1932 = vset.pattern.permute.xlu1 %v2909_v4  ;;  %v357_v11 = vmul.f32 %v2368_v10, %v318_v53  ;;  %v355_v53 = vmul.f32 %v2368_v10, %v316_v43  ;;  %v474_v62 = vsel %vm410_vm5, %v378_v27, %v442_v25  ;;  %v303_v27 = vld [vmem:[%s2358_s14 + $0x20] sm:$0xff]  ;;  %vm409_vm9 = vcmp.ge.f32.partialorder %v377_v46, 0.0 }
 0x123   : > { %814 = vperm.xlu1 %1932, %v2117_v29   ;;  %v1097_v25 = vsel %vm1081_vm0, %v2213_v50, %v2327_v23  ;;  %v342_v23 = vmul.f32 %v2368_v10, %v303_v27 }
 0x124   : > { %v396_v42 = vadd.f32 %v2381_v9, %v357_v11 }
 0x125   : > { %v2426_v12 = vpop.permute.xlu1 %966  ;;  %v923_v2 = vpop.permute.xlu0 %922 }
 0x126   : > { %v2431_v59 = vsel %vm1114_vm2, %v1106_v26, %v923_v2  ;;  %v460_v56 = vmul.f32 0.1, %v396_v42  ;;  %vm428_vm8 = vcmp.ge.f32.partialorder %v396_v42, 0.0 }
 0x127   : > { %2913 = vst [vmem:[#allocation34_spill] sm:$0xff] %v2431_v59  ;;  %1933 = vset.pattern.permute.xlu1 %v2905_v6  ;;  %v443_v59 = vmul.f32 0.1, %v379_v28 }
 0x128   : > { %874 = vperm.xlu1 %1933, %v2056_v14   ;;  %v380_v14 = vadd.f32 %v2381_v9, %v341_v17  ;;  %v394_v17 = vadd.f32 %v2381_v9, %v355_v53 }
 0x129   : > { %v2443_v26 = vpop.permute.xlu1 %1030  ;;  %v871_v2 = vpop.permute.xlu0 %870  ;;  %v475_v16 = vsel %vm411_vm6, %v379_v28, %v443_v59  ;;  %v441_v59 = vmul.f32 0.1, %v377_v46  ;;  %v1084_v28 = vsel %vm1081_vm0, %v2168_v36, %v2290_v22  ;;  %v1082_v36 = vsel %vm1081_vm0, %v2170_v37, %v2286_v21 }
 0x12a   : > { %v2446_v15 = vsel %vm1114_vm2, %v1093_v45, %v871_v2  ;;  %vm412_vm7 = vcmp.ge.f32.partialorder %v380_v14, 0.0  ;;  %v444_v11 = vmul.f32 0.1, %v380_v14  ;;  %v395_v2 = vadd.f32 %v2381_v9, %v356_v1 }
 0x12b   : > { %v1116_v1 = vsel %vm1114_vm2, %v1083_v19, %v2343_v49  ;;  %v458_v20 = vmul.f32 0.1, %v394_v17  ;;  %vm426_vm10 = vcmp.ge.f32.partialorder %v394_v17, 0.0  ;;  %v304_v19 = vld [vmem:[%s2358_s14 + $0x28] sm:$0xff] }
 0x12c   : > { %878 = vperm.xlu1 %1933, %v2053_v13   ;;  %v459_v22 = vmul.f32 0.1, %v395_v2  ;;  %vm427_vm11 = vcmp.ge.f32.partialorder %v395_v2, 0.0  ;;  %v476_v21 = vsel %vm412_vm7, %v380_v14, %v444_v11  ;;  %v381_v11 = vadd.f32 %v2381_v9, %v342_v23 }
 0x12d   : > { %v939_v8 = vpop.permute.xlu0 %938 }
 0x12e   : > { %v2457_v45 = vsel %vm1114_vm2, %v2375_v44, %v939_v8  ;;  %v2459_v43 = vpop.permute.xlu1 %782  ;;  %v358_v44 = vmul.f32 %v2368_v10, %v319_v31  ;;  %v1117_v31 = vsel %vm1114_vm2, %v1084_v28, %v2389_v60  ;;  %v1085_v60 = vsel %vm1081_vm0, %v2176_v38, %v2292_v54 }
 0x12f   : > { %v1150_v50 = vsel %vm1147_vm3, %v1117_v31, %v963_v3  ;;  %v1118_v37 = vsel %vm1114_vm2, %v1085_v60, %v2405_v0  ;;  %v2500_v3 = vsel %vm428_vm8, %v396_v42, %v460_v56  ;;  %v1115_v38 = vsel %vm1114_vm2, %v1082_v36, %v2335_v18 }
 0x130   : > { %942 = vperm.xlu1 %1933, %v2117_v29   ;;  %v1149_v29 = vsel %vm1147_vm3, %v1116_v1, %v2370_v47  ;;  %v397_v47 = vadd.f32 %v2381_v9, %v358_v44  ;;  %v1182_v54 = vsub.f32 1.0, %v1150_v50  ;;  %v1151_v44 = vsel %vm1147_vm3, %v1118_v37, %v2426_v12 }
 0x131   : > { %v887_v53 = vpop.permute.xlu0 %886  ;;  %v1181_v8 = vsub.f32 1.0, %v1149_v29  ;;  %v473_v28 = vsel %vm409_vm9, %v377_v46, %v441_v59  ;;  %v491_v42 = vsel %vm427_vm11, %v395_v2, %v459_v22  ;;  %v1101_v18 = vsel %vm1081_vm0, %v2232_v57, %v2333_v48  ;;  %v320_v59 = vld [vmem:[%s2358_s14 + $0xa8] sm:$0xff] }
 0x132   : > { %v2482_v39 = vsel %vm1114_vm2, %v1097_v25, %v887_v53  ;;  %v461_v56 = vmul.f32 0.1, %v397_v47  ;;  %v343_v46 = vmul.f32 %v2368_v10, %v304_v19  ;;  %v1099_v25 = vsel %vm1081_vm0, %v2219_v52, %v2330_v33  ;;  %v1244_v53 = vld [vmem:[%s2401_s22] sm:$0xff]  ;;  %v1245_v57 = vld [vmem:[%s2401_s22 + $0x8] sm:$0xff]  ;;  %v1246_v33 = vld [vmem:[%s2401_s22 + $0x10] sm:$0xff] }
 0x133   : > { %v2488_v49 = vpop.permute.xlu1 %842  ;;  %v1213_v1 = vmul.f32 %v1181_v8, %v474_v62  ;;  %v1183_v2 = vsub.f32 1.0, %v1151_v44  ;;  %v1132_v48 = vsel %vm1114_vm2, %v1099_v25, %v2348_v34  ;;  %v1214_v29 = vmul.f32 %v1182_v54, %v475_v16  ;;  %v1261_v8 = vld [vmem:[%s2401_s22 + $0x88] sm:$0xff] }
 0x134   : > { %1934 = vset.pattern.permute.xlu1 %v2907_v7  ;;  %vm429_vm12 = vcmp.ge.f32.partialorder %v397_v47, 0.0  ;;  %vm413_vm13 = vcmp.ge.f32.partialorder %v381_v11, 0.0  ;;  %v382_v16 = vadd.f32 %v2381_v9, %v343_v46  ;;  %v1263_v46 = vld [vmem:[%s2401_s22 + $0x98] sm:$0xff] }
 0x135   : > { %1066 = vperm.xlu1 %1934, %v2120_v30   ;;  %v490_v30 = vsel %vm426_vm10, %v394_v17, %v458_v20  ;;  %v1134_v17 = vsel %vm1114_vm2, %v1101_v18, %v2409_v35  ;;  %v359_v35 = vmul.f32 %v2368_v10, %v320_v59  ;;  %v1277_v22 = vadd.f32 %v1245_v57, %v1213_v1  ;;  %v2914_v1 = vld [vmem:[#allocation3_spill] sm:$0xff]  ;;  %v1248_v57 = vld [vmem:[%s2401_s22 + $0x20] sm:$0xff] }
 0x136   : > { %v955_v27 = vpop.permute.xlu0 %954  ;;  %v1167_v31 = vsel %vm1147_vm3, %v1134_v17, %v2443_v26  ;;  %v1100_v26 = vsel %vm1081_vm0, %v2235_v58, %v2383_v61  ;;  %v1215_v23 = vmul.f32 %v1183_v2, %v476_v21  ;;  %v1278_v19 = vadd.f32 %v1246_v33, %v1214_v29 }
 0x137   : > { %v1148_v0 = vsel %vm1147_vm3, %v1115_v38, %v955_v27  ;;  %v2510_v14 = vpop.permute.xlu1 %846  ;;  %v1199_v60 = vsub.f32 1.0, %v1167_v31  ;;  %v1133_v37 = vsel %vm1114_vm2, %v1100_v26, %v2403_v5  ;;  %v1247_v38 = vld [vmem:[%s2401_s22 + $0x18] sm:$0xff]  ;;  %v493_v58 = vsel %vm429_vm12, %v397_v47, %v461_v56  ;;  %v1265_v26 = vld [vmem:[%s2401_s22 + $0xa8] sm:$0xff] }
 0x138   : > { %v1180_v12 = vsub.f32 1.0, %v1148_v0  ;;  %v398_v61 = vadd.f32 %v2381_v9, %v359_v35  ;;  %v1135_v5 = vsel %vm1114_vm2, %v2341_v51, %v2411_v63  ;;  %v1086_v18 = vsel %vm1081_vm0, %v2184_v41, %v2296_v55  ;;  %v1264_v55 = vld [vmem:[%s2401_s22 + $0xa0] sm:$0xff]  ;;  %v1249_v35 = vld [vmem:[%s2401_s22 + $0x28] sm:$0xff] }
 0x139   : > { %1006 = vperm.xlu1 %1934, %v2053_v13   ;;  %v445_v13 = vmul.f32 0.1, %v381_v11  ;;  %v1279_v47 = vadd.f32 %v1247_v38, %v1215_v23  ;;  %v1119_v51 = vsel %vm1114_vm2, %v1086_v18, %v2488_v49  ;;  %vm414_vm14 = vcmp.ge.f32.partialorder %v382_v16, 0.0  ;;  %v305_v38 = vld [vmem:[%s2358_s14 + $0x30] sm:$0xff] }
 0x13a   : > { %v1023_v20 = vpop.permute.xlu0 %1022  ;;  %v1212_v36 = vmul.f32 %v1180_v12, %v473_v28  ;;  %v1262_v12 = vld [vmem:[%s2401_s22 + $0x90] sm:$0xff]  ;;  %v1087_v41 = vsel %vm1081_vm0, %v2182_v40, %v2299_v24  ;;  %vm430_vm15 = vcmp.ge.f32.partialorder %v398_v61, 0.0  ;;  %v462_v49 = vmul.f32 0.1, %v398_v61  ;;  %v2915_v40 = vld [vmem:[#allocation13_spill] sm:$0xff] }
 0x13b   : > { %v1165_v52 = vsel %vm1147_vm3, %v1132_v48, %v1023_v20  ;;  %v2534_v62 = vpop.permute.xlu1 %910  ;;  %v1103_v24 = vsel %vm1081_vm0, %v2915_v40, %v2459_v43  ;;  %v321_v20 = vld [vmem:[%s2358_s14 + $0xb0] sm:$0xff]  ;;  %v2921_v40 = vld [vmem:[#allocation23_spill] sm:$0xff] }
 0x13c   : > { %v1197_v50 = vsub.f32 1.0, %v1165_v52  ;;  %v1276_v34 = vadd.f32 %v1244_v53, %v1212_v36  ;;  %v1136_v36 = vsel %vm1114_vm2, %v1103_v24, %v2534_v62  ;;  %v2922_v24 = vld [vmem:[#allocation5_spill] sm:$0xff] }
 0x13d   : > { %1935 = vset.pattern.permute.xlu1 %v2909_v4  ;;  %v477_v4 = vsel %vm413_vm13, %v381_v11, %v445_v13  ;;  %v1231_v11 = vmul.f32 %v1199_v60, %v2500_v3 }
 0x13e   : > { %v1229_v54 = vmul.f32 %v1197_v50, %v490_v30  ;;  %818 = vperm.xlu1 %1935, %v2128_v32   ;;  %v1027_v44 = vpop.permute.xlu0 %1026  ;;  %1839 = vmatprep.mubr.msk.f32.mxu0 %vm1312_vm4, %v1276_v34  ;;  %v446_v30 = vmul.f32 0.1, %v382_v16  ;;  %v494_v50 = vsel %vm430_vm15, %v398_v61, %v462_v49  ;;  %v2917_v61 = vld [vmem:[#allocation15_spill] sm:$0xff] }
 0x13f   : > { %v1166_v27 = vsel %vm1147_vm3, %v1133_v37, %v1027_v44  ;;  %1840 = vmatmul.mubr.msk.f32.vlgmr.msra.gmra.mrb[0].mxu0 %vm1312_vm4, %v1277_v22  ;;  %v1295_v48 = vadd.f32 %v1263_v46, %v1231_v11  ;;  %v360_v22 = vmul.f32 %v2368_v10, %v321_v20  ;;  %v2916_v37 = vld [vmem:[#allocation4_spill] sm:$0xff] }
 0x140   : > { %v1293_v21 = vadd.f32 %v1261_v8, %v1229_v54  ;;  %v1198_v28 = vsub.f32 1.0, %v1166_v27  ;;  %v1035_v0 = vpop.permute.xlu1 %1034  ;;  %1842 = vmatprep.mubr.msk.f32.mxu0 %vm1312_vm4, %v1278_v19  ;;  %v478_v29 = vsel %vm414_vm14, %v382_v16, %v446_v30  ;;  %v344_v27 = vmul.f32 %v2368_v10, %v305_v38 }
 0x141   : > { %v1168_v56 = vsel %vm1147_vm3, %v1135_v5, %v1035_v0  ;;  %v399_v19 = vadd.f32 %v2381_v9, %v360_v22  ;;  %v1251_v22 = vld [vmem:[%s2401_s22 + $0x38] sm:$0xff] }
 0x142   : > { %v1230_v63 = vmul.f32 %v1198_v28, %v491_v42  ;;  %v1200_v59 = vsub.f32 1.0, %v1168_v56  ;;  %1937 = vset.pattern.permute.xlu1 %v2905_v6  ;;  %v971_v25 = vpop.permute.xlu0 %970  ;;  %1864 = vmatmul.mubr.msk.f32.vlgmr.msra.gmra.mrb[0].mxu1 %vm1312_vm4, %v1293_v21  ;;  %v1120_v6 = vsel %vm1114_vm2, %v1087_v41, %v2510_v14  ;;  %v383_v18 = vadd.f32 %v2381_v9, %v344_v27  ;;  %v1266_v56 = vld [vmem:[%s2401_s22 + $0xb0] sm:$0xff] }
 0x143   : > { %v1152_v3 = vsel %vm1147_vm3, %v1119_v51, %v971_v25  ;;  %882 = vperm.xlu1 %1937, %v2914_v1   ;;  %1843 = vmatmul.mubr.msk.f32.gmra.mrb[2].mxu0 %vm1312_vm4, %v1279_v47  ;;  %v463_v44 = vmul.f32 0.1, %v399_v19  ;;  %vm431_vm1 = vcmp.ge.f32.partialorder %v399_v19, 0.0 }
 0x144   : > { %v1294_v42 = vadd.f32 %v1262_v12, %v1230_v63  ;;  %v1232_v17 = vmul.f32 %v1200_v59, %v493_v58  ;;  %v1184_v2 = vsub.f32 1.0, %v1152_v3  ;;  %v975_v53 = vpop.permute.xlu1 %974  ;;  %v322_v12 = vld [vmem:[%s2358_s14 + $0xb8] sm:$0xff]  ;;  %v447_v63 = vmul.f32 0.1, %v383_v18  ;;  %v2920_v3 = vld [vmem:[#allocation6_spill] sm:$0xff] }
 0x145   : > { %v1153_v31 = vsel %vm1147_vm3, %v1120_v6, %v975_v53  ;;  %v495_v0 = vsel %vm431_vm1, %v399_v19, %v463_v44  ;;  %v361_v25 = vmul.f32 %v2368_v10, %v322_v12  ;;  %vm415_vm5 = vcmp.ge.f32.partialorder %v383_v18, 0.0 }
 0x146   : > { %v1296_v14 = vadd.f32 %v1264_v55, %v1232_v17  ;;  %v1216_v33 = vmul.f32 %v1184_v2, %v477_v4  ;;  %v1185_v52 = vsub.f32 1.0, %v1153_v31  ;;  %v1039_v13 = vpop.permute.xlu0 %1038  ;;  %1866 = vmatprep.mubr.msk.f32.mxu1 %vm1312_vm4, %v1294_v42  ;;  %v306_v4 = vld [vmem:[%s2358_s14 + $0x38] sm:$0xff]  ;;  %v2919_v55 = vld [vmem:[#allocation22_spill] sm:$0xff]  ;;  %v479_v42 = vsel %vm415_vm5, %v383_v18, %v447_v63  ;;  %v308_v63 = vld [vmem:[%s2358_s14 + $0x48] sm:$0xff] }
 0x147   : > { %v1169_v43 = vsel %vm1147_vm3, %v1136_v36, %v1039_v13  ;;  %946 = vperm.xlu1 %1937, %v2128_v32   ;;  %1867 = vmatmul.mubr.msk.f32.gmra.mrb[2].mxu1 %vm1312_vm4, %v1295_v48  ;;  %v345_v47 = vmul.f32 %v2368_v10, %v306_v4  ;;  %v400_v53 = vadd.f32 %v2381_v9, %v361_v25  ;;  %v2923_v31 = vld [vmem:[#allocation33_spill] sm:$0xff] }
 0x148   : > { %v1280_v34 = vadd.f32 %v1248_v57, %v1216_v33  ;;  %v1217_v16 = vmul.f32 %v1185_v52, %v478_v29  ;;  %v1201_v62 = vsub.f32 1.0, %v1169_v43  ;;  %1869 = vmatprep.mubr.msk.f32.mxu1 %vm1312_vm4, %v1296_v14  ;;  %v1089_v57 = vsel %vm1081_vm0, %v2922_v24, %v2921_v40  ;;  %v1250_v29 = vld [vmem:[%s2401_s22 + $0x30] sm:$0xff] }
 0x149   : > { %v787_v23 = vpop.permute.xlu1 %786  ;;  %v384_v59 = vadd.f32 %v2381_v9, %v345_v47  ;;  %v1122_v20 = vsel %vm1114_vm2, %v1089_v57, %v2923_v31  ;;  %v464_v13 = vmul.f32 0.1, %v400_v53  ;;  %vm432_vm7 = vcmp.ge.f32.partialorder %v400_v53, 0.0 }
 0x14a   : > { %v1281_v60 = vadd.f32 %v1249_v35, %v1217_v16  ;;  %v1233_v8 = vmul.f32 %v1201_v62, %v494_v50  ;;  %1845 = vmatprep.mubr.msk.f32.mxu0 %vm1312_vm4, %v1280_v34  ;;  %v1043_v58 = vpop.permute.xlu0 %1042  ;;  %v1104_v5 = vsel %vm1081_vm0, %v2917_v61, %v787_v23  ;;  %v307_v35 = vld [vmem:[%s2358_s14 + $0x40] sm:$0xff] }
 0x14b   : > { %950 = vperm.xlu1 %1937, %v2916_v37   ;;  %v448_v2 = vmul.f32 0.1, %v384_v59  ;;  %vm416_vm6 = vcmp.ge.f32.partialorder %v384_v59, 0.0  ;;  %v2924_v34 = vld [vmem:[#allocation30_spill] sm:$0xff] }
 0x14c   : > { %v1297_v32 = vadd.f32 %v1265_v26, %v1233_v8  ;;  %1846 = vmatmul.mubr.msk.f32.gmra.mrb[4].mxu0 %vm1312_vm4, %v1281_v60  ;;  %v2925_v16 = vld [vmem:[#allocation14_spill] sm:$0xff]  ;;  %v346_v8 = vmul.f32 %v2368_v10, %v307_v35  ;;  %v2930_v35 = vld [vmem:[#allocation25_spill] sm:$0xff] }
 0x14d   : > { %v480_v33 = vsel %vm416_vm6, %v384_v59, %v448_v2  ;;  %v1105_v62 = vsel %vm1081_vm0, %v2925_v16, %v2924_v34  ;;  %v1252_v59 = vld [vmem:[%s2401_s22 + $0x40] sm:$0xff] }
 0x14e   : > { %v851_v54 = vpop.permute.xlu1 %850  ;;  %1870 = vmatmul.mubr.msk.f32.gmra.mrb[4].mxu1 %vm1312_vm4, %v1297_v32  ;;  %v385_v27 = vadd.f32 %v2381_v9, %v346_v8  ;;  %v1268_v16 = vld [vmem:[%s2401_s22 + $0xc0] sm:$0xff] }
 0x14f   : > { %1939 = vset.pattern.permute.xlu1 %v2907_v7  ;;  %v2918_v7 = vld [vmem:[#allocation2_spill] sm:$0xff] }
 0x150   : > { %1010 = vperm.xlu1 %1939, %v2914_v1   ;;  %v1088_v1 = vsel %vm1081_vm0, %v2920_v3, %v2919_v55  ;;  %v449_v61 = vmul.f32 0.1, %v385_v27  ;;  %vm417_vm8 = vcmp.ge.f32.partialorder %v385_v27, 0.0 }
 0x151   : > { %v1121_v49 = vsel %vm1114_vm2, %v1088_v1, %v851_v54  ;;  %v1267_v54 = vld [vmem:[%s2401_s22 + $0xb8] sm:$0xff]  ;;  %v347_v1 = vmul.f32 %v2368_v10, %v308_v63 }
 0x152   : > { %v915_v21 = vpop.permute.xlu1 %914  ;;  %v481_v12 = vsel %vm417_vm8, %v385_v27, %v449_v61 }
 0x153   : > { %v1137_v28 = vsel %vm1114_vm2, %v1104_v5, %v915_v21  ;;  %v324_v5 = vld [vmem:[%s2358_s14 + $0xc8] sm:$0xff]  ;;  %v987_v21 = vpop.permute.xlu0 %986  ;;  %v386_v57 = vadd.f32 %v2381_v9, %v347_v1 }
 0x154   : > { %v1170_v30 = vsel %vm1147_vm3, %v1137_v28, %v1043_v58  ;;  %1014 = vperm.xlu1 %1939, %v2918_v7   ;;  %v323_v28 = vld [vmem:[%s2358_s14 + $0xc0] sm:$0xff] }
 0x155   : > { %v1202_v11 = vsub.f32 1.0, %v1170_v30  ;;  %v2927_v30 = vld [vmem:[#allocation8_spill] sm:$0xff]  ;;  %vm418_vm11 = vcmp.ge.f32.partialorder %v386_v57, 0.0 }
 0x156   : > { %v919_v46 = vpop.permute.xlu1 %918 }
 0x157   : > { %v1234_v51 = vmul.f32 %v1202_v11, %v495_v0  ;;  %v1138_v26 = vsel %vm1114_vm2, %v1105_v62, %v919_v46  ;;  %v2926_v0 = vld [vmem:[#allocation24_spill] sm:$0xff]  ;;  %v363_v11 = vmul.f32 %v2368_v10, %v324_v5  ;;  %v362_v46 = vmul.f32 %v2368_v10, %v323_v28 }
 0x158   : > { %1078 = vperm.xlu1 %1939, %v2916_v37   ;;  %v496_v37 = vsel %vm432_vm7, %v400_v53, %v464_v13  ;;  %v1090_v7 = vsel %vm1081_vm0, %v2927_v30, %v2926_v0  ;;  %v309_v5 = vld [vmem:[%s2358_s14 + $0x50] sm:$0xff] }
 0x159   : > { %v1298_v41 = vadd.f32 %v1266_v56, %v1234_v51  ;;  %v402_v55 = vadd.f32 %v2381_v9, %v363_v11  ;;  %v401_v3 = vadd.f32 %v2381_v9, %v362_v46  ;;  %v348_v0 = vmul.f32 %v2368_v10, %v309_v5  ;;  %v328_v5 = vld [vmem:[%s2358_s14 + $0xe8] sm:$0xff] }
 0x15b   : > { %v979_v6 = vpop.permute.xlu1 %978  ;;  %1872 = vmatprep.mubr.msk.f32.mxu1 %vm1312_vm4, %v1298_v41  ;;  %vm434_vm9 = vcmp.ge.f32.partialorder %v402_v55, 0.0  ;;  %v465_v24 = vmul.f32 0.1, %v401_v3  ;;  %vm433_vm10 = vcmp.ge.f32.partialorder %v401_v3, 0.0 }
 0x15c   : > { %v1154_v17 = vsel %vm1147_vm3, %v1121_v49, %v979_v6  ;;  %v1055_v6 = vpop.permute.xlu0 %1054 }
 0x15d   : > { %v1186_v48 = vsub.f32 1.0, %v1154_v17 }
 0x15f   : > { %v1218_v36 = vmul.f32 %v1186_v48, %v479_v42  ;;  %v983_v14 = vpop.permute.xlu1 %982  ;;  %v2928_v42 = vld [vmem:[#allocation16_spill] sm:$0xff]  ;;  %v466_v48 = vmul.f32 0.1, %v402_v55 }
 0x160   : > { %v1155_v52 = vsel %vm1147_vm3, %v1122_v20, %v983_v14  ;;  %v2929_v14 = vld [vmem:[#allocation34_spill] sm:$0xff]  ;;  %v1059_v30 = vpop.permute.xlu0 %1058 }
 0x161   : > { %v1282_v50 = vadd.f32 %v1250_v29, %v1218_v36  ;;  %v1187_v43 = vsub.f32 1.0, %v1155_v52  ;;  %v498_v31 = vsel %vm434_vm9, %v402_v55, %v466_v48  ;;  %v497_v36 = vsel %vm433_vm10, %v401_v3, %v465_v24 }
 0x162   : > { %v450_v52 = vmul.f32 0.1, %v386_v57 }
 0x163   : > { %v1219_v23 = vmul.f32 %v1187_v43, %v480_v33  ;;  %v1047_v60 = vpop.permute.xlu1 %1046  ;;  %1848 = vmatprep.mubr.msk.f32.mxu0 %vm1312_vm4, %v1282_v50  ;;  %v2931_v50 = vld [vmem:[#allocation7_spill] sm:$0xff] }
 0x164   : > { %v1171_v32 = vsel %vm1147_vm3, %v1138_v26, %v1047_v60  ;;  %v1091_v43 = vsel %vm1081_vm0, %v2931_v50, %v2930_v35  ;;  %v482_v60 = vsel %vm418_vm11, %v386_v57, %v450_v52  ;;  %v311_v50 = vld [vmem:[%s2358_s14 + $0x60] sm:$0xff] }
 0x165   : > { %v1283_v19 = vadd.f32 %v1251_v22, %v1219_v23  ;;  %v1203_v38 = vsub.f32 1.0, %v1171_v32  ;;  %v1269_v22 = vld [vmem:[%s2401_s22 + $0xc8] sm:$0xff] }
 0x167   : > { %v1235_v44 = vmul.f32 %v1203_v38, %v496_v37  ;;  %1849 = vmatmul.mubr.msk.f32.gmra.mrb[6].mxu0 %vm1312_vm4, %v1283_v19  ;;  %v325_v37 = vld [vmem:[%s2358_s14 + $0xd0] sm:$0xff] }
 0x168   : > { %v799_v58 = vpop.permute.xlu1 %798  ;;  %v364_v27 = vmul.f32 %v2368_v10, %v325_v37 }
 0x169   : > { %v1299_v4 = vadd.f32 %v1267_v54, %v1235_v44  ;;  %v1107_v17 = vsel %vm1081_vm0, %v2928_v42, %v799_v58  ;;  %v1253_v54 = vld [vmem:[%s2401_s22 + $0x48] sm:$0xff] }
 0x16a   : > { %v403_v61 = vadd.f32 %v2381_v9, %v364_v27 }
 0x16b   : > { %1873 = vmatmul.mubr.msk.f32.gmra.mrb[6].mxu1 %vm1312_vm4, %v1299_v4 }
 0x16c   : > { %v467_v28 = vmul.f32 0.1, %v403_v61  ;;  %vm435_vm12 = vcmp.ge.f32.partialorder %v403_v61, 0.0 }
 0x16d   : > { %v859_v18 = vpop.permute.xlu1 %858 }
 0x16e   : > { %v1123_v47 = vsel %vm1114_vm2, %v1090_v7, %v859_v18  ;;  %v310_v7 = vld [vmem:[%s2358_s14 + $0x58] sm:$0xff]  ;;  %v2932_v18 = vld [vmem:[#allocation18_spill] sm:$0xff] }
 0x16f   : > { %v1156_v56 = vsel %vm1147_vm3, %v1123_v47, %v987_v21  ;;  %v349_v63 = vmul.f32 %v2368_v10, %v310_v7 }
 0x170   : > { %v1188_v51 = vsub.f32 1.0, %v1156_v56  ;;  %v499_v56 = vsel %vm435_vm12, %v403_v61, %v467_v28  ;;  %v2937_v28 = vld [vmem:[#allocation27_spill] sm:$0xff] }
 0x171   : > { %v863_v25 = vpop.permute.xlu1 %862 }
 0x172   : > { %v1220_v41 = vmul.f32 %v1188_v51, %v481_v12  ;;  %v1124_v62 = vsel %vm1114_vm2, %v1091_v43, %v863_v25  ;;  %v387_v51 = vadd.f32 %v2381_v9, %v348_v0  ;;  %v326_v25 = vld [vmem:[%s2358_s14 + $0xd8] sm:$0xff]  ;;  %v2938_v0 = vld [vmem:[#allocation11_spill] sm:$0xff] }
 0x174   : > { %v1284_v49 = vadd.f32 %v1252_v59, %v1220_v41  ;;  %v1270_v41 = vld [vmem:[%s2401_s22 + $0xd0] sm:$0xff]  ;;  %v451_v1 = vmul.f32 0.1, %v387_v51  ;;  %vm419_vm13 = vcmp.ge.f32.partialorder %v387_v51, 0.0 }
 0x175   : > { %v927_v2 = vpop.permute.xlu1 %926 }
 0x176   : > { %v1140_v53 = vsel %vm1114_vm2, %v1107_v17, %v927_v2  ;;  %1851 = vmatprep.mubr.msk.f32.mxu0 %vm1312_vm4, %v1284_v49  ;;  %v388_v49 = vadd.f32 %v2381_v9, %v349_v63  ;;  %v2933_v17 = vld [vmem:[#allocation26_spill] sm:$0xff]  ;;  %v2934_v2 = vld [vmem:[#allocation9_spill] sm:$0xff]  ;;  %v483_v24 = vsel %vm419_vm13, %v387_v51, %v451_v1  ;;  %v312_v63 = vld [vmem:[%s2358_s14 + $0x68] sm:$0xff] }
 0x177   : > { %v1173_v40 = vsel %vm1147_vm3, %v1140_v53, %v1055_v6  ;;  %v365_v6 = vmul.f32 %v2368_v10, %v326_v25  ;;  %v1092_v53 = vsel %vm1081_vm0, %v2934_v2, %v2933_v17  ;;  %v1256_v25 = vld [vmem:[%s2401_s22 + $0x60] sm:$0xff]  ;;  %v351_v1 = vmul.f32 %v2368_v10, %v312_v63 }
 0x178   : > { %v1205_v29 = vsub.f32 1.0, %v1173_v40  ;;  %vm420_vm14 = vcmp.ge.f32.partialorder %v388_v49, 0.0 }
 0x17a   : > { %v1051_v20 = vpop.permute.xlu1 %1050  ;;  %v1237_v34 = vmul.f32 %v1205_v29, %v498_v31  ;;  %v452_v29 = vmul.f32 0.1, %v388_v49  ;;  %v404_v31 = vadd.f32 %v2381_v9, %v365_v6  ;;  %v2939_v6 = vld [vmem:[#allocation19_spill] sm:$0xff] }
 0x17b   : > { %v1172_v33 = vsel %vm1147_vm3, %v2929_v14, %v1051_v20 }
 0x17c   : > { %v1204_v13 = vsub.f32 1.0, %v1172_v33  ;;  %v1301_v38 = vadd.f32 %v1269_v22, %v1237_v34  ;;  %v484_v52 = vsel %vm420_vm14, %v388_v49, %v452_v29  ;;  %v468_v35 = vmul.f32 0.1, %v404_v31 }
 0x17d   : > { %vm436_vm15 = vcmp.ge.f32.partialorder %v404_v31, 0.0 }
 0x17e   : > { %v1236_v26 = vmul.f32 %v1204_v13, %v497_v36  ;;  %v991_v23 = vpop.permute.xlu1 %990  ;;  %v1254_v36 = vld [vmem:[%s2401_s22 + $0x50] sm:$0xff]  ;;  %v500_v37 = vsel %vm436_vm15, %v404_v31, %v468_v35  ;;  %v2941_v35 = vld [vmem:[#allocation10_spill] sm:$0xff] }
 0x17f   : > { %v1157_v8 = vsel %vm1147_vm3, %v1124_v62, %v991_v23  ;;  %v2936_v62 = vld [vmem:[#allocation17_spill] sm:$0xff] }
 0x180   : > { %v1300_v32 = vadd.f32 %v1268_v16, %v1236_v26  ;;  %v1189_v19 = vsub.f32 1.0, %v1157_v8  ;;  %v2935_v16 = vld [vmem:[#allocation31_spill] sm:$0xff]  ;;  %v1255_v26 = vld [vmem:[%s2401_s22 + $0x58] sm:$0xff] }
 0x181   : > { %v1109_v22 = vsel %vm1081_vm0, %v2936_v62, %v2935_v16 }
 0x182   : > { %v1221_v44 = vmul.f32 %v1189_v19, %v482_v60  ;;  %1875 = vmatprep.mubr.msk.f32.mxu1 %vm1312_vm4, %v1300_v32 }
 0x183   : > { %v803_v58 = vpop.permute.xlu1 %802  ;;  %1876 = vmatmul.mubr.msk.f32.gmra.mrb[8].mxu1 %vm1312_vm4, %v1301_v38 }
 0x184   : > { %v1285_v4 = vadd.f32 %v1253_v54, %v1221_v44  ;;  %v1108_v47 = vsel %vm1081_vm0, %v2932_v18, %v803_v58  ;;  %v1271_v54 = vld [vmem:[%s2401_s22 + $0xd8] sm:$0xff]  ;;  %v1003_v18 = vpop.permute.xlu0 %1002 }
 0x186   : > { %1852 = vmatmul.mubr.msk.f32.gmra.mrb[8].mxu0 %vm1312_vm4, %v1285_v4 }
 0x188   : > { %v867_v21 = vpop.permute.xlu1 %866  ;;  %v1071_v2 = vpop.permute.xlu0 %1070 }
 0x189   : > { %v1125_v48 = vsel %vm1114_vm2, %v1092_v53, %v867_v21  ;;  %v327_v21 = vld [vmem:[%s2358_s14 + $0xe0] sm:$0xff] }
 0x18c   : > { %v931_v11 = vpop.permute.xlu1 %930 }
 0x18d   : > { %v1141_v12 = vsel %vm1114_vm2, %v1108_v47, %v931_v11  ;;  %v367_v11 = vmul.f32 %v2368_v10, %v328_v5 }
 0x18e   : > { %v1174_v46 = vsel %vm1147_vm3, %v1141_v12, %v1059_v30  ;;  %v1094_v30 = vsel %vm1081_vm0, %v2938_v0, %v2937_v28  ;;  %v2942_v28 = vld [vmem:[#allocation21_spill] sm:$0xff] }
 0x18f   : > { %v1206_v59 = vsub.f32 1.0, %v1174_v46  ;;  %v366_v46 = vmul.f32 %v2368_v10, %v327_v21  ;;  %v314_v21 = vld [vmem:[%s2358_s14 + $0x78] sm:$0xff] }
 0x190   : > { %v935_v55 = vpop.permute.xlu1 %934 }
 0x191   : > { %v1238_v3 = vmul.f32 %v1206_v59, %v499_v56  ;;  %v1142_v23 = vsel %vm1114_vm2, %v1109_v22, %v935_v55  ;;  %v406_v55 = vadd.f32 %v2381_v9, %v367_v11 }
 0x193   : > { %v1302_v42 = vadd.f32 %v1270_v41, %v1238_v3  ;;  %v405_v3 = vadd.f32 %v2381_v9, %v366_v46  ;;  %v470_v53 = vmul.f32 0.1, %v406_v55  ;;  %vm438_vm5 = vcmp.ge.f32.partialorder %v406_v55, 0.0 }
 0x195   : > { %v995_v40 = vpop.permute.xlu1 %994  ;;  %1878 = vmatprep.mubr.msk.f32.mxu1 %vm1312_vm4, %v1302_v42  ;;  %vm437_vm6 = vcmp.ge.f32.partialorder %v405_v3, 0.0  ;;  %v502_v31 = vsel %vm438_vm5, %v406_v55, %v470_v53 }
 0x196   : > { %v1158_v57 = vsel %vm1147_vm3, %v1125_v48, %v995_v40 }
 0x197   : > { %v1190_v20 = vsub.f32 1.0, %v1158_v57  ;;  %v390_v57 = vadd.f32 %v2381_v9, %v351_v1 }
 0x199   : > { %v1222_v14 = vmul.f32 %v1190_v20, %v483_v24  ;;  %v999_v33 = vpop.permute.xlu1 %998  ;;  %v469_v24 = vmul.f32 0.1, %v405_v3  ;;  %vm422_vm7 = vcmp.ge.f32.partialorder %v390_v57, 0.0 }
 0x19a   : > { %v1159_v13 = vsel %vm1147_vm3, %v2446_v15, %v999_v33  ;;  %v350_v15 = vmul.f32 %v2368_v10, %v311_v50  ;;  %v454_v33 = vmul.f32 0.1, %v390_v57 }
 0x19b   : > { %v1286_v43 = vadd.f32 %v1254_v36, %v1222_v14  ;;  %v1191_v34 = vsub.f32 1.0, %v1159_v13  ;;  %v501_v36 = vsel %vm437_vm6, %v405_v3, %v469_v24  ;;  %v2940_v13 = vld [vmem:[#allocation28_spill] sm:$0xff] }
 0x19c   : > { %v389_v27 = vadd.f32 %v2381_v9, %v350_v15  ;;  %v1095_v50 = vsel %vm1081_vm0, %v2941_v35, %v2940_v13  ;;  %v2945_v13 = vld [vmem:[#allocation32_spill] sm:$0xff] }
 0x19d   : > { %v1223_v60 = vmul.f32 %v1191_v34, %v484_v52  ;;  %v1063_v8 = vpop.permute.xlu1 %1062  ;;  %1854 = vmatprep.mubr.msk.f32.mxu0 %vm1312_vm4, %v1286_v43  ;;  %v1272_v34 = vld [vmem:[%s2401_s22 + $0xe0] sm:$0xff]  ;;  %v2946_v35 = vld [vmem:[#allocation20_spill] sm:$0xff] }
 0x19e   : > { %v1175_v32 = vsel %vm1147_vm3, %v1142_v23, %v1063_v8  ;;  %v453_v61 = vmul.f32 0.1, %v389_v27  ;;  %vm421_vm1 = vcmp.ge.f32.partialorder %v389_v27, 0.0  ;;  %v486_v23 = vsel %vm422_vm7, %v390_v57, %v454_v33  ;;  %v1258_v57 = vld [vmem:[%s2401_s22 + $0x70] sm:$0xff] }
 0x19f   : > { %v1287_v19 = vadd.f32 %v1255_v26, %v1223_v60  ;;  %v1207_v38 = vsub.f32 1.0, %v1175_v32  ;;  %v1273_v26 = vld [vmem:[%s2401_s22 + $0xe8] sm:$0xff] }
 0x1a0   : > { %v485_v12 = vsel %vm421_vm1, %v389_v27, %v453_v61 }
 0x1a1   : > { %v1239_v44 = vmul.f32 %v1207_v38, %v500_v37  ;;  %1855 = vmatmul.mubr.msk.f32.gmra.mrb[10].mxu0 %vm1312_vm4, %v1287_v19  ;;  %v1257_v37 = vld [vmem:[%s2401_s22 + $0x68] sm:$0xff] }
 0x1a2   : > { %v815_v58 = vpop.permute.xlu1 %814 }
 0x1a3   : > { %v1303_v4 = vadd.f32 %v1271_v54, %v1239_v44  ;;  %v1111_v42 = vsel %vm1081_vm0, %v2939_v6, %v815_v58  ;;  %v313_v58 = vld [vmem:[%s2358_s14 + $0x70] sm:$0xff] }
 0x1a4   : > { %v352_v5 = vmul.f32 %v2368_v10, %v313_v58  ;;  %v2944_v6 = vld [vmem:[#allocation12_spill] sm:$0xff] }
 0x1a5   : > { %1879 = vmatmul.mubr.msk.f32.gmra.mrb[10].mxu1 %vm1312_vm4, %v1303_v4 }
 0x1a7   : > { %v875_v7 = vpop.permute.xlu1 %874 }
 0x1a8   : > { %v1127_v47 = vsel %vm1114_vm2, %v1094_v30, %v875_v7  ;;  %v1075_v7 = vpop.permute.xlu0 %1074 }
 0x1a9   : > { %v1160_v56 = vsel %vm1147_vm3, %v1127_v47, %v1003_v18 }
 0x1aa   : > { %v1192_v51 = vsub.f32 1.0, %v1160_v56  ;;  %v353_v56 = vmul.f32 %v2368_v10, %v314_v21 }
 0x1ab   : > { %v879_v59 = vpop.permute.xlu1 %878 }
 0x1ac   : > { %v1224_v41 = vmul.f32 %v1192_v51, %v485_v12  ;;  %v1128_v16 = vsel %vm1114_vm2, %v1095_v50, %v879_v59  ;;  %v391_v12 = vadd.f32 %v2381_v9, %v352_v5  ;;  %v330_v51 = vld [vmem:[%s2358_s14 + $0xf8] sm:$0xff]  ;;  %v1274_v59 = vld [vmem:[%s2401_s22 + $0xf0] sm:$0xff]  ;;  %v392_v55 = vadd.f32 %v2381_v9, %v353_v56 }
 0x1ad   : > { %v369_v3 = vmul.f32 %v2368_v10, %v330_v51  ;;  %v1113_v50 = vsel %vm1081_vm0, %v2946_v35, %v2945_v13 }
 0x1ae   : > { %v1288_v49 = vadd.f32 %v1256_v25, %v1224_v41  ;;  %v455_v41 = vmul.f32 0.1, %v391_v12  ;;  %vm423_vm9 = vcmp.ge.f32.partialorder %v391_v12, 0.0  ;;  %vm424_vm10 = vcmp.ge.f32.partialorder %v392_v55, 0.0 }
 0x1af   : > { %v943_v17 = vpop.permute.xlu1 %942 }
 0x1b0   : > { %v1144_v48 = vsel %vm1114_vm2, %v1111_v42, %v943_v17  ;;  %1857 = vmatprep.mubr.msk.f32.mxu0 %vm1312_vm4, %v1288_v49  ;;  %v2943_v49 = vld [vmem:[#allocation29_spill] sm:$0xff]  ;;  %v487_v53 = vsel %vm423_vm9, %v391_v12, %v455_v41 }
 0x1b1   : > { %v1177_v40 = vsel %vm1147_vm3, %v1144_v48, %v1071_v2  ;;  %v1096_v42 = vsel %vm1081_vm0, %v2944_v6, %v2943_v49 }
 0x1b2   : > { %v1209_v29 = vsub.f32 1.0, %v1177_v40  ;;  %v456_v40 = vmul.f32 0.1, %v392_v55 }
 0x1b4   : > { %v1067_v20 = vpop.permute.xlu1 %1066  ;;  %v1241_v43 = vmul.f32 %v1209_v29, %v502_v31 }
 0x1b5   : > { %v1176_v14 = vsel %vm1147_vm3, %v2457_v45, %v1067_v20  ;;  %v329_v45 = vld [vmem:[%s2358_s14 + $0xf0] sm:$0xff]  ;;  %v488_v20 = vsel %vm424_vm10, %v392_v55, %v456_v40 }
 0x1b6   : > { %v1208_v52 = vsub.f32 1.0, %v1176_v14  ;;  %v1305_v32 = vadd.f32 %v1273_v26, %v1241_v43  ;;  %v368_v38 = vmul.f32 %v2368_v10, %v329_v45  ;;  %v1259_v43 = vld [vmem:[%s2401_s22 + $0x78] sm:$0xff] }
 0x1b8   : > { %v1240_v62 = vmul.f32 %v1208_v52, %v501_v36  ;;  %v1007_v22 = vpop.permute.xlu1 %1006  ;;  %v407_v27 = vadd.f32 %v2381_v9, %v368_v38  ;;  %v1940_v9 = vld [vmem:[%s2864_s4] ss:$0 sm:$0xff] }
 0x1b9   : > { %v1161_v60 = vsel %vm1147_vm3, %v1128_v16, %v1007_v22  ;;  %v408_v10 = vadd.f32 %v1940_v9, %v369_v3 }
 0x1ba   : > { %v1304_v8 = vadd.f32 %v1272_v34, %v1240_v62  ;;  %v1193_v15 = vsub.f32 1.0, %v1161_v60  ;;  %v471_v61 = vmul.f32 0.1, %v407_v27  ;;  %vm439_vm8 = vcmp.ge.f32.partialorder %v407_v27, 0.0  ;;  %v1275_v60 = vld [vmem:[%s2401_s22 + $0xf8] sm:$0xff] }
 0x1bb   : > { %v472_v14 = vmul.f32 0.1, %v408_v10  ;;  %vm440_vm11 = vcmp.ge.f32.partialorder %v408_v10, 0.0 }
 0x1bc   : > { %v1225_v19 = vmul.f32 %v1193_v15, %v486_v23  ;;  %1881 = vmatprep.mubr.msk.f32.mxu1 %vm1312_vm4, %v1304_v8  ;;  %v503_v47 = vsel %vm439_vm8, %v407_v27, %v471_v61 }
 0x1bd   : > { %v819_v54 = vpop.permute.xlu1 %818  ;;  %1882 = vmatmul.mubr.msk.f32.gmra.mrb[12].mxu1 %vm1312_vm4, %v1305_v32  ;;  %v504_v22 = vsel %vm440_vm11, %v408_v10, %v472_v14 }
 0x1be   : > { %v1289_v44 = vadd.f32 %v1257_v37, %v1225_v19  ;;  %v1112_v0 = vsel %vm1081_vm0, %v2942_v28, %v819_v54 }
 0x1c0   : > { %1858 = vmatmul.mubr.msk.f32.gmra.mrb[12].mxu0 %vm1312_vm4, %v1289_v44 }
 0x1c2   : > { %v883_v4 = vpop.permute.xlu1 %882 }
 0x1c3   : > { %v1129_v17 = vsel %vm1114_vm2, %v1096_v42, %v883_v4 }
 0x1c6   : > { %v947_v30 = vpop.permute.xlu1 %946 }
 0x1c7   : > { %v1145_v18 = vsel %vm1114_vm2, %v1112_v0, %v947_v30 }
 0x1c8   : > { %v1178_v11 = vsel %vm1147_vm3, %v1145_v18, %v1075_v7 }
 0x1c9   : > { %v1210_v46 = vsub.f32 1.0, %v1178_v11 }
 0x1ca   : > { %v951_v63 = vpop.permute.xlu1 %950 }
 0x1cb   : > { %v1242_v25 = vmul.f32 %v1210_v46, %v503_v47  ;;  %v1146_v34 = vsel %vm1114_vm2, %v1113_v50, %v951_v63 }
 0x1cd   : > { %v1306_v1 = vadd.f32 %v1274_v59, %v1242_v25 }
 0x1cf   : > { %v1011_v2 = vpop.permute.xlu1 %1010  ;;  %1884 = vmatprep.mubr.msk.f32.mxu1 %vm1312_vm4, %v1306_v1 }
 0x1d0   : > { %v1162_v48 = vsel %vm1147_vm3, %v1129_v17, %v1011_v2 }
 0x1d1   : > { %v1194_v24 = vsub.f32 1.0, %v1162_v48 }
 0x1d3   : > { %v1226_v29 = vmul.f32 %v1194_v24, %v487_v53  ;;  %v1015_v31 = vpop.permute.xlu1 %1014 }
 0x1d4   : > { %v1163_v36 = vsel %vm1147_vm3, %v2482_v39, %v1015_v31 }
 0x1d5   : > { %v1290_v33 = vadd.f32 %v1258_v57, %v1226_v29  ;;  %v1195_v52 = vsub.f32 1.0, %v1163_v36 }
 0x1d7   : > { %v1227_v16 = vmul.f32 %v1195_v52, %v488_v20  ;;  %v1079_v62 = vpop.permute.xlu1 %1078  ;;  %1860 = vmatprep.mubr.msk.f32.mxu0 %vm1312_vm4, %v1290_v33 }
 0x1d8   : > { %v1179_v26 = vsel %vm1147_vm3, %v1146_v34, %v1079_v62 }
 0x1d9   : > { %v1291_v39 = vadd.f32 %v1259_v43, %v1227_v16  ;;  %v1211_v23 = vsub.f32 1.0, %v1179_v26 }
 0x1db   : > { %v1243_v45 = vmul.f32 %v1211_v23, %v504_v22  ;;  %1861 = vmatmul.mubr.msk.f32.gmra.mrb[14].mxu0 %vm1312_vm4, %v1291_v39 }
 0x1dd   : > { %v1307_v8 = vadd.f32 %v1275_v60, %v1243_v45 }
 0x1df   : > { %1885 = vmatmul.mubr.msk.f32.gmra.mrb[14].mxu1 %vm1312_vm4, %v1307_v8 }
 0x212   : > { %v1841_v15 = vpop.f32.mrb[0].mxu0 }
 0x213   : > { %1635 = vst.msk [vmem:[%s2791_s28 + $0x8] sm:$0xff] %vm1312_vm4, %v1841_v15  ;;  %v1475_v37 = vpop.f32.mrb[1].mxu0 }
 0x214   : > { %1634 = vst.msk [vmem:[%s2791_s28] sm:$0xff] %vm1312_vm4, %v1475_v37 }
 0x215   : > { %v1865_v32 = vpop.f32.mrb[0].mxu1 }
 0x216   : > { %1651 = vst.msk [vmem:[%s2791_s28 + $0x88] sm:$0xff] %vm1312_vm4, %v1865_v32  ;;  %v1844_v19 = vpop.f32.mrb[2].mxu0  ;;  %v1555_v38 = vpop.f32.mrb[1].mxu1 }
 0x217   : > { %1637 = vst.msk [vmem:[%s2791_s28 + $0x18] sm:$0xff] %vm1312_vm4, %v1844_v19  ;;  %1650 = vst.msk [vmem:[%s2791_s28 + $0x80] sm:$0xff] %vm1312_vm4, %v1555_v38  ;;  %v1485_v54 = vpop.f32.mrb[3].mxu0 }
 0x218   : > { %1636 = vst.msk [vmem:[%s2791_s28 + $0x10] sm:$0xff] %vm1312_vm4, %v1485_v54 }
 0x21a   : > { %v1868_v44 = vpop.f32.mrb[2].mxu1 }
 0x21b   : > { %1653 = vst.msk [vmem:[%s2791_s28 + $0x98] sm:$0xff] %vm1312_vm4, %v1868_v44  ;;  %v1565_v27 = vpop.f32.mrb[3].mxu1 }
 0x21c   : > { %1652 = vst.msk [vmem:[%s2791_s28 + $0x90] sm:$0xff] %vm1312_vm4, %v1565_v27 }
 0x21f   : > { %v1847_v58 = vpop.f32.mrb[4].mxu0 }
 0x220   : > { %1639 = vst.msk [vmem:[%s2791_s28 + $0x28] sm:$0xff] %vm1312_vm4, %v1847_v58  ;;  %v1495_v4 = vpop.f32.mrb[5].mxu0 }
 0x221   : > { %1638 = vst.msk [vmem:[%s2791_s28 + $0x20] sm:$0xff] %vm1312_vm4, %v1495_v4  ;;  %v1871_v61 = vpop.f32.mrb[4].mxu1 }
 0x222   : > { %1655 = vst.msk [vmem:[%s2791_s28 + $0xa8] sm:$0xff] %vm1312_vm4, %v1871_v61  ;;  %v1575_v5 = vpop.f32.mrb[5].mxu1 }
 0x223   : > { %1654 = vst.msk [vmem:[%s2791_s28 + $0xa0] sm:$0xff] %vm1312_vm4, %v1575_v5 }
 0x23a   : > { %v1850_v21 = vpop.f32.mrb[6].mxu0 }
 0x23b   : > { %1641 = vst.msk [vmem:[%s2791_s28 + $0x38] sm:$0xff] %vm1312_vm4, %v1850_v21  ;;  %v1505_v28 = vpop.f32.mrb[7].mxu0 }
 0x23c   : > { %1640 = vst.msk [vmem:[%s2791_s28 + $0x30] sm:$0xff] %vm1312_vm4, %v1505_v28 }
 0x23e   : > { %v1874_v0 = vpop.f32.mrb[6].mxu1 }
 0x23f   : > { %1657 = vst.msk [vmem:[%s2791_s28 + $0xb8] sm:$0xff] %vm1312_vm4, %v1874_v0  ;;  %v1585_v30 = vpop.f32.mrb[7].mxu1 }
 0x240   : > { %1656 = vst.msk [vmem:[%s2791_s28 + $0xb0] sm:$0xff] %vm1312_vm4, %v1585_v30 }
 0x256   : > { %v1877_v7 = vpop.f32.mrb[8].mxu1 }
 0x257   : > { %1659 = vst.msk [vmem:[%s2791_s28 + $0xc8] sm:$0xff] %vm1312_vm4, %v1877_v7  ;;  %v1595_v18 = vpop.f32.mrb[9].mxu1 }
 0x258   : > { %1658 = vst.msk [vmem:[%s2791_s28 + $0xc0] sm:$0xff] %vm1312_vm4, %v1595_v18 }
 0x259   : > { %v1853_v47 = vpop.f32.mrb[8].mxu0 }
 0x25a   : > { %1643 = vst.msk [vmem:[%s2791_s28 + $0x48] sm:$0xff] %vm1312_vm4, %v1853_v47  ;;  %v1515_v11 = vpop.f32.mrb[9].mxu0 }
 0x25b   : > { %1642 = vst.msk [vmem:[%s2791_s28 + $0x40] sm:$0xff] %vm1312_vm4, %v1515_v11 }
 0x274   : > { %v1856_v12 = vpop.f32.mrb[10].mxu0 }
 0x275   : > { %1645 = vst.msk [vmem:[%s2791_s28 + $0x58] sm:$0xff] %vm1312_vm4, %v1856_v12  ;;  %v1525_v56 = vpop.f32.mrb[11].mxu0 }
 0x276   : > { %1644 = vst.msk [vmem:[%s2791_s28 + $0x50] sm:$0xff] %vm1312_vm4, %v1525_v56 }
 0x278   : > { %v1880_v46 = vpop.f32.mrb[10].mxu1 }
 0x279   : > { %1661 = vst.msk [vmem:[%s2791_s28 + $0xd8] sm:$0xff] %vm1312_vm4, %v1880_v46  ;;  %v1605_v51 = vpop.f32.mrb[11].mxu1 }
 0x27a   : > { %1660 = vst.msk [vmem:[%s2791_s28 + $0xd0] sm:$0xff] %vm1312_vm4, %v1605_v51 }
 0x290   : > { %v1883_v63 = vpop.f32.mrb[12].mxu1 }
 0x291   : > { %1663 = vst.msk [vmem:[%s2791_s28 + $0xe8] sm:$0xff] %vm1312_vm4, %v1883_v63  ;;  %v1615_v59 = vpop.f32.mrb[13].mxu1 }
 0x292   : > { %1662 = vst.msk [vmem:[%s2791_s28 + $0xe0] sm:$0xff] %vm1312_vm4, %v1615_v59 }
 0x293   : > { %v1859_v25 = vpop.f32.mrb[12].mxu0 }
 0x294   : > { %1647 = vst.msk [vmem:[%s2791_s28 + $0x68] sm:$0xff] %vm1312_vm4, %v1859_v25  ;;  %v1535_v41 = vpop.f32.mrb[13].mxu0 }
 0x295   : > { %1646 = vst.msk [vmem:[%s2791_s28 + $0x60] sm:$0xff] %vm1312_vm4, %v1535_v41 }
 0x2ae   : > { %v1862_v55 = vpop.f32.mrb[14].mxu0 }
 0x2af   : > { %1649 = vst.msk [vmem:[%s2791_s28 + $0x78] sm:$0xff] %vm1312_vm4, %v1862_v55  ;;  %v1545_v3 = vpop.f32.mrb[15].mxu0 }
 0x2b0   : > { %1648 = vst.msk [vmem:[%s2791_s28 + $0x70] sm:$0xff] %vm1312_vm4, %v1545_v3 }
 0x2b2   : > { %v1886_v1 = vpop.f32.mrb[14].mxu1 }
 0x2b3   : > { %1665 = vst.msk [vmem:[%s2791_s28 + $0xf8] sm:$0xff] %vm1312_vm4, %v1886_v1  ;;  %v1625_v49 = vpop.f32.mrb[15].mxu1 }
 0x2b4   : > { %1664 = vst.msk [vmem:[%s2791_s28 + $0xf0] sm:$0xff] %vm1312_vm4, %v1625_v49 }
 0x2b5 PF: > { %s16_s21 = sadd.s32 1, %s1947_s21  }
 0x2b6   : > { %p13_p4 = scmp.ge.s32.totalorder %s16_s21, 4  }
 0x2b8   :  { %15 = sbr.rel (!%p13_p4) target bundleno = 1 (0x1), region = 80 }

// kernel: mrg_forward.21
= control target key start
LH: loop header
LB: loop body
LE: loop exit
PB: predicated region body
PF: predicated region fallthrough
CT: control target
= control target key end

     0   :  { %s1556_s30 = smov 0   ;;  %s1982_s0 = inlined_call_operand.vmem [shape: f32[512,32], index: 0, kind: input, shape index: {}]   ;;  %s1983_s1 = inlined_call_operand.vmem [shape: f32[512,32], index: 1, kind: input, shape index: {}]   ;;  %s1984_s2 = inlined_call_operand.vmem [shape: f32[512,8], index: 2, kind: input, shape index: {}]   ;;  %s1985_s3 = inlined_call_operand.vmem [shape: f32[1,32], index: 3, kind: input, shape index: {}]   ;;  %s1986_s4 = inlined_call_operand.vmem [shape: f32[1,32], index: 4, kind: input, shape index: {}]   ;;  %s1987_s5 = inlined_call_operand.vmem [shape: f32[1,32], index: 5, kind: input, shape index: {}]   ;;  %s1988_s6 = inlined_call_operand.vmem [shape: f32[1,32], index: 6, kind: input, shape index: {}]   ;;  %s1989_s7 = inlined_call_operand.vmem [shape: f32[32,8], index: 7, kind: input, shape index: {}]   ;;  %s1990_s8 = inlined_call_operand.vmem [shape: f32[1,8], index: 8, kind: input, shape index: {}]   ;;  %s1991_s9 = inlined_call_operand.vmem [shape: f32[512,8], index: 9, kind: output, shape index: {}]  }
   0x1 LB: > { %s1334_s10 = sadd.s32 4294967295, %s1504_s30   ;;  %p1338_p0 = scmp.ge.s32.totalorder %s1504_s30, 1  ;;  %s1504_s30 = sphi %s1556_s30, %s19_s30  }
   0x2   : > { %p310_p1 = scmp.lt.s32.totalorder %s1504_s30, 3 }
   0x4   : > { %p311_p2 = pnand %p1338_p0, %p310_p1 }
   0x5   : > { %v824_v0 = vld [vmem:[%s1989_s7] sm:$0xff] (!%p311_p2)  ;;  %v825_v1 = vld [vmem:[%s1989_s7 + $0x8] sm:$0xff] (!%p311_p2)  ;;  %v826_v2 = vld [vmem:[%s1989_s7 + $0x10] sm:$0xff] (!%p311_p2)  ;;  %s1339_s17 = sshll.u32 (!%p311_p2), %s1334_s10, 5  ;;  %vm835_vm0 = vcmask (!%p311_p2), 261120  }
   0x6   : > { %314 = sbr.rel (%p311_p2) target bundleno = 328 (0x148), region = 56  ;;  %v1478_v3 = vpack.c.bf16 (!%p311_p2), %v825_v1, %v824_v0  ;;  %v827_v4 = vld [vmem:[%s1989_s7 + $0x18] sm:$0xff] (!%p311_p2)  ;;  %p357_p3 = scmp.lt.s32.totalorder (!%p311_p2), %s1339_s17, 63  ;;  %v1581_v6 = vld [vmem:[%s1985_s3] ss:$0 sm:$0xff] (!%p311_p2) }
   0x7   : > { %v1482_v5 = vpack.c.bf16 (!%p311_p2), %v827_v4, %v826_v2  ;;  %v1586_v7 = vld [vmem:[%s1987_s5] ss:$0 sm:$0xff] (!%p311_p2) }
   0x8   : > { %1479 = vmatprep.subr.bf16.mxu0 (!%p311_p2), %v1478_v3  ;;  %1486 = vmatprep.subr.bf16.mxu1 (!%p311_p2), %v1478_v3  ;;  %v1603_v8 = vld [vmem:[%s1986_s4] ss:$0 sm:$0xff] (!%p311_p2) }
   0x9   : > { %1481 = vmatpush3.bf16.msra.mxu0 (!%p311_p2), %v1478_v3  ;;  %1488 = vmatpush3.bf16.msra.mxu1 (!%p311_p2), %v1478_v3  ;;  %v1608_v9 = vld [vmem:[%s1988_s6] ss:$0 sm:$0xff] (!%p311_p2) }
   0xa   : > { %1483 = vmatprep.subr.bf16.mxu0 (!%p311_p2), %v1482_v5  ;;  %1487 = vmatprep.subr.bf16.mxu1 (!%p311_p2), %v1482_v5 }
   0xd   : > { %s1993_s17 = smov (!%p357_p3, %s1339_s17), 63  ;;  %1485 = vmatpush3.bf16.msra.mxu0 %v1482_v5  ;;  %1489 = vmatpush3.bf16.msra.mxu1 %v1482_v5 }
   0xe   : > { %s1576_s20 = sshll.u32 %s1993_s17, 3 }
   0xf   : > { %s1592_s27 = scalar_lea.vmem %s1982_s0, %s1576_s20  ;;  %s1598_s10 = scalar_lea.vmem %s1983_s1, %s1576_s20 }
  0x10   : > { %v380_v10 = vld [vmem:[%s1592_s27] sm:$0xff]  ;;  %v381_v17 = vld [vmem:[%s1592_s27 + $0x8] sm:$0xff]  ;;  %v382_v39 = vld [vmem:[%s1592_s27 + $0x10] sm:$0xff]  ;;  %s1838_s17 = scalar_lea.vmem %s1984_s2, %s1576_s20  ;;  %s1852_s23 = scalar_lea.vmem %s1991_s9, %s1576_s20 }
  0x11   : > { %v586_v11 = vld [vmem:[%s1598_s10] sm:$0xff]  ;;  %v419_v13 = vmul.f32 %v1581_v6, %v380_v10  ;;  %v587_v18 = vld [vmem:[%s1598_s10 + $0x8] sm:$0xff]  ;;  %v420_v20 = vmul.f32 %v1581_v6, %v381_v17  ;;  %v588_v40 = vld [vmem:[%s1598_s10 + $0x10] sm:$0xff]  ;;  %v421_v51 = vmul.f32 %v1581_v6, %v382_v39 }
  0x12   : > { %v396_v12 = vld [vmem:[%s1592_s27 + $0x80] sm:$0xff]  ;;  %v625_v14 = vmul.f32 %v1586_v7, %v586_v11  ;;  %v626_v21 = vmul.f32 %v1586_v7, %v587_v18  ;;  %v397_v22 = vld [vmem:[%s1592_s27 + $0x88] sm:$0xff]  ;;  %v398_v41 = vld [vmem:[%s1592_s27 + $0x90] sm:$0xff]  ;;  %v627_v52 = vmul.f32 %v1586_v7, %v588_v40 }
  0x13   : > { %v435_v15 = vmul.f32 %v1581_v6, %v396_v12  ;;  %v602_v16 = vld [vmem:[%s1598_s10 + $0x80] sm:$0xff]  ;;  %v603_v23 = vld [vmem:[%s1598_s10 + $0x88] sm:$0xff]  ;;  %v458_v24 = vadd.f32 %v1603_v8, %v419_v13  ;;  %v436_v27 = vmul.f32 %v1581_v6, %v397_v22  ;;  %v459_v29 = vadd.f32 %v1603_v8, %v420_v20  ;;  %v604_v45 = vld [vmem:[%s1598_s10 + $0x90] sm:$0xff] }
  0x14   : > { %v641_v19 = vmul.f32 %v1586_v7, %v602_v16  ;;  %v664_v25 = vadd.f32 %v1608_v9, %v625_v14  ;;  %v665_v30 = vadd.f32 %v1608_v9, %v626_v21  ;;  %v642_v31 = vmul.f32 %v1586_v7, %v603_v23  ;;  %v383_v57 = vld [vmem:[%s1592_s27 + $0x18] sm:$0xff]  ;;  %v384_v20 = vld [vmem:[%s1592_s27 + $0x20] sm:$0xff] }
  0x15   : > { %v474_v26 = vadd.f32 %v1603_v8, %v435_v15  ;;  %vm490_vm1 = vcmp.ge.f32.partialorder %v458_v24, 0.0  ;;  %v522_v32 = vmul.f32 0.1, %v458_v24  ;;  %vm491_vm5 = vcmp.ge.f32.partialorder %v459_v29, 0.0  ;;  %v589_v4 = vld [vmem:[%s1598_s10 + $0x18] sm:$0xff]  ;;  %v590_v21 = vld [vmem:[%s1598_s10 + $0x20] sm:$0xff] }
  0x16   : > { %v680_v28 = vadd.f32 %v1608_v9, %v641_v19  ;;  %vm696_vm2 = vcmp.ge.f32.partialorder %v664_v25, 0.0  ;;  %v728_v33 = vmul.f32 0.1, %v664_v25  ;;  %v523_v38 = vmul.f32 0.1, %v459_v29  ;;  %v399_v5 = vld [vmem:[%s1592_s27 + $0x98] sm:$0xff] }
  0x17   : > { %vm506_vm3 = vcmp.ge.f32.partialorder %v474_v26, 0.0  ;;  %v538_v34 = vmul.f32 0.1, %v474_v26  ;;  %v554_v36 = vsel %vm490_vm1, %v458_v24, %v522_v32  ;;  %vm697_vm6 = vcmp.ge.f32.partialorder %v665_v30, 0.0  ;;  %v605_v12 = vld [vmem:[%s1598_s10 + $0x98] sm:$0xff] }
  0x18   : > { %vm712_vm4 = vcmp.ge.f32.partialorder %v680_v28, 0.0  ;;  %v744_v35 = vmul.f32 0.1, %v680_v28  ;;  %v760_v37 = vsel %vm696_vm2, %v664_v25, %v728_v33  ;;  %v555_v47 = vsel %vm491_vm5, %v459_v29, %v523_v38 }
  0x19   : > { %v792_v42 = vadd.f32 %v760_v37, %v554_v36  ;;  %v570_v43 = vsel %vm506_vm3, %v474_v26, %v538_v34  ;;  %v729_v48 = vmul.f32 0.1, %v665_v30  ;;  %v475_v49 = vadd.f32 %v1603_v8, %v436_v27  ;;  %v400_v26 = vld [vmem:[%s1592_s27 + $0xa0] sm:$0xff] }
  0x1a   : > { %v776_v44 = vsel %vm712_vm4, %v680_v28, %v744_v35  ;;  %v681_v50 = vadd.f32 %v1608_v9, %v642_v31  ;;  %v437_v53 = vmul.f32 %v1581_v6, %v398_v41  ;;  %v643_v56 = vmul.f32 %v1586_v7, %v604_v45  ;;  %v606_v37 = vld [vmem:[%s1598_s10 + $0xa0] sm:$0xff] }
  0x1b   : > { %v808_v46 = vadd.f32 %v776_v44, %v570_v43  ;;  %1430 = vmatprep.mubr.msk.f32.mxu0 %vm835_vm0, %v792_v42  ;;  %v761_v54 = vsel %vm697_vm6, %v665_v30, %v729_v48  ;;  %vm507_vm7 = vcmp.ge.f32.partialorder %v475_v49, 0.0  ;;  %v539_v55 = vmul.f32 0.1, %v475_v49  ;;  %v385_v48 = vld [vmem:[%s1592_s27 + $0x28] sm:$0xff] }
  0x1c   : > { %v793_v58 = vadd.f32 %v761_v54, %v555_v47  ;;  %vm713_vm8 = vcmp.ge.f32.partialorder %v681_v50, 0.0  ;;  %v745_v59 = vmul.f32 0.1, %v681_v50  ;;  %v460_v60 = vadd.f32 %v1603_v8, %v421_v51 }
  0x1d   : > { %1454 = vmatprep.mubr.msk.f32.mxu1 %vm835_vm0, %v808_v46  ;;  %v571_v61 = vsel %vm507_vm7, %v475_v49, %v539_v55  ;;  %v666_v62 = vadd.f32 %v1608_v9, %v627_v52  ;;  %v476_v63 = vadd.f32 %v1603_v8, %v437_v53  ;;  %v682_v0 = vadd.f32 %v1608_v9, %v643_v56  ;;  %v591_v49 = vld [vmem:[%s1598_s10 + $0x28] sm:$0xff] }
  0x1e   : > { %1431 = vmatmul.mubr.msk.f32.vlgmr.msra.gmra.mrb[0].mxu0 %vm835_vm0, %v793_v58  ;;  %v777_v1 = vsel %vm713_vm8, %v681_v50, %v745_v59  ;;  %vm492_vm9 = vcmp.ge.f32.partialorder %v460_v60, 0.0  ;;  %v524_v2 = vmul.f32 0.1, %v460_v60  ;;  %v422_v3 = vmul.f32 %v1581_v6, %v383_v57  ;;  %v401_v50 = vld [vmem:[%s1592_s27 + $0xa8] sm:$0xff] }
  0x1f   : > { %v809_v10 = vadd.f32 %v777_v1, %v571_v61  ;;  %vm698_vm10 = vcmp.ge.f32.partialorder %v666_v62, 0.0  ;;  %v730_v11 = vmul.f32 0.1, %v666_v62  ;;  %vm508_vm11 = vcmp.ge.f32.partialorder %v476_v63, 0.0  ;;  %v386_v61 = vld [vmem:[%s1592_s27 + $0x30] sm:$0xff] }
  0x20   : > { %v556_v13 = vsel %vm492_vm9, %v460_v60, %v524_v2  ;;  %v540_v14 = vmul.f32 0.1, %v476_v63  ;;  %vm714_vm12 = vcmp.ge.f32.partialorder %v682_v0, 0.0  ;;  %v746_v15 = vmul.f32 0.1, %v682_v0  ;;  %v607_v60 = vld [vmem:[%s1598_s10 + $0xa8] sm:$0xff] }
  0x21   : > { %1455 = vmatmul.mubr.msk.f32.vlgmr.msra.gmra.mrb[0].mxu1 %vm835_vm0, %v809_v10  ;;  %v762_v16 = vsel %vm698_vm10, %v666_v62, %v730_v11  ;;  %v461_v17 = vadd.f32 %v1603_v8, %v422_v3  ;;  %v628_v18 = vmul.f32 %v1586_v7, %v589_v4  ;;  %v438_v19 = vmul.f32 %v1581_v6, %v399_v5  ;;  %v592_v62 = vld [vmem:[%s1598_s10 + $0x30] sm:$0xff] }
  0x22   : > { %v794_v22 = vadd.f32 %v762_v16, %v556_v13  ;;  %v572_v23 = vsel %vm508_vm11, %v476_v63, %v540_v14  ;;  %v778_v24 = vsel %vm714_vm12, %v682_v0, %v746_v15  ;;  %v644_v25 = vmul.f32 %v1586_v7, %v605_v12  ;;  %v402_v14 = vld [vmem:[%s1592_s27 + $0xb0] sm:$0xff] }
  0x23   : > { %v810_v27 = vadd.f32 %v778_v24, %v572_v23  ;;  %vm493_vm13 = vcmp.ge.f32.partialorder %v461_v17, 0.0  ;;  %v525_v28 = vmul.f32 0.1, %v461_v17  ;;  %v667_v29 = vadd.f32 %v1608_v9, %v628_v18  ;;  %v608_v24 = vld [vmem:[%s1598_s10 + $0xb0] sm:$0xff] }
  0x24   : > { %1433 = vmatprep.mubr.msk.f32.mxu0 %vm835_vm0, %v794_v22  ;;  %v477_v30 = vadd.f32 %v1603_v8, %v438_v19  ;;  %v683_v31 = vadd.f32 %v1608_v9, %v644_v25  ;;  %v423_v32 = vmul.f32 %v1581_v6, %v384_v20  ;;  %v629_v33 = vmul.f32 %v1586_v7, %v590_v21 }
  0x25   : > { %1457 = vmatprep.mubr.msk.f32.mxu1 %vm835_vm0, %v810_v27  ;;  %v557_v34 = vsel %vm493_vm13, %v461_v17, %v525_v28  ;;  %vm699_vm14 = vcmp.ge.f32.partialorder %v667_v29, 0.0  ;;  %v731_v35 = vmul.f32 0.1, %v667_v29  ;;  %v439_v36 = vmul.f32 %v1581_v6, %v400_v26  ;;  %v387_v28 = vld [vmem:[%s1592_s27 + $0x38] sm:$0xff] }
  0x26   : > { %vm509_vm15 = vcmp.ge.f32.partialorder %v477_v30, 0.0  ;;  %v541_v38 = vmul.f32 0.1, %v477_v30  ;;  %vm715_vm1 = vcmp.ge.f32.partialorder %v683_v31, 0.0  ;;  %v747_v39 = vmul.f32 0.1, %v683_v31 }
  0x27   : > { %v763_v40 = vsel %vm699_vm14, %v667_v29, %v731_v35  ;;  %v462_v41 = vadd.f32 %v1603_v8, %v423_v32  ;;  %v668_v42 = vadd.f32 %v1608_v9, %v629_v33  ;;  %v478_v43 = vadd.f32 %v1603_v8, %v439_v36  ;;  %v593_v29 = vld [vmem:[%s1598_s10 + $0x38] sm:$0xff] }
  0x28   : > { %v795_v44 = vadd.f32 %v763_v40, %v557_v34  ;;  %v573_v45 = vsel %vm509_vm15, %v477_v30, %v541_v38  ;;  %v779_v46 = vsel %vm715_vm1, %v683_v31, %v747_v39  ;;  %v645_v47 = vmul.f32 %v1586_v7, %v606_v37  ;;  %v403_v36 = vld [vmem:[%s1592_s27 + $0xb8] sm:$0xff] }
  0x29   : > { %v811_v51 = vadd.f32 %v779_v46, %v573_v45  ;;  %vm494_vm2 = vcmp.ge.f32.partialorder %v462_v41, 0.0  ;;  %v526_v52 = vmul.f32 0.1, %v462_v41  ;;  %vm700_vm3 = vcmp.ge.f32.partialorder %v668_v42, 0.0 }
  0x2a   : > { %1434 = vmatmul.mubr.msk.f32.gmra.mrb[2].mxu0 %vm835_vm0, %v795_v44  ;;  %v732_v53 = vmul.f32 0.1, %v668_v42  ;;  %vm510_vm4 = vcmp.ge.f32.partialorder %v478_v43, 0.0  ;;  %v542_v54 = vmul.f32 0.1, %v478_v43  ;;  %v684_v55 = vadd.f32 %v1608_v9, %v645_v47 }
  0x2b   : > { %1458 = vmatmul.mubr.msk.f32.gmra.mrb[2].mxu1 %vm835_vm0, %v811_v51  ;;  %v558_v56 = vsel %vm494_vm2, %v462_v41, %v526_v52  ;;  %v424_v57 = vmul.f32 %v1581_v6, %v385_v48  ;;  %v630_v58 = vmul.f32 %v1586_v7, %v591_v49  ;;  %v440_v59 = vmul.f32 %v1581_v6, %v401_v50  ;;  %v609_v41 = vld [vmem:[%s1598_s10 + $0xb8] sm:$0xff]  ;;  %v388_v49 = vld [vmem:[%s1592_s27 + $0x40] sm:$0xff] }
  0x2c   : > { %v764_v63 = vsel %vm700_vm3, %v668_v42, %v732_v53  ;;  %v574_v0 = vsel %vm510_vm4, %v478_v43, %v542_v54  ;;  %vm716_vm5 = vcmp.ge.f32.partialorder %v684_v55, 0.0  ;;  %v748_v1 = vmul.f32 0.1, %v684_v55  ;;  %v594_v53 = vld [vmem:[%s1598_s10 + $0x40] sm:$0xff] }
  0x2d   : > { %v796_v2 = vadd.f32 %v764_v63, %v558_v56  ;;  %v463_v3 = vadd.f32 %v1603_v8, %v424_v57  ;;  %v669_v4 = vadd.f32 %v1608_v9, %v630_v58  ;;  %v479_v5 = vadd.f32 %v1603_v8, %v440_v59 }
  0x2e   : > { %v780_v10 = vsel %vm716_vm5, %v684_v55, %v748_v1  ;;  %v646_v11 = vmul.f32 %v1586_v7, %v607_v60  ;;  %v425_v12 = vmul.f32 %v1581_v6, %v386_v61  ;;  %v631_v13 = vmul.f32 %v1586_v7, %v592_v62  ;;  %v404_v60 = vld [vmem:[%s1592_s27 + $0xc0] sm:$0xff] }
  0x2f   : > { %1436 = vmatprep.mubr.msk.f32.mxu0 %vm835_vm0, %v796_v2  ;;  %v812_v15 = vadd.f32 %v780_v10, %v574_v0  ;;  %vm495_vm6 = vcmp.ge.f32.partialorder %v463_v3, 0.0  ;;  %v527_v16 = vmul.f32 0.1, %v463_v3  ;;  %vm701_vm7 = vcmp.ge.f32.partialorder %v669_v4, 0.0  ;;  %v610_v1 = vld [vmem:[%s1598_s10 + $0xc0] sm:$0xff]  ;;  %v389_v2 = vld [vmem:[%s1592_s27 + $0x48] sm:$0xff] }
  0x30   : > { %v733_v17 = vmul.f32 0.1, %v669_v4  ;;  %vm511_vm8 = vcmp.ge.f32.partialorder %v479_v5, 0.0  ;;  %v543_v18 = vmul.f32 0.1, %v479_v5  ;;  %v685_v19 = vadd.f32 %v1608_v9, %v646_v11 }
  0x31   : > { %1460 = vmatprep.mubr.msk.f32.mxu1 %vm835_vm0, %v812_v15  ;;  %v559_v20 = vsel %vm495_vm6, %v463_v3, %v527_v16  ;;  %v464_v21 = vadd.f32 %v1603_v8, %v425_v12  ;;  %v670_v22 = vadd.f32 %v1608_v9, %v631_v13  ;;  %v441_v23 = vmul.f32 %v1581_v6, %v402_v14  ;;  %v595_v3 = vld [vmem:[%s1598_s10 + $0x48] sm:$0xff] }
  0x32   : > { %v765_v25 = vsel %vm701_vm7, %v669_v4, %v733_v17  ;;  %v575_v26 = vsel %vm511_vm8, %v479_v5, %v543_v18  ;;  %vm717_vm9 = vcmp.ge.f32.partialorder %v685_v19, 0.0  ;;  %v749_v27 = vmul.f32 0.1, %v685_v19  ;;  %v405_v18 = vld [vmem:[%s1592_s27 + $0xc8] sm:$0xff] }
  0x33   : > { %v797_v30 = vadd.f32 %v765_v25, %v559_v20  ;;  %vm496_vm10 = vcmp.ge.f32.partialorder %v464_v21, 0.0  ;;  %v528_v31 = vmul.f32 0.1, %v464_v21  ;;  %vm702_vm11 = vcmp.ge.f32.partialorder %v670_v22, 0.0 }
  0x34   : > { %v781_v32 = vsel %vm717_vm9, %v685_v19, %v749_v27  ;;  %v734_v33 = vmul.f32 0.1, %v670_v22  ;;  %v480_v34 = vadd.f32 %v1603_v8, %v441_v23  ;;  %v647_v35 = vmul.f32 %v1586_v7, %v608_v24 }
  0x35   : > { %1437 = vmatmul.mubr.msk.f32.gmra.mrb[4].mxu0 %vm835_vm0, %v797_v30  ;;  %v813_v37 = vadd.f32 %v781_v32, %v575_v26  ;;  %v560_v38 = vsel %vm496_vm10, %v464_v21, %v528_v31  ;;  %v426_v39 = vmul.f32 %v1581_v6, %v387_v28  ;;  %v632_v40 = vmul.f32 %v1586_v7, %v593_v29  ;;  %v611_v31 = vld [vmem:[%s1598_s10 + $0xc8] sm:$0xff]  ;;  %v390_v32 = vld [vmem:[%s1592_s27 + $0x50] sm:$0xff] }
  0x36   : > { %v766_v42 = vsel %vm702_vm11, %v670_v22, %v734_v33  ;;  %vm512_vm12 = vcmp.ge.f32.partialorder %v480_v34, 0.0  ;;  %v544_v43 = vmul.f32 0.1, %v480_v34  ;;  %v686_v44 = vadd.f32 %v1608_v9, %v647_v35 }
  0x37   : > { %1461 = vmatmul.mubr.msk.f32.gmra.mrb[4].mxu1 %vm835_vm0, %v813_v37  ;;  %v798_v45 = vadd.f32 %v766_v42, %v560_v38  ;;  %v465_v46 = vadd.f32 %v1603_v8, %v426_v39  ;;  %v671_v47 = vadd.f32 %v1608_v9, %v632_v40  ;;  %v442_v48 = vmul.f32 %v1581_v6, %v403_v36  ;;  %v596_v39 = vld [vmem:[%s1598_s10 + $0x50] sm:$0xff] }
  0x38   : > { %v576_v50 = vsel %vm512_vm12, %v480_v34, %v544_v43  ;;  %vm718_vm13 = vcmp.ge.f32.partialorder %v686_v44, 0.0  ;;  %v750_v51 = vmul.f32 0.1, %v686_v44  ;;  %v648_v52 = vmul.f32 %v1586_v7, %v609_v41 }
  0x39   : > { %1439 = vmatprep.mubr.msk.f32.mxu0 %vm835_vm0, %v798_v45  ;;  %vm497_vm14 = vcmp.ge.f32.partialorder %v465_v46, 0.0  ;;  %v529_v54 = vmul.f32 0.1, %v465_v46  ;;  %vm703_vm15 = vcmp.ge.f32.partialorder %v671_v47, 0.0  ;;  %v735_v55 = vmul.f32 0.1, %v671_v47 }
  0x3a   : > { %v782_v56 = vsel %vm718_vm13, %v686_v44, %v750_v51  ;;  %v481_v57 = vadd.f32 %v1603_v8, %v442_v48  ;;  %v687_v58 = vadd.f32 %v1608_v9, %v648_v52  ;;  %v427_v59 = vmul.f32 %v1581_v6, %v388_v49  ;;  %v406_v44 = vld [vmem:[%s1592_s27 + $0xd0] sm:$0xff] }
  0x3b   : > { %v814_v61 = vadd.f32 %v782_v56, %v576_v50  ;;  %v561_v62 = vsel %vm497_vm14, %v465_v46, %v529_v54  ;;  %v767_v63 = vsel %vm703_vm15, %v671_v47, %v735_v55  ;;  %v633_v0 = vmul.f32 %v1586_v7, %v594_v53  ;;  %v612_v45 = vld [vmem:[%s1598_s10 + $0xd0] sm:$0xff]  ;;  %v391_v46 = vld [vmem:[%s1592_s27 + $0x58] sm:$0xff] }
  0x3c   : > { %v799_v4 = vadd.f32 %v767_v63, %v561_v62  ;;  %vm513_vm1 = vcmp.ge.f32.partialorder %v481_v57, 0.0  ;;  %v545_v5 = vmul.f32 0.1, %v481_v57  ;;  %vm719_vm2 = vcmp.ge.f32.partialorder %v687_v58, 0.0 }
  0x3d   : > { %1463 = vmatprep.mubr.msk.f32.mxu1 %vm835_vm0, %v814_v61  ;;  %v751_v10 = vmul.f32 0.1, %v687_v58  ;;  %v466_v11 = vadd.f32 %v1603_v8, %v427_v59  ;;  %v672_v12 = vadd.f32 %v1608_v9, %v633_v0  ;;  %v443_v13 = vmul.f32 %v1581_v6, %v404_v60  ;;  %v407_v59 = vld [vmem:[%s1592_s27 + $0xd8] sm:$0xff] }
  0x3e   : > { %1440 = vmatmul.mubr.msk.f32.gmra.mrb[6].mxu0 %vm835_vm0, %v799_v4  ;;  %v577_v14 = vsel %vm513_vm1, %v481_v57, %v545_v5  ;;  %v649_v15 = vmul.f32 %v1586_v7, %v610_v1  ;;  %v428_v16 = vmul.f32 %v1581_v6, %v389_v2  ;;  %v634_v17 = vmul.f32 %v1586_v7, %v595_v3 }
  0x3f   : > { %v783_v19 = vsel %vm719_vm2, %v687_v58, %v751_v10  ;;  %vm498_vm3 = vcmp.ge.f32.partialorder %v466_v11, 0.0  ;;  %v530_v20 = vmul.f32 0.1, %v466_v11  ;;  %vm704_vm4 = vcmp.ge.f32.partialorder %v672_v12, 0.0  ;;  %v597_v58 = vld [vmem:[%s1598_s10 + $0x58] sm:$0xff] }
  0x40   : > { %v815_v21 = vadd.f32 %v783_v19, %v577_v14  ;;  %v736_v22 = vmul.f32 0.1, %v672_v12  ;;  %v482_v23 = vadd.f32 %v1603_v8, %v443_v13  ;;  %v688_v24 = vadd.f32 %v1608_v9, %v649_v15  ;;  %v392_v19 = vld [vmem:[%s1592_s27 + $0x60] sm:$0xff] }
  0x41   : > { %v562_v25 = vsel %vm498_vm3, %v466_v11, %v530_v20  ;;  %v467_v26 = vadd.f32 %v1603_v8, %v428_v16  ;;  %v673_v27 = vadd.f32 %v1608_v9, %v634_v17  ;;  %v444_v28 = vmul.f32 %v1581_v6, %v405_v18 }
  0x42   : > { %1464 = vmatmul.mubr.msk.f32.gmra.mrb[6].mxu1 %vm835_vm0, %v815_v21  ;;  %v768_v29 = vsel %vm704_vm4, %v672_v12, %v736_v22  ;;  %vm514_vm5 = vcmp.ge.f32.partialorder %v482_v23, 0.0  ;;  %v546_v30 = vmul.f32 0.1, %v482_v23  ;;  %vm720_vm6 = vcmp.ge.f32.partialorder %v688_v24, 0.0  ;;  %v613_v12 = vld [vmem:[%s1598_s10 + $0xd8] sm:$0xff] }
  0x43   : > { %v800_v33 = vadd.f32 %v768_v29, %v562_v25  ;;  %v752_v34 = vmul.f32 0.1, %v688_v24  ;;  %vm499_vm7 = vcmp.ge.f32.partialorder %v467_v26, 0.0  ;;  %v531_v35 = vmul.f32 0.1, %v467_v26  ;;  %v408_v25 = vld [vmem:[%s1592_s27 + $0xe0] sm:$0xff] }
  0x44   : > { %v578_v36 = vsel %vm514_vm5, %v482_v23, %v546_v30  ;;  %vm705_vm8 = vcmp.ge.f32.partialorder %v673_v27, 0.0  ;;  %v737_v37 = vmul.f32 0.1, %v673_v27  ;;  %v483_v38 = vadd.f32 %v1603_v8, %v444_v28 }
  0x45   : > { %1442 = vmatprep.mubr.msk.f32.mxu0 %vm835_vm0, %v800_v33  ;;  %v784_v40 = vsel %vm720_vm6, %v688_v24, %v752_v34  ;;  %v563_v41 = vsel %vm499_vm7, %v467_v26, %v531_v35  ;;  %v650_v42 = vmul.f32 %v1586_v7, %v611_v31  ;;  %v429_v43 = vmul.f32 %v1581_v6, %v390_v32  ;;  %v598_v24 = vld [vmem:[%s1598_s10 + $0x60] sm:$0xff] }
  0x46   : > { %v816_v47 = vadd.f32 %v784_v40, %v578_v36  ;;  %v769_v48 = vsel %vm705_vm8, %v673_v27, %v737_v37  ;;  %vm515_vm9 = vcmp.ge.f32.partialorder %v483_v38, 0.0  ;;  %v547_v49 = vmul.f32 0.1, %v483_v38  ;;  %v614_v26 = vld [vmem:[%s1598_s10 + $0xe0] sm:$0xff]  ;;  %v393_v37 = vld [vmem:[%s1592_s27 + $0x68] sm:$0xff] }
  0x47   : > { %v801_v50 = vadd.f32 %v769_v48, %v563_v41  ;;  %v689_v51 = vadd.f32 %v1608_v9, %v650_v42  ;;  %v468_v52 = vadd.f32 %v1603_v8, %v429_v43  ;;  %v635_v53 = vmul.f32 %v1586_v7, %v596_v39  ;;  %v409_v39 = vld [vmem:[%s1592_s27 + $0xe8] sm:$0xff] }
  0x48   : > { %1466 = vmatprep.mubr.msk.f32.mxu1 %vm835_vm0, %v816_v47  ;;  %v579_v54 = vsel %vm515_vm9, %v483_v38, %v547_v49  ;;  %v445_v55 = vmul.f32 %v1581_v6, %v406_v44  ;;  %v651_v56 = vmul.f32 %v1586_v7, %v612_v45  ;;  %v430_v57 = vmul.f32 %v1581_v6, %v391_v46  ;;  %v599_v38 = vld [vmem:[%s1598_s10 + $0x68] sm:$0xff] }
  0x49   : > { %1443 = vmatmul.mubr.msk.f32.gmra.mrb[8].mxu0 %vm835_vm0, %v801_v50  ;;  %vm721_vm10 = vcmp.ge.f32.partialorder %v689_v51, 0.0  ;;  %v753_v60 = vmul.f32 0.1, %v689_v51  ;;  %vm500_vm11 = vcmp.ge.f32.partialorder %v468_v52, 0.0  ;;  %v532_v61 = vmul.f32 0.1, %v468_v52 }
  0x4a   : > { %v674_v62 = vadd.f32 %v1608_v9, %v635_v53  ;;  %v484_v63 = vadd.f32 %v1603_v8, %v445_v55  ;;  %v690_v0 = vadd.f32 %v1608_v9, %v651_v56  ;;  %v469_v1 = vadd.f32 %v1603_v8, %v430_v57  ;;  %v615_v53 = vld [vmem:[%s1598_s10 + $0xe8] sm:$0xff] }
  0x4b   : > { %v785_v2 = vsel %vm721_vm10, %v689_v51, %v753_v60  ;;  %v564_v3 = vsel %vm500_vm11, %v468_v52, %v532_v61  ;;  %v636_v4 = vmul.f32 %v1586_v7, %v597_v58  ;;  %v446_v5 = vmul.f32 %v1581_v6, %v407_v59 }
  0x4c   : > { %v817_v10 = vadd.f32 %v785_v2, %v579_v54  ;;  %vm706_vm12 = vcmp.ge.f32.partialorder %v674_v62, 0.0  ;;  %v738_v11 = vmul.f32 0.1, %v674_v62  ;;  %vm516_vm13 = vcmp.ge.f32.partialorder %v484_v63, 0.0 }
  0x4d   : > { %v548_v13 = vmul.f32 0.1, %v484_v63  ;;  %vm722_vm14 = vcmp.ge.f32.partialorder %v690_v0, 0.0  ;;  %v754_v14 = vmul.f32 0.1, %v690_v0  ;;  %vm501_vm15 = vcmp.ge.f32.partialorder %v469_v1, 0.0 }
  0x4e   : > { %1467 = vmatmul.mubr.msk.f32.gmra.mrb[8].mxu1 %vm835_vm0, %v817_v10  ;;  %v770_v15 = vsel %vm706_vm12, %v674_v62, %v738_v11  ;;  %v533_v16 = vmul.f32 0.1, %v469_v1  ;;  %v675_v17 = vadd.f32 %v1608_v9, %v636_v4  ;;  %v485_v18 = vadd.f32 %v1603_v8, %v446_v5  ;;  %v600_v4 = vld [vmem:[%s1598_s10 + $0x70] sm:$0xff] }
  0x4f   : > { %v802_v20 = vadd.f32 %v770_v15, %v564_v3  ;;  %v580_v21 = vsel %vm516_vm13, %v484_v63, %v548_v13  ;;  %v786_v22 = vsel %vm722_vm14, %v690_v0, %v754_v14  ;;  %v652_v23 = vmul.f32 %v1586_v7, %v613_v12  ;;  %v394_v0 = vld [vmem:[%s1592_s27 + $0x70] sm:$0xff] }
  0x50   : > { %v818_v27 = vadd.f32 %v786_v22, %v580_v21  ;;  %v565_v28 = vsel %vm501_vm15, %v469_v1, %v533_v16  ;;  %vm707_vm1 = vcmp.ge.f32.partialorder %v675_v17, 0.0  ;;  %v739_v29 = vmul.f32 0.1, %v675_v17  ;;  %v410_v5 = vld [vmem:[%s1592_s27 + $0xf0] sm:$0xff]  ;;  %v395_v21 = vld [vmem:[%s1592_s27 + $0x78] sm:$0xff] }
  0x51   : > { %1445 = vmatprep.mubr.msk.f32.mxu0 %vm835_vm0, %v802_v20  ;;  %vm517_vm2 = vcmp.ge.f32.partialorder %v485_v18, 0.0  ;;  %v549_v30 = vmul.f32 0.1, %v485_v18  ;;  %v691_v31 = vadd.f32 %v1608_v9, %v652_v23  ;;  %v431_v32 = vmul.f32 %v1581_v6, %v392_v19  ;;  %v616_v10 = vld [vmem:[%s1598_s10 + $0xf0] sm:$0xff]  ;;  %v601_v22 = vld [vmem:[%s1598_s10 + $0x78] sm:$0xff] }
  0x52   : > { %1469 = vmatprep.mubr.msk.f32.mxu1 %vm835_vm0, %v818_v27  ;;  %v771_v33 = vsel %vm707_vm1, %v675_v17, %v739_v29  ;;  %v637_v34 = vmul.f32 %v1586_v7, %v598_v24  ;;  %v447_v35 = vmul.f32 %v1581_v6, %v408_v25  ;;  %v653_v36 = vmul.f32 %v1586_v7, %v614_v26  ;;  %v411_v23 = vld [vmem:[%s1592_s27 + $0xf8] sm:$0xff] }
  0x53   : > { %v803_v40 = vadd.f32 %v771_v33, %v565_v28  ;;  %v581_v41 = vsel %vm517_vm2, %v485_v18, %v549_v30  ;;  %vm723_vm3 = vcmp.ge.f32.partialorder %v691_v31, 0.0  ;;  %v755_v42 = vmul.f32 0.1, %v691_v31 }
  0x54   : > { %v470_v43 = vadd.f32 %v1603_v8, %v431_v32  ;;  %v676_v44 = vadd.f32 %v1608_v9, %v637_v34  ;;  %v486_v45 = vadd.f32 %v1603_v8, %v447_v35  ;;  %v692_v46 = vadd.f32 %v1608_v9, %v653_v36 }
  0x55   : > { %1446 = vmatmul.mubr.msk.f32.gmra.mrb[10].mxu0 %vm835_vm0, %v803_v40  ;;  %v787_v47 = vsel %vm723_vm3, %v691_v31, %v755_v42  ;;  %v432_v48 = vmul.f32 %v1581_v6, %v393_v37  ;;  %v638_v49 = vmul.f32 %v1586_v7, %v599_v38  ;;  %v448_v50 = vmul.f32 %v1581_v6, %v409_v39  ;;  %v617_v37 = vld [vmem:[%s1598_s10 + $0xf8] sm:$0xff] }
  0x56   : > { %v819_v51 = vadd.f32 %v787_v47, %v581_v41  ;;  %vm502_vm4 = vcmp.ge.f32.partialorder %v470_v43, 0.0  ;;  %v534_v52 = vmul.f32 0.1, %v470_v43  ;;  %vm708_vm5 = vcmp.ge.f32.partialorder %v676_v44, 0.0 }
  0x57   : > { %v740_v54 = vmul.f32 0.1, %v676_v44  ;;  %vm518_vm6 = vcmp.ge.f32.partialorder %v486_v45, 0.0  ;;  %v550_v55 = vmul.f32 0.1, %v486_v45  ;;  %vm724_vm7 = vcmp.ge.f32.partialorder %v692_v46, 0.0 }
  0x58   : > { %1470 = vmatmul.mubr.msk.f32.gmra.mrb[10].mxu1 %vm835_vm0, %v819_v51  ;;  %v566_v56 = vsel %vm502_vm4, %v470_v43, %v534_v52  ;;  %v756_v57 = vmul.f32 0.1, %v692_v46  ;;  %v471_v58 = vadd.f32 %v1603_v8, %v432_v48  ;;  %v677_v59 = vadd.f32 %v1608_v9, %v638_v49 }
  0x59   : > { %v772_v60 = vsel %vm708_vm5, %v676_v44, %v740_v54  ;;  %v582_v61 = vsel %vm518_vm6, %v486_v45, %v550_v55  ;;  %v487_v62 = vadd.f32 %v1603_v8, %v448_v50  ;;  %v654_v63 = vmul.f32 %v1586_v7, %v615_v53 }
  0x5a   : > { %v804_v1 = vadd.f32 %v772_v60, %v566_v56  ;;  %v788_v2 = vsel %vm724_vm7, %v692_v46, %v756_v57  ;;  %vm503_vm8 = vcmp.ge.f32.partialorder %v471_v58, 0.0  ;;  %v535_v3 = vmul.f32 0.1, %v471_v58  ;;  %v1158_v60 = vld [vmem:[%s1838_s17 + $0x8] sm:$0xff] }
  0x5b   : > { %v820_v11 = vadd.f32 %v788_v2, %v582_v61  ;;  %vm709_vm9 = vcmp.ge.f32.partialorder %v677_v59, 0.0  ;;  %v741_v12 = vmul.f32 0.1, %v677_v59  ;;  %vm519_vm10 = vcmp.ge.f32.partialorder %v487_v62, 0.0 }
  0x5c   : > { %1448 = vmatprep.mubr.msk.f32.mxu0 %vm835_vm0, %v804_v1  ;;  %v567_v13 = vsel %vm503_vm8, %v471_v58, %v535_v3  ;;  %v551_v14 = vmul.f32 0.1, %v487_v62  ;;  %v693_v15 = vadd.f32 %v1608_v9, %v654_v63  ;;  %v433_v16 = vmul.f32 %v1581_v6, %v394_v0  ;;  %v1157_v63 = vld [vmem:[%s1838_s17] sm:$0xff]  ;;  %v1174_v3 = vld [vmem:[%s1838_s17 + $0x88] sm:$0xff] }
  0x5d   : > { %1472 = vmatprep.mubr.msk.f32.mxu1 %vm835_vm0, %v820_v11  ;;  %v773_v17 = vsel %vm709_vm9, %v677_v59, %v741_v12  ;;  %v639_v18 = vmul.f32 %v1586_v7, %v600_v4  ;;  %v449_v19 = vmul.f32 %v1581_v6, %v410_v5  ;;  %v655_v20 = vmul.f32 %v1586_v7, %v616_v10  ;;  %v1173_v11 = vld [vmem:[%s1838_s17 + $0x80] sm:$0xff] }
  0x5e   : > { %v805_v24 = vadd.f32 %v773_v17, %v567_v13  ;;  %v583_v25 = vsel %vm519_vm10, %v487_v62, %v551_v14  ;;  %vm725_vm11 = vcmp.ge.f32.partialorder %v693_v15, 0.0  ;;  %v757_v26 = vmul.f32 0.1, %v693_v15 }
  0x5f   : > { %v472_v27 = vadd.f32 %v1603_v8, %v433_v16  ;;  %v678_v28 = vadd.f32 %v1608_v9, %v639_v18  ;;  %v488_v29 = vadd.f32 %v1603_v8, %v449_v19  ;;  %v694_v30 = vadd.f32 %v1608_v9, %v655_v20  ;;  %v1160_v16 = vld [vmem:[%s1838_s17 + $0x18] sm:$0xff] }
  0x60   : > { %1449 = vmatmul.mubr.msk.f32.gmra.mrb[12].mxu0 %vm835_vm0, %v805_v24  ;;  %v789_v31 = vsel %vm725_vm11, %v693_v15, %v757_v26  ;;  %v434_v32 = vmul.f32 %v1581_v6, %v395_v21  ;;  %v640_v33 = vmul.f32 %v1586_v7, %v601_v22  ;;  %v450_v34 = vmul.f32 %v1581_v6, %v411_v23  ;;  %v1176_v19 = vld [vmem:[%s1838_s17 + $0x98] sm:$0xff]  ;;  %v1159_v21 = vld [vmem:[%s1838_s17 + $0x10] sm:$0xff] }
  0x61   : > { %v821_v35 = vadd.f32 %v789_v31, %v583_v25  ;;  %vm504_vm12 = vcmp.ge.f32.partialorder %v472_v27, 0.0  ;;  %v536_v36 = vmul.f32 0.1, %v472_v27  ;;  %vm710_vm13 = vcmp.ge.f32.partialorder %v678_v28, 0.0  ;;  %v1175_v25 = vld [vmem:[%s1838_s17 + $0x90] sm:$0xff] }
  0x62   : > { %v742_v38 = vmul.f32 0.1, %v678_v28  ;;  %vm520_vm14 = vcmp.ge.f32.partialorder %v488_v29, 0.0  ;;  %v552_v39 = vmul.f32 0.1, %v488_v29  ;;  %vm726_vm15 = vcmp.ge.f32.partialorder %v694_v30, 0.0 }
  0x63   : > { %1473 = vmatmul.mubr.msk.f32.gmra.mrb[12].mxu1 %vm835_vm0, %v821_v35  ;;  %v568_v40 = vsel %vm504_vm12, %v472_v27, %v536_v36  ;;  %v758_v41 = vmul.f32 0.1, %v694_v30  ;;  %v473_v42 = vadd.f32 %v1603_v8, %v434_v32  ;;  %v679_v43 = vadd.f32 %v1608_v9, %v640_v33  ;;  %v1162_v32 = vld [vmem:[%s1838_s17 + $0x28] sm:$0xff]  ;;  %v1161_v35 = vld [vmem:[%s1838_s17 + $0x20] sm:$0xff] }
  0x64   : > { %v774_v44 = vsel %vm710_vm13, %v678_v28, %v742_v38  ;;  %v584_v45 = vsel %vm520_vm14, %v488_v29, %v552_v39  ;;  %v489_v6 = vadd.f32 %v1603_v8, %v450_v34  ;;  %v656_v46 = vmul.f32 %v1586_v7, %v617_v37  ;;  %v1178_v37 = vld [vmem:[%s1838_s17 + $0xa8] sm:$0xff] }
  0x65   : > { %v806_v47 = vadd.f32 %v774_v44, %v568_v40  ;;  %v790_v48 = vsel %vm726_vm15, %v694_v30, %v758_v41  ;;  %vm505_vm1 = vcmp.ge.f32.partialorder %v473_v42, 0.0  ;;  %v537_v49 = vmul.f32 0.1, %v473_v42 }
  0x66   : > { %v822_v50 = vadd.f32 %v790_v48, %v584_v45  ;;  %vm711_vm2 = vcmp.ge.f32.partialorder %v679_v43, 0.0  ;;  %v743_v51 = vmul.f32 0.1, %v679_v43  ;;  %vm521_vm3 = vcmp.ge.f32.partialorder %v489_v6, 0.0 }
  0x67   : > { %1451 = vmatprep.mubr.msk.f32.mxu0 %vm835_vm0, %v806_v47  ;;  %v569_v52 = vsel %vm505_vm1, %v473_v42, %v537_v49  ;;  %v553_v53 = vmul.f32 0.1, %v489_v6  ;;  %v695_v54 = vadd.f32 %v1608_v9, %v656_v46  ;;  %v1843_v9 = vld [vmem:[%s1990_s8] ss:$0 sm:$0xff]  ;;  %v1164_v47 = vld [vmem:[%s1838_s17 + $0x38] sm:$0xff] }
  0x68   : > { %1475 = vmatprep.mubr.msk.f32.mxu1 %vm835_vm0, %v822_v50  ;;  %v775_v8 = vsel %vm711_vm2, %v679_v43, %v743_v51  ;;  %v1177_v42 = vld [vmem:[%s1838_s17 + $0xa0] sm:$0xff]  ;;  %v1163_v50 = vld [vmem:[%s1838_s17 + $0x30] sm:$0xff] }
  0x69   : > { %v807_v7 = vadd.f32 %v775_v8, %v569_v52  ;;  %v585_v55 = vsel %vm521_vm3, %v489_v6, %v553_v53  ;;  %vm727_vm4 = vcmp.ge.f32.partialorder %v695_v54, 0.0  ;;  %v759_v56 = vmul.f32 0.1, %v695_v54 }
  0x6b   : > { %1452 = vmatmul.mubr.msk.f32.gmra.mrb[14].mxu0 %vm835_vm0, %v807_v7  ;;  %v791_v57 = vsel %vm727_vm4, %v695_v54, %v759_v56  ;;  %v1180_v54 = vld [vmem:[%s1838_s17 + $0xb8] sm:$0xff]  ;;  %v1179_v56 = vld [vmem:[%s1838_s17 + $0xb0] sm:$0xff] }
  0x6c   : > { %v823_v58 = vadd.f32 %v791_v57, %v585_v55 }
  0x6e   : > { %1476 = vmatmul.mubr.msk.f32.gmra.mrb[14].mxu1 %vm835_vm0, %v823_v58  ;;  %vm1221_vm0 = vcmask 64512  }
  0xf1   : > { %v1432_v59 = vpop.f32.mrb[0].mxu0 }
  0xf2   : > { %v1004_v61 = vadd.f32 %v1432_v59, %v1843_v9  ;;  %v998_v62 = vpop.f32.mrb[1].mxu0 }
  0xf3   : > { %v999_v0 = vadd.f32 %v1843_v9, %v998_v62 }
  0xf4   : > { %v1190_v1 = vadd.f32 %v1158_v60, %v1004_v61  ;;  %v1456_v2 = vpop.f32.mrb[0].mxu1  ;;  %v1166_v61 = vld [vmem:[%s1838_s17 + $0x48] sm:$0xff] }
  0xf5   : > { %v1084_v4 = vadd.f32 %v1456_v2, %v1843_v9  ;;  %v1189_v5 = vadd.f32 %v1157_v63, %v999_v0  ;;  %v1078_v10 = vpop.f32.mrb[1].mxu1  ;;  %v1165_v0 = vld [vmem:[%s1838_s17 + $0x40] sm:$0xff] }
  0xf6   : > { %1223 = vst.msk [vmem:[%s1852_s23 + $0x8] sm:$0xff] %vm1221_vm0, %v1190_v1  ;;  %v1079_v12 = vadd.f32 %v1843_v9, %v1078_v10 }
  0xf7   : > { %v1206_v13 = vadd.f32 %v1174_v3, %v1084_v4  ;;  %1222 = vst.msk [vmem:[%s1852_s23] sm:$0xff] %vm1221_vm0, %v1189_v5  ;;  %v1182_v5 = vld [vmem:[%s1838_s17 + $0xc8] sm:$0xff] }
  0xf8   : > { %v1205_v14 = vadd.f32 %v1173_v11, %v1079_v12  ;;  %v1181_v12 = vld [vmem:[%s1838_s17 + $0xc0] sm:$0xff] }
  0xf9   : > { %1239 = vst.msk [vmem:[%s1852_s23 + $0x88] sm:$0xff] %vm1221_vm0, %v1206_v13 }
  0xfa   : > { %1238 = vst.msk [vmem:[%s1852_s23 + $0x80] sm:$0xff] %vm1221_vm0, %v1205_v14 }
  0xfd   : > { %v1435_v15 = vpop.f32.mrb[2].mxu0 }
  0xfe   : > { %v1014_v17 = vadd.f32 %v1435_v15, %v1843_v9  ;;  %v1459_v18 = vpop.f32.mrb[2].mxu1  ;;  %v1008_v20 = vpop.f32.mrb[3].mxu0 }
  0xff   : > { %v1094_v22 = vadd.f32 %v1459_v18, %v1843_v9  ;;  %v1009_v23 = vadd.f32 %v1843_v9, %v1008_v20  ;;  %v1088_v24 = vpop.f32.mrb[3].mxu1  ;;  %v1167_v20 = vld [vmem:[%s1838_s17 + $0x50] sm:$0xff] }
 0x100   : > { %v1192_v26 = vadd.f32 %v1160_v16, %v1014_v17  ;;  %v1089_v27 = vadd.f32 %v1843_v9, %v1088_v24  ;;  %v1168_v17 = vld [vmem:[%s1838_s17 + $0x58] sm:$0xff] }
 0x101   : > { %v1208_v28 = vadd.f32 %v1176_v19, %v1094_v22  ;;  %v1191_v29 = vadd.f32 %v1159_v21, %v1009_v23  ;;  %v1184_v24 = vld [vmem:[%s1838_s17 + $0xd8] sm:$0xff] }
 0x102   : > { %1225 = vst.msk [vmem:[%s1852_s23 + $0x18] sm:$0xff] %vm1221_vm0, %v1192_v26  ;;  %v1207_v30 = vadd.f32 %v1175_v25, %v1089_v27 }
 0x103   : > { %1241 = vst.msk [vmem:[%s1852_s23 + $0x98] sm:$0xff] %vm1221_vm0, %v1208_v28  ;;  %1224 = vst.msk [vmem:[%s1852_s23 + $0x10] sm:$0xff] %vm1221_vm0, %v1191_v29  ;;  %v1183_v28 = vld [vmem:[%s1838_s17 + $0xd0] sm:$0xff] }
 0x104   : > { %1240 = vst.msk [vmem:[%s1852_s23 + $0x90] sm:$0xff] %vm1221_vm0, %v1207_v30 }
 0x108   : > { %v1438_v31 = vpop.f32.mrb[4].mxu0 }
 0x109   : > { %v1024_v33 = vadd.f32 %v1438_v31, %v1843_v9  ;;  %v1018_v34 = vpop.f32.mrb[5].mxu0 }
 0x10a   : > { %v1462_v36 = vpop.f32.mrb[4].mxu1  ;;  %v1019_v38 = vadd.f32 %v1843_v9, %v1018_v34 }
 0x10b   : > { %v1194_v39 = vadd.f32 %v1162_v32, %v1024_v33  ;;  %v1104_v40 = vadd.f32 %v1462_v36, %v1843_v9  ;;  %v1098_v41 = vpop.f32.mrb[5].mxu1  ;;  %v1170_v33 = vld [vmem:[%s1838_s17 + $0x68] sm:$0xff]  ;;  %v1169_v36 = vld [vmem:[%s1838_s17 + $0x60] sm:$0xff] }
 0x10c   : > { %v1193_v43 = vadd.f32 %v1161_v35, %v1019_v38  ;;  %v1099_v44 = vadd.f32 %v1843_v9, %v1098_v41 }
 0x10d   : > { %1227 = vst.msk [vmem:[%s1852_s23 + $0x28] sm:$0xff] %vm1221_vm0, %v1194_v39  ;;  %v1210_v45 = vadd.f32 %v1178_v37, %v1104_v40  ;;  %v1186_v40 = vld [vmem:[%s1838_s17 + $0xe8] sm:$0xff] }
 0x10e   : > { %1226 = vst.msk [vmem:[%s1852_s23 + $0x20] sm:$0xff] %vm1221_vm0, %v1193_v43  ;;  %v1209_v6 = vadd.f32 %v1177_v42, %v1099_v44  ;;  %v1185_v44 = vld [vmem:[%s1838_s17 + $0xe0] sm:$0xff] }
 0x10f   : > { %1243 = vst.msk [vmem:[%s1852_s23 + $0xa8] sm:$0xff] %vm1221_vm0, %v1210_v45 }
 0x110   : > { %1242 = vst.msk [vmem:[%s1852_s23 + $0xa0] sm:$0xff] %vm1221_vm0, %v1209_v6 }
 0x111   : > { %v1441_v46 = vpop.f32.mrb[6].mxu0 }
 0x112   : > { %v1034_v48 = vadd.f32 %v1441_v46, %v1843_v9  ;;  %v1028_v49 = vpop.f32.mrb[7].mxu0 }
 0x113   : > { %v1029_v51 = vadd.f32 %v1843_v9, %v1028_v49 }
 0x114   : > { %v1196_v52 = vadd.f32 %v1164_v47, %v1034_v48  ;;  %v1172_v48 = vld [vmem:[%s1838_s17 + $0x78] sm:$0xff] }
 0x115   : > { %v1465_v53 = vpop.f32.mrb[6].mxu1  ;;  %v1195_v8 = vadd.f32 %v1163_v50, %v1029_v51  ;;  %v1171_v51 = vld [vmem:[%s1838_s17 + $0x70] sm:$0xff] }
 0x116   : > { %1229 = vst.msk [vmem:[%s1852_s23 + $0x38] sm:$0xff] %vm1221_vm0, %v1196_v52  ;;  %v1114_v7 = vadd.f32 %v1465_v53, %v1843_v9  ;;  %v1108_v55 = vpop.f32.mrb[7].mxu1 }
 0x117   : > { %1228 = vst.msk [vmem:[%s1852_s23 + $0x30] sm:$0xff] %vm1221_vm0, %v1195_v8  ;;  %v1109_v57 = vadd.f32 %v1843_v9, %v1108_v55  ;;  %v1188_v8 = vld [vmem:[%s1838_s17 + $0xf8] sm:$0xff] }
 0x118   : > { %v1212_v58 = vadd.f32 %v1180_v54, %v1114_v7 }
 0x119   : > { %v1211_v59 = vadd.f32 %v1179_v56, %v1109_v57  ;;  %v1187_v57 = vld [vmem:[%s1838_s17 + $0xf0] sm:$0xff] }
 0x11a   : > { %1245 = vst.msk [vmem:[%s1852_s23 + $0xb8] sm:$0xff] %vm1221_vm0, %v1212_v58 }
 0x11b   : > { %1244 = vst.msk [vmem:[%s1852_s23 + $0xb0] sm:$0xff] %vm1221_vm0, %v1211_v59 }
 0x11c   : > { %v1444_v60 = vpop.f32.mrb[8].mxu0 }
 0x11d   : > { %v1044_v62 = vadd.f32 %v1444_v60, %v1843_v9  ;;  %v1038_v63 = vpop.f32.mrb[9].mxu0 }
 0x11e   : > { %v1039_v1 = vadd.f32 %v1843_v9, %v1038_v63 }
 0x11f   : > { %v1198_v2 = vadd.f32 %v1166_v61, %v1044_v62 }
 0x120   : > { %v1197_v3 = vadd.f32 %v1165_v0, %v1039_v1 }
 0x121   : > { %1231 = vst.msk [vmem:[%s1852_s23 + $0x48] sm:$0xff] %vm1221_vm0, %v1198_v2  ;;  %v1468_v4 = vpop.f32.mrb[8].mxu1 }
 0x122   : > { %v1124_v10 = vadd.f32 %v1468_v4, %v1843_v9  ;;  %1230 = vst.msk [vmem:[%s1852_s23 + $0x40] sm:$0xff] %vm1221_vm0, %v1197_v3  ;;  %v1118_v11 = vpop.f32.mrb[9].mxu1 }
 0x123   : > { %v1119_v13 = vadd.f32 %v1843_v9, %v1118_v11 }
 0x124   : > { %v1214_v14 = vadd.f32 %v1182_v5, %v1124_v10 }
 0x125   : > { %v1213_v15 = vadd.f32 %v1181_v12, %v1119_v13 }
 0x126   : > { %1247 = vst.msk [vmem:[%s1852_s23 + $0xc8] sm:$0xff] %vm1221_vm0, %v1214_v14 }
 0x127   : > { %1246 = vst.msk [vmem:[%s1852_s23 + $0xc0] sm:$0xff] %vm1221_vm0, %v1213_v15 }
 0x128   : > { %v1447_v16 = vpop.f32.mrb[10].mxu0 }
 0x129   : > { %v1054_v18 = vadd.f32 %v1447_v16, %v1843_v9  ;;  %v1048_v19 = vpop.f32.mrb[11].mxu0 }
 0x12a   : > { %v1049_v21 = vadd.f32 %v1843_v9, %v1048_v19 }
 0x12b   : > { %v1200_v22 = vadd.f32 %v1168_v17, %v1054_v18  ;;  %v1471_v23 = vpop.f32.mrb[10].mxu1 }
 0x12c   : > { %v1134_v25 = vadd.f32 %v1471_v23, %v1843_v9  ;;  %v1199_v26 = vadd.f32 %v1167_v20, %v1049_v21  ;;  %v1128_v27 = vpop.f32.mrb[11].mxu1 }
 0x12d   : > { %1233 = vst.msk [vmem:[%s1852_s23 + $0x58] sm:$0xff] %vm1221_vm0, %v1200_v22  ;;  %v1129_v29 = vadd.f32 %v1843_v9, %v1128_v27 }
 0x12e   : > { %v1216_v30 = vadd.f32 %v1184_v24, %v1134_v25  ;;  %1232 = vst.msk [vmem:[%s1852_s23 + $0x50] sm:$0xff] %vm1221_vm0, %v1199_v26 }
 0x12f   : > { %v1215_v31 = vadd.f32 %v1183_v28, %v1129_v29 }
 0x130   : > { %1249 = vst.msk [vmem:[%s1852_s23 + $0xd8] sm:$0xff] %vm1221_vm0, %v1216_v30 }
 0x131   : > { %1248 = vst.msk [vmem:[%s1852_s23 + $0xd0] sm:$0xff] %vm1221_vm0, %v1215_v31 }
 0x133   : > { %v1450_v32 = vpop.f32.mrb[12].mxu0 }
 0x134   : > { %v1064_v34 = vadd.f32 %v1450_v32, %v1843_v9  ;;  %v1058_v35 = vpop.f32.mrb[13].mxu0 }
 0x135   : > { %v1059_v37 = vadd.f32 %v1843_v9, %v1058_v35 }
 0x136   : > { %v1202_v38 = vadd.f32 %v1170_v33, %v1064_v34  ;;  %v1474_v39 = vpop.f32.mrb[12].mxu1 }
 0x137   : > { %v1144_v41 = vadd.f32 %v1474_v39, %v1843_v9  ;;  %v1201_v42 = vadd.f32 %v1169_v36, %v1059_v37  ;;  %v1138_v43 = vpop.f32.mrb[13].mxu1 }
 0x138   : > { %1235 = vst.msk [vmem:[%s1852_s23 + $0x68] sm:$0xff] %vm1221_vm0, %v1202_v38  ;;  %v1139_v45 = vadd.f32 %v1843_v9, %v1138_v43 }
 0x139   : > { %v1218_v6 = vadd.f32 %v1186_v40, %v1144_v41  ;;  %1234 = vst.msk [vmem:[%s1852_s23 + $0x60] sm:$0xff] %vm1221_vm0, %v1201_v42 }
 0x13a   : > { %v1217_v46 = vadd.f32 %v1185_v44, %v1139_v45 }
 0x13b   : > { %1251 = vst.msk [vmem:[%s1852_s23 + $0xe8] sm:$0xff] %vm1221_vm0, %v1218_v6 }
 0x13c   : > { %1250 = vst.msk [vmem:[%s1852_s23 + $0xe0] sm:$0xff] %vm1221_vm0, %v1217_v46 }
 0x13e   : > { %v1453_v47 = vpop.f32.mrb[14].mxu0 }
 0x13f   : > { %v1074_v49 = vadd.f32 %v1453_v47, %v1843_v9  ;;  %v1068_v50 = vpop.f32.mrb[15].mxu0 }
 0x140   : > { %v1069_v52 = vadd.f32 %v1843_v9, %v1068_v50 }
 0x141   : > { %v1204_v53 = vadd.f32 %v1172_v48, %v1074_v49  ;;  %v1477_v54 = vpop.f32.mrb[14].mxu1 }
 0x142   : > { %v1154_v7 = vadd.f32 %v1477_v54, %v1843_v9  ;;  %v1203_v55 = vadd.f32 %v1171_v51, %v1069_v52  ;;  %v1148_v56 = vpop.f32.mrb[15].mxu1 }
 0x143   : > { %1237 = vst.msk [vmem:[%s1852_s23 + $0x78] sm:$0xff] %vm1221_vm0, %v1204_v53  ;;  %v1149_v58 = vadd.f32 %v1843_v9, %v1148_v56 }
 0x144   : > { %v1220_v59 = vadd.f32 %v1188_v8, %v1154_v7  ;;  %1236 = vst.msk [vmem:[%s1852_s23 + $0x70] sm:$0xff] %vm1221_vm0, %v1203_v55 }
 0x145   : > { %v1219_v60 = vadd.f32 %v1187_v57, %v1149_v58 }
 0x146   : > { %1253 = vst.msk [vmem:[%s1852_s23 + $0xf8] sm:$0xff] %vm1221_vm0, %v1220_v59 }
 0x147   : > { %1252 = vst.msk [vmem:[%s1852_s23 + $0xf0] sm:$0xff] %vm1221_vm0, %v1219_v60 }
 0x148 PF: > { %s19_s30 = sadd.s32 1, %s1504_s30  }
 0x149   : > { %p16_p4 = scmp.ge.s32.totalorder %s19_s30, 4  }
 0x14b   :  { %18 = sbr.rel (!%p16_p4) target bundleno = 1 (0x1), region = 92 }

</bundles_post_ra>
